<compile_context>
chip_gen: v6e
topology: v6e:2x2x1
jax: 0.10.0
libtpu: 0.0.40
codegen_flags: <defaults>
</compile_context>

<pallas_src>
import jax
import jax.numpy as jnp
from jax import lax
from jax.experimental import pallas as pl
from jax.experimental.pallas import tpu as pltpu


def ctrgc_kernel(x_ref, pool_ref, w1_ref, b1_ref, w2_ref, b2_ref,
                 w3_ref, b3_ref, w4_ref, b4_ref, a_ref, o_ref):
    # x_ref   : (Cin, T*V)   one batch element, lane-dense
    # pool_ref: (T*V, V)     mean-over-T projection matrix
    # w1/w2   : (R, Cin)     1x1 conv weights, b1/b2: (R, 1)
    # w3      : (Cout, Cin)  b3: (Cout, 1)
    # w4      : (Cout, R)    alpha pre-folded, b4: (Cout, 1) alpha pre-folded
    # a_ref   : (1, V*V)     adjacency A flattened over (u, v) (zeros if None)
    # o_ref   : (Cout, T*V)  out[c, t*V + u]
    cin, tv = x_ref.shape
    cout = w3_ref.shape[0]
    r = w1_ref.shape[0]
    v = pool_ref.shape[1]
    t = tv // v

    x2d = x_ref[...]                                                   # (Cin, T*V)

    # conv3: single lane-dense MXU matmul.
    z3 = jnp.dot(w3_ref[...], x2d,
                 preferred_element_type=jnp.float32) + b3_ref[...]     # (Cout, T*V)

    # mean over T (conv is linear, so pooling commutes with conv1/conv2).
    xbar = jnp.dot(x2d, pool_ref[...],
                   preferred_element_type=jnp.float32)                 # (Cin, V)

    p1 = jnp.dot(w1_ref[...], xbar,
                 preferred_element_type=jnp.float32) + b1_ref[...]     # (R, V)
    p2 = jnp.dot(w2_ref[...], xbar,
                 preferred_element_type=jnp.float32) + b2_ref[...]     # (R, V)

    # m[r, u, v] = tanh(p1[r, u] - p2[r, v]); flatten (u, v) for the conv4 matmul.
    m = jnp.tanh(p1[:, :, None] - p2[:, None, :])                      # (R, V, V)
    m2 = m.reshape(r, v * v)                                           # (R, V*V)

    # conv4 (*alpha folded) + A: lane-dense MXU matmul + one VPU add.
    x4 = jnp.dot(w4_ref[...], m2,
                 preferred_element_type=jnp.float32) + b4_ref[...]     # (Cout, V*V)
    x4 = x4 + a_ref[...]

    # out[c, t, u] = sum_v z3[c, t, v] * x4[c, u, v]
    # -> single batched dot_general over channel (no per-channel Python loop).
    z3_3 = z3.reshape(cout, t, v)
    x4_3 = x4.reshape(cout, v, v)
    out = lax.dot_general(z3_3, x4_3,
                          (((2,), (2,)), ((0,), (0,))),
                          preferred_element_type=jnp.float32)          # (Cout, T, V)

    # lane-dense store: last dim is T*V = 256.
    o_ref[...] = out.reshape(cout, t * v)


def ctrgc_forward(x, w1, b1, w2, b2, w3, b3, w4, b4, A=None, alpha=1.0):
    """x: (N, Cin, T, V) float32. Returns (N, Cout, T, V) float32."""
    n, cin, t, v = x.shape
    r = w1.shape[0]
    cout = w3.shape[0]
    tv = t * v

    x2 = x.reshape(n, cin, tv).astype(jnp.float32)
    # pool[t*V + vv, vv'] = (vv == vv') / T  => x2 @ pool == mean over T.
    pool = jnp.tile(jnp.eye(v, dtype=jnp.float32) / t, (t, 1))          # (T*V, V)

    w4a = (alpha * w4).astype(jnp.float32)
    b4a = (alpha * b4).astype(jnp.float32).reshape(cout, 1)
    a_flat = (A if A is not None
              else jnp.zeros((v, v), jnp.float32)).astype(jnp.float32).reshape(1, v * v)

    out2 = pl.pallas_call(
        ctrgc_kernel,
        out_shape=jax.ShapeDtypeStruct((n, cout, tv), jnp.float32),
        grid=(n,),
        in_specs=[
            pl.BlockSpec((None, cin, tv), lambda i: (i, 0, 0)),   # x (lane-dense)
            pl.BlockSpec((tv, v), lambda i: (0, 0)),              # pooling matrix
            pl.BlockSpec((r, cin), lambda i: (0, 0)),             # conv1 weight
            pl.BlockSpec((r, 1), lambda i: (0, 0)),               # conv1 bias
            pl.BlockSpec((r, cin), lambda i: (0, 0)),             # conv2 weight
            pl.BlockSpec((r, 1), lambda i: (0, 0)),               # conv2 bias
            pl.BlockSpec((cout, cin), lambda i: (0, 0)),          # conv3 weight
            pl.BlockSpec((cout, 1), lambda i: (0, 0)),            # conv3 bias
            pl.BlockSpec((cout, r), lambda i: (0, 0)),            # conv4 weight (*alpha)
            pl.BlockSpec((cout, 1), lambda i: (0, 0)),            # conv4 bias (*alpha)
            pl.BlockSpec((1, v * v), lambda i: (0, 0)),           # A flattened
        ],
        out_specs=pl.BlockSpec((None, cout, tv), lambda i: (i, 0, 0)),
        compiler_params=pltpu.CompilerParams(
            dimension_semantics=("parallel",)),
    )(x2, pool, w1, b1.reshape(r, 1), w2, b2.reshape(r, 1),
      w3, b3.reshape(cout, 1), w4a, b4a, a_flat)

    # out2[n, c, t*V + u]  ->  (N, Cout, T, V)   (free wrapper-side reshape)
    return out2.reshape(n, cout, t, v)


def ref_forward(x, w1, b1, w2, b2, w3, b3, w4, b4, A, alpha):
    """Pure-JAX reference mirroring the PyTorch CTRGC forward."""
    def conv1x1(xx, w, b):
        return jnp.einsum('nctv,oc->notv', xx, w) + b.reshape(1, -1, 1, 1)

    x1 = conv1x1(x, w1, b1).mean(axis=2)                 # (N, R, V)
    x2 = conv1x1(x, w2, b2).mean(axis=2)                 # (N, R, V)
    x3 = conv1x1(x, w3, b3)                              # (N, Cout, T, V)
    m = jnp.tanh(x1[:, :, :, None] - x2[:, :, None, :])  # (N, R, V, V)
    x4 = jnp.einsum('nruv,or->nouv', m, w4) + b4.reshape(1, -1, 1, 1)
    x4 = x4 * alpha + (A[None, None] if A is not None else 0.0)
    return jnp.einsum('ncuv,nctv->nctu', x4, x3)


if __name__ == "__main__":
    # CTRGC(in_channels=64, out_channels=64) -> rel_channels = 64 // 8 = 8.
    # x is (N, Cin, T, V); A is the (V, V) adjacency.
    N, Cin, Cout, T, V = 2, 64, 64, 16, 16
    R = Cin // 8
    alpha = 0.5

    key = jax.random.PRNGKey(0)
    ks = jax.random.split(key, 11)
    x = jax.random.normal(ks[0], (N, Cin, T, V), jnp.float32)
    w1 = jax.random.normal(ks[1], (R, Cin), jnp.float32) / Cin ** 0.5
    b1 = 0.1 * jax.random.normal(ks[2], (R,), jnp.float32)
    w2 = jax.random.normal(ks[3], (R, Cin), jnp.float32) / Cin ** 0.5
    b2 = 0.1 * jax.random.normal(ks[4], (R,), jnp.float32)
    w3 = jax.random.normal(ks[5], (Cout, Cin), jnp.float32) / Cin ** 0.5
    b3 = 0.1 * jax.random.normal(ks[6], (Cout,), jnp.float32)
    w4 = jax.random.normal(ks[7], (Cout, R), jnp.float32) / R ** 0.5
    b4 = 0.1 * jax.random.normal(ks[8], (Cout,), jnp.float32)
    A = 0.5 * jax.random.normal(ks[9], (V, V), jnp.float32)

    out = ctrgc_forward(x, w1, b1, w2, b2, w3, b3, w4, b4, A=A, alpha=alpha)
    out = jax.block_until_ready(out)

    ref = ref_forward(x, w1, b1, w2, b2, w3, b3, w4, b4, A, alpha)
    assert out.shape == (N, Cout, T, V)
    assert bool(jnp.all(jnp.isfinite(out)))
    max_err = float(jnp.max(jnp.abs(out - ref)))
    assert bool(jnp.allclose(out, ref, atol=2e-2, rtol=2e-2)), max_err

    print("KERNEL_OK")
</pallas_src>

<mosaic_0001>
module attributes {stable_mosaic.version = 11 : i64} {
  func.func @ctrgc_kernel(%arg0: i32, %arg1: memref<1x64x256xf32, #tpu.memory_space<vmem>>, %arg2: memref<256x16xf32, #tpu.memory_space<vmem>>, %arg3: memref<8x64xf32, #tpu.memory_space<vmem>>, %arg4: memref<8x1xf32, #tpu.memory_space<vmem>>, %arg5: memref<8x64xf32, #tpu.memory_space<vmem>>, %arg6: memref<8x1xf32, #tpu.memory_space<vmem>>, %arg7: memref<64x64xf32, #tpu.memory_space<vmem>>, %arg8: memref<64x1xf32, #tpu.memory_space<vmem>>, %arg9: memref<64x8xf32, #tpu.memory_space<vmem>>, %arg10: memref<64x1xf32, #tpu.memory_space<vmem>>, %arg11: memref<1x256xf32, #tpu.memory_space<vmem>>, %arg12: memref<1x64x256xf32, #tpu.memory_space<vmem>>) attributes {dimension_semantics = [#tpu.dimension_semantics<parallel>], iteration_bounds = array<i64: 2>, scalar_prefetch = 0 : i64, scratch_operands = 0 : i64, tpu.core_type = #tpu.core_type<tc>, window_params = [{transform_indices = @transform_0, window_bounds = array<i64: 1, 64, 256>}, {pipeline_mode = #tpu.pipeline_mode<synchronous>, transform_indices = @transform_1, window_bounds = array<i64: 256, 16>}, {pipeline_mode = #tpu.pipeline_mode<synchronous>, transform_indices = @transform_2, window_bounds = array<i64: 8, 64>}, {pipeline_mode = #tpu.pipeline_mode<synchronous>, transform_indices = @transform_3, window_bounds = array<i64: 8, 1>}, {pipeline_mode = #tpu.pipeline_mode<synchronous>, transform_indices = @transform_4, window_bounds = array<i64: 8, 64>}, {pipeline_mode = #tpu.pipeline_mode<synchronous>, transform_indices = @transform_5, window_bounds = array<i64: 8, 1>}, {pipeline_mode = #tpu.pipeline_mode<synchronous>, transform_indices = @transform_6, window_bounds = array<i64: 64, 64>}, {pipeline_mode = #tpu.pipeline_mode<synchronous>, transform_indices = @transform_7, window_bounds = array<i64: 64, 1>}, {pipeline_mode = #tpu.pipeline_mode<synchronous>, transform_indices = @transform_8, window_bounds = array<i64: 64, 8>}, {pipeline_mode = #tpu.pipeline_mode<synchronous>, transform_indices = @transform_9, window_bounds = array<i64: 64, 1>}, {pipeline_mode = #tpu.pipeline_mode<synchronous>, transform_indices = @transform_10, window_bounds = array<i64: 1, 256>}, {transform_indices = @transform_11, window_bounds = array<i64: 1, 64, 256>}]} {
    %c0 = arith.constant 0 : index
    %c0_0 = arith.constant 0 : index
    %c0_1 = arith.constant 0 : index
    %0 = vector.load %arg1[%c0, %c0_0, %c0_1] : memref<1x64x256xf32, #tpu.memory_space<vmem>>, vector<1x64x256xf32>
    %1 = vector.shape_cast %0 : vector<1x64x256xf32> to vector<64x256xf32>
    %c0_2 = arith.constant 0 : index
    %c0_3 = arith.constant 0 : index
    %2 = vector.load %arg7[%c0_2, %c0_3] : memref<64x64xf32, #tpu.memory_space<vmem>>, vector<64x64xf32>
    %cst = arith.constant dense<0.000000e+00> : vector<64x256xf32>
    %3 = tpu.matmul %2, %1, %cst {dimension_numbers = #tpu.dot_dimension_numbers<[1], [0], [0], [1], [0, 0, 1, 1], [], []>} : vector<64x64xf32>, vector<64x256xf32>, vector<64x256xf32> -> vector<64x256xf32>
    %c0_4 = arith.constant 0 : index
    %c0_5 = arith.constant 0 : index
    %4 = vector.load %arg8[%c0_4, %c0_5] : memref<64x1xf32, #tpu.memory_space<vmem>>, vector<64x1xf32>
    %5 = vector.broadcast %4 : vector<64x1xf32> to vector<64x256xf32>
    %6 = arith.addf %3, %5 : vector<64x256xf32>
    %c0_6 = arith.constant 0 : index
    %c0_7 = arith.constant 0 : index
    %7 = vector.load %arg2[%c0_6, %c0_7] : memref<256x16xf32, #tpu.memory_space<vmem>>, vector<256x16xf32>
    %cst_8 = arith.constant dense<0.000000e+00> : vector<64x16xf32>
    %8 = tpu.matmul %1, %7, %cst_8 {dimension_numbers = #tpu.dot_dimension_numbers<[1], [0], [0], [1], [0, 0, 1, 1], [], []>} : vector<64x256xf32>, vector<256x16xf32>, vector<64x16xf32> -> vector<64x16xf32>
    %c0_9 = arith.constant 0 : index
    %c0_10 = arith.constant 0 : index
    %9 = vector.load %arg3[%c0_9, %c0_10] : memref<8x64xf32, #tpu.memory_space<vmem>>, vector<8x64xf32>
    %cst_11 = arith.constant dense<0.000000e+00> : vector<8x16xf32>
    %10 = tpu.matmul %9, %8, %cst_11 {dimension_numbers = #tpu.dot_dimension_numbers<[1], [0], [0], [1], [0, 0, 1, 1], [], []>} : vector<8x64xf32>, vector<64x16xf32>, vector<8x16xf32> -> vector<8x16xf32>
    %c0_12 = arith.constant 0 : index
    %c0_13 = arith.constant 0 : index
    %11 = vector.load %arg4[%c0_12, %c0_13] : memref<8x1xf32, #tpu.memory_space<vmem>>, vector<8x1xf32>
    %12 = vector.broadcast %11 : vector<8x1xf32> to vector<8x16xf32>
    %13 = arith.addf %10, %12 : vector<8x16xf32>
    %c0_14 = arith.constant 0 : index
    %c0_15 = arith.constant 0 : index
    %14 = vector.load %arg5[%c0_14, %c0_15] : memref<8x64xf32, #tpu.memory_space<vmem>>, vector<8x64xf32>
    %cst_16 = arith.constant dense<0.000000e+00> : vector<8x16xf32>
    %15 = tpu.matmul %14, %8, %cst_16 {dimension_numbers = #tpu.dot_dimension_numbers<[1], [0], [0], [1], [0, 0, 1, 1], [], []>} : vector<8x64xf32>, vector<64x16xf32>, vector<8x16xf32> -> vector<8x16xf32>
    %c0_17 = arith.constant 0 : index
    %c0_18 = arith.constant 0 : index
    %16 = vector.load %arg6[%c0_17, %c0_18] : memref<8x1xf32, #tpu.memory_space<vmem>>, vector<8x1xf32>
    %17 = vector.broadcast %16 : vector<8x1xf32> to vector<8x16xf32>
    %18 = arith.addf %15, %17 : vector<8x16xf32>
    %19 = vector.shape_cast %13 : vector<8x16xf32> to vector<8x16x1xf32>
    %20 = vector.shape_cast %18 : vector<8x16xf32> to vector<8x1x16xf32>
    %21 = vector.broadcast %19 : vector<8x16x1xf32> to vector<8x16x16xf32>
    %22 = vector.broadcast %20 : vector<8x1x16xf32> to vector<8x16x16xf32>
    %23 = arith.subf %21, %22 : vector<8x16x16xf32>
    %24 = math.tanh %23 : vector<8x16x16xf32>
    %25 = vector.shape_cast %24 : vector<8x16x16xf32> to vector<8x256xf32>
    %c0_19 = arith.constant 0 : index
    %c0_20 = arith.constant 0 : index
    %26 = vector.load %arg9[%c0_19, %c0_20] : memref<64x8xf32, #tpu.memory_space<vmem>>, vector<64x8xf32>
    %cst_21 = arith.constant dense<0.000000e+00> : vector<64x256xf32>
    %27 = tpu.matmul %26, %25, %cst_21 {dimension_numbers = #tpu.dot_dimension_numbers<[1], [0], [0], [1], [0, 0, 1, 1], [], []>} : vector<64x8xf32>, vector<8x256xf32>, vector<64x256xf32> -> vector<64x256xf32>
    %c0_22 = arith.constant 0 : index
    %c0_23 = arith.constant 0 : index
    %28 = vector.load %arg10[%c0_22, %c0_23] : memref<64x1xf32, #tpu.memory_space<vmem>>, vector<64x1xf32>
    %29 = vector.broadcast %28 : vector<64x1xf32> to vector<64x256xf32>
    %30 = arith.addf %27, %29 : vector<64x256xf32>
    %c0_24 = arith.constant 0 : index
    %c0_25 = arith.constant 0 : index
    %31 = vector.load %arg11[%c0_24, %c0_25] : memref<1x256xf32, #tpu.memory_space<vmem>>, vector<1x256xf32>
    %32 = vector.broadcast %31 : vector<1x256xf32> to vector<64x256xf32>
    %33 = arith.addf %30, %32 : vector<64x256xf32>
    %34 = vector.shape_cast %6 : vector<64x256xf32> to vector<64x16x16xf32>
    %35 = vector.shape_cast %33 : vector<64x256xf32> to vector<64x16x16xf32>
    %cst_26 = arith.constant dense<0.000000e+00> : vector<64x16x16xf32>
    %36 = tpu.matmul %34, %35, %cst_26 {dimension_numbers = #tpu.dot_dimension_numbers<[2], [2], [1], [1], [0, 0, 0, 1, 1, 1], [0], [0]>} : vector<64x16x16xf32>, vector<64x16x16xf32>, vector<64x16x16xf32> -> vector<64x16x16xf32>
    %37 = vector.shape_cast %36 : vector<64x16x16xf32> to vector<64x256xf32>
    %c0_27 = arith.constant 0 : index
    %c0_28 = arith.constant 0 : index
    %c0_29 = arith.constant 0 : index
    %38 = vector.load %arg12[%c0_27, %c0_28, %c0_29] : memref<1x64x256xf32, #tpu.memory_space<vmem>>, vector<1x64x256xf32>
    %39 = vector.shape_cast %38 : vector<1x64x256xf32> to vector<64x256xf32>
    %40 = vector.shape_cast %37 : vector<64x256xf32> to vector<1x64x256xf32>
    tpu.vector_store %arg12[%c0_27, %c0_28, %c0_29], %40 {strides = array<i32>} : memref<1x64x256xf32, #tpu.memory_space<vmem>>, vector<1x64x256xf32>,
    return
  }
  func.func @transform_0(%arg0: i32) -> (i32, i32, i32) {
    %c0_i32 = arith.constant 0 : i32
    %c0_i32_0 = arith.constant 0 : i32
    %c0_i32_1 = arith.constant 0 : i32
    return %arg0, %c0_i32, %c0_i32_0 : i32, i32, i32
  }
  func.func @transform_1(%arg0: i32) -> (i32, i32) {
    %c0_i32 = arith.constant 0 : i32
    %c0_i32_0 = arith.constant 0 : i32
    %c0_i32_1 = arith.constant 0 : i32
    return %c0_i32, %c0_i32_0 : i32, i32
  }
  func.func @transform_2(%arg0: i32) -> (i32, i32) {
    %c0_i32 = arith.constant 0 : i32
    %c0_i32_0 = arith.constant 0 : i32
    %c0_i32_1 = arith.constant 0 : i32
    return %c0_i32, %c0_i32_0 : i32, i32
  }
  func.func @transform_3(%arg0: i32) -> (i32, i32) {
    %c0_i32 = arith.constant 0 : i32
    %c0_i32_0 = arith.constant 0 : i32
    %c0_i32_1 = arith.constant 0 : i32
    return %c0_i32, %c0_i32_0 : i32, i32
  }
  func.func @transform_4(%arg0: i32) -> (i32, i32) {
    %c0_i32 = arith.constant 0 : i32
    %c0_i32_0 = arith.constant 0 : i32
    %c0_i32_1 = arith.constant 0 : i32
    return %c0_i32, %c0_i32_0 : i32, i32
  }
  func.func @transform_5(%arg0: i32) -> (i32, i32) {
    %c0_i32 = arith.constant 0 : i32
    %c0_i32_0 = arith.constant 0 : i32
    %c0_i32_1 = arith.constant 0 : i32
    return %c0_i32, %c0_i32_0 : i32, i32
  }
  func.func @transform_6(%arg0: i32) -> (i32, i32) {
    %c0_i32 = arith.constant 0 : i32
    %c0_i32_0 = arith.constant 0 : i32
    %c0_i32_1 = arith.constant 0 : i32
    return %c0_i32, %c0_i32_0 : i32, i32
  }
  func.func @transform_7(%arg0: i32) -> (i32, i32) {
    %c0_i32 = arith.constant 0 : i32
    %c0_i32_0 = arith.constant 0 : i32
    %c0_i32_1 = arith.constant 0 : i32
    return %c0_i32, %c0_i32_0 : i32, i32
  }
  func.func @transform_8(%arg0: i32) -> (i32, i32) {
    %c0_i32 = arith.constant 0 : i32
    %c0_i32_0 = arith.constant 0 : i32
    %c0_i32_1 = arith.constant 0 : i32
    return %c0_i32, %c0_i32_0 : i32, i32
  }
  func.func @transform_9(%arg0: i32) -> (i32, i32) {
    %c0_i32 = arith.constant 0 : i32
    %c0_i32_0 = arith.constant 0 : i32
    %c0_i32_1 = arith.constant 0 : i32
    return %c0_i32, %c0_i32_0 : i32, i32
  }
  func.func @transform_10(%arg0: i32) -> (i32, i32) {
    %c0_i32 = arith.constant 0 : i32
    %c0_i32_0 = arith.constant 0 : i32
    %c0_i32_1 = arith.constant 0 : i32
    return %c0_i32, %c0_i32_0 : i32, i32
  }
  func.func @transform_11(%arg0: i32) -> (i32, i32, i32) {
    %c0_i32 = arith.constant 0 : i32
    %c0_i32_0 = arith.constant 0 : i32
    %c0_i32_1 = arith.constant 0 : i32
    return %arg0, %c0_i32, %c0_i32_0 : i32, i32, i32
  }
}

</mosaic_0001>

<bundles_post_ra>
// kernel: tpu_custom_call.1
= control target key start
LH: loop header
LB: loop body
LE: loop exit
PB: predicated region body
PF: predicated region fallthrough
CT: control target
= control target key end

     0   :  { %16 = vsyncpa [#allocation3], 0  ;;  %s22624_s0 = inlined_call_operand.vmem [shape: f32[2,64,256], index: 0, kind: input, shape index: {}]   ;;  %s22625_s1 = inlined_call_operand.vmem [shape: f32[256,16], index: 1, kind: input, shape index: {}]   ;;  %s22626_s2 = inlined_call_operand.vmem [shape: f32[8,64], index: 2, kind: input, shape index: {}]   ;;  %s22627_s3 = inlined_call_operand.vmem [shape: f32[8,1], index: 3, kind: input, shape index: {}]   ;;  %s22628_s4 = inlined_call_operand.vmem [shape: f32[8,64], index: 4, kind: input, shape index: {}]   ;;  %s22629_s5 = inlined_call_operand.vmem [shape: f32[8,1], index: 5, kind: input, shape index: {}]   ;;  %s22630_s6 = inlined_call_operand.vmem [shape: f32[64,64], index: 6, kind: input, shape index: {}]   ;;  %s22631_s7 = inlined_call_operand.vmem [shape: f32[64,1], index: 7, kind: input, shape index: {}]   ;;  %s22632_s8 = inlined_call_operand.vmem [shape: f32[64,8], index: 8, kind: input, shape index: {}]   ;;  %s22633_s9 = inlined_call_operand.vmem [shape: f32[64,1], index: 9, kind: input, shape index: {}]   ;;  %s22634_s10 = inlined_call_operand.vmem [shape: f32[1,256], index: 10, kind: input, shape index: {}]   ;;  %s22635_s11 = inlined_call_operand.hbm [shape: f32[2,64,256], index: 11, kind: output, shape index: {}]  }
   0x1   :  { %18 = vsyncpa [#allocation3 + $0x1], 0  ;;  %s16454_s17 = smov 0   ;;  %s16456_s18 = smov 0  }
   0x2   :  { %s16458_s19 = smov 0   ;;  %s16460_s20 = smov 0  }
   0x3 LB: > { %22939 = sst [smem:[#allocation5_spill]] %s16373_s19  ;;  %s16475_s21 = sadd.s32 4294967295, %s16377_s20   ;;  %s16377_s20 = sphi %s16460_s20, %s23473_s20   ;;  %s16373_s19 = sphi %s16458_s19, %s23470_s19   ;;  %s16369_s18 = sphi %s16456_s18, %s23472_s18   ;;  %s16365_s17 = sphi %s16454_s17, %s23471_s17  }
   0x4   : > { %s15124_s22 = sadd.s32 4294967294, %s16377_s20   ;;  %s16479_s23 = sadd.s32 1, %s16377_s20  }
   0x5   : > { %s267_s24 = sadd.s32 1, %s16373_s19  ;;  %s264_s25 = ssub.s32 %s16377_s20, %s16479_s23 }
   0x6   : > { %p277_p0 = scmp.ne.s32.totalorder %s16373_s19, %s16369_s18  ;;  %p265_p1 = scmp.eq.s32.totalorder %s264_s25, 0 }
   0x7   : > { %p278_p2 = scmp.eq.s32.totalorder %s16475_s21, 1  ;;  %p283_p3 = scmp.ne.s32.totalorder %s16369_s18, %s16365_s17 }
   0x8   : > { %p284_p4 = scmp.eq.s32.totalorder %s15124_s22, 1  ;;  %p15127_p7 = scmp.ge.s32.totalorder %s16377_s20, 1 }
   0x9   : > { %s16490_s26 = scalar_select %p265_p1, %s16373_s19, %s267_s24  }
   0xa   : > { %p16492_p5 = por %p278_p2, %p277_p0  ;;  %p16496_p6 = por %p284_p4, %p283_p3 }
   0xb   : > { %22940 = sst [smem:[#allocation6_spill]] %s16490_s26  ;;  %p340_p8 = scmp.lt.s32.totalorder %s16377_s20, 3 }
   0xd   : > { %p341_p9 = pnand %p15127_p7, %p340_p8 }
   0xf   : > { %344 = sbr.rel (%p341_p9) target bundleno = 1869 (0x74d), region = 64 }
  0x14   : > { %v626_v0 = vld [vmem:[%s22625_s1 + $0xf8] sm:$0xff]  ;;  %v625_v2 = vld [vmem:[%s22625_s1 + $0xf0] sm:$0xff]  ;;  %p380_p10 = scmp.lt.s32.totalorder %s16475_s21, 1  ;;  %v624_v4 = vld [vmem:[%s22625_s1 + $0xe8] sm:$0xff]  ;;  %v16379_v48 = vmov 0.0   ;;  %vm457_vm0 = vcmask 523264  }
  0x15   : > { %v610_v1 = vld [vmem:[%s22625_s1 + $0x78] sm:$0xff]  ;;  %15412 = vmatprep.subr.mxu1 %v626_v0  ;;  %v609_v3 = vld [vmem:[%s22625_s1 + $0x70] sm:$0xff]  ;;  %v608_v5 = vld [vmem:[%s22625_s1 + $0x68] sm:$0xff]  ;;  %546 = vmatprep.mubr.f32.mxu0 %v16379_v48  ;;  %vm16380_vm1 = vmmov 0   ;;  %v16381_v58 = vmov 0   ;;  %s22639_s14 = smov 48  }
  0x16   : > { %15413 = vmatpush3.msra.mxu1 %v610_v1  ;;  %s381_s29 = scalar_select %p380_p10, %s16475_s21, 1  ;;  %v623_v6 = vld [vmem:[%s22625_s1 + $0xe0] sm:$0xff]  ;;  %v622_v8 = vld [vmem:[%s22625_s1 + $0xd8] sm:$0xff]  ;;  %v621_v10 = vld [vmem:[%s22625_s1 + $0xd0] sm:$0xff]  ;;  %16283 = vset.pattern.permute.xlu0 %v16381_v58  ;;  %vm1430_vm2 = vcmask 130048   ;;  %vm1432_vm3 = vcmask 261120  }
  0x17   : > { %15414 = vmatprep.subr.mxu1 %v625_v2  ;;  %v607_v7 = vld [vmem:[%s22625_s1 + $0x60] sm:$0xff]  ;;  %v606_v9 = vld [vmem:[%s22625_s1 + $0x58] sm:$0xff]  ;;  %v605_v11 = vld [vmem:[%s22625_s1 + $0x50] sm:$0xff]  ;;  %16284 = vset.pattern.permute.xlu1 %v16381_v58  ;;  %s22643_s16 = smov 64   ;;  %s22645_s22 = smov 80   ;;  %vm1434_vm4 = vcmask 392192  }
  0x18   : > { %15415 = vmatpush3.msra.mxu1 %v609_v3  ;;  %s15410_s15 = sshll.u32 %s381_s29, 7  ;;  %v620_v12 = vld [vmem:[%s22625_s1 + $0xc8] sm:$0xff]  ;;  %v619_v15 = vld [vmem:[%s22625_s1 + $0xc0] sm:$0xff]  ;;  %v618_v17 = vld [vmem:[%s22625_s1 + $0xb8] sm:$0xff]  ;;  %s22641_s29 = smov 32   ;;  %vm1437_vm5 = vcmask 654336  }
  0x19   : > { %15416 = vmatprep.subr.mxu1 %v624_v4  ;;  %s16537_s13 = scalar_lea.vmem %s22624_s0, %s15410_s15  ;;  %v604_v14 = vld [vmem:[%s22625_s1 + $0x48] sm:$0xff]  ;;  %v603_v16 = vld [vmem:[%s22625_s1 + $0x40] sm:$0xff]  ;;  %v602_v18 = vld [vmem:[%s22625_s1 + $0x38] sm:$0xff]  ;;  %s16390_s26 = smov 96   ;;  %vm1439_vm6 = vcmask 785408   ;;  %vm1441_vm7 = vcmask 916480  }
  0x1a   : > { %15417 = vmatpush3.msra.mxu1 %v608_v5  ;;  %v16549_v13 = vld [vmem:[%s16537_s13 + $0x8] sm:$0xff]  ;;  %v16568_v19 = vld [vmem:[%s16537_s13 + $0x78] sm:$0xff]  ;;  %v617_v20 = vld [vmem:[%s22625_s1 + $0xb0] sm:$0xff]  ;;  %s16391_s24 = smov 112   ;;  %vm1506_vm8 = vcmask 64512   ;;  %s22945_s15 = smov 80  }
  0x1b   : > { %15418 = vmatprep.subr.mxu1 %v623_v6  ;;  %691 = vmatprep.mubr.f32.mxu1 %v16549_v13  ;;  %v16574_v21 = vld [vmem:[%s16537_s13 + $0x70] sm:$0xff]  ;;  %v16581_v23 = vld [vmem:[%s16537_s13 + $0x68] sm:$0xff]  ;;  %v397_v25 = vld [vmem:[%s16537_s13 + $0x60] sm:$0xff]  ;;  %s22946_s25 = smov 64   ;;  %s22949_s30 = smov 48  }
  0x1c   : > { %15419 = vmatpush3.msra.mxu1 %v607_v7  ;;  %498 = vmatprep.subr.mxu0 %v16568_v19  ;;  %v601_v22 = vld [vmem:[%s22625_s1 + $0x30] sm:$0xff]  ;;  %v616_v24 = vld [vmem:[%s22625_s1 + $0xa8] sm:$0xff]  ;;  %v396_v27 = vld [vmem:[%s16537_s13 + $0x58] sm:$0xff]  ;;  %s16392_s12 = smov [#allocation2]  }
  0x1d   : > { %15420 = vmatprep.subr.mxu1 %v622_v8  ;;  %499 = vmatpush1.msra.mxu0 %v16574_v21  ;;  %v600_v26 = vld [vmem:[%s22625_s1 + $0x28] sm:$0xff]  ;;  %v615_v28 = vld [vmem:[%s22625_s1 + $0xa0] sm:$0xff]  ;;  %v395_v29 = vld [vmem:[%s16537_s13 + $0x50] sm:$0xff] }
  0x1e   : > { %15421 = vmatpush3.msra.mxu1 %v606_v9  ;;  %500 = vmatprep.subr.mxu0 %v16581_v23  ;;  %v599_v30 = vld [vmem:[%s22625_s1 + $0x20] sm:$0xff]  ;;  %v394_v31 = vld [vmem:[%s16537_s13 + $0x48] sm:$0xff]  ;;  %v614_v32 = vld [vmem:[%s22625_s1 + $0x98] sm:$0xff] }
  0x1f   : > { %15422 = vmatprep.subr.mxu1 %v621_v10  ;;  %501 = vmatpush1.msra.mxu0 %v397_v25  ;;  %v393_v33 = vld [vmem:[%s16537_s13 + $0x40] sm:$0xff]  ;;  %v598_v34 = vld [vmem:[%s22625_s1 + $0x18] sm:$0xff]  ;;  %v613_v36 = vld [vmem:[%s22625_s1 + $0x90] sm:$0xff] }
  0x20   : > { %15423 = vmatpush3.msra.mxu1 %v605_v11  ;;  %502 = vmatprep.subr.mxu0 %v396_v27  ;;  %v392_v35 = vld [vmem:[%s16537_s13 + $0x38] sm:$0xff]  ;;  %v391_v37 = vld [vmem:[%s16537_s13 + $0x30] sm:$0xff]  ;;  %v390_v39 = vld [vmem:[%s16537_s13 + $0x28] sm:$0xff] }
  0x21   : > { %15424 = vmatprep.subr.mxu1 %v620_v12  ;;  %503 = vmatpush1.msra.mxu0 %v395_v29  ;;  %v597_v38 = vld [vmem:[%s22625_s1 + $0x10] sm:$0xff]  ;;  %v612_v40 = vld [vmem:[%s22625_s1 + $0x88] sm:$0xff]  ;;  %v389_v41 = vld [vmem:[%s16537_s13 + $0x20] sm:$0xff] }
  0x22   : > { %15425 = vmatpush3.msra.mxu1 %v604_v14  ;;  %504 = vmatprep.subr.mxu0 %v394_v31  ;;  %v596_v42 = vld [vmem:[%s22625_s1 + $0x8] sm:$0xff]  ;;  %v388_v43 = vld [vmem:[%s16537_s13 + $0x18] sm:$0xff]  ;;  %v611_v44 = vld [vmem:[%s22625_s1 + $0x80] sm:$0xff] }
  0x23   : > { %15426 = vmatprep.subr.mxu1 %v619_v15  ;;  %505 = vmatpush1.msra.mxu0 %v393_v33  ;;  %v387_v45 = vld [vmem:[%s16537_s13 + $0x10] sm:$0xff]  ;;  %v595_v46 = vld [vmem:[%s22625_s1] sm:$0xff]  ;;  %v402_v50 = vld [vmem:[%s22630_s6 + $0x8] sm:$0xff] }
  0x24   : > { %15427 = vmatpush3.msra.mxu1 %v603_v16  ;;  %506 = vmatprep.subr.mxu0 %v392_v35  ;;  %v385_v47 = vld [vmem:[%s16537_s13] sm:$0xff]  ;;  %v403_v51 = vld [vmem:[%s22630_s6 + $0x10] sm:$0xff]  ;;  %v404_v52 = vld [vmem:[%s22630_s6 + $0x18] sm:$0xff]  ;;  %s22637_s13 = smov 16  }
  0x25   : > { %15428 = vmatprep.subr.mxu1 %v618_v17  ;;  %507 = vmatpush1.msra.mxu0 %v391_v37  ;;  %v401_v49 = vld [vmem:[%s22630_s6] sm:$0xff]  ;;  %v406_v54 = vld [vmem:[%s22630_s6 + $0x28] sm:$0xff]  ;;  %v407_v55 = vld [vmem:[%s22630_s6 + $0x30] sm:$0xff] }
  0x26   : > { %15429 = vmatpush3.msra.mxu1 %v602_v18  ;;  %508 = vmatprep.subr.mxu0 %v390_v39  ;;  %v405_v53 = vld [vmem:[%s22630_s6 + $0x20] sm:$0xff]  ;;  %v408_v56 = vld [vmem:[%s22630_s6 + $0x38] sm:$0xff] }
  0x27   : > { %15430 = vmatprep.subr.mxu1 %v617_v20  ;;  %509 = vmatpush1.msra.mxu0 %v389_v41  ;;  %v733_v57 = vld [vmem:[%s22627_s3] sm:$0xff] }
  0x28   : > { %15431 = vmatpush3.msra.mxu1 %v601_v22  ;;  %510 = vmatprep.subr.mxu0 %v388_v43  ;;  %v813_v59 = vld [vmem:[%s22629_s5] sm:$0xff] }
  0x29   : > { %15432 = vmatprep.subr.mxu1 %v616_v24  ;;  %511 = vmatpush1.msra.mxu0 %v387_v45  ;;  %v732_v20 = vld [vmem:[%s22626_s2] sm:$0xff] }
  0x2a   : > { %15433 = vmatpush3.msra.mxu1 %v600_v26  ;;  %512 = vmatprep.subr.mxu0 %v16549_v13 }
  0x2b   : > { %15434 = vmatprep.subr.mxu1 %v615_v28  ;;  %513 = vmatpush1.msra.mxu0 %v385_v47 }
  0x2c   : > { %15435 = vmatpush3.msra.mxu1 %v599_v30  ;;  %15131 = vmatmul.mubr.msk.f32.vlgmr.msra.gmra.mxu0 %vm457_vm0, %v401_v49 }
  0x2d   : > { %15436 = vmatprep.subr.mxu1 %v614_v32  ;;  %15761 = vmatprep.subr.mxu0 %v16379_v48 }
  0x2e   : > { %15437 = vmatpush3.msra.mxu1 %v598_v34  ;;  %552 = vmatprep.mubr.f32.mxu0 %v16379_v48 }
  0x2f   : > { %15438 = vmatprep.subr.mxu1 %v613_v36  ;;  %736 = vperm.xlu0 %16283, %v733_v57   ;;  %v892_v36 = vlaneseq }
  0x30   : > { %15439 = vmatpush3.msra.mxu1 %v597_v38  ;;  %15132 = vmatmul.mubr.msk.f32.gmra.mxu0 %vm457_vm0, %v402_v50 }
  0x31   : > { %15440 = vmatprep.subr.mxu1 %v612_v40  ;;  %558 = vmatprep.mubr.f32.mxu0 %v16379_v48 }
  0x32   : > { %15441 = vmatpush3.msra.mxu1 %v596_v42 }
  0x33   : > { %15442 = vmatprep.subr.mxu1 %v611_v44  ;;  %816 = vperm.xlu0 %16283, %v813_v59  }
  0x34   : > { %15443 = vmatpush3.msra.mxu1 %v595_v46  ;;  %15133 = vmatmul.mubr.msk.f32.gmra.mxu0 %vm457_vm0, %v403_v51 }
  0x35   : > { %692 = vmatmul.mubr.f32.vlgmr.msra.gmra.mxu1 %v385_v47  ;;  %15742 = vmatprep.subr.mxu1 %v16379_v48 }
  0x36   : > { %696 = vmatprep.mubr.f32.mxu1 %v388_v43  ;;  %564 = vmatprep.mubr.f32.mxu0 %v16379_v48 }
  0x38   : > { %15134 = vmatmul.mubr.msk.f32.gmra.mxu0 %vm457_vm0, %v404_v52 }
  0x39   : > { %697 = vmatmul.mubr.f32.gmra.mxu1 %v387_v45  ;;  %570 = vmatprep.mubr.f32.mxu0 %v16379_v48 }
  0x3a   : > { %701 = vmatprep.mubr.f32.mxu1 %v390_v39  ;;  %v16382_v39 = vmov 1966171168  }
  0x3b   : > { %v983_v40 = vunpack.c.l.s4 %v16382_v39 }
  0x3c   : > { %15135 = vmatmul.mubr.msk.f32.gmra.mxu0 %vm457_vm0, %v405_v53 }
  0x3d   : > { %702 = vmatmul.mubr.f32.gmra.mxu1 %v389_v41  ;;  %576 = vmatprep.mubr.f32.mxu0 %v16379_v48  ;;  %v16741_v41 = vshrl.u32 %v892_v36, 7  ;;  %v984_v43 = vunpack.c.0.s8 %v983_v40 }
  0x3e   : > { %706 = vmatprep.mubr.f32.mxu1 %v392_v35 }
  0x3f   : > { %v916_v45 = vsub.s32 2, %v16741_v41  ;;  %v16747_v46 = vsub.s32 0, %v16741_v41  ;;  %v987_v50 = vsub.s32 %v984_v43, %v16741_v41  ;;  %v938_v57 = vsub.s32 4, %v16741_v41 }
  0x40   : > { %15136 = vmatmul.mubr.msk.f32.gmra.mxu0 %vm457_vm0, %v406_v54  ;;  %v22647_v58 = vsub.s32 1, %v16741_v41 }
  0x41   : > { %707 = vmatmul.mubr.f32.gmra.mxu1 %v391_v37  ;;  %582 = vmatprep.mubr.f32.mxu0 %v16379_v48 }
  0x42   : > { %711 = vmatprep.mubr.f32.mxu1 %v394_v31 }
  0x44   : > { %15137 = vmatmul.mubr.msk.f32.gmra.mxu0 %vm457_vm0, %v407_v55 }
  0x45   : > { %712 = vmatmul.mubr.f32.gmra.mxu1 %v393_v33  ;;  %588 = vmatprep.mubr.f32.mxu0 %v16379_v48 }
  0x46   : > { %716 = vmatprep.mubr.f32.mxu1 %v396_v27 }
  0x48   : > { %15138 = vmatmul.mubr.msk.f32.gmra.mxu0 %vm457_vm0, %v408_v56 }
  0x49   : > { %717 = vmatmul.mubr.f32.gmra.mxu1 %v395_v29  ;;  %15777 = vmatprep.mubr.msk.f32.mxu0 %vm16380_vm1, %v16379_v48 }
  0x4a   : > { %721 = vmatprep.mubr.f32.mxu1 %v16581_v23 }
  0x4d   : > { %722 = vmatmul.mubr.f32.gmra.mxu1 %v397_v25 }
  0x4e   : > { %726 = vmatprep.mubr.f32.mxu1 %v16568_v19 }
  0x51   : > { %727 = vmatmul.mubr.f32.gmra.mxu1 %v16574_v21  ;;  %v812_v21 = vld [vmem:[%s22628_s4] sm:$0xff] }
  0x52   : > { %15758 = vmatprep.mubr.msk.f32.mxu1 %vm16380_vm1, %v16379_v48 }
  0xaa   : > { %v737_v37 = vpop.permute.xlu0 %736 }
  0xae   : > { %v817_v44 = vpop.permute.xlu0 %816 }
  0xec   : > { %v16711_v22 = vpop.f32.mrf.mxu0 }
  0xee   : > { %v16713_v23 = vpop.f32.mrf.mxu0 }
  0xf0   : > { %v16715_v24 = vpop.f32.mrf.mxu0 }
  0xf2   : > { %v16717_v25 = vpop.f32.mrf.mxu0 }
  0xf4   : > { %v16719_v26 = vpop.f32.mrf.mxu0 }
  0xf5   : > { %v15444_v60 = vpop.f32.mrf.mxu1 }
  0xf6   : > { %v16721_v27 = vpop.f32.mrf.mxu0 }
  0xf7   : > { %v15445_v61 = vpop.f32.mrf.mxu1 }
  0xf8   : > { %v15446_v19 = vadd.f32 %v15445_v61, %v15444_v60  ;;  %v16723_v28 = vpop.f32.mrf.mxu0 }
  0xf9   : > { %v15447_v62 = vpop.f32.mrf.mxu1 }
  0xfa   : > { %v16725_v29 = vpop.f32.mrf.mxu0 }
  0xfb   : > { %v15448_v63 = vpop.f32.mrf.mxu1 }
  0xfc   : > { %v15449_v18 = vadd.f32 %v15448_v63, %v15447_v62  ;;  %v16727_v30 = vpop.f32.mrf.mxu0 }
  0xfd   : > { %v15450_v0 = vpop.f32.mrf.mxu1 }
  0xfe   : > { %v16729_v31 = vpop.f32.mrf.mxu0 }
  0xff   : > { %v15451_v1 = vpop.f32.mrf.mxu1 }
 0x100   : > { %v15452_v17 = vadd.f32 %v15451_v1, %v15450_v0  ;;  %v16731_v32 = vpop.f32.mrf.mxu0 }
 0x101   : > { %v15453_v2 = vpop.f32.mrf.mxu1 }
 0x102   : > { %v16733_v33 = vpop.f32.mrf.mxu0 }
 0x103   : > { %v15454_v3 = vpop.f32.mrf.mxu1 }
 0x104   : > { %v15455_v16 = vadd.f32 %v15454_v3, %v15453_v2  ;;  %v16735_v34 = vpop.f32.mrf.mxu0  ;;  %v960_v2 = vsub.s32 6, %v16741_v41  ;;  %v927_v3 = vsub.s32 3, %v16741_v41 }
 0x105   : > { %v15456_v4 = vpop.f32.mrf.mxu1 }
 0x106   : > { %v16737_v35 = vpop.f32.mrf.mxu0 }
 0x107   : > { %v15457_v5 = vpop.f32.mrf.mxu1 }
 0x108   : > { %v15458_v15 = vadd.f32 %v15457_v5, %v15456_v4  ;;  %v16739_v38 = vpop.f32.mrf.mxu0 }
 0x109   : > { %v15459_v6 = vpop.f32.mrf.mxu1 }
 0x10a   : > { %v16743_v42 = vpop.f32.mrf.mxu0 }
 0x10b   : > { %v15460_v7 = vpop.f32.mrf.mxu1 }
 0x10c   : > { %v15461_v14 = vadd.f32 %v15460_v7, %v15459_v6 }
 0x10d   : > { %v15462_v8 = vpop.f32.mrf.mxu1 }
 0x10f   : > { %v15463_v9 = vpop.f32.mrf.mxu1 }
 0x110   : > { %v15464_v13 = vadd.f32 %v15463_v9, %v15462_v8 }
 0x111   : > { %v15465_v10 = vpop.f32.mrf.mxu1 }
 0x113   : > { %v15466_v11 = vpop.f32.mrf.mxu1 }
 0x114   : > { %v15467_v12 = vadd.f32 %v15466_v11, %v15465_v10  ;;  %v949_v10 = vsub.s32 5, %v16741_v41 }
 0x116   : > { %15743 = vmatpush3.msra.mxu1 %v15467_v12  ;;  %15762 = vmatpush3.msra.mxu0 %v15467_v12  ;;  %v971_v12 = vsub.s32 7, %v16741_v41 }
 0x117   : > { %15744 = vmatprep.subr.mxu1 %v16379_v48  ;;  %15763 = vmatprep.subr.mxu0 %v16379_v48 }
 0x118   : > { %15745 = vmatpush3.msra.mxu1 %v15464_v13  ;;  %15764 = vmatpush3.msra.mxu0 %v15464_v13 }
 0x119   : > { %15746 = vmatprep.subr.mxu1 %v16379_v48  ;;  %15765 = vmatprep.subr.mxu0 %v16379_v48 }
 0x11a   : > { %15747 = vmatpush3.msra.mxu1 %v15461_v14  ;;  %15766 = vmatpush3.msra.mxu0 %v15461_v14 }
 0x11b   : > { %15748 = vmatprep.subr.mxu1 %v16379_v48  ;;  %15767 = vmatprep.subr.mxu0 %v16379_v48 }
 0x11c   : > { %15749 = vmatpush3.msra.mxu1 %v15458_v15  ;;  %15768 = vmatpush3.msra.mxu0 %v15458_v15 }
 0x11d   : > { %15750 = vmatprep.subr.mxu1 %v16379_v48  ;;  %15769 = vmatprep.subr.mxu0 %v16379_v48 }
 0x11e   : > { %15751 = vmatpush3.msra.mxu1 %v15455_v16  ;;  %15770 = vmatpush3.msra.mxu0 %v15455_v16 }
 0x11f   : > { %15752 = vmatprep.subr.mxu1 %v16379_v48  ;;  %15771 = vmatprep.subr.mxu0 %v16379_v48 }
 0x120   : > { %15753 = vmatpush3.msra.mxu1 %v15452_v17  ;;  %15772 = vmatpush3.msra.mxu0 %v15452_v17 }
 0x121   : > { %15754 = vmatprep.subr.mxu1 %v16379_v48  ;;  %15773 = vmatprep.subr.mxu0 %v16379_v48 }
 0x122   : > { %15755 = vmatpush3.msra.mxu1 %v15449_v18  ;;  %15774 = vmatpush3.msra.mxu0 %v15449_v18 }
 0x123   : > { %15756 = vmatprep.subr.mxu1 %v16379_v48  ;;  %15775 = vmatprep.subr.mxu0 %v16379_v48 }
 0x124   : > { %15757 = vmatpush3.msra.mxu1 %v15446_v19  ;;  %15776 = vmatpush3.msra.mxu0 %v15446_v19 }
 0x125   : > { %15759 = vmatmul.mubr.msk.f32.vlgmr.msra.gmra.mxu1 %vm457_vm0, %v732_v20  ;;  %15778 = vmatmul.mubr.msk.f32.vlgmr.msra.gmra.mxu0 %vm457_vm0, %v812_v21 }
 0x126   : > { %1595 = vmatprep.mubr.f32.mxu0 %v16379_v48  ;;  %1607 = vmatprep.mubr.f32.mxu1 %v16379_v48 }
 0x1e5   : > { %v808_v47 = vpop.f32.mrf.mxu1  ;;  %v888_v49 = vpop.f32.mrf.mxu0 }
 0x1e6   : > { %v809_v51 = vadd.f32 %v808_v47, %v737_v37  ;;  %v889_v52 = vadd.f32 %v888_v49, %v817_v44 }
 0x1e7   : > { %v15760_v53 = vpop.f32.mrf.mxu1  ;;  %v15779_v54 = vpop.f32.mrf.mxu0 }
 0x1e8   : > { %v917_v55 = vrot.slane %v809_v51, %v916_v45  ;;  %v895_v56 = vrot.slane %v809_v51, %v16747_v46  ;;  %v981_v59 = vcombine.high %v889_v52, %v889_v52  ;;  %v988_v60 = vrot.slane %v889_v52, %v987_v50 }
 0x1e9   : > { %v939_v0 = vrot.slane %v809_v51, %v938_v57  ;;  %v906_v1 = vrot.slane %v809_v51, %v22647_v58  ;;  %v961_v8 = vrot.slane %v809_v51, %v960_v2  ;;  %v928_v9 = vrot.slane %v809_v51, %v927_v3 }
 0x1ea   : > { %923 = vbcast.lane.b32.xlu0 %v917_v55, 264  ;;  %901 = vbcast.lane.b32.xlu1 %v895_v56, 264  ;;  %v995_v61 = vrot.slane %v981_v59, %v987_v50  ;;  %v996_v62 = vcombine.high %v988_v60, %v988_v60  ;;  %v1004_v63 = vrot.slane %v988_v60, %v987_v50  ;;  %v16383_v59 = vmov 1983009808  }
 0x1eb   : > { %v950_v11 = vrot.slane %v809_v51, %v949_v10  ;;  %v972_v13 = vrot.slane %v809_v51, %v971_v12  ;;  %v1105_v60 = vunpack.c.l.s4 %v16383_v59 }
 0x1ec   : > { %v997_v4 = vcombine.high %v995_v61, %v995_v61  ;;  %v1011_v5 = vrot.slane %v995_v61, %v987_v50  ;;  %v1018_v6 = vrot.slane %v996_v62, %v987_v50  ;;  %v1026_v14 = vcombine.high %v1004_v63, %v1004_v63 }
 0x1ed   : > { %v1033_v18 = vrot.slane %v1004_v63, %v16747_v46  ;;  %v1106_v3 = vunpack.c.0.s8 %v1105_v60 }
 0x1ee   : > { %945 = vbcast.lane.b32.xlu0 %v939_v0, 264  ;;  %912 = vbcast.lane.b32.xlu1 %v906_v1, 264  ;;  %v1025_v7 = vrot.slane %v997_v4, %v987_v50  ;;  %v1041_v16 = vrot.slane %v1026_v14, %v16747_v46  ;;  %v1028_v21 = vcombine.high %v1018_v6, %v1018_v6 }
 0x1ef   : > { %v1037_v39 = vrot.slane %v1018_v6, %v16747_v46  ;;  %v1027_v40 = vcombine.high %v1011_v5, %v1011_v5  ;;  %v16765_v52 = vrot.slane %v1011_v5, %v16747_v46 }
 0x1f0   : > { %v1045_v44 = vrot.slane %v1028_v21, %v16747_v46  ;;  %v1029_v51 = vcombine.high %v1025_v7, %v1025_v7 }
 0x1f1   : > { %v1057_v50 = vrot.slane %v1027_v40, %v16747_v46 }
 0x1f2   : > { %967 = vbcast.lane.b32.xlu0 %v961_v8, 264  ;;  %934 = vbcast.lane.b32.xlu1 %v928_v9, 264  ;;  %v1061_v62 = vrot.slane %v1029_v51, %v16747_v46 }
 0x1f6   : > { %897 = vbcast.lane.b32.xlu0 %v895_v56, 256  ;;  %956 = vbcast.lane.b32.xlu1 %v950_v11, 264  ;;  %v1053_v56 = vrot.slane %v1025_v7, %v16747_v46 }
 0x1fa   : > { %919 = vbcast.lane.b32.xlu0 %v917_v55, 256  ;;  %978 = vbcast.lane.b32.xlu1 %v972_v13, 264 }
 0x1fe   : > { %941 = vbcast.lane.b32.xlu0 %v939_v0, 256  ;;  %908 = vbcast.lane.b32.xlu1 %v906_v1, 256 }
 0x202   : > { %963 = vbcast.lane.b32.xlu0 %v961_v8, 256  ;;  %930 = vbcast.lane.b32.xlu1 %v928_v9, 256  ;;  %v16771_v8 = vsub.s32 %v1106_v3, %v16741_v41 }
 0x206   : > { %952 = vbcast.lane.b32.xlu1 %v950_v11, 256 }
 0x20a   : > { %974 = vbcast.lane.b32.xlu1 %v972_v13, 256 }
 0x25c   : > { %v924_v15 = vpop.permute.xlu0 %923  ;;  %v902_v17 = vpop.permute.xlu1 %901 }
 0x25d   : > { %v1075_v19 = vsub.f32 %v924_v15, %v1041_v16  ;;  %v1071_v20 = vsub.f32 %v902_v17, %v1033_v18 }
 0x25f   : > { %16285 = vtanh.f32 %v1075_v19 }
 0x260   : > { %v946_v36 = vpop.permute.xlu0 %945  ;;  %v913_v37 = vpop.permute.xlu1 %912  ;;  %16287 = vtanh.f32 %v1071_v20 }
 0x261   : > { %v1073_v43 = vsub.f32 %v913_v37, %v1037_v39  ;;  %v1079_v57 = vsub.f32 %v946_v36, %v16765_v52  ;;  %v16384_v36 = vmov 1934713408  }
 0x262   : > { %v1169_v37 = vunpack.c.l.s4 %v16384_v36 }
 0x263   : > { %16289 = vtanh.f32 %v1073_v43 }
 0x264   : > { %v968_v45 = vpop.permute.xlu0 %967  ;;  %v935_v47 = vpop.permute.xlu1 %934 }
 0x265   : > { %v1077_v49 = vsub.f32 %v935_v47, %v1045_v44  ;;  %v1083_v53 = vsub.f32 %v968_v45, %v1057_v50 }
 0x267   : > { %16291 = vtanh.f32 %v1077_v49 }
 0x268   : > { %v898_v54 = vpop.permute.xlu0 %897  ;;  %v957_v55 = vpop.permute.xlu1 %956  ;;  %16293 = vtanh.f32 %v1083_v53 }
 0x269   : > { %v1081_v61 = vsub.f32 %v957_v55, %v1053_v56  ;;  %16295 = vtanh.f32 %v1079_v57  ;;  %v1070_v9 = vsub.f32 %v898_v54, %v1033_v18  ;;  %v1170_v57 = vunpack.c.0.s8 %v1169_v37 }
 0x26b   : > { %16297 = vtanh.f32 %v1081_v61 }
 0x26c   : > { %v920_v63 = vpop.permute.xlu0 %919  ;;  %v979_v0 = vpop.permute.xlu1 %978 }
 0x26d   : > { %v1085_v1 = vsub.f32 %v979_v0, %v1061_v62  ;;  %v16286_v2 = vpop.eup %16285  ;;  %v1074_v7 = vsub.f32 %v920_v63, %v1041_v16 }
 0x26e   : > { %v16288_v4 = vpop.eup %16287 }
 0x26f   : > { %16299 = vtanh.f32 %v1085_v1  ;;  %v1238_v10 = vcombine.low %v16288_v4, %v16286_v2  ;;  %v1239_v14 = vcombine.high %v16288_v4, %v16286_v2 }
 0x270   : > { %v942_v5 = vpop.permute.xlu0 %941  ;;  %v909_v6 = vpop.permute.xlu1 %908  ;;  %16301 = vtanh.f32 %v1074_v7 }
 0x271   : > { %v16290_v11 = vpop.eup %16289  ;;  %v1072_v17 = vsub.f32 %v909_v6, %v1037_v39  ;;  %16303 = vtanh.f32 %v1070_v9  ;;  %v1246_v16 = vrot.slane %v1238_v10, %v16771_v8  ;;  %v1253_v45 = vrot.slane %v1239_v14, %v16771_v8 }
 0x272   : > { %v1078_v39 = vsub.f32 %v942_v5, %v16765_v52  ;;  %v16779_v52 = vsub.s32 %v1170_v57, %v16741_v41 }
 0x274   : > { %v964_v12 = vpop.permute.xlu0 %963  ;;  %v931_v13 = vpop.permute.xlu1 %930 }
 0x275   : > { %v16292_v15 = vpop.eup %16291  ;;  %v1076_v19 = vsub.f32 %v931_v13, %v1045_v44  ;;  %v1082_v40 = vsub.f32 %v964_v12, %v1057_v50 }
 0x276   : > { %v1254_v20 = vcombine.low %v16290_v11, %v16292_v15  ;;  %v1255_v21 = vcombine.high %v16290_v11, %v16292_v15  ;;  %v16294_v49 = vpop.eup %16293 }
 0x277   : > { %16305 = vtanh.f32 %v1076_v19  ;;  %v16296_v50 = vpop.eup %16295 }
 0x278   : > { %v953_v43 = vpop.permute.xlu1 %952  ;;  %v1262_v18 = vrot.slane %v1254_v20, %v16771_v8  ;;  %v1269_v47 = vrot.slane %v1255_v21, %v16771_v8  ;;  %16307 = vtanh.f32 %v1072_v17  ;;  %v16298_v59 = vpop.eup %16297  ;;  %v1270_v61 = vcombine.low %v16296_v50, %v16294_v49 }
 0x279   : > { %v1080_v44 = vsub.f32 %v953_v43, %v1053_v56  ;;  %16309 = vtanh.f32 %v1082_v40  ;;  %v1271_v63 = vcombine.high %v16296_v50, %v16294_v49 }
 0x27a   : > { %v1302_v51 = vcombine.low %v1246_v16, %v1262_v18  ;;  %v1303_v53 = vcombine.high %v1246_v16, %v1262_v18  ;;  %v1318_v54 = vcombine.low %v1253_v45, %v1269_v47  ;;  %v1319_v55 = vcombine.high %v1253_v45, %v1269_v47 }
 0x27b   : > { %16311 = vtanh.f32 %v1078_v39  ;;  %v1278_v56 = vrot.slane %v1270_v61, %v16771_v8  ;;  %v1285_v5 = vrot.slane %v1271_v63, %v16771_v8 }
 0x27c   : > { %v975_v60 = vpop.permute.xlu1 %974  ;;  %v16300_v0 = vpop.eup %16299  ;;  %16313 = vtanh.f32 %v1080_v44  ;;  %v16786_v12 = vrot.slane %v1302_v51, %v16779_v52  ;;  %v1317_v13 = vrot.slane %v1303_v53, %v16779_v52  ;;  %v16790_v14 = vrot.slane %v1318_v54, %v16779_v52 }
 0x27d   : > { %v1084_v1 = vsub.f32 %v975_v60, %v1061_v62  ;;  %v1286_v2 = vcombine.low %v16298_v59, %v16300_v0  ;;  %v1287_v3 = vcombine.high %v16298_v59, %v16300_v0  ;;  %v16302_v7 = vpop.eup %16301  ;;  %v16803_v40 = vrot.slane %v1319_v55, %v16779_v52 }
 0x27e   : > { %v16304_v15 = vpop.eup %16303 }
 0x27f   : > { %16315 = vtanh.f32 %v1084_v1  ;;  %v1294_v4 = vrot.slane %v1286_v2, %v16771_v8  ;;  %v1301_v6 = vrot.slane %v1287_v3, %v16771_v8  ;;  %v1102_v37 = vcombine.low %v16304_v15, %v16302_v7 }
 0x280   : > { %v1103_v16 = vcombine.high %v16304_v15, %v16302_v7 }
 0x281   : > { %v1334_v9 = vcombine.low %v1278_v56, %v1294_v4  ;;  %v1335_v10 = vcombine.high %v1278_v56, %v1294_v4  ;;  %v1350_v11 = vcombine.low %v1285_v5, %v1301_v6  ;;  %v1351_v62 = vcombine.high %v1285_v5, %v1301_v6 }
 0x282   : > { %v1110_v57 = vrot.slane %v1102_v37, %v16771_v8  ;;  %v1117_v61 = vrot.slane %v1103_v16, %v16771_v8 }
 0x283   : > { %v16793_v17 = vrot.slane %v1334_v9, %v16779_v52  ;;  %v1349_v19 = vrot.slane %v1335_v10, %v16779_v52  ;;  %v16797_v20 = vrot.slane %v1350_v11, %v16779_v52  ;;  %v16800_v21 = vrot.slane %v1351_v62, %v16779_v52 }
 0x284   : > { %v16306_v36 = vpop.eup %16305 }
 0x285   : > { %v16308_v43 = vpop.eup %16307  ;;  %v1367_v18 = vcombine.high %v16786_v12, %v16793_v17  ;;  %v1368_v45 = vcombine.low %v1317_v13, %v1349_v19  ;;  %v1369_v47 = vcombine.high %v1317_v13, %v1349_v19  ;;  %v1370_v49 = vcombine.low %v16790_v14, %v16797_v20 }
 0x286   : > { %v1371_v39 = vcombine.high %v16790_v14, %v16797_v20  ;;  %v1118_v44 = vcombine.low %v16308_v43, %v16306_v36  ;;  %v1372_v51 = vcombine.low %v16803_v40, %v16800_v21  ;;  %v16310_v53 = vpop.eup %16309  ;;  %v1373_v54 = vcombine.high %v16803_v40, %v16800_v21 }
 0x287   : > { %1403 = vrot.lane.b32.xlu0 %v1367_v18, %s22637_s13  ;;  %v1119_v55 = vcombine.high %v16308_v43, %v16306_v36  ;;  %v1366_v50 = vcombine.low %v16786_v12, %v16793_v17 }
 0x288   : > { %v1126_v59 = vrot.slane %v1118_v44, %v16771_v8  ;;  %v16312_v60 = vpop.eup %16311 }
 0x289   : > { %v1133_v63 = vrot.slane %v1119_v55, %v16771_v8  ;;  %v16314_v0 = vpop.eup %16313  ;;  %v1134_v1 = vcombine.low %v16312_v60, %v16310_v53  ;;  %v1135_v56 = vcombine.high %v16312_v60, %v16310_v53 }
 0x28a   : > { %v1166_v2 = vcombine.low %v1110_v57, %v1126_v59  ;;  %v1167_v3 = vcombine.high %v1110_v57, %v1126_v59 }
 0x28b   : > { %1407 = vrot.lane.b32.xlu0 %v1368_v45, %s22641_s29  ;;  %v1182_v5 = vcombine.low %v1117_v61, %v1133_v63  ;;  %v1183_v6 = vcombine.high %v1117_v61, %v1133_v63  ;;  %v1142_v10 = vrot.slane %v1134_v1, %v16771_v8  ;;  %v1149_v62 = vrot.slane %v1135_v56, %v16771_v8  ;;  %v410_v63 = vld [vmem:[%s22631_s7 + $0x8] sm:$0xff]  ;;  %v412_v1 = vld [vmem:[%s22631_s7 + $0x18] sm:$0xff]  ;;  %v1462_v56 = vld [vmem:[%s22633_s9 + $0x20] sm:$0xff] }
 0x28c   : > { %v16316_v4 = vpop.eup %16315  ;;  %v16829_v21 = vrot.slane %v1166_v2, %v16779_v52  ;;  %v1181_v36 = vrot.slane %v1167_v3, %v16779_v52  ;;  %v1460_v2 = vld [vmem:[%s22633_s9 + $0x10] sm:$0xff]  ;;  %v414_v3 = vld [vmem:[%s22631_s7 + $0x28] sm:$0xff] }
 0x28d   : > { %v1150_v7 = vcombine.low %v16314_v0, %v16316_v4  ;;  %v1151_v9 = vcombine.high %v16314_v0, %v16316_v4  ;;  %v1190_v37 = vrot.slane %v1182_v5, %v16779_v52  ;;  %v1197_v45 = vrot.slane %v1183_v6, %v16779_v52  ;;  %v1458_v0 = vld [vmem:[%s22633_s9] sm:$0xff]  ;;  %v416_v4 = vld [vmem:[%s22631_s7 + $0x38] sm:$0xff]  ;;  %v1464_v5 = vld [vmem:[%s22633_s9 + $0x30] sm:$0xff] }
 0x28e   : > { %v1459_v6 = vld [vmem:[%s22633_s9 + $0x8] sm:$0xff] }
 0x28f   : > { %v1158_v11 = vrot.slane %v1150_v7, %v16771_v8  ;;  %v1165_v13 = vrot.slane %v1151_v9, %v16771_v8  ;;  %1411 = vrot.lane.b32.xlu0 %v1369_v47, %s22639_s14  ;;  %v1461_v7 = vld [vmem:[%s22633_s9 + $0x18] sm:$0xff]  ;;  %v1463_v9 = vld [vmem:[%s22633_s9 + $0x28] sm:$0xff] }
 0x291   : > { %v1198_v14 = vcombine.low %v1142_v10, %v1158_v11  ;;  %v1199_v15 = vcombine.high %v1142_v10, %v1158_v11  ;;  %v1214_v19 = vcombine.low %v1149_v62, %v1165_v13  ;;  %v1215_v20 = vcombine.high %v1149_v62, %v1165_v13  ;;  %v1465_v10 = vld [vmem:[%s22633_s9 + $0x38] sm:$0xff] }
 0x293   : > { %v16834_v40 = vrot.slane %v1198_v14, %v16779_v52  ;;  %v1213_v16 = vrot.slane %v1199_v15, %v16779_v52  ;;  %v1222_v43 = vrot.slane %v1214_v19, %v16779_v52  ;;  %v1229_v18 = vrot.slane %v1215_v20, %v16779_v52  ;;  %1415 = vrot.lane.b32.xlu0 %v1370_v49, %s22643_s16  ;;  %v409_v49 = vld [vmem:[%s22631_s7] sm:$0xff] }
 0x295   : > { %v1231_v47 = vcombine.high %v16829_v21, %v16834_v40  ;;  %v1232_v44 = vcombine.low %v1181_v36, %v1213_v16  ;;  %v1233_v53 = vcombine.high %v1181_v36, %v1213_v16  ;;  %v1234_v55 = vcombine.low %v1190_v37, %v1222_v43 }
 0x296   : > { %v1235_v57 = vcombine.high %v1190_v37, %v1222_v43  ;;  %v1236_v59 = vcombine.low %v1197_v45, %v1229_v18  ;;  %v1237_v60 = vcombine.high %v1197_v45, %v1229_v18  ;;  %v1230_v61 = vcombine.low %v16829_v21, %v16834_v40  ;;  %v1450_v40 = vld [vmem:[%s22632_s8] sm:$0xff] }
 0x297   : > { %1375 = vrot.lane.b32.xlu1 %v1231_v47, %s22637_s13  ;;  %1419 = vrot.lane.b32.xlu0 %v1371_v39, %s22645_s22  ;;  %v411_v39 = vld [vmem:[%s22631_s7 + $0x10] sm:$0xff]  ;;  %s22950_s13 = smov 16  }
 0x29b   : > { %1379 = vrot.lane.b32.xlu1 %v1232_v44, %s22641_s29  ;;  %1423 = vrot.lane.b32.xlu0 %v1372_v51, %s16390_s26  ;;  %v413_v51 = vld [vmem:[%s22631_s7 + $0x20] sm:$0xff]  ;;  %s22947_s29 = smov 32  }
 0x29f   : > { %1383 = vrot.lane.b32.xlu1 %v1233_v53, %s22639_s14  ;;  %1427 = vrot.lane.b32.xlu0 %v1373_v54, %s16391_s24  ;;  %v415_v54 = vld [vmem:[%s22631_s7 + $0x30] sm:$0xff]  ;;  %s377_s14 = sand.u32 1, %s16369_s18  }
 0x2a3   : > { %1387 = vrot.lane.b32.xlu1 %v1234_v55, %s22643_s16  ;;  %419 = vperm.xlu0 %16283, %v409_v49   ;;  %s16321_s16 = sshll.u32 %s16392_s12, 4  ;;  %s16322_s16 = int_to_ptr.vmem [resolvable:$false] %s16321_s16 }
 0x2a7   : > { %1391 = vrot.lane.b32.xlu1 %v1235_v57, %s22645_s22  ;;  %429 = vperm.xlu0 %16283, %v411_v39   ;;  %s15128_s22 = sshll.u32 %s377_s14, 7 }
 0x2a8   : > { %s21813_s19 = scalar_lea.vmem [#allocation2], %s15128_s22  ;;  %s16323_s22 = scalar_lea.vmem %s16322_s16, 4096 }
 0x2ab   : > { %1395 = vrot.lane.b32.xlu1 %v1236_v59, %s16390_s26  ;;  %439 = vperm.xlu0 %16283, %v413_v51  }
 0x2af   : > { %1399 = vrot.lane.b32.xlu1 %v1237_v60, %s16391_s24  ;;  %449 = vperm.xlu0 %16283, %v415_v54  }
 0x2b3   : > { %424 = vperm.xlu1 %16284, %v410_v63   ;;  %1468 = vperm.xlu0 %16283, %v1458_v0  }
 0x2b7   : > { %434 = vperm.xlu1 %16284, %v412_v1   ;;  %1478 = vperm.xlu0 %16283, %v1460_v2   ;;  %v1451_v2 = vld [vmem:[%s22632_s8 + $0x8] sm:$0xff] }
 0x2bb   : > { %444 = vperm.xlu1 %16284, %v414_v3   ;;  %1488 = vperm.xlu0 %16283, %v1462_v56   ;;  %v1453_v3 = vld [vmem:[%s22632_s8 + $0x18] sm:$0xff] }
 0x2bf   : > { %454 = vperm.xlu1 %16284, %v416_v4   ;;  %1498 = vperm.xlu0 %16283, %v1464_v5   ;;  %v1454_v4 = vld [vmem:[%s22632_s8 + $0x20] sm:$0xff] }
 0x2c3   : > { %1473 = vperm.xlu1 %16284, %v1459_v6  }
 0x2c7   : > { %1483 = vperm.xlu1 %16284, %v1461_v7  }
 0x2cb   : > { %1493 = vperm.xlu1 %16284, %v1463_v9  }
 0x2cf   : > { %1503 = vperm.xlu1 %16284, %v1465_v10  }
 0x2f9   : > { %v1404_v11 = vpop.permute.xlu0 %1403 }
 0x2fa   : > { %v1443_v20 = vsel %vm1430_vm2, %v1366_v50, %v1404_v11  ;;  %v1457_v11 = vld [vmem:[%s22632_s8 + $0x38] sm:$0xff] }
 0x2fd   : > { %v1408_v62 = vpop.permute.xlu0 %1407 }
 0x2fe   : > { %v1444_v37 = vsel %vm1432_vm3, %v1443_v20, %v1408_v62 }
 0x301   : > { %v1412_v13 = vpop.permute.xlu0 %1411 }
 0x302   : > { %v1445_v43 = vsel %vm1434_vm4, %v1444_v37, %v1412_v13 }
 0x305   : > { %v1416_v14 = vpop.permute.xlu0 %1415 }
 0x306   : > { %v1446_v18 = vsel %vm457_vm0, %v1445_v43, %v1416_v14 }
 0x309   : > { %v1376_v15 = vpop.permute.xlu1 %1375  ;;  %v1420_v19 = vpop.permute.xlu0 %1419 }
 0x30a   : > { %v1447_v45 = vsel %vm1437_vm5, %v1446_v18, %v1420_v19  ;;  %v1431_v55 = vsel %vm1430_vm2, %v1230_v61, %v1376_v15  ;;  %v1452_v61 = vld [vmem:[%s22632_s8 + $0x10] sm:$0xff] }
 0x30d   : > { %v1380_v36 = vpop.permute.xlu1 %1379  ;;  %v1424_v16 = vpop.permute.xlu0 %1423 }
 0x30e   : > { %v1448_v44 = vsel %vm1439_vm6, %v1447_v45, %v1424_v16  ;;  %v1433_v57 = vsel %vm1432_vm3, %v1431_v55, %v1380_v36 }
 0x311   : > { %v1384_v47 = vpop.permute.xlu1 %1383  ;;  %v1428_v53 = vpop.permute.xlu0 %1427 }
 0x312   : > { %v1449_v12 = vsel %vm1441_vm7, %v1448_v44, %v1428_v53  ;;  %v1435_v60 = vsel %vm1434_vm4, %v1433_v57, %v1384_v47 }
 0x313   : > { %1561 = vmatprep.subr.mxu0 %v1449_v12  ;;  %16228 = vmatprep.subr.mxu1 %v1449_v12 }
 0x315   : > { %v1388_v17 = vpop.permute.xlu1 %1387 }
 0x316   : > { %v1436_v49 = vsel %vm457_vm0, %v1435_v60, %v1388_v17 }
 0x319   : > { %v1392_v50 = vpop.permute.xlu1 %1391 }
 0x31a   : > { %v1438_v51 = vsel %vm1437_vm5, %v1436_v49, %v1392_v50 }
 0x31d   : > { %v1396_v59 = vpop.permute.xlu1 %1395 }
 0x31e   : > { %v16920_v39 = vpop.permute.xlu0 %419  ;;  %v1440_v63 = vsel %vm1439_vm6, %v1438_v51, %v1396_v59 }
 0x31f   : > { %v16925_v54 = vadd.f32 %v16711_v22, %v16920_v39 }
 0x321   : > { %v1400_v21 = vpop.permute.xlu1 %1399  ;;  %1680 = vrot.lane.b32.xlu0 %v16925_v54, %s16391_s24 }
 0x322   : > { %v1442_v0 = vsel %vm1441_vm7, %v1440_v63, %v1400_v21  ;;  %v16937_v1 = vpop.permute.xlu0 %429 }
 0x323   : > { %1562 = vmatpush1.msra.mxu0 %v1442_v0  ;;  %16229 = vmatpush1.msra.mxu1 %v1442_v0  ;;  %v16941_v22 = vadd.f32 %v16719_v26, %v16937_v1  ;;  %v17121_v15 = vadd.f32 %v16721_v27, %v16937_v1 }
 0x324   : > { %15141 = vmatmul.mubr.msk.f32.vlgmr.msra.gmra.mxu0 %vm1506_vm8, %v1450_v40  ;;  %15143 = vmatmul.mubr.msk.f32.vlgmr.msra.gmra.mxu1 %vm1506_vm8, %v1452_v61 }
 0x325   : > { %1601 = vmatprep.mubr.f32.mxu0 %v16379_v48  ;;  %1613 = vmatprep.mubr.f32.mxu1 %v16379_v48  ;;  %22953 = vst [vmem:[#allocation12_spill] sm:$0xff] %v17121_v15 }
 0x326   : > { %1684 = vrot.lane.b32.xlu0 %v16941_v22, %s16391_s24  ;;  %v16955_v26 = vpop.permute.xlu0 %439 }
 0x327   : > { %v16959_v56 = vadd.f32 %v16727_v30, %v16955_v26  ;;  %v1455_v30 = vld [vmem:[%s22632_s8 + $0x28] sm:$0xff] }
 0x328   : > { %15142 = vmatmul.mubr.msk.f32.gmra.mxu0 %vm1506_vm8, %v1451_v2  ;;  %15144 = vmatmul.mubr.msk.f32.gmra.mxu1 %vm1506_vm8, %v1453_v3 }
 0x329   : > { %1619 = vmatprep.mubr.f32.mxu1 %v16379_v48 }
 0x32a   : > { %1688 = vrot.lane.b32.xlu0 %v16959_v56, %s16391_s24  ;;  %v16969_v5 = vpop.permute.xlu0 %449 }
 0x32b   : > { %v16973_v6 = vadd.f32 %v16735_v34, %v16969_v5  ;;  %v1456_v34 = vld [vmem:[%s22632_s8 + $0x30] sm:$0xff] }
 0x32c   : > { %15145 = vmatmul.mubr.msk.f32.gmra.mxu1 %vm1506_vm8, %v1454_v4 }
 0x32d   : > { %22943 = vst [vmem:[#allocation7_spill] sm:$0xff] %v16973_v6  ;;  %1625 = vmatprep.mubr.f32.mxu1 %v16379_v48 }
 0x32e   : > { %1692 = vrot.lane.b32.xlu0 %v16973_v6, %s16391_s24  ;;  %v425_v7 = vpop.permute.xlu1 %424 }
 0x32f   : > { %v16983_v9 = vadd.f32 %v16715_v24, %v425_v7 }
 0x330   : > { %15146 = vmatmul.mubr.msk.f32.gmra.mxu1 %vm1506_vm8, %v1455_v30 }
 0x331   : > { %1682 = vrot.lane.b32.xlu1 %v16983_v9, %s16391_s24  ;;  %1631 = vmatprep.mubr.f32.mxu1 %v16379_v48 }
 0x332   : > { %1704 = vrot.lane.b32.xlu0 %v16925_v54, %s16390_s26  ;;  %v16994_v10 = vpop.permute.xlu1 %434 }
 0x333   : > { %v16998_v24 = vadd.f32 %v16723_v28, %v16994_v10  ;;  %v17159_v45 = vadd.f32 %v16725_v29, %v16994_v10 }
 0x334   : > { %15147 = vmatmul.mubr.msk.f32.gmra.mxu1 %vm1506_vm8, %v1456_v34 }
 0x335   : > { %1686 = vrot.lane.b32.xlu1 %v16998_v24, %s16391_s24  ;;  %1637 = vmatprep.mubr.f32.mxu1 %v16379_v48  ;;  %22957 = vst [vmem:[#allocation16_spill] sm:$0xff] %v17159_v45 }
 0x336   : > { %1708 = vrot.lane.b32.xlu0 %v16941_v22, %s16390_s26  ;;  %v17009_v62 = vpop.permute.xlu1 %444 }
 0x337   : > { %v17013_v28 = vadd.f32 %v16731_v32, %v17009_v62  ;;  %v17068_v32 = vadd.f32 %v16713_v23, %v16920_v39  ;;  %v17091_v23 = vadd.f32 %v16717_v25, %v425_v7 }
 0x338   : > { %15148 = vmatmul.mubr.msk.f32.gmra.mxu1 %vm1506_vm8, %v1457_v11 }
 0x339   : > { %1690 = vrot.lane.b32.xlu1 %v17013_v28, %s16391_s24  ;;  %22948 = vst [vmem:[#allocation9_spill] sm:$0xff] %v17068_v32  ;;  %22951 = vst [vmem:[#allocation10_spill] sm:$0xff] %v17091_v23 }
 0x33a   : > { %1712 = vrot.lane.b32.xlu0 %v16959_v56, %s16390_s26  ;;  %v17020_v48 = vpop.permute.xlu1 %454 }
 0x33b   : > { %v17024_v13 = vadd.f32 %v16739_v38, %v17020_v48  ;;  %v17099_v38 = vpop.permute.xlu0 %1468 }
 0x33d   : > { %22944 = vst [vmem:[#allocation8_spill] sm:$0xff] %v17024_v13  ;;  %1694 = vrot.lane.b32.xlu1 %v17024_v13, %s16391_s24 }
 0x33e   : > { %1716 = vrot.lane.b32.xlu0 %v16973_v6, %s16390_s26  ;;  %v17123_v19 = vpop.permute.xlu1 %1473 }
 0x33f   : > { %v17107_v25 = vpop.permute.xlu0 %1478 }
 0x341   : > { %1706 = vrot.lane.b32.xlu1 %v16983_v9, %s16390_s26 }
 0x342   : > { %1728 = vrot.lane.b32.xlu0 %v16925_v54, %s22945_s15  ;;  %v17135_v36 = vpop.permute.xlu1 %1483 }
 0x343   : > { %v17115_v14 = vpop.permute.xlu0 %1488 }
 0x344   : > { %22952 = vst [vmem:[#allocation11_spill] sm:$0xff] %v17115_v14 }
 0x345   : > { %1710 = vrot.lane.b32.xlu1 %v16998_v24, %s16390_s26 }
 0x346   : > { %1732 = vrot.lane.b32.xlu0 %v16941_v22, %s22945_s15  ;;  %v17143_v16 = vpop.permute.xlu1 %1493 }
 0x347   : > { %v17129_v20 = vpop.permute.xlu0 %1498  ;;  %22955 = vst [vmem:[#allocation14_spill] sm:$0xff] %v17143_v16 }
 0x348   : > { %22954 = vst [vmem:[#allocation13_spill] sm:$0xff] %v17129_v20 }
 0x349   : > { %1714 = vrot.lane.b32.xlu1 %v17013_v28, %s16390_s26 }
 0x34a   : > { %1736 = vrot.lane.b32.xlu0 %v16959_v56, %s22945_s15  ;;  %v17155_v18 = vpop.permute.xlu1 %1503 }
 0x34b   : > { %22956 = vst [vmem:[#allocation15_spill] sm:$0xff] %v17155_v18  ;;  %v1644_v18 = vld [vmem:[%s22634_s10] sm:$0x3] }
 0x34c   : > { %v17257_v20 = vrot.slane %v1644_v18, %v16747_v46 }
 0x34d   : > { %1718 = vrot.lane.b32.xlu1 %v17024_v13, %s16390_s26 }
 0x34e   : > { %1740 = vrot.lane.b32.xlu0 %v16973_v6, %s22945_s15 }
 0x351   : > { %1730 = vrot.lane.b32.xlu1 %v16983_v9, %s22945_s15 }
 0x352   : > { %1752 = vrot.lane.b32.xlu0 %v16925_v54, %s22946_s25 }
 0x355   : > { %1734 = vrot.lane.b32.xlu1 %v16998_v24, %s22945_s15 }
 0x356   : > { %1756 = vrot.lane.b32.xlu0 %v16941_v22, %s22946_s25 }
 0x359   : > { %1738 = vrot.lane.b32.xlu1 %v17013_v28, %s22945_s15 }
 0x35a   : > { %1760 = vrot.lane.b32.xlu0 %v16959_v56, %s22946_s25 }
 0x35d   : > { %1742 = vrot.lane.b32.xlu1 %v17024_v13, %s22945_s15 }
 0x35e   : > { %1764 = vrot.lane.b32.xlu0 %v16973_v6, %s22946_s25 }
 0x361   : > { %1754 = vrot.lane.b32.xlu1 %v16983_v9, %s22946_s25 }
 0x362   : > { %1800 = vrot.lane.b32.xlu0 %v16925_v54, %s22947_s29 }
 0x365   : > { %1758 = vrot.lane.b32.xlu1 %v16998_v24, %s22946_s25 }
 0x366   : > { %1856 = vrot.lane.b32.xlu0 %v17068_v32, %s16391_s24 }
 0x369   : > { %1762 = vrot.lane.b32.xlu1 %v17013_v28, %s22946_s25 }
 0x36a   : > { %1904 = vrot.lane.b32.xlu0 %v17068_v32, %s22945_s15 }
 0x36d   : > { %1776 = vrot.lane.b32.xlu1 %v16925_v54, %s22949_s30 }
 0x36e   : > { %1952 = vrot.lane.b32.xlu0 %v17068_v32, %s22949_s30 }
 0x371   : > { %1824 = vrot.lane.b32.xlu1 %v16925_v54, %s22950_s13 }
 0x372   : > { %2000 = vrot.lane.b32.xlu0 %v17068_v32, %s22950_s13 }
 0x375   : > { %1880 = vrot.lane.b32.xlu1 %v17068_v32, %s16390_s26 }
 0x376   : > { %1802 = vrot.lane.b32.xlu0 %v16983_v9, %s22947_s29 }
 0x379   : > { %1928 = vrot.lane.b32.xlu1 %v17068_v32, %s22946_s25 }
 0x37a   : > { %1858 = vrot.lane.b32.xlu0 %v17091_v23, %s16391_s24 }
 0x37d   : > { %1976 = vrot.lane.b32.xlu1 %v17068_v32, %s22947_s29 }
 0x37e   : > { %1906 = vrot.lane.b32.xlu0 %v17091_v23, %s22945_s15 }
 0x381   : > { %1778 = vrot.lane.b32.xlu1 %v16983_v9, %s22949_s30 }
 0x382   : > { %1954 = vrot.lane.b32.xlu0 %v17091_v23, %s22949_s30 }
 0x385   : > { %1826 = vrot.lane.b32.xlu1 %v16983_v9, %s22950_s13 }
 0x386   : > { %2002 = vrot.lane.b32.xlu0 %v17091_v23, %s22950_s13 }
 0x389   : > { %1882 = vrot.lane.b32.xlu1 %v17091_v23, %s16390_s26 }
 0x38a   : > { %1804 = vrot.lane.b32.xlu0 %v16941_v22, %s22947_s29 }
 0x38d   : > { %1930 = vrot.lane.b32.xlu1 %v17091_v23, %s22946_s25 }
 0x38e   : > { %1860 = vrot.lane.b32.xlu0 %v17121_v15, %s16391_s24 }
 0x391   : > { %1978 = vrot.lane.b32.xlu1 %v17091_v23, %s22947_s29 }
 0x392   : > { %1908 = vrot.lane.b32.xlu0 %v17121_v15, %s22945_s15 }
 0x393   : > { %v1681_v27 = vpop.permute.xlu0 %1680 }
 0x395   : > { %1780 = vrot.lane.b32.xlu1 %v16941_v22, %s22949_s30 }
 0x396   : > { %1956 = vrot.lane.b32.xlu0 %v17121_v15, %s22949_s30 }
 0x398   : > { %v17141_v37 = vpop.permute.xlu0 %1684 }
 0x399   : > { %1828 = vrot.lane.b32.xlu1 %v16941_v22, %s22950_s13 }
 0x39a   : > { %2004 = vrot.lane.b32.xlu0 %v17121_v15, %s22950_s13 }
 0x39c   : > { %v17149_v43 = vpop.permute.xlu0 %1688 }
 0x39d   : > { %1884 = vrot.lane.b32.xlu1 %v17121_v15, %s16390_s26 }
 0x39e   : > { %1806 = vrot.lane.b32.xlu0 %v16998_v24, %s22947_s29 }
 0x3a0   : > { %v17161_v47 = vpop.permute.xlu0 %1692 }
 0x3a1   : > { %1932 = vrot.lane.b32.xlu1 %v17121_v15, %s22946_s25 }
 0x3a2   : > { %1862 = vrot.lane.b32.xlu0 %v17159_v45, %s16391_s24 }
 0x3a3   : > { %v17167_v44 = vpop.permute.xlu1 %1682 }
 0x3a4   : > { %v1705_v53 = vpop.permute.xlu0 %1704 }
 0x3a5   : > { %1980 = vrot.lane.b32.xlu1 %v17121_v15, %s22947_s29  ;;  %v2024_v59 = vcombine.low %v16925_v54, %v1705_v53  ;;  %v2025_v60 = vcombine.high %v16925_v54, %v1705_v53 }
 0x3a6   : > { %1910 = vrot.lane.b32.xlu0 %v17159_v45, %s22945_s15 }
 0x3a7   : > { %v17173_v12 = vpop.permute.xlu1 %1686  ;;  %v17202_v21 = vrot.slane %v2024_v59, %v16771_v8  ;;  %v17205_v40 = vrot.slane %v2025_v60, %v16771_v8 }
 0x3a8   : > { %v17175_v29 = vpop.permute.xlu0 %1708 }
 0x3a9   : > { %1782 = vrot.lane.b32.xlu1 %v16998_v24, %s22949_s30 }
 0x3aa   : > { %1958 = vrot.lane.b32.xlu0 %v17159_v45, %s22949_s30 }
 0x3ab   : > { %v17181_v17 = vpop.permute.xlu1 %1690 }
 0x3ac   : > { %v17183_v50 = vpop.permute.xlu0 %1712 }
 0x3ad   : > { %1830 = vrot.lane.b32.xlu1 %v16998_v24, %s22950_s13 }
 0x3ae   : > { %2006 = vrot.lane.b32.xlu0 %v17159_v45, %s22950_s13 }
 0x3af   : > { %v17189_v55 = vpop.permute.xlu1 %1694 }
 0x3b0   : > { %22958 = vst [vmem:[#allocation17_spill] sm:$0xff] %v17189_v55  ;;  %v17191_v57 = vpop.permute.xlu0 %1716 }
 0x3b1   : > { %1886 = vrot.lane.b32.xlu1 %v17159_v45, %s16390_s26 }
 0x3b3   : > { %v17197_v49 = vpop.permute.xlu1 %1706 }
 0x3b4   : > { %v1729_v39 = vpop.permute.xlu0 %1728 }
 0x3b5   : > { %v2040_v51 = vcombine.low %v1681_v27, %v1729_v39  ;;  %v2041_v63 = vcombine.high %v1681_v27, %v1729_v39  ;;  %1934 = vrot.lane.b32.xlu1 %v17159_v45, %s22946_s25 }
 0x3b7   : > { %v17208_v61 = vrot.slane %v2040_v51, %v16771_v8  ;;  %v17211_v0 = vrot.slane %v2041_v63, %v16771_v8  ;;  %v17213_v54 = vpop.permute.xlu1 %1710 }
 0x3b8   : > { %v17215_v1 = vpop.permute.xlu0 %1732 }
 0x3b9   : > { %v2105_v3 = vcombine.high %v17205_v40, %v17211_v0  ;;  %1982 = vrot.lane.b32.xlu1 %v17159_v45, %s22947_s29 }
 0x3bb   : > { %v17223_v4 = vpop.permute.xlu1 %1714 }
 0x3bc   : > { %v17225_v30 = vpop.permute.xlu0 %1736 }
 0x3bd   : > { %1784 = vrot.lane.b32.xlu1 %v16959_v56, %s22949_s30 }
 0x3bf   : > { %v17229_v7 = vpop.permute.xlu1 %1718 }
 0x3c0   : > { %v17231_v34 = vpop.permute.xlu0 %1740 }
 0x3c3   : > { %v17233_v10 = vpop.permute.xlu1 %1730 }
 0x3c4   : > { %v1753_v11 = vpop.permute.xlu0 %1752 }
 0x3c7   : > { %v17235_v27 = vpop.permute.xlu1 %1734 }
 0x3c8   : > { %v17239_v59 = vpop.permute.xlu0 %1756 }
 0x3c9   : > { %22959 = vst [vmem:[#allocation18_spill] sm:$0xff] %v17239_v59 }
 0x3cb   : > { %v17237_v53 = vpop.permute.xlu1 %1738 }
 0x3cc   : > { %v17243_v39 = vpop.permute.xlu0 %1760 }
 0x3cd   : > { %22961 = vst [vmem:[#allocation20_spill] sm:$0xff] %v17243_v39 }
 0x3cf   : > { %v17241_v60 = vpop.permute.xlu1 %1742 }
 0x3d0   : > { %22960 = vst [vmem:[#allocation19_spill] sm:$0xff] %v17241_v60  ;;  %v17249_v58 = vpop.permute.xlu0 %1764 }
 0x3d1   : > { %22964 = vst [vmem:[#allocation23_spill] sm:$0xff] %v17249_v58 }
 0x3d3   : > { %v17245_v51 = vpop.permute.xlu1 %1754 }
 0x3d4   : > { %22962 = vst [vmem:[#allocation21_spill] sm:$0xff] %v17245_v51  ;;  %v1801_v45 = vpop.permute.xlu0 %1800 }
 0x3d5   : > { %v2056_v23 = vcombine.low %v1753_v11, %v1801_v45  ;;  %v2057_v59 = vcombine.high %v1753_v11, %v1801_v45  ;;  %v2088_v11 = vcombine.low %v17202_v21, %v17208_v61 }
 0x3d7   : > { %v17247_v63 = vpop.permute.xlu1 %1758  ;;  %v2064_v58 = vrot.slane %v2056_v23, %v16771_v8  ;;  %v2104_v23 = vcombine.low %v17205_v40, %v17211_v0 }
 0x3d8   : > { %22963 = vst [vmem:[#allocation22_spill] sm:$0xff] %v17247_v63 }
 0x3d9   : > { %v17292_v40 = vrot.slane %v2104_v23, %v16779_v52 }
 0x3db   : > { %v17251_v2 = vpop.permute.xlu1 %1762  ;;  %22969 = vst [vmem:[#allocation28_spill] sm:$0xff] %v17292_v40 }
 0x3dc   : > { %22965 = vst [vmem:[#allocation24_spill] sm:$0xff] %v17251_v2  ;;  %v2071_v2 = vrot.slane %v2057_v59, %v16771_v8  ;;  %v17277_v59 = vpop.permute.xlu0 %1856 }
 0x3df   : > { %v1777_v15 = vpop.permute.xlu1 %1776 }
 0x3e3   : > { %v1825_v39 = vpop.permute.xlu1 %1824 }
 0x3e4   : > { %v2072_v16 = vcombine.low %v1777_v15, %v1825_v39  ;;  %v2073_v14 = vcombine.high %v1777_v15, %v1825_v39  ;;  %v1597_v51 = vpop.f32.mrf.mxu0  ;;  %v1609_v39 = vpop.f32.mrf.mxu1 }
 0x3e5   : > { %v1598_v63 = vadd.f32 %v1597_v51, %v17099_v38 }
 0x3e6   : > { %v2080_v32 = vrot.slane %v2072_v16, %v16771_v8  ;;  %v2087_v55 = vrot.slane %v2073_v14, %v16771_v8 }
 0x3e7   : > { %v17265_v60 = vadd.f32 %v17257_v20, %v1598_v63  ;;  %v17275_v14 = vpop.permute.xlu1 %1880 }
 0x3e8   : > { %v2121_v45 = vcombine.high %v2064_v58, %v2080_v32  ;;  %v2137_v46 = vcombine.high %v2071_v2, %v2087_v55  ;;  %v2120_v15 = vcombine.low %v2064_v58, %v2080_v32  ;;  %v2136_v16 = vcombine.low %v2071_v2, %v2087_v55 }
 0x3e9   : > { %22966 = vst [vmem:[#allocation25_spill] sm:$0xff] %v17265_v60  ;;  %4232 = vrot.lane.b32.xlu1 %v17265_v60, %s16390_s26  ;;  %4208 = vrot.lane.b32.xlu0 %v17265_v60, %s16391_s24  ;;  %v17282_v58 = vrot.slane %v2088_v11, %v16779_v52  ;;  %v1610_v2 = vadd.f32 %v1609_v39, %v17107_v25  ;;  %v17303_v11 = vpop.permute.xlu0 %1904 }
 0x3ea   : > { %v17285_v32 = vrot.slane %v2120_v15, %v16779_v52  ;;  %v17295_v0 = vrot.slane %v2136_v16, %v16779_v52  ;;  %v17316_v16 = vrot.slane %v2105_v3, %v16779_v52  ;;  %v17319_v39 = vrot.slane %v2137_v46, %v16779_v52 }
 0x3eb   : > { %22967 = vst [vmem:[#allocation26_spill] sm:$0xff] %v17282_v58  ;;  %v17298_v51 = vpop.permute.xlu1 %1928  ;;  %v17313_v23 = vadd.f32 %v17257_v20, %v1610_v2  ;;  %v22978_v2 = vsub.s32 1, %v16741_v41 }
 0x3ec   : > { %22968 = vst [vmem:[#allocation27_spill] sm:$0xff] %v17285_v32  ;;  %v2152_v55 = vcombine.low %v17282_v58, %v17285_v32  ;;  %22970 = vst [vmem:[#allocation29_spill] sm:$0xff] %v17295_v0  ;;  %v2156_v63 = vcombine.low %v17292_v40, %v17295_v0 }
 0x3ed   : > { %4280 = vrot.lane.b32.xlu1 %v17265_v60, %s22946_s25  ;;  %4256 = vrot.lane.b32.xlu0 %v17265_v60, %s22945_s15  ;;  %22971 = vst [vmem:[#allocation30_spill] sm:$0xff] %v17298_v51  ;;  %22972 = vst [vmem:[#allocation31_spill] sm:$0xff] %v17313_v23  ;;  %v17328_v51 = vrot.slane %v2121_v45, %v16779_v52  ;;  %v1599_v45 = vpop.f32.mrf.mxu0 }
 0x3ee   : > { %15784 = vmatprep.mubr.msk.f32.mxu0 %vm1430_vm2, %v2152_v55  ;;  %15812 = vmatprep.mubr.msk.f32.mxu1 %vm1430_vm2, %v2156_v63  ;;  %22973 = vst [vmem:[#allocation32_spill] sm:$0xff] %v17316_v16  ;;  %22974 = vst [vmem:[#allocation33_spill] sm:$0xff] %v17319_v39  ;;  %v22975_v55 = vcombine.high %v17202_v21, %v17208_v61  ;;  %v17342_v61 = vpop.permute.xlu0 %1952  ;;  %v1600_v15 = vadd.f32 %v1599_v45, %v17099_v38 }
 0x3ef   : > { %22977 = vst [vmem:[#allocation35_spill] sm:$0xff] %v17328_v51  ;;  %v17334_v3 = vpop.permute.xlu1 %1976 }
 0x3f0   : > { %v17325_v63 = vrot.slane %v22975_v55, %v16779_v52  ;;  %v17350_v55 = vrot.slane %v1644_v18, %v22978_v2 }
 0x3f1   : > { %4328 = vrot.lane.b32.xlu1 %v17265_v60, %s22947_s29  ;;  %4304 = vrot.lane.b32.xlu0 %v17265_v60, %s22949_s30 }
 0x3f2   : > { %22976 = vst [vmem:[#allocation34_spill] sm:$0xff] %v17325_v63  ;;  %v17355_v46 = vpop.permute.xlu0 %2000  ;;  %v17362_v21 = vadd.f32 %v17350_v55, %v1600_v15  ;;  %v1611_v15 = vpop.f32.mrf.mxu1 }
 0x3f3   : > { %v17353_v0 = vpop.permute.xlu1 %1778  ;;  %v1612_v38 = vadd.f32 %v1611_v15, %v17107_v25 }
 0x3f4   : > { %22979 = vst [vmem:[#allocation36_spill] sm:$0xff] %v17362_v21 }
 0x3f5   : > { %4236 = vrot.lane.b32.xlu1 %v17313_v23, %s16390_s26  ;;  %4352 = vrot.lane.b32.xlu0 %v17265_v60, %s22950_s13 }
 0x3f6   : > { %v17374_v45 = vpop.permute.xlu0 %1802 }
 0x3f7   : > { %v17370_v18 = vpop.permute.xlu1 %1826 }
 0x3f9   : > { %4284 = vrot.lane.b32.xlu1 %v17313_v23, %s22946_s25  ;;  %4212 = vrot.lane.b32.xlu0 %v17313_v23, %s16391_s24 }
 0x3fa   : > { %v17382_v41 = vpop.permute.xlu0 %1858 }
 0x3fb   : > { %v17380_v2 = vpop.permute.xlu1 %1882 }
 0x3fd   : > { %4332 = vrot.lane.b32.xlu1 %v17313_v23, %s22947_s29  ;;  %4260 = vrot.lane.b32.xlu0 %v17313_v23, %s22945_s15 }
 0x3fe   : > { %v17398_v51 = vpop.permute.xlu0 %1906 }
 0x3ff   : > { %v17391_v40 = vpop.permute.xlu1 %1930 }
 0x401   : > { %4384 = vrot.lane.b32.xlu1 %v17362_v21, %s16391_s24  ;;  %4308 = vrot.lane.b32.xlu0 %v17313_v23, %s22949_s30 }
 0x402   : > { %v17406_v15 = vpop.permute.xlu0 %1954 }
 0x403   : > { %v17404_v25 = vpop.permute.xlu1 %1978 }
 0x405   : > { %4432 = vrot.lane.b32.xlu1 %v17362_v21, %s22945_s15  ;;  %4356 = vrot.lane.b32.xlu0 %v17313_v23, %s22950_s13  ;;  %v17396_v23 = vadd.f32 %v17350_v55, %v1612_v38  ;;  %v1603_v38 = vpop.f32.mrf.mxu0 }
 0x406   : > { %v1604_v39 = vadd.f32 %v1603_v38, %v17123_v19  ;;  %v17419_v16 = vpop.permute.xlu0 %2002  ;;  %v1615_v38 = vpop.f32.mrf.mxu1 }
 0x407   : > { %22980 = vst [vmem:[#allocation37_spill] sm:$0xff] %v17396_v23  ;;  %v17414_v63 = vpop.permute.xlu1 %1780 }
 0x408   : > { %22981 = vst [vmem:[#allocation38_spill] sm:$0xff] %v17414_v63  ;;  %v17426_v32 = vadd.f32 %v17257_v20, %v1604_v39  ;;  %v1616_v39 = vadd.f32 %v1615_v38, %v17135_v36  ;;  %v1605_v38 = vpop.f32.mrf.mxu0 }
 0x409   : > { %4480 = vrot.lane.b32.xlu1 %v17362_v21, %s22949_s30  ;;  %4408 = vrot.lane.b32.xlu0 %v17362_v21, %s16390_s26 }
 0x40a   : > { %22982 = vst [vmem:[#allocation39_spill] sm:$0xff] %v17426_v32  ;;  %v17430_v60 = vpop.permute.xlu0 %1804  ;;  %v17450_v63 = vadd.f32 %v17257_v20, %v1616_v39  ;;  %v1606_v39 = vadd.f32 %v1605_v38, %v17123_v19  ;;  %v2568_v19 = vcombine.low %v16941_v22, %v17175_v29  ;;  %v2584_v38 = vcombine.low %v17141_v37, %v17215_v1 }
 0x40b   : > { %v17428_v58 = vpop.permute.xlu1 %1828  ;;  %22984 = vst [vmem:[#allocation41_spill] sm:$0xff] %v17430_v60 }
 0x40c   : > { %22983 = vst [vmem:[#allocation40_spill] sm:$0xff] %v17428_v58  ;;  %22987 = vst [vmem:[#allocation44_spill] sm:$0xff] %v17450_v63 }
 0x40d   : > { %4528 = vrot.lane.b32.xlu1 %v17362_v21, %s22950_s13  ;;  %4456 = vrot.lane.b32.xlu0 %v17362_v21, %s22946_s25 }
 0x411   : > { %4388 = vrot.lane.b32.xlu1 %v17396_v23, %s16391_s24  ;;  %4504 = vrot.lane.b32.xlu0 %v17362_v21, %s22947_s29  ;;  %v17438_v21 = vpop.permute.xlu1 %1884 }
 0x412   : > { %22985 = vst [vmem:[#allocation42_spill] sm:$0xff] %v17438_v21 }
 0x415   : > { %4436 = vrot.lane.b32.xlu1 %v17396_v23, %s22945_s15  ;;  %4412 = vrot.lane.b32.xlu0 %v17396_v23, %s16390_s26  ;;  %v17452_v58 = vpop.permute.xlu1 %1932 }
 0x416   : > { %22988 = vst [vmem:[#allocation45_spill] sm:$0xff] %v17452_v58 }
 0x419   : > { %4484 = vrot.lane.b32.xlu1 %v17396_v23, %s22949_s30  ;;  %4460 = vrot.lane.b32.xlu0 %v17396_v23, %s22946_s25  ;;  %v17462_v21 = vpop.permute.xlu1 %1980 }
 0x41a   : > { %22990 = vst [vmem:[#allocation47_spill] sm:$0xff] %v17462_v21  ;;  %v17496_v21 = vadd.f32 %v16737_v35, %v16969_v5  ;;  %v3656_v35 = vcombine.low %v16973_v6, %v17191_v57 }
 0x41c   : > { %22996 = vst [vmem:[#allocation53_spill] sm:$0xff] %v17496_v21 }
 0x41d   : > { %4532 = vrot.lane.b32.xlu1 %v17396_v23, %s22950_s13  ;;  %4508 = vrot.lane.b32.xlu0 %v17396_v23, %s22947_s29  ;;  %v17443_v23 = vpop.permute.xlu0 %1860 }
 0x41e   : > { %22986 = vst [vmem:[#allocation43_spill] sm:$0xff] %v17443_v23  ;;  %v17476_v23 = vpop.permute.xlu1 %1782 }
 0x41f   : > { %22993 = vst [vmem:[#allocation50_spill] sm:$0xff] %v17476_v23  ;;  %v17492_v23 = vadd.f32 %v16729_v31, %v16955_v26  ;;  %v3113_v31 = vcombine.high %v16959_v56, %v17183_v50  ;;  %v3657_v26 = vcombine.high %v16973_v6, %v17191_v57 }
 0x421   : > { %4234 = vrot.lane.b32.xlu1 %v17426_v32, %s16390_s26  ;;  %4210 = vrot.lane.b32.xlu0 %v17426_v32, %s16391_s24  ;;  %v17454_v60 = vpop.permute.xlu0 %1908  ;;  %22995 = vst [vmem:[#allocation52_spill] sm:$0xff] %v17492_v23 }
 0x422   : > { %22989 = vst [vmem:[#allocation46_spill] sm:$0xff] %v17454_v60  ;;  %v17514_v5 = vpop.permute.xlu1 %1830 }
 0x423   : > { %22998 = vst [vmem:[#allocation55_spill] sm:$0xff] %v17514_v5 }
 0x425   : > { %4282 = vrot.lane.b32.xlu1 %v17426_v32, %s22946_s25  ;;  %4258 = vrot.lane.b32.xlu0 %v17426_v32, %s22945_s15  ;;  %v17467_v58 = vpop.permute.xlu0 %1956 }
 0x426   : > { %22991 = vst [vmem:[#allocation48_spill] sm:$0xff] %v17467_v58  ;;  %v3112_v58 = vcombine.low %v16959_v56, %v17183_v50  ;;  %v17568_v5 = vpop.permute.xlu1 %1886 }
 0x427   : > { %23001 = vst [vmem:[#allocation58_spill] sm:$0xff] %v17568_v5  ;;  %v2857_v5 = vcombine.high %v17173_v12, %v17235_v27 }
 0x429   : > { %4330 = vrot.lane.b32.xlu1 %v17426_v32, %s22947_s29  ;;  %4306 = vrot.lane.b32.xlu0 %v17426_v32, %s22949_s30  ;;  %v17478_v60 = vpop.permute.xlu0 %2004 }
 0x42a   : > { %22994 = vst [vmem:[#allocation51_spill] sm:$0xff] %v17478_v60  ;;  %v2585_v60 = vcombine.high %v17141_v37, %v17215_v1  ;;  %v17520_v37 = vadd.f32 %v16743_v42, %v17020_v48  ;;  %v2297_v1 = vcombine.high %v16983_v9, %v17197_v49  ;;  %v3128_v42 = vcombine.low %v17149_v43, %v17225_v30 }
 0x42b   : > { %v3120_v48 = vrot.slane %v3112_v58, %v16771_v8 }
 0x42c   : > { %22999 = vst [vmem:[#allocation56_spill] sm:$0xff] %v17520_v37  ;;  %v3129_v37 = vcombine.high %v17149_v43, %v17225_v30  ;;  %v3672_v30 = vcombine.low %v17161_v47, %v17231_v34  ;;  %v17562_v58 = vrot.slane %v2297_v1, %v16771_v8 }
 0x42d   : > { %4238 = vrot.lane.b32.xlu1 %v17450_v63, %s16390_s26  ;;  %4354 = vrot.lane.b32.xlu0 %v17426_v32, %s22950_s13  ;;  %v17474_v32 = vadd.f32 %v17350_v55, %v1606_v39  ;;  %v2569_v39 = vcombine.high %v16941_v22, %v17175_v29  ;;  %v17506_v22 = vadd.f32 %v16733_v33, %v17009_v62  ;;  %v17526_v50 = vpop.permute.xlu0 %1806 }
 0x42e   : > { %v2576_v33 = vrot.slane %v2568_v19, %v16771_v8  ;;  %v2296_v62 = vcombine.low %v16983_v9, %v17197_v49  ;;  %v2592_v29 = vrot.slane %v2584_v38, %v16771_v8  ;;  %23000 = vst [vmem:[#allocation57_spill] sm:$0xff] %v17526_v50  ;;  %v2599_v19 = vrot.slane %v2585_v60, %v16771_v8 }
 0x42f   : > { %22992 = vst [vmem:[#allocation49_spill] sm:$0xff] %v17474_v32  ;;  %22997 = vst [vmem:[#allocation54_spill] sm:$0xff] %v17506_v22  ;;  %v2583_v57 = vrot.slane %v2569_v39, %v16771_v8  ;;  %v2841_v38 = vcombine.high %v16998_v24, %v17213_v54  ;;  %v3127_v9 = vrot.slane %v3113_v31, %v16771_v8 }
 0x430   : > { %v17545_v49 = vrot.slane %v3656_v35, %v16771_v8  ;;  %v17548_v39 = vrot.slane %v3657_v26, %v16771_v8  ;;  %v3384_v60 = vcombine.low %v17013_v28, %v17223_v4  ;;  %v2632_v43 = vcombine.low %v2576_v33, %v2592_v29 }
 0x431   : > { %4286 = vrot.lane.b32.xlu1 %v17450_v63, %s22946_s25  ;;  %4214 = vrot.lane.b32.xlu0 %v17450_v63, %s16391_s24  ;;  %v2633_v31 = vcombine.high %v2576_v33, %v2592_v29  ;;  %v3136_v26 = vrot.slane %v3128_v42, %v16771_v8  ;;  %v2649_v50 = vcombine.high %v2583_v57, %v2599_v19  ;;  %v17574_v6 = vpop.permute.xlu0 %1862 }
 0x432   : > { %v17571_v21 = vrot.slane %v2841_v38, %v16771_v8  ;;  %v17579_v33 = vrot.slane %v3384_v60, %v16771_v8  ;;  %v3928_v29 = vcombine.low %v17024_v13, %v17229_v7  ;;  %v3680_v1 = vrot.slane %v3672_v30, %v16771_v8 }
 0x433   : > { %v2312_v42 = vcombine.low %v17167_v44, %v17233_v10  ;;  %v2313_v38 = vcombine.high %v17167_v44, %v17233_v10  ;;  %v17603_v60 = vrot.slane %v2633_v31, %v16779_v52  ;;  %v2856_v30 = vcombine.low %v17173_v12, %v17235_v27 }
 0x434   : > { %v17613_v44 = vrot.slane %v3928_v29, %v16771_v8  ;;  %v3720_v12 = vcombine.low %v17545_v49, %v3680_v1  ;;  %v3401_v29 = vcombine.high %v17181_v17, %v17237_v53 }
 0x435   : > { %4334 = vrot.lane.b32.xlu1 %v17450_v63, %s22947_s29  ;;  %4262 = vrot.lane.b32.xlu0 %v17450_v63, %s22945_s15  ;;  %23003 = vst [vmem:[#allocation60_spill] sm:$0xff] %v17603_v60  ;;  %v2320_v27 = vrot.slane %v2312_v42, %v16771_v8  ;;  %v17626_v31 = vpop.permute.xlu0 %1910 }
 0x439   : > { %4386 = vrot.lane.b32.xlu1 %v17474_v32, %s16391_s24  ;;  %4310 = vrot.lane.b32.xlu0 %v17450_v63, %s22949_s30 }
 0x43d   : > { %4434 = vrot.lane.b32.xlu1 %v17474_v32, %s22945_s15  ;;  %4358 = vrot.lane.b32.xlu0 %v17450_v63, %s22950_s13  ;;  %v2840_v63 = vcombine.low %v16998_v24, %v17213_v54  ;;  %v17555_v24 = vrot.slane %v2296_v62, %v16771_v8  ;;  %v3385_v54 = vcombine.high %v17013_v28, %v17223_v4 }
 0x43e   : > { %v2648_v62 = vcombine.low %v2583_v57, %v2599_v19  ;;  %v3143_v4 = vrot.slane %v3129_v37, %v16771_v8  ;;  %v3929_v57 = vcombine.high %v17024_v13, %v17229_v7  ;;  %v17596_v19 = vrot.slane %v2632_v43, %v16779_v52  ;;  %v17600_v7 = vpop.f32.mrf.mxu1  ;;  %v17620_v43 = vpop.permute.xlu1 %1934 }
 0x43f   : > { %v17565_v35 = vrot.slane %v2840_v63, %v16771_v8  ;;  %v3673_v63 = vcombine.high %v17161_v47, %v17231_v34  ;;  %v17590_v37 = vrot.slane %v3385_v54, %v16771_v8  ;;  %v3176_v47 = vcombine.low %v3120_v48, %v3136_v26  ;;  %23004 = vst [vmem:[#allocation61_spill] sm:$0xff] %v17620_v43 }
 0x440   : > { %23002 = vst [vmem:[#allocation59_spill] sm:$0xff] %v17596_v19  ;;  %v3177_v34 = vcombine.high %v3120_v48, %v3136_v26  ;;  %v3192_v54 = vcombine.low %v3127_v9, %v3143_v4  ;;  %v3193_v13 = vcombine.high %v3127_v9, %v3143_v4  ;;  %v17616_v10 = vrot.slane %v3929_v57, %v16771_v8  ;;  %v17637_v57 = vpop.f32.mrf.mxu1 }
 0x441   : > { %4482 = vrot.lane.b32.xlu1 %v17474_v32, %s22949_s30  ;;  %4410 = vrot.lane.b32.xlu0 %v17474_v32, %s16390_s26  ;;  %v3687_v48 = vrot.slane %v3673_v63, %v16771_v8  ;;  %v3400_v9 = vcombine.low %v17181_v17, %v17237_v53  ;;  %v17629_v26 = vrot.slane %v2648_v62, %v16779_v52 }
 0x442   : > { %v17632_v4 = vrot.slane %v2649_v50, %v16779_v52  ;;  %v2327_v63 = vrot.slane %v2313_v38, %v16771_v8  ;;  %v17643_v42 = vrot.slane %v3177_v34, %v16779_v52  ;;  %v2864_v43 = vrot.slane %v2856_v30, %v16771_v8  ;;  %v23011_v30 = vld [vmem:[#allocation19_spill] sm:$0xff] }
 0x443   : > { %23005 = vst [vmem:[#allocation62_spill] sm:$0xff] %v17629_v26  ;;  %v2871_v62 = vrot.slane %v2857_v5, %v16771_v8  ;;  %v17650_v50 = vrot.slane %v3192_v54, %v16779_v52  ;;  %v17653_v17 = vrot.slane %v3193_v13, %v16779_v52  ;;  %v3721_v53 = vcombine.high %v17545_v49, %v3680_v1 }
 0x444   : > { %23006 = vst [vmem:[#allocation63_spill] sm:$0xff] %v17632_v4  ;;  %23008 = vst [vmem:[#allocation65_spill] sm:$0xff] %v17643_v42  ;;  %v3737_v34 = vcombine.high %v17548_v39, %v3687_v48  ;;  %v3408_v38 = vrot.slane %v3400_v9, %v16771_v8  ;;  %v2360_v5 = vcombine.low %v17555_v24, %v2320_v27  ;;  %v23012_v42 = vld [vmem:[#allocation17_spill] sm:$0xff]  ;;  %v17675_v9 = vpop.permute.xlu1 %1982 }
 0x445   : > { %1832 = vrot.lane.b32.xlu1 %v16959_v56, %s22950_s13  ;;  %4458 = vrot.lane.b32.xlu0 %v17474_v32, %s22946_s25  ;;  %23009 = vst [vmem:[#allocation66_spill] sm:$0xff] %v17650_v50  ;;  %23010 = vst [vmem:[#allocation67_spill] sm:$0xff] %v17653_v17  ;;  %v3944_v54 = vcombine.low %v23012_v42, %v23011_v30  ;;  %v3945_v13 = vcombine.high %v23012_v42, %v23011_v30  ;;  %v17681_v30 = vpop.permute.xlu0 %1958 }
 0x446   : > { %v17667_v17 = vrot.slane %v3720_v12, %v16779_v52  ;;  %v2361_v49 = vcombine.high %v17555_v24, %v2320_v27  ;;  %v2377_v1 = vcombine.high %v17562_v58, %v2327_v63  ;;  %23014 = vst [vmem:[#allocation17_spill] sm:$0xff] %v17675_v9  ;;  %v2904_v50 = vcombine.low %v17565_v35, %v2864_v43  ;;  %v23100_v9 = vld [vmem:[#allocation45_spill] sm:$0xff] }
 0x447   : > { %v2920_v42 = vcombine.low %v17571_v21, %v2871_v62  ;;  %v2921_v12 = vcombine.high %v17571_v21, %v2871_v62  ;;  %23015 = vst [vmem:[#allocation68_spill] sm:$0xff] %v17681_v30  ;;  %v3448_v24 = vcombine.low %v17579_v33, %v3408_v38  ;;  %v17690_v27 = vrot.slane %v3721_v53, %v16779_v52  ;;  %v23127_v26 = vld [vmem:[#allocation61_spill] sm:$0xff] }
 0x448   : > { %23013 = vst [vmem:[#allocation19_spill] sm:$0xff] %v17667_v17  ;;  %v3952_v21 = vrot.slane %v3944_v54, %v16771_v8  ;;  %v17707_v53 = vrot.slane %v2361_v49, %v16779_v52  ;;  %v23032_v17 = vld [vmem:[#allocation30_spill] sm:$0xff] }
 0x449   : > { %4530 = vrot.lane.b32.xlu1 %v17474_v32, %s22950_s13  ;;  %4506 = vrot.lane.b32.xlu0 %v17474_v32, %s22947_s29  ;;  %v17640_v32 = vrot.slane %v3176_v47, %v16779_v52  ;;  %v3736_v47 = vcombine.low %v17548_v39, %v3687_v48  ;;  %v2376_v39 = vcombine.low %v17562_v58, %v2327_v63 }
 0x44a   : > { %v3415_v48 = vrot.slane %v3401_v29, %v16771_v8  ;;  %v3449_v58 = vcombine.high %v17579_v33, %v3408_v38  ;;  %23016 = vst [vmem:[#allocation69_spill] sm:$0xff] %v17690_v27  ;;  %v17698_v63 = vrot.slane %v2360_v5, %v16779_v52  ;;  %v17701_v29 = vrot.slane %v3737_v34, %v16779_v52 }
 0x44b   : > { %23007 = vst [vmem:[#allocation64_spill] sm:$0xff] %v17640_v32  ;;  %v2905_v32 = vcombine.high %v17565_v35, %v2864_v43  ;;  %v17693_v35 = vrot.slane %v3736_v47, %v16779_v52  ;;  %v3959_v43 = vrot.slane %v3945_v13, %v16771_v8  ;;  %23020 = vst [vmem:[#allocation73_spill] sm:$0xff] %v17707_v53  ;;  %v23086_v53 = vld [vmem:[#allocation22_spill] sm:$0xff] }
 0x44c   : > { %23018 = vst [vmem:[#allocation71_spill] sm:$0xff] %v17698_v63  ;;  %23019 = vst [vmem:[#allocation72_spill] sm:$0xff] %v17701_v29  ;;  %v3464_v33 = vcombine.low %v17590_v37, %v3415_v48  ;;  %v17710_v47 = vrot.slane %v2376_v39, %v16779_v52  ;;  %v17713_v38 = vrot.slane %v2377_v1, %v16779_v52  ;;  %v23027_v39 = vld [vmem:[#allocation9_spill] sm:$0xff]  ;;  %v17732_v29 = vpop.permute.xlu1 %1784 }
 0x44d   : > { %1888 = vrot.lane.b32.xlu1 %v17492_v23, %s16390_s26  ;;  %1808 = vrot.lane.b32.xlu0 %v16959_v56, %s22947_s29  ;;  %v17673_v56 = vpop.f32.mrf.mxu1  ;;  %23017 = vst [vmem:[#allocation70_spill] sm:$0xff] %v17693_v35  ;;  %v17718_v5 = vrot.slane %v2904_v50, %v16779_v52  ;;  %v17721_v34 = vrot.slane %v2905_v32, %v16779_v52  ;;  %23028 = vst [vmem:[#allocation9_spill] sm:$0xff] %v17732_v29  ;;  %v17747_v35 = vpop.permute.xlu0 %2006 }
 0x44e   : > { %23021 = vst [vmem:[#allocation74_spill] sm:$0xff] %v17710_v47  ;;  %23022 = vst [vmem:[#allocation75_spill] sm:$0xff] %v17713_v38  ;;  %v17724_v54 = vrot.slane %v2920_v42, %v16779_v52  ;;  %v17727_v13 = vrot.slane %v2921_v12, %v16779_v52  ;;  %v3465_v49 = vcombine.high %v17590_v37, %v3415_v48  ;;  %v23085_v47 = vld [vmem:[#allocation57_spill] sm:$0xff] }
 0x44f   : > { %v17704_v62 = vpop.f32.mrf.mxu1  ;;  %23023 = vst [vmem:[#allocation76_spill] sm:$0xff] %v17718_v5  ;;  %23024 = vst [vmem:[#allocation77_spill] sm:$0xff] %v17721_v34  ;;  %v2160_v1 = vcombine.low %v23027_v39, %v17275_v14  ;;  %v17737_v50 = vrot.slane %v3448_v24, %v16779_v52  ;;  %v17740_v32 = vrot.slane %v3449_v58, %v16779_v52 }
 0x450   : > { %23025 = vst [vmem:[#allocation78_spill] sm:$0xff] %v17724_v54  ;;  %23026 = vst [vmem:[#allocation79_spill] sm:$0xff] %v17727_v13  ;;  %v3992_v42 = vcombine.low %v17613_v44, %v3952_v21  ;;  %v3993_v12 = vcombine.high %v17613_v44, %v3952_v21  ;;  %v4008_v37 = vcombine.low %v17616_v10, %v3959_v43 }
 0x451   : > { %1936 = vrot.lane.b32.xlu1 %v17492_v23, %s22946_s25  ;;  %1864 = vrot.lane.b32.xlu0 %v17492_v23, %s16391_s24  ;;  %23029 = vst [vmem:[#allocation80_spill] sm:$0xff] %v17737_v50  ;;  %23030 = vst [vmem:[#allocation81_spill] sm:$0xff] %v17740_v32  ;;  %v2161_v48 = vcombine.high %v23027_v39, %v17275_v14  ;;  %v4009_v27 = vcombine.high %v17616_v10, %v3959_v43  ;;  %v1629_v32 = vpop.f32.mrf.mxu1  ;;  %v23034_v43 = vld [vmem:[#allocation21_spill] sm:$0xff] }
 0x452   : > { %23031 = vst [vmem:[#allocation82_spill] sm:$0xff] %v17747_v35  ;;  %v2176_v24 = vcombine.low %v17277_v59, %v17303_v11  ;;  %v2192_v58 = vcombine.low %v23032_v17, %v17334_v3  ;;  %v17755_v50 = vrot.slane %v3464_v33, %v16779_v52  ;;  %v2177_v44 = vcombine.high %v17277_v59, %v17303_v11 }
 0x453   : > { %v2208_v14 = vcombine.low %v17342_v61, %v17355_v46  ;;  %v2209_v21 = vcombine.high %v17342_v61, %v17355_v46  ;;  %v2193_v10 = vcombine.high %v23032_v17, %v17334_v3  ;;  %v2328_v39 = vcombine.low %v23034_v43, %v17374_v45 }
 0x454   : > { %23033 = vst [vmem:[#allocation30_spill] sm:$0xff] %v17755_v50  ;;  %v2329_v33 = vcombine.high %v23034_v43, %v17374_v45  ;;  %v2168_v59 = vrot.slane %v2160_v1, %v16771_v8  ;;  %v17777_v46 = vrot.slane %v3465_v49, %v16779_v52  ;;  %v2175_v3 = vrot.slane %v2161_v48, %v16771_v8 }
 0x455   : > { %1984 = vrot.lane.b32.xlu1 %v17492_v23, %s22947_s29  ;;  %1912 = vrot.lane.b32.xlu0 %v17492_v23, %s22945_s15  ;;  %v17783_v17 = vrot.slane %v3992_v42, %v16779_v52  ;;  %v17786_v50 = vrot.slane %v3993_v12, %v16779_v52  ;;  %v17789_v45 = vrot.slane %v4008_v37, %v16779_v52 }
 0x456   : > { %23035 = vst [vmem:[#allocation21_spill] sm:$0xff] %v17777_v46  ;;  %v2184_v1 = vrot.slane %v2176_v24, %v16771_v8  ;;  %v1618_v43 = vadd.f32 %v17600_v7, %v17135_v36  ;;  %v2200_v49 = vrot.slane %v2192_v58, %v16771_v8  ;;  %v1633_v46 = vpop.f32.mrf.mxu1  ;;  %v17796_v48 = vrot.slane %v4009_v27, %v16779_v52 }
 0x457   : > { %23036 = vst [vmem:[#allocation83_spill] sm:$0xff] %v17783_v17  ;;  %23037 = vst [vmem:[#allocation84_spill] sm:$0xff] %v17786_v50  ;;  %v2191_v42 = vrot.slane %v2177_v44, %v16771_v8  ;;  %v2216_v17 = vrot.slane %v2208_v14, %v16771_v8  ;;  %v2223_v12 = vrot.slane %v2209_v21, %v16771_v8  ;;  %v23040_v21 = vld [vmem:[#allocation11_spill] sm:$0xff] }
 0x458   : > { %23038 = vst [vmem:[#allocation85_spill] sm:$0xff] %v17789_v45  ;;  %23039 = vst [vmem:[#allocation86_spill] sm:$0xff] %v17796_v48  ;;  %v2207_v37 = vrot.slane %v2193_v10, %v16771_v8  ;;  %v17805_v24 = vrot.slane %v2328_v39, %v16771_v8  ;;  %v17808_v36 = vrot.slane %v2329_v33, %v16771_v8  ;;  %v1635_v50 = vpop.f32.mrf.mxu1 }
 0x459   : > { %1786 = vrot.lane.b32.xlu1 %v17013_v28, %s22949_s30  ;;  %1960 = vrot.lane.b32.xlu0 %v17492_v23, %s22949_s30  ;;  %v2224_v7 = vcombine.low %v2168_v59, %v2184_v1  ;;  %v2225_v27 = vcombine.high %v2168_v59, %v2184_v1  ;;  %v2240_v44 = vcombine.low %v2175_v3, %v2191_v42 }
 0x45a   : > { %v2241_v14 = vcombine.high %v2175_v3, %v2191_v42  ;;  %v1622_v10 = vadd.f32 %v17637_v57, %v23040_v21  ;;  %v1624_v48 = vadd.f32 %v17673_v56, %v23040_v21  ;;  %v17821_v33 = vadd.f32 %v17350_v55, %v1618_v43 }
 0x45b   : > { %v17774_v11 = vpop.permute.xlu1 %4232  ;;  %v17780_v61 = vpop.permute.xlu0 %4208  ;;  %v2448_v59 = vcombine.low %v17382_v41, %v17398_v51  ;;  %v2256_v1 = vcombine.low %v2200_v49, %v2216_v17  ;;  %v2257_v45 = vcombine.high %v2200_v49, %v2216_v17  ;;  %v2449_v3 = vcombine.high %v17382_v41, %v17398_v51  ;;  %v23044_v49 = vld [vmem:[#allocation13_spill] sm:$0xff] }
 0x45c   : > { %23041 = vst [vmem:[#allocation11_spill] sm:$0xff] %v17821_v33  ;;  %v2272_v42 = vcombine.low %v2207_v37, %v2223_v12  ;;  %v17833_v43 = vrot.slane %v2224_v7, %v16779_v52  ;;  %v17836_v21 = vrot.slane %v2225_v27, %v16779_v52  ;;  %v2273_v17 = vcombine.high %v2207_v37, %v2223_v12  ;;  %v1639_v7 = vpop.f32.mrf.mxu1 }
 0x45d   : > { %1834 = vrot.lane.b32.xlu1 %v17013_v28, %s22950_s13  ;;  %2008 = vrot.lane.b32.xlu0 %v17492_v23, %s22950_s13  ;;  %v23042_v23 = vld [vmem:[#allocation14_spill] sm:$0xff]  ;;  %v1634_v29 = vadd.f32 %v1633_v46, %v23044_v49  ;;  %v17842_v51 = vrot.slane %v2240_v44, %v16779_v52  ;;  %v17848_v41 = vadd.f32 %v17257_v20, %v1622_v10 }
 0x45e   : > { %v1628_v57 = vadd.f32 %v17704_v62, %v23042_v23  ;;  %v1630_v56 = vadd.f32 %v1629_v32, %v23042_v23  ;;  %23043 = vst [vmem:[#allocation14_spill] sm:$0xff] %v17836_v21  ;;  %v17845_v23 = vrot.slane %v2241_v14, %v16779_v52  ;;  %v17851_v62 = vadd.f32 %v17350_v55, %v1624_v48 }
 0x45f   : > { %v17812_v58 = vpop.permute.xlu1 %4280  ;;  %v17818_v39 = vpop.permute.xlu0 %4256  ;;  %23045 = vst [vmem:[#allocation13_spill] sm:$0xff] %v17848_v41  ;;  %v17856_v12 = vrot.slane %v2448_v59, %v16771_v8  ;;  %v17859_v46 = vrot.slane %v2256_v1, %v16779_v52  ;;  %v2344_v37 = vcombine.low %v17353_v0, %v17370_v18  ;;  %v17869_v48 = vrot.slane %v2449_v3, %v16771_v8  ;;  %v23051_v3 = vld [vmem:[#allocation10_spill] sm:$0xff] }
 0x460   : > { %23046 = vst [vmem:[#allocation87_spill] sm:$0xff] %v17851_v62  ;;  %v17872_v44 = vrot.slane %v2272_v42, %v16779_v52  ;;  %v17875_v14 = vadd.f32 %v17257_v20, %v1628_v57  ;;  %v17878_v10 = vadd.f32 %v17350_v55, %v1630_v56  ;;  %v17886_v59 = vadd.f32 %v17257_v20, %v1634_v29 }
 0x461   : > { %1890 = vrot.lane.b32.xlu1 %v17506_v22, %s16390_s26  ;;  %1810 = vrot.lane.b32.xlu0 %v17013_v28, %s22947_s29  ;;  %v17862_v28 = vrot.slane %v2257_v45, %v16779_v52  ;;  %v17883_v45 = vrot.slane %v2273_v17, %v16779_v52  ;;  %v2345_v1 = vcombine.high %v17353_v0, %v17370_v18 }
 0x462   : > { %23048 = vst [vmem:[#allocation89_spill] sm:$0xff] %v17875_v14  ;;  %23049 = vst [vmem:[#allocation90_spill] sm:$0xff] %v17878_v10  ;;  %v2432_v42 = vcombine.low %v23051_v3, %v17380_v2  ;;  %v1636_v57 = vadd.f32 %v1635_v50, %v23044_v49  ;;  %v2480_v56 = vcombine.low %v17406_v15, %v17419_v16  ;;  %v1641_v10 = vpop.f32.mrf.mxu1  ;;  %v23053_v50 = vld [vmem:[#allocation15_spill] sm:$0xff] }
 0x463   : > { %v17853_v32 = vpop.permute.xlu1 %4328  ;;  %23047 = vst [vmem:[#allocation88_spill] sm:$0xff] %v17862_v28  ;;  %v17866_v27 = vpop.permute.xlu0 %4304  ;;  %23050 = vst [vmem:[#allocation91_spill] sm:$0xff] %v17886_v59  ;;  %v2481_v17 = vcombine.high %v17406_v15, %v17419_v16  ;;  %v2433_v29 = vcombine.high %v23051_v3, %v17380_v2  ;;  %v2352_v49 = vrot.slane %v2344_v37, %v16771_v8 }
 0x464   : > { %v2464_v3 = vcombine.low %v17391_v40, %v17404_v25  ;;  %v2359_v37 = vrot.slane %v2345_v1, %v16771_v8  ;;  %v1640_v18 = vadd.f32 %v1639_v7, %v23053_v50  ;;  %v2440_v0 = vrot.slane %v2432_v42, %v16771_v8  ;;  %v23057_v42 = vld [vmem:[#allocation18_spill] sm:$0xff] }
 0x465   : > { %1938 = vrot.lane.b32.xlu1 %v17506_v22, %s22946_s25  ;;  %1866 = vrot.lane.b32.xlu0 %v17506_v22, %s16391_s24  ;;  %v2465_v16 = vcombine.high %v17391_v40, %v17404_v25  ;;  %v1642_v13 = vadd.f32 %v1641_v10, %v23053_v50  ;;  %v2447_v1 = vrot.slane %v2433_v29, %v16771_v8  ;;  %v23056_v25 = vld [vmem:[#allocation41_spill] sm:$0xff] }
 0x466   : > { %v17938_v7 = vadd.f32 %v17350_v55, %v1636_v57  ;;  %v2392_v40 = vcombine.low %v17805_v24, %v2352_v49  ;;  %v2600_v54 = vcombine.low %v23057_v42, %v23056_v25  ;;  %v2601_v15 = vcombine.high %v23057_v42, %v23056_v25  ;;  %v23059_v57 = vld [vmem:[#allocation7_spill] sm:$0xff] }
 0x467   : > { %v17901_v59 = vpop.permute.xlu1 %4236  ;;  %v17910_v14 = vpop.permute.xlu0 %4352  ;;  %v2488_v2 = vrot.slane %v2480_v56, %v16771_v8  ;;  %v2495_v10 = vrot.slane %v2481_v17, %v16771_v8  ;;  %v2393_v29 = vcombine.high %v17805_v24, %v2352_v49  ;;  %v2472_v50 = vrot.slane %v2464_v3, %v16771_v8 }
 0x468   : > { %23052 = vst [vmem:[#allocation10_spill] sm:$0xff] %v17901_v59  ;;  %23055 = vst [vmem:[#allocation92_spill] sm:$0xff] %v17938_v7  ;;  %v2408_v7 = vcombine.low %v17808_v36, %v2359_v37  ;;  %v2496_v25 = vcombine.low %v2440_v0, %v17856_v12  ;;  %v2479_v42 = vrot.slane %v2465_v16, %v16771_v8 }
 0x469   : > { %1986 = vrot.lane.b32.xlu1 %v17506_v22, %s22947_s29  ;;  %1914 = vrot.lane.b32.xlu0 %v17506_v22, %s22945_s15  ;;  %v2409_v56 = vcombine.high %v17808_v36, %v2359_v37  ;;  %v17963_v24 = vadd.f32 %v17350_v55, %v1642_v13  ;;  %v2497_v17 = vcombine.high %v2440_v0, %v17856_v12  ;;  %v23065_v55 = vld [vmem:[#allocation46_spill] sm:$0xff]  ;;  %v23066_v13 = vld [vmem:[#allocation43_spill] sm:$0xff] }
 0x46a   : > { %v2512_v49 = vcombine.low %v2447_v1, %v17869_v48  ;;  %v2513_v16 = vcombine.high %v2447_v1, %v17869_v48  ;;  %v17979_v36 = vrot.slane %v2392_v40, %v16779_v52  ;;  %v2720_v12 = vcombine.low %v23066_v13, %v23065_v55 }
 0x46b   : > { %v17935_v59 = vpop.permute.xlu1 %4284  ;;  %v17945_v34 = vpop.permute.xlu0 %4212  ;;  %23061 = vst [vmem:[#allocation7_spill] sm:$0xff] %v17963_v24  ;;  %v2721_v0 = vcombine.high %v23066_v13, %v23065_v55  ;;  %v2528_v37 = vcombine.low %v2472_v50, %v2488_v2  ;;  %v17991_v48 = vrot.slane %v2496_v25, %v16779_v52  ;;  %v2544_v1 = vcombine.low %v2479_v42, %v2495_v10 }
 0x46c   : > { %23054 = vst [vmem:[#allocation15_spill] sm:$0xff] %v17935_v59  ;;  %23058 = vst [vmem:[#allocation41_spill] sm:$0xff] %v17945_v34  ;;  %v17955_v59 = vadd.f32 %v17257_v20, %v1640_v18  ;;  %v17970_v20 = vrot.slane %v2600_v54, %v16771_v8  ;;  %v17973_v18 = vrot.slane %v2601_v15, %v16771_v8  ;;  %v23083_v34 = vld [vmem:[#allocation48_spill] sm:$0xff] }
 0x46d   : > { %1788 = vrot.lane.b32.xlu1 %v23059_v57, %s22949_s30  ;;  %1962 = vrot.lane.b32.xlu0 %v17506_v22, %s22949_s30  ;;  %23064 = vst [vmem:[#allocation95_spill] sm:$0xff] %v17979_v36  ;;  %v17988_v54 = vrot.slane %v2393_v29, %v16779_v52  ;;  %23068 = vst [vmem:[#allocation43_spill] sm:$0xff] %v17991_v48  ;;  %v2529_v15 = vcombine.high %v2472_v50, %v2488_v2  ;;  %v23074_v50 = vld [vmem:[#allocation40_spill] sm:$0xff] }
 0x46e   : > { %23060 = vst [vmem:[#allocation18_spill] sm:$0xff] %v17955_v59  ;;  %v17996_v40 = vrot.slane %v2408_v7, %v16779_v52  ;;  %v17999_v55 = vrot.slane %v2497_v17, %v16779_v52  ;;  %v18002_v13 = vrot.slane %v2512_v49, %v16779_v52  ;;  %v2545_v24 = vcombine.high %v2479_v42, %v2495_v10 }
 0x46f   : > { %v17967_v3 = vpop.permute.xlu1 %4332  ;;  %v17976_v59 = vpop.permute.xlu0 %4260  ;;  %23067 = vst [vmem:[#allocation46_spill] sm:$0xff] %v17988_v54  ;;  %v18007_v25 = vrot.slane %v2409_v56, %v16779_v52  ;;  %v18010_v2 = vrot.slane %v2513_v16, %v16779_v52  ;;  %v18021_v10 = vrot.slane %v2720_v12, %v16771_v8  ;;  %v18024_v42 = vrot.slane %v2721_v0, %v16771_v8 }
 0x470   : > { %23062 = vst [vmem:[#allocation93_spill] sm:$0xff] %v17967_v3  ;;  %23063 = vst [vmem:[#allocation94_spill] sm:$0xff] %v17976_v59  ;;  %v18027_v56 = vrot.slane %v2528_v37, %v16779_v52  ;;  %v18034_v17 = vrot.slane %v2529_v15, %v16779_v52  ;;  %v18037_v49 = vrot.slane %v2544_v1, %v16779_v52 }
 0x471   : > { %1836 = vrot.lane.b32.xlu1 %v23059_v57, %s22950_s13  ;;  %2010 = vrot.lane.b32.xlu0 %v17506_v22, %s22950_s13  ;;  %23069 = vst [vmem:[#allocation96_spill] sm:$0xff] %v17996_v40  ;;  %23070 = vst [vmem:[#allocation97_spill] sm:$0xff] %v17999_v55  ;;  %v23075_v22 = vld [vmem:[#allocation38_spill] sm:$0xff] }
 0x472   : > { %23071 = vst [vmem:[#allocation98_spill] sm:$0xff] %v18002_v13  ;;  %23072 = vst [vmem:[#allocation99_spill] sm:$0xff] %v18007_v25  ;;  %v2616_v3 = vcombine.low %v23075_v22, %v23074_v50  ;;  %v2617_v16 = vcombine.high %v23075_v22, %v23074_v50  ;;  %v18046_v22 = vrot.slane %v2545_v24, %v16779_v52  ;;  %v23082_v50 = vld [vmem:[#allocation51_spill] sm:$0xff]  ;;  %v23087_v25 = vld [vmem:[#allocation42_spill] sm:$0xff] }
 0x473   : > { %v18004_v29 = vpop.permute.xlu1 %4384  ;;  %23073 = vst [vmem:[#allocation100_spill] sm:$0xff] %v18010_v2  ;;  %v18014_v7 = vpop.permute.xlu0 %4308  ;;  %23077 = vst [vmem:[#allocation38_spill] sm:$0xff] %v18027_v56  ;;  %v2752_v12 = vcombine.low %v23083_v34, %v23082_v50  ;;  %v2753_v0 = vcombine.high %v23083_v34, %v23082_v50  ;;  %v2872_v34 = vcombine.low %v23086_v53, %v23085_v47  ;;  %v23088_v50 = vld [vmem:[#allocation12_spill] sm:$0xff] }
 0x474   : > { %23076 = vst [vmem:[#allocation40_spill] sm:$0xff] %v18014_v7  ;;  %v23078_v7 = vld [vmem:[#allocation53_spill] sm:$0xff]  ;;  %23079 = vst [vmem:[#allocation101_spill] sm:$0xff] %v18034_v17  ;;  %v18061_v24 = vrot.slane %v2616_v3, %v16771_v8  ;;  %v18072_v40 = vrot.slane %v2617_v16, %v16771_v8  ;;  %v2873_v3 = vcombine.high %v23086_v53, %v23085_v47 }
 0x475   : > { %1892 = vrot.lane.b32.xlu1 %v23078_v7, %s16390_s26  ;;  %23080 = vst [vmem:[#allocation102_spill] sm:$0xff] %v18037_v49  ;;  %1812 = vrot.lane.b32.xlu0 %v23059_v57, %s22947_s29  ;;  %23081 = vst [vmem:[#allocation103_spill] sm:$0xff] %v18046_v22  ;;  %v2704_v38 = vcombine.low %v23088_v50, %v23087_v25  ;;  %v18097_v15 = vrot.slane %v2752_v12, %v16771_v8 }
 0x476   : > { %v18100_v57 = vrot.slane %v2753_v0, %v16771_v8  ;;  %v2664_v49 = vcombine.low %v17970_v20, %v18061_v24  ;;  %v2705_v16 = vcombine.high %v23088_v50, %v23087_v25  ;;  %v2665_v53 = vcombine.high %v17970_v20, %v18061_v24  ;;  %v23089_v50 = vld [vmem:[#allocation36_spill] sm:$0xff] }
 0x477   : > { %v18048_v37 = vpop.permute.xlu1 %4432  ;;  %v18063_v54 = vpop.permute.xlu0 %4356  ;;  %v2680_v47 = vcombine.low %v17973_v18, %v18072_v40  ;;  %v2681_v12 = vcombine.high %v17973_v18, %v18072_v40  ;;  %v18113_v22 = vrot.slane %v2872_v34, %v16771_v8  ;;  %v4600_v0 = vcombine.low %v17866_v27, %v17910_v14  ;;  %v23091_v34 = vld [vmem:[#allocation25_spill] sm:$0xff] }
 0x478   : > { %23084 = vst [vmem:[#allocation51_spill] sm:$0xff] %v18063_v54  ;;  %v4601_v25 = vcombine.high %v17866_v27, %v17910_v14  ;;  %v18126_v18 = vrot.slane %v2873_v3, %v16771_v8  ;;  %v18129_v40 = vrot.slane %v2704_v38, %v16771_v8  ;;  %v4552_v2 = vcombine.low %v23091_v34, %v17774_v11 }
 0x479   : > { %1940 = vrot.lane.b32.xlu1 %v23078_v7, %s22946_s25  ;;  %1868 = vrot.lane.b32.xlu0 %v23078_v7, %s16391_s24  ;;  %v4553_v13 = vcombine.high %v23091_v34, %v17774_v11  ;;  %v4584_v14 = vcombine.low %v17812_v58, %v17853_v32  ;;  %v4704_v3 = vcombine.low %v18004_v29, %v18048_v37 }
 0x47a   : > { %23090 = vst [vmem:[#allocation48_spill] sm:$0xff] %v18126_v18  ;;  %v4705_v38 = vcombine.high %v18004_v29, %v18048_v37  ;;  %v18144_v55 = vrot.slane %v2705_v16, %v16771_v8  ;;  %v4568_v11 = vcombine.low %v17780_v61, %v17818_v39  ;;  %v4569_v34 = vcombine.high %v17780_v61, %v17818_v39 }
 0x47b   : > { %v4481_v17 = vpop.permute.xlu1 %4480  ;;  %v4409_v1 = vpop.permute.xlu0 %4408  ;;  %v18159_v29 = vrot.slane %v4601_v25, %v16771_v8  ;;  %v18170_v61 = vrot.slane %v4552_v2, %v16771_v8  ;;  %v18173_v39 = vrot.slane %v4553_v13, %v16771_v8  ;;  %v18178_v25 = vrot.slane %v4584_v14, %v16771_v8 }
 0x47c   : > { %v4688_v20 = vcombine.low %v23089_v50, %v4409_v1  ;;  %v4689_v24 = vcombine.high %v23089_v50, %v4409_v1  ;;  %v4585_v1 = vcombine.high %v17812_v58, %v17853_v32  ;;  %v18153_v58 = vrot.slane %v2664_v49, %v16779_v52 }
 0x47d   : > { %4390 = vrot.lane.b32.xlu1 %v17821_v33, %s16391_s24  ;;  %1916 = vrot.lane.b32.xlu0 %v23078_v7, %s22945_s15  ;;  %v18156_v32 = vrot.slane %v4600_v0, %v16771_v8  ;;  %v18187_v48 = vrot.slane %v4705_v38, %v16771_v8  ;;  %v18190_v13 = vrot.slane %v4568_v11, %v16771_v8 }
 0x47e   : > { %23092 = vst [vmem:[#allocation57_spill] sm:$0xff] %v18153_v58  ;;  %v18162_v37 = vrot.slane %v4688_v20, %v16771_v8  ;;  %v18165_v16 = vrot.slane %v4689_v24, %v16771_v8  ;;  %v18181_v20 = vrot.slane %v4585_v1, %v16771_v8  ;;  %v18184_v24 = vrot.slane %v4704_v3, %v16771_v8  ;;  %v23133_v58 = vld [vmem:[#allocation95_spill] sm:$0xff] }
 0x47f   : > { %v4529_v27 = vpop.permute.xlu1 %4528  ;;  %v4457_v50 = vpop.permute.xlu0 %4456  ;;  %v4648_v14 = vcombine.low %v18178_v25, %v18156_v32  ;;  %v2768_v59 = vcombine.low %v18129_v40, %v18021_v10  ;;  %v18222_v21 = vrot.slane %v2665_v53, %v16779_v52  ;;  %v2769_v53 = vcombine.high %v18129_v40, %v18021_v10 }
 0x480   : > { %v4736_v49 = vcombine.low %v4481_v17, %v4529_v27  ;;  %v4737_v0 = vcombine.high %v4481_v17, %v4529_v27  ;;  %v18193_v17 = vrot.slane %v4569_v34, %v16771_v8  ;;  %v4664_v1 = vcombine.low %v18181_v20, %v18159_v29 }
 0x481   : > { %4438 = vrot.lane.b32.xlu1 %v17821_v33, %s22945_s15  ;;  %4414 = vrot.lane.b32.xlu0 %v17821_v33, %s16390_s26  ;;  %v4752_v3 = vcombine.low %v18162_v37, %v18184_v24  ;;  %v4768_v38 = vcombine.low %v18165_v16, %v18187_v48  ;;  %23096 = vst [vmem:[#allocation36_spill] sm:$0xff] %v18222_v21 }
 0x482   : > { %v4751_v11 = vrot.slane %v4737_v0, %v16771_v8  ;;  %v18228_v0 = vrot.slane %v2681_v12, %v16779_v52  ;;  %v18245_v12 = vrot.slane %v4648_v14, %v16779_v52  ;;  %v23099_v14 = vld [vmem:[#allocation47_spill] sm:$0xff] }
 0x483   : > { %v18175_v56 = vpop.permute.xlu1 %4388  ;;  %v4505_v2 = vpop.permute.xlu0 %4504  ;;  %v4760_v63 = vrot.slane %v4752_v3, %v16779_v52  ;;  %v18255_v10 = vrot.slane %v4768_v38, %v16779_v52  ;;  %v2736_v30 = vcombine.low %v23100_v9, %v23099_v14 }
 0x484   : > { %23093 = vst [vmem:[#allocation22_spill] sm:$0xff] %v18175_v56  ;;  %v4720_v27 = vcombine.low %v4457_v50, %v4505_v2  ;;  %v4721_v56 = vcombine.high %v4457_v50, %v4505_v2  ;;  %v18208_v50 = vrot.slane %v4736_v49, %v16771_v8  ;;  %v18225_v49 = vrot.slane %v2680_v47, %v16779_v52 }
 0x485   : > { %4486 = vrot.lane.b32.xlu1 %v17821_v33, %s22949_s30  ;;  %4462 = vrot.lane.b32.xlu0 %v17821_v33, %s22946_s25  ;;  %23098 = vst [vmem:[#allocation104_spill] sm:$0xff] %v18228_v0  ;;  %v2784_v47 = vcombine.low %v18144_v55, %v18024_v42  ;;  %v2744_v21 = vrot.slane %v2736_v30, %v16771_v8 }
 0x486   : > { %v18212_v34 = vrot.slane %v4720_v27, %v16771_v8  ;;  %v4735_v2 = vrot.slane %v4721_v56, %v16771_v8  ;;  %23097 = vst [vmem:[#allocation25_spill] sm:$0xff] %v18225_v49  ;;  %v4616_v27 = vcombine.low %v18170_v61, %v18190_v13  ;;  %v4632_v56 = vcombine.low %v18173_v39, %v18193_v17 }
 0x487   : > { %v18215_v54 = vpop.permute.xlu1 %4436  ;;  %v18219_v28 = vpop.permute.xlu0 %4412  ;;  %v18309_v3 = vrot.slane %v2784_v47, %v16779_v52 }
 0x488   : > { %23094 = vst [vmem:[#allocation42_spill] sm:$0xff] %v18215_v54  ;;  %23095 = vst [vmem:[#allocation12_spill] sm:$0xff] %v18219_v28  ;;  %v4784_v54 = vcombine.low %v18212_v34, %v18208_v50  ;;  %v4800_v5 = vcombine.low %v4735_v2, %v4751_v11  ;;  %v18248_v28 = vrot.slane %v4664_v1, %v16779_v52 }
 0x489   : > { %4534 = vrot.lane.b32.xlu1 %v17821_v33, %s22950_s13  ;;  %4510 = vrot.lane.b32.xlu0 %v17821_v33, %s22947_s29  ;;  %v2785_v33 = vcombine.high %v18144_v55, %v18024_v42  ;;  %v4801_v1 = vcombine.high %v4735_v2, %v4751_v11  ;;  %v4624_v38 = vrot.slane %v4616_v27, %v16779_v52 }
 0x48a   : > { %v4792_v18 = vrot.slane %v4784_v54, %v16779_v52  ;;  %v18258_v40 = vrot.slane %v4800_v5, %v16779_v52  ;;  %v18274_v55 = vrot.slane %v4632_v56, %v16779_v52  ;;  %v4769_v42 = vcombine.high %v18165_v16, %v18187_v48  ;;  %23103 = vst [vmem:[#allocation105_spill] sm:$0xff] %v18309_v3 }
 0x48b   : > { %v18250_v36 = vpop.permute.xlu1 %4484  ;;  %v18264_v35 = vpop.permute.xlu0 %4460  ;;  %v2737_v27 = vcombine.high %v23100_v9, %v23099_v14  ;;  %v4680_v16 = vcombine.low %v4624_v38, %v18245_v12  ;;  %v18296_v11 = vrot.slane %v2768_v59, %v16779_v52  ;;  %v18299_v2 = vrot.slane %v2769_v53, %v16779_v52 }
 0x48c   : > { %v4816_v54 = vcombine.low %v4760_v63, %v4792_v18  ;;  %v4820_v5 = vcombine.low %v18255_v10, %v18258_v40  ;;  %v4684_v56 = vcombine.low %v18274_v55, %v18248_v28  ;;  %v18306_v14 = vrot.slane %v4801_v1, %v16779_v52 }
 0x48d   : > { %1988 = vrot.lane.b32.xlu1 %v23078_v7, %s22947_s29  ;;  %1964 = vrot.lane.b32.xlu0 %v23078_v7, %s22949_s30  ;;  %23101 = vst [vmem:[#allocation47_spill] sm:$0xff] %v18296_v11  ;;  %23102 = vst [vmem:[#allocation45_spill] sm:$0xff] %v18299_v2  ;;  %v4665_v59 = vcombine.high %v18181_v20, %v18159_v29  ;;  %v18317_v53 = vrot.slane %v2785_v33, %v16779_v52  ;;  %v23131_v2 = vld [vmem:[#allocation48_spill] sm:$0xff]  ;;  %v23132_v11 = vld [vmem:[#allocation71_spill] sm:$0xff] }
 0x48e   : > { %15780 = vmatprep.subr.msk.mxu0 %vm1430_vm2, %v4816_v54  ;;  %15808 = vmatprep.subr.msk.mxu1 %vm1430_vm2, %v4820_v5  ;;  %v18324_v47 = vrot.slane %v4769_v42, %v16779_v52  ;;  %v2751_v29 = vrot.slane %v2737_v27, %v16771_v8  ;;  %v4633_v20 = vcombine.high %v18173_v39, %v18193_v17 }
 0x48f   : > { %v18290_v48 = vpop.permute.xlu1 %4532  ;;  %15781 = vmatpush3.xpose.msk.msra.mxu0 %vm1430_vm2, %v4816_v54  ;;  %15809 = vmatpush3.xpose.msk.msra.mxu1 %vm1430_vm2, %v4820_v5  ;;  %v18303_v9 = vpop.permute.xlu0 %4508  ;;  %23104 = vst [vmem:[#allocation106_spill] sm:$0xff] %v18317_v53  ;;  %v4817_v33 = vcombine.high %v4760_v63, %v4792_v18  ;;  %v2992_v5 = vcombine.low %v17574_v6, %v17626_v31 }
 0x490   : > { %15782 = vmatprep.subr.msk.mxu0 %vm1430_vm2, %v4680_v16  ;;  %15810 = vmatprep.subr.msk.mxu1 %vm1430_vm2, %v4684_v56  ;;  %v4785_v42 = vcombine.high %v18212_v34, %v18208_v50  ;;  %v4822_v39 = vcombine.low %v18324_v47, %v18306_v14  ;;  %v2993_v63 = vcombine.high %v17574_v6, %v17626_v31 }
 0x491   : > { %4240 = vrot.lane.b32.xlu1 %v17848_v41, %s16390_s26  ;;  %4216 = vrot.lane.b32.xlu0 %v17848_v41, %s16391_s24  ;;  %v2800_v18 = vcombine.low %v2744_v21, %v18097_v15  ;;  %v18350_v17 = vrot.slane %v4665_v59, %v16779_v52  ;;  %v2801_v34 = vcombine.high %v2744_v21, %v18097_v15  ;;  %v23106_v59 = vld [vmem:[#allocation50_spill] sm:$0xff] }
 0x492   : > { %v2816_v31 = vcombine.low %v2751_v29, %v18100_v57  ;;  %v23107_v21 = vcombine.low %v17833_v43, %v17859_v46  ;;  %v23108_v6 = vcombine.low %v17842_v51, %v17872_v44  ;;  %v4681_v30 = vcombine.high %v4624_v38, %v18245_v12 }
 0x493   : > { %v18331_v1 = vpop.permute.xlu1 %4234  ;;  %15783 = vmatpush3.xpose.msk.msra.mxu0 %vm1430_vm2, %v4680_v16  ;;  %15811 = vmatpush3.xpose.msk.msra.mxu1 %vm1430_vm2, %v4684_v56  ;;  %v18341_v27 = vpop.permute.xlu0 %4210  ;;  %v4753_v16 = vcombine.high %v18162_v37, %v18184_v24  ;;  %v23105_v56 = vld [vmem:[#allocation55_spill] sm:$0xff]  ;;  %v18374_v37 = vrot.slane %v4633_v20, %v16779_v52  ;;  %v4649_v24 = vcombine.high %v18178_v25, %v18156_v32  ;;  %v23110_v32 = vld [vmem:[#allocation26_spill] sm:$0xff] }
 0x494   : > { %15787 = vmatprep.subr.msk.mxu0 %vm1430_vm2, %v4817_v33  ;;  %15822 = vmatprep.subr.msk.mxu1 %vm1430_vm2, %v4822_v39  ;;  %v2888_v54 = vcombine.low %v23106_v59, %v23105_v56  ;;  %v18390_v20 = vrot.slane %v2800_v18, %v16779_v52  ;;  %v2817_v0 = vcombine.high %v2751_v29, %v18100_v57  ;;  %v23111_v25 = vld [vmem:[#allocation27_spill] sm:$0xff]  ;;  %v23114_v18 = vld [vmem:[#allocation33_spill] sm:$0xff] }
 0x495   : > { %4288 = vrot.lane.b32.xlu1 %v17848_v41, %s22946_s25  ;;  %4264 = vrot.lane.b32.xlu0 %v17848_v41, %s22945_s15  ;;  %v23112_v4 = vcombine.high %v23110_v32, %v23111_v25  ;;  %v2889_v12 = vcombine.high %v23106_v59, %v23105_v56  ;;  %v4617_v38 = vcombine.high %v18170_v61, %v18190_v13  ;;  %v23119_v59 = vld [vmem:[#allocation58_spill] sm:$0xff]  ;;  %v23120_v32 = vld [vmem:[#allocation16_spill] sm:$0xff] }
 0x496   : > { %15785 = vmatmul.mubr.msk.f32.vlgmr.msra.gmra.mxu0 %vm1430_vm2, %v23107_v21  ;;  %15813 = vmatmul.mubr.msk.f32.vlgmr.msra.gmra.mxu1 %vm1430_vm2, %v23108_v6  ;;  %v18387_v21 = vrot.slane %v4785_v42, %v16779_v52  ;;  %23109 = vst [vmem:[#allocation55_spill] sm:$0xff] %v18390_v20  ;;  %v23113_v42 = vld [vmem:[#allocation32_spill] sm:$0xff]  ;;  %v18411_v57 = vrot.slane %v2992_v5, %v16771_v8 }
 0x497   : > { %v18371_v15 = vpop.permute.xlu1 %4282  ;;  %15788 = vmatpush3.xpose.msk.msra.mxu0 %vm1430_vm2, %v4817_v33  ;;  %v18383_v50 = vpop.permute.xlu0 %4258  ;;  %15791 = vmatprep.mubr.msk.f32.mxu0 %vm1430_vm2, %v23112_v4  ;;  %v4686_v33 = vcombine.low %v18374_v37, %v18350_v17  ;;  %v23115_v6 = vcombine.low %v23113_v42, %v23114_v18  ;;  %v4767_v4 = vrot.slane %v4753_v16, %v16779_v52 }
 0x498   : > { %15823 = vmatpush3.xpose.msk.msra.mxu1 %vm1430_vm2, %v4822_v39  ;;  %15789 = vmatprep.subr.msk.mxu0 %vm1430_vm2, %v4681_v30  ;;  %v18414_v29 = vrot.slane %v2801_v34, %v16779_v52  ;;  %v2896_v39 = vrot.slane %v2888_v54, %v16771_v8  ;;  %v18423_v13 = vrot.slane %v2816_v31, %v16779_v52 }
 0x499   : > { %15826 = vmatprep.mubr.msk.f32.mxu1 %vm1430_vm2, %v23115_v6  ;;  %15824 = vmatprep.subr.msk.mxu1 %vm1430_vm2, %v4686_v33  ;;  %v4818_v34 = vcombine.low %v4767_v4, %v18387_v21  ;;  %v18432_v54 = vrot.slane %v4649_v24, %v16779_v52  ;;  %v18435_v16 = vrot.slane %v2993_v63, %v16771_v8 }
 0x49a   : > { %23116 = vst [vmem:[#allocation50_spill] sm:$0xff] %v18414_v29  ;;  %4336 = vrot.lane.b32.xlu1 %v17848_v41, %s22947_s29  ;;  %23117 = vst [vmem:[#allocation26_spill] sm:$0xff] %v18423_v13  ;;  %4312 = vrot.lane.b32.xlu0 %v17848_v41, %s22949_s30  ;;  %v18438_v56 = vrot.slane %v2817_v0, %v16779_v52  ;;  %v2976_v25 = vcombine.low %v23120_v32, %v23119_v59  ;;  %v23156_v13 = vld [vmem:[#allocation40_spill] sm:$0xff] }
 0x49b   : > { %v18420_v61 = vpop.permute.xlu1 %4330  ;;  %15790 = vmatpush3.xpose.msk.msra.mxu0 %vm1430_vm2, %v4681_v30  ;;  %v18428_v5 = vpop.permute.xlu0 %4306  ;;  %v2903_v24 = vrot.slane %v2889_v12, %v16771_v8  ;;  %v2977_v63 = vcombine.high %v23120_v32, %v23119_v59  ;;  %v4631_v0 = vrot.slane %v4617_v38, %v16779_v52  ;;  %v23121_v12 = vcombine.high %v17833_v43, %v17859_v46  ;;  %v23124_v46 = vld [vmem:[#allocation82_spill] sm:$0xff]  ;;  %v23126_v38 = vld [vmem:[#allocation17_spill] sm:$0xff] }
 0x49c   : > { %23118 = vst [vmem:[#allocation27_spill] sm:$0xff] %v18438_v56  ;;  %15825 = vmatpush3.xpose.msk.msra.mxu1 %vm1430_vm2, %v4686_v33  ;;  %15794 = vmatprep.subr.msk.mxu0 %vm1430_vm2, %v4818_v34  ;;  %v2936_v33 = vcombine.low %v18113_v22, %v2896_v39  ;;  %v2937_v32 = vcombine.high %v18113_v22, %v2896_v39  ;;  %v23128_v39 = vld [vmem:[#allocation34_spill] sm:$0xff] }
 0x49d   : > { %v23123_v31 = vcombine.low %v17845_v23, %v17883_v45  ;;  %v4682_v43 = vcombine.low %v4631_v0, %v18432_v54  ;;  %v2984_v49 = vrot.slane %v2976_v25, %v16771_v8  ;;  %v3008_v22 = vcombine.low %v23127_v26, %v23126_v38 }
 0x49e   : > { %4392 = vrot.lane.b32.xlu1 %v17851_v62, %s16391_s24  ;;  %15792 = vmatmul.mubr.msk.f32.vlgmr.msra.gmra.mxu0 %vm1430_vm2, %v23121_v12  ;;  %v23125_v12 = vld [vmem:[#allocation68_spill] sm:$0xff]  ;;  %v2952_v60 = vcombine.low %v23131_v2, %v2903_v24  ;;  %v2991_v20 = vrot.slane %v2977_v63, %v16771_v8  ;;  %v23134_v25 = vcombine.low %v23132_v11, %v23133_v58 }
 0x49f   : > { %v18463_v59 = vpop.permute.xlu1 %4238  ;;  %4360 = vrot.lane.b32.xlu0 %v17848_v41, %s22950_s13  ;;  %15827 = vmatmul.mubr.msk.f32.vlgmr.msra.gmra.mxu1 %vm1430_vm2, %v23123_v31  ;;  %v18474_v6 = vpop.permute.xlu0 %4354  ;;  %v3024_v30 = vcombine.low %v23125_v12, %v23124_v46  ;;  %v23129_v41 = vld [vmem:[#allocation35_spill] sm:$0xff]  ;;  %v3025_v31 = vcombine.high %v23125_v12, %v23124_v46  ;;  %v2953_v19 = vcombine.high %v23131_v2, %v2903_v24 }
 0x4a0   : > { %23122 = vst [vmem:[#allocation32_spill] sm:$0xff] %v18463_v59  ;;  %15795 = vmatpush3.xpose.msk.msra.mxu0 %vm1430_vm2, %v4818_v34  ;;  %v23130_v29 = vcombine.low %v23128_v39, %v23129_v41  ;;  %15840 = vmatprep.mubr.msk.f32.mxu1 %vm1430_vm2, %v23134_v25  ;;  %v18506_v63 = vrot.slane %v2936_v33, %v16779_v52  ;;  %v23162_v59 = vld [vmem:[#allocation15_spill] sm:$0xff] }
 0x4a1   : > { %15796 = vmatprep.subr.msk.mxu0 %vm1430_vm2, %v4682_v43  ;;  %v18518_v24 = vrot.slane %v2937_v32, %v16779_v52  ;;  %v3040_v33 = vcombine.low %v2984_v49, %v18411_v57  ;;  %v3041_v34 = vcombine.high %v2984_v49, %v18411_v57  ;;  %v3016_v12 = vrot.slane %v3008_v22, %v16771_v8 }
 0x4a2   : > { %15798 = vmatprep.mubr.msk.f32.mxu0 %vm1430_vm2, %v23130_v29  ;;  %v3009_v29 = vcombine.high %v23127_v26, %v23126_v38  ;;  %4440 = vrot.lane.b32.xlu1 %v17851_v62, %s22945_s15  ;;  %23136 = vst [vmem:[#allocation58_spill] sm:$0xff] %v18506_v63  ;;  %v4819_v26 = vcombine.high %v4767_v4, %v18387_v21 }
 0x4a3   : > { %v18503_v46 = vpop.permute.xlu1 %4286  ;;  %4416 = vrot.lane.b32.xlu0 %v17851_v62, %s16390_s26  ;;  %v18514_v2 = vpop.permute.xlu0 %4214  ;;  %23138 = vst [vmem:[#allocation82_spill] sm:$0xff] %v18518_v24  ;;  %v3032_v38 = vrot.slane %v3024_v30, %v16771_v8  ;;  %v3039_v25 = vrot.slane %v3025_v31, %v16771_v8  ;;  %v3056_v56 = vcombine.low %v2991_v20, %v18435_v16  ;;  %v23154_v30 = vld [vmem:[#allocation41_spill] sm:$0xff] }
 0x4a4   : > { %23135 = vst [vmem:[#allocation33_spill] sm:$0xff] %v18503_v46  ;;  %23137 = vst [vmem:[#allocation16_spill] sm:$0xff] %v18514_v2  ;;  %15797 = vmatpush3.xpose.msk.msra.mxu0 %vm1430_vm2, %v4682_v43  ;;  %v3057_v53 = vcombine.high %v2991_v20, %v18435_v16  ;;  %v18530_v21 = vrot.slane %v2952_v60, %v16779_v52  ;;  %v3023_v4 = vrot.slane %v3009_v29, %v16771_v8  ;;  %v23143_v60 = vld [vmem:[#allocation14_spill] sm:$0xff]  ;;  %v23144_v16 = vld [vmem:[#allocation88_spill] sm:$0xff] }
 0x4a5   : > { %15801 = vmatprep.subr.msk.mxu0 %vm1430_vm2, %v4819_v26  ;;  %v18542_v20 = vrot.slane %v2953_v19, %v16779_v52  ;;  %v23145_v43 = vcombine.low %v23143_v60, %v23144_v16  ;;  %v4683_v31 = vcombine.high %v4631_v0, %v18432_v54  ;;  %v18558_v19 = vrot.slane %v3040_v33, %v16779_v52  ;;  %v23153_v33 = vld [vmem:[#allocation94_spill] sm:$0xff] }
 0x4a6   : > { %23139 = vst [vmem:[#allocation68_spill] sm:$0xff] %v18530_v21  ;;  %4488 = vrot.lane.b32.xlu1 %v17851_v62, %s22949_s30  ;;  %v18561_v63 = vrot.slane %v3041_v34, %v16779_v52  ;;  %v3072_v57 = vcombine.low %v3016_v12, %v3032_v38  ;;  %v18569_v54 = vrot.slane %v3056_v56, %v16779_v52 }
 0x4a7   : > { %v18535_v49 = vpop.permute.xlu1 %4334  ;;  %23142 = vst [vmem:[#allocation61_spill] sm:$0xff] %v18542_v20  ;;  %4464 = vrot.lane.b32.xlu0 %v17851_v62, %s22946_s25  ;;  %15799 = vmatmul.mubr.msk.f32.vlgmr.msra.gmra.mxu0 %vm1430_vm2, %v23145_v43  ;;  %v18550_v22 = vpop.permute.xlu0 %4262  ;;  %23148 = vst [vmem:[#allocation35_spill] sm:$0xff] %v18558_v19  ;;  %v23150_v43 = vcombine.high %v23128_v39, %v23129_v41  ;;  %v18572_v0 = vrot.slane %v3057_v53, %v16779_v52  ;;  %v23158_v39 = vld [vmem:[#allocation10_spill] sm:$0xff]  ;;  %v23161_v53 = vld [vmem:[#allocation93_spill] sm:$0xff] }
 0x4a8   : > { %23140 = vst [vmem:[#allocation17_spill] sm:$0xff] %v18535_v49  ;;  %23146 = vst [vmem:[#allocation34_spill] sm:$0xff] %v18550_v22  ;;  %15802 = vmatpush3.xpose.msk.msra.mxu0 %vm1430_vm2, %v4819_v26  ;;  %v3073_v32 = vcombine.high %v3016_v12, %v3032_v38  ;;  %v5112_v24 = vcombine.low %v23154_v30, %v23153_v33  ;;  %v3088_v34 = vcombine.low %v3023_v4, %v3039_v25  ;;  %v23155_v26 = vld [vmem:[#allocation51_spill] sm:$0xff] }
 0x4a9   : > { %23149 = vst [vmem:[#allocation48_spill] sm:$0xff] %v18561_v63  ;;  %15805 = vmatprep.mubr.msk.f32.mxu0 %vm1430_vm2, %v23150_v43  ;;  %23151 = vst [vmem:[#allocation71_spill] sm:$0xff] %v18569_v54  ;;  %15803 = vmatprep.subr.msk.mxu0 %vm1430_vm2, %v4683_v31  ;;  %v3089_v29 = vcombine.high %v3023_v4, %v3039_v25  ;;  %v5144_v3 = vcombine.low %v23156_v13, %v23155_v26  ;;  %v23159_v12 = vld [vmem:[#allocation31_spill] sm:$0xff] }
 0x4aa   : > { %23152 = vst [vmem:[#allocation95_spill] sm:$0xff] %v18572_v0  ;;  %4536 = vrot.lane.b32.xlu1 %v17851_v62, %s22950_s13  ;;  %v5096_v38 = vcombine.low %v23159_v12, %v23158_v39  ;;  %v5113_v43 = vcombine.high %v23154_v30, %v23153_v33  ;;  %v4821_v4 = vcombine.high %v18255_v10, %v18258_v40  ;;  %v23180_v30 = vld [vmem:[#allocation39_spill] sm:$0xff] }
 0x4ab   : > { %v18581_v41 = vpop.permute.xlu1 %4386  ;;  %4512 = vrot.lane.b32.xlu0 %v17851_v62, %s22947_s29  ;;  %v18591_v25 = vpop.permute.xlu0 %4310  ;;  %v18598_v49 = vrot.slane %v3072_v57, %v16779_v52  ;;  %v5128_v2 = vcombine.low %v23162_v59, %v23161_v53  ;;  %v18608_v22 = vrot.slane %v3073_v32, %v16779_v52  ;;  %v5097_v10 = vcombine.high %v23159_v12, %v23158_v39  ;;  %v23167_v39 = vld [vmem:[#allocation8_spill] sm:$0xff] }
 0x4ac   : > { %15804 = vmatpush3.xpose.msk.msra.mxu0 %vm1430_vm2, %v4683_v31  ;;  %v5120_v40 = vrot.slane %v5112_v24, %v16771_v8  ;;  %v5145_v57 = vcombine.high %v23156_v13, %v23155_v26  ;;  %v18617_v31 = vrot.slane %v3088_v34, %v16779_v52  ;;  %v18620_v33 = vrot.slane %v3089_v29, %v16779_v52 }
 0x4ad   : > { %23160 = vst [vmem:[#allocation14_spill] sm:$0xff] %v18598_v49  ;;  %23164 = vst [vmem:[#allocation88_spill] sm:$0xff] %v18608_v22  ;;  %15815 = vmatprep.subr.msk.mxu0 %vm1430_vm2, %v4821_v4  ;;  %v5129_v32 = vcombine.high %v23162_v59, %v23161_v53  ;;  %v5152_v62 = vrot.slane %v5144_v3, %v16771_v8  ;;  %v5104_v13 = vrot.slane %v5096_v38, %v16771_v8  ;;  %v23169_v38 = vld [vmem:[#allocation28_spill] sm:$0xff] }
 0x4ae   : > { %23165 = vst [vmem:[#allocation94_spill] sm:$0xff] %v18617_v31  ;;  %23166 = vst [vmem:[#allocation41_spill] sm:$0xff] %v18620_v33  ;;  %1766 = vrot.lane.b32.xlu1 %v23167_v39, %s22946_s25  ;;  %v5127_v26 = vrot.slane %v5113_v43, %v16771_v8  ;;  %v23168_v29 = vcombine.high %v23143_v60, %v23144_v16  ;;  %v4685_v3 = vcombine.high %v18274_v55, %v18248_v28  ;;  %v23170_v43 = vld [vmem:[#allocation29_spill] sm:$0xff] }
 0x4af   : > { %v18627_v24 = vpop.permute.xlu1 %4434  ;;  %2012 = vrot.lane.b32.xlu0 %v23078_v7, %s22950_s13  ;;  %v18637_v59 = vpop.permute.xlu0 %4358  ;;  %v5136_v12 = vrot.slane %v5128_v2, %v16771_v8  ;;  %v23171_v60 = vcombine.high %v23169_v38, %v23170_v43  ;;  %v5111_v28 = vrot.slane %v5097_v10, %v16771_v8  ;;  %v5160_v55 = vcombine.low %v5104_v13, %v5120_v40  ;;  %v23172_v38 = vld [vmem:[#allocation89_spill] sm:$0xff] }
 0x4b0   : > { %15806 = vmatmul.mubr.msk.f32.vlgmr.msra.gmra.mxu0 %vm1430_vm2, %v23168_v29  ;;  %v5159_v29 = vrot.slane %v5145_v57, %v16771_v8  ;;  %v5161_v46 = vcombine.high %v5104_v13, %v5120_v40  ;;  %v4823_v2 = vcombine.high %v18324_v47, %v18306_v14  ;;  %v4687_v14 = vcombine.high %v18374_v37, %v18350_v17 }
 0x4b1   : > { %15816 = vmatpush3.xpose.msk.msra.mxu0 %vm1430_vm2, %v4821_v4  ;;  %15819 = vmatprep.mubr.msk.f32.mxu0 %vm1430_vm2, %v23171_v60  ;;  %v5143_v4 = vrot.slane %v5129_v32, %v16771_v8  ;;  %v5192_v53 = vcombine.low %v5136_v12, %v5152_v62  ;;  %v5176_v60 = vcombine.low %v5111_v28, %v5127_v26  ;;  %v23173_v32 = vld [vmem:[#allocation49_spill] sm:$0xff] }
 0x4b2   : > { %15817 = vmatprep.subr.msk.mxu0 %vm1430_vm2, %v4685_v3  ;;  %4242 = vrot.lane.b32.xlu1 %v23172_v38, %s16390_s26  ;;  %v5177_v16 = vcombine.high %v5111_v28, %v5127_v26  ;;  %v5193_v10 = vcombine.high %v5136_v12, %v5152_v62  ;;  %v5168_v47 = vrot.slane %v5160_v55, %v16779_v52 }
 0x4b3   : > { %v18661_v43 = vpop.permute.xlu1 %4482  ;;  %4218 = vrot.lane.b32.xlu0 %v23172_v38, %s16391_s24  ;;  %v18665_v57 = vpop.permute.xlu0 %4410  ;;  %v5208_v26 = vcombine.low %v5143_v4, %v5159_v29  ;;  %v5209_v12 = vcombine.high %v5143_v4, %v5159_v29  ;;  %v4872_v28 = vcombine.low %v18428_v5, %v18474_v6  ;;  %v5175_v29 = vrot.slane %v5161_v46, %v16779_v52 }
 0x4b4   : > { %v4960_v13 = vcombine.low %v23173_v32, %v18665_v57  ;;  %v23174_v17 = vcombine.high %v17842_v51, %v17872_v44  ;;  %v5207_v55 = vrot.slane %v5193_v10, %v16779_v52  ;;  %v5184_v4 = vrot.slane %v5176_v60, %v16779_v52  ;;  %v23176_v44 = vld [vmem:[#allocation42_spill] sm:$0xff] }
 0x4b5   : > { %15818 = vmatpush3.xpose.msk.msra.mxu0 %vm1430_vm2, %v4685_v3  ;;  %v5200_v3 = vrot.slane %v5192_v53, %v16779_v52  ;;  %v5191_v40 = vrot.slane %v5177_v16, %v16779_v52  ;;  %v4840_v53 = vcombine.low %v18341_v27, %v18383_v50  ;;  %v4856_v46 = vcombine.low %v18371_v15, %v18420_v61  ;;  %v23177_v60 = vld [vmem:[#allocation22_spill] sm:$0xff]  ;;  %v23178_v16 = vld [vmem:[#allocation12_spill] sm:$0xff] }
 0x4b6   : > { %15829 = vmatprep.subr.msk.mxu0 %vm1430_vm2, %v4823_v2  ;;  %4290 = vrot.lane.b32.xlu1 %v23172_v38, %s22946_s25  ;;  %v4976_v34 = vcombine.low %v18581_v41, %v18627_v24  ;;  %v23175_v51 = vcombine.high %v23113_v42, %v23114_v18  ;;  %v5248_v10 = vcombine.low %v23177_v60, %v23176_v44 }
 0x4b7   : > { %v18688_v62 = vpop.permute.xlu1 %1832  ;;  %4266 = vrot.lane.b32.xlu0 %v23172_v38, %s22945_s15  ;;  %v18698_v37 = vpop.permute.xlu0 %4458  ;;  %v5216_v0 = vrot.slane %v5208_v26, %v16779_v52  ;;  %v5223_v20 = vrot.slane %v5209_v12, %v16779_v52  ;;  %v18724_v31 = vrot.slane %v4872_v28, %v16771_v8  ;;  %v18727_v42 = vrot.slane %v4960_v13, %v16771_v8 }
 0x4b8   : > { %15820 = vmatmul.mubr.msk.f32.vlgmr.msra.gmra.mxu0 %vm1430_vm2, %v23174_v17  ;;  %v23179_v17 = vld [vmem:[#allocation37_spill] sm:$0xff]  ;;  %v5249_v26 = vcombine.high %v23177_v60, %v23176_v44  ;;  %v18745_v54 = vcombine.high %v5168_v47, %v5200_v3  ;;  %v18748_v21 = vrot.slane %v4840_v53, %v16771_v8  ;;  %v18751_v56 = vrot.slane %v4856_v46, %v16771_v8 }
 0x4b9   : > { %15830 = vmatpush3.xpose.msk.msra.mxu0 %vm1430_vm2, %v4823_v2  ;;  %15833 = vmatprep.mubr.msk.f32.mxu0 %vm1430_vm2, %v23175_v51  ;;  %v5232_v33 = vcombine.low %v23179_v17, %v23178_v16  ;;  %v4824_v2 = vcombine.low %v23180_v30, %v18331_v1  ;;  %v18733_v51 = vcombine.low %v5168_v47, %v5200_v3 }
 0x4ba   : > { %15831 = vmatprep.subr.msk.mxu0 %vm1430_vm2, %v4687_v14  ;;  %4338 = vrot.lane.b32.xlu1 %v23172_v38, %s22947_s29  ;;  %v5233_v12 = vcombine.high %v23179_v17, %v23178_v16  ;;  %v18754_v44 = vrot.slane %v4976_v34, %v16771_v8  ;;  %v18760_v16 = vrot.slane %v5248_v10, %v16771_v8  ;;  %v23181_v10 = vld [vmem:[#allocation90_spill] sm:$0xff] }
 0x4bb   : > { %v18731_v18 = vpop.permute.xlu1 %4530  ;;  %4314 = vrot.lane.b32.xlu0 %v23172_v38, %s22949_s30  ;;  %v18743_v28 = vpop.permute.xlu0 %4506  ;;  %v18763_v47 = vrot.slane %v5232_v33, %v16771_v8  ;;  %v18766_v53 = vcombine.low %v5175_v29, %v5207_v55  ;;  %v18769_v46 = vrot.slane %v4824_v2, %v16771_v8  ;;  %v4920_v34 = vcombine.low %v18751_v56, %v18724_v31 }
 0x4bc   : > { %v5008_v13 = vcombine.low %v18661_v43, %v18731_v18  ;;  %v4992_v60 = vcombine.low %v18698_v37, %v18743_v28  ;;  %v18784_v22 = vrot.slane %v5233_v12, %v16771_v8  ;;  %v23182_v2 = vcombine.high %v17845_v23, %v17883_v45 }
 0x4bd   : > { %15832 = vmatpush3.xpose.msk.msra.mxu0 %vm1430_vm2, %v4687_v14  ;;  %v5024_v14 = vcombine.low %v18727_v42, %v18754_v44  ;;  %v18794_v63 = vcombine.high %v5175_v29, %v5207_v55  ;;  %v4888_v49 = vcombine.low %v18769_v46, %v18748_v21  ;;  %v23183_v12 = vcombine.high %v23132_v11, %v23133_v58 }
 0x4be   : > { %v5016_v3 = vrot.slane %v5008_v13, %v16771_v8  ;;  %v5000_v17 = vrot.slane %v4992_v60, %v16771_v8  ;;  %4394 = vrot.lane.b32.xlu1 %v23181_v10, %s16391_s24  ;;  %v18781_v13 = vrot.slane %v5249_v26, %v16771_v8  ;;  %v18802_v19 = vcombine.low %v5184_v4, %v5216_v0 }
 0x4bf   : > { %v18778_v33 = vpop.permute.xlu1 %1888  ;;  %4362 = vrot.lane.b32.xlu0 %v23172_v38, %s22950_s13  ;;  %v18792_v60 = vpop.permute.xlu0 %1808  ;;  %v18804_v38 = vcombine.high %v5184_v4, %v5216_v0  ;;  %v5296_v23 = vcombine.low %v18763_v47, %v18760_v16  ;;  %v5280_v45 = vcombine.low %v18250_v36, %v18290_v48  ;;  %v18810_v29 = vcombine.low %v5191_v40, %v5223_v20 }
 0x4c0   : > { %15834 = vmatmul.mubr.msk.f32.vlgmr.msra.gmra.mxu0 %vm1430_vm2, %v23182_v2  ;;  %v5056_v26 = vcombine.low %v5000_v17, %v5016_v3  ;;  %v18812_v55 = vcombine.high %v5191_v40, %v5223_v20  ;;  %v5264_v2 = vcombine.low %v18264_v35, %v18303_v9  ;;  %v5032_v11 = vrot.slane %v5024_v14, %v16779_v52 }
 0x4c1   : > { %15847 = vmatprep.mubr.msk.f32.mxu0 %vm1430_vm2, %v23183_v12  ;;  %23184 = vst [vmem:[#allocation51_spill] sm:$0xff] %v18810_v29  ;;  %v4928_v4 = vrot.slane %v4920_v34, %v16779_v52  ;;  %v5297_v12 = vcombine.high %v18763_v47, %v18760_v16  ;;  %v5312_v20 = vcombine.low %v18784_v22, %v18781_v13 }
 0x4c2   : > { %23185 = vst [vmem:[#allocation40_spill] sm:$0xff] %v18812_v55  ;;  %4442 = vrot.lane.b32.xlu1 %v23181_v10, %s22945_s15  ;;  %v5064_v0 = vrot.slane %v5056_v26, %v16779_v52  ;;  %v5057_v7 = vcombine.high %v5000_v17, %v5016_v3  ;;  %v5281_v14 = vcombine.high %v18250_v36, %v18290_v48 }
 0x4c3   : > { %v18818_v58 = vpop.permute.xlu1 %1936  ;;  %4418 = vrot.lane.b32.xlu0 %v23181_v10, %s16390_s26  ;;  %v18831_v55 = vpop.permute.xlu0 %1864  ;;  %v4896_v29 = vrot.slane %v4888_v49, %v16779_v52  ;;  %v5265_v16 = vcombine.high %v18264_v35, %v18303_v9  ;;  %v5025_v47 = vcombine.high %v18727_v42, %v18754_v44  ;;  %v5009_v3 = vcombine.high %v18661_v43, %v18731_v18 }
 0x4c4   : > { %v5088_v26 = vcombine.low %v5032_v11, %v5064_v0  ;;  %v5089_v34 = vcombine.high %v5032_v11, %v5064_v0  ;;  %v4993_v17 = vcombine.high %v18698_v37, %v18743_v28  ;;  %v5288_v40 = vrot.slane %v5280_v45, %v16771_v8 }
 0x4c5   : > { %v5272_v36 = vrot.slane %v5264_v2, %v16771_v8  ;;  %v4952_v35 = vcombine.low %v4896_v29, %v4928_v4  ;;  %v4961_v9 = vcombine.high %v23173_v32, %v18665_v57  ;;  %v4953_v43 = vcombine.high %v4896_v29, %v4928_v4 }
 0x4c6   : > { %4490 = vrot.lane.b32.xlu1 %v23181_v10, %s22949_s30  ;;  %15836 = vmatprep.subr.msk.mxu1 %vm1430_vm2, %v5088_v26  ;;  %v5071_v37 = vrot.slane %v5057_v7, %v16779_v52  ;;  %v4921_v42 = vcombine.high %v18751_v56, %v18724_v31  ;;  %v4977_v18 = vcombine.high %v18581_v41, %v18627_v24 }
 0x4c7   : > { %v18849_v48 = vpop.permute.xlu1 %1984  ;;  %4466 = vrot.lane.b32.xlu0 %v23181_v10, %s22946_s25  ;;  %15843 = vmatprep.subr.msk.mxu0 %vm1430_vm2, %v5089_v34  ;;  %v18856_v49 = vpop.permute.xlu0 %1912  ;;  %v18866_v57 = vrot.slane %v5296_v23, %v16779_v52  ;;  %v18869_v32 = vrot.slane %v5009_v3, %v16771_v8  ;;  %v18872_v28 = vrot.slane %v4993_v17, %v16771_v8  ;;  %v23187_v3 = vld [vmem:[#allocation38_spill] sm:$0xff] }
 0x4c8   : > { %15837 = vmatpush3.xpose.msk.msra.mxu1 %vm1430_vm2, %v5088_v26  ;;  %15844 = vmatpush3.xpose.msk.msra.mxu0 %vm1430_vm2, %v5089_v34  ;;  %v5039_v7 = vrot.slane %v5025_v47, %v16779_v52  ;;  %v5295_v41 = vrot.slane %v5281_v14, %v16771_v8  ;;  %v5279_v56 = vrot.slane %v5265_v16, %v16771_v8  ;;  %v23186_v47 = vld [vmem:[#allocation43_spill] sm:$0xff] }
 0x4c9   : > { %15838 = vmatprep.subr.msk.mxu1 %vm1430_vm2, %v4952_v35  ;;  %15845 = vmatprep.subr.msk.mxu0 %vm1430_vm2, %v4953_v43  ;;  %v5328_v31 = vcombine.low %v5272_v36, %v5288_v40  ;;  %v18884_v44 = vrot.slane %v5297_v12, %v16779_v52  ;;  %v4889_v23 = vcombine.high %v18769_v46, %v18748_v21 }
 0x4ca   : > { %4538 = vrot.lane.b32.xlu1 %v23181_v10, %s22950_s13  ;;  %v4873_v45 = vcombine.high %v18428_v5, %v18474_v6  ;;  %v18891_v29 = vrot.slane %v4961_v9, %v16771_v8  ;;  %v5090_v11 = vcombine.low %v5039_v7, %v5071_v37  ;;  %v5329_v0 = vcombine.high %v5272_v36, %v5288_v40  ;;  %v23190_v9 = vld [vmem:[#allocation73_spill] sm:$0xff] }
 0x4cb   : > { %v18881_v24 = vpop.permute.xlu1 %1786  ;;  %4514 = vrot.lane.b32.xlu0 %v23181_v10, %s22947_s29  ;;  %v18895_v2 = vpop.permute.xlu0 %1960  ;;  %v4841_v4 = vcombine.high %v18341_v27, %v18383_v50  ;;  %v4857_v12 = vcombine.high %v18371_v15, %v18420_v61  ;;  %v5091_v21 = vcombine.high %v5039_v7, %v5071_v37  ;;  %v18903_v5 = vrot.slane %v4977_v18, %v16771_v8 }
 0x4cc   : > { %15839 = vmatpush3.xpose.msk.msra.mxu1 %vm1430_vm2, %v4952_v35  ;;  %v5072_v6 = vcombine.low %v18872_v28, %v18869_v32  ;;  %15846 = vmatpush3.xpose.msk.msra.mxu0 %vm1430_vm2, %v4953_v43  ;;  %v4935_v46 = vrot.slane %v4921_v42, %v16779_v52  ;;  %v5344_v40 = vcombine.low %v5279_v56, %v5295_v41  ;;  %v23191_v43 = vld [vmem:[#allocation46_spill] sm:$0xff] }
 0x4cd   : > { %15850 = vmatprep.subr.msk.mxu1 %vm1430_vm2, %v5090_v11  ;;  %v5345_v27 = vcombine.high %v5279_v56, %v5295_v41  ;;  %v4825_v50 = vcombine.high %v23180_v30, %v18331_v1  ;;  %15857 = vmatprep.subr.msk.mxu0 %vm1430_vm2, %v5091_v21  ;;  %v5336_v61 = vrot.slane %v5328_v31, %v16779_v52 }
 0x4ce   : > { %v18917_v14 = vrot.slane %v4873_v45, %v16771_v8  ;;  %v5040_v26 = vcombine.low %v18891_v29, %v18903_v5  ;;  %1814 = vrot.lane.b32.xlu1 %v23167_v39, %s22947_s29  ;;  %v4903_v1 = vrot.slane %v4889_v23, %v16779_v52  ;;  %v18929_v30 = vrot.slane %v4841_v4, %v16771_v8 }
 0x4cf   : > { %v18913_v15 = vpop.permute.xlu1 %1834  ;;  %1790 = vrot.lane.b32.xlu0 %v23167_v39, %s22949_s30  ;;  %v18925_v34 = vpop.permute.xlu0 %2008  ;;  %v18932_v16 = vrot.slane %v4857_v12, %v16771_v8  ;;  %v23188_v17 = vcombine.low %v23186_v47, %v23187_v3  ;;  %v23189_v36 = vcombine.high %v23186_v47, %v23187_v3  ;;  %v5343_v35 = vrot.slane %v5329_v0, %v16779_v52 }
 0x4d0   : > { %v23192_v37 = vcombine.low %v23190_v9, %v23191_v43  ;;  %v4954_v42 = vcombine.low %v4903_v1, %v4935_v46  ;;  %v4955_v18 = vcombine.high %v4903_v1, %v4935_v46  ;;  %v5080_v7 = vrot.slane %v5072_v6, %v16779_v52  ;;  %v23195_v6 = vld [vmem:[#allocation91_spill] sm:$0xff] }
 0x4d1   : > { %15841 = vmatmul.mubr.msk.f32.vlgmr.msra.gmra.mxu1 %vm1430_vm2, %v23188_v17  ;;  %15848 = vmatmul.mubr.msk.f32.vlgmr.msra.gmra.mxu0 %vm1430_vm2, %v23189_v36  ;;  %v18950_v41 = vrot.slane %v4825_v50, %v16771_v8  ;;  %v23193_v56 = vcombine.high %v23190_v9, %v23191_v43  ;;  %v5320_v23 = vrot.slane %v5312_v20, %v16779_v52  ;;  %v23197_v36 = vld [vmem:[#allocation16_spill] sm:$0xff] }
 0x4d2   : > { %15851 = vmatpush3.xpose.msk.msra.mxu1 %vm1430_vm2, %v5090_v11  ;;  %15854 = vmatprep.mubr.msk.f32.mxu1 %vm1430_vm2, %v23192_v37  ;;  %v5352_v45 = vrot.slane %v5344_v40, %v16779_v52  ;;  %v4936_v11 = vcombine.low %v18932_v16, %v18917_v14  ;;  %v5048_v4 = vrot.slane %v5040_v26, %v16779_v52  ;;  %v23198_v37 = vld [vmem:[#allocation32_spill] sm:$0xff] }
 0x4d3   : > { %15858 = vmatpush3.xpose.msk.msra.mxu0 %vm1430_vm2, %v5091_v21  ;;  %15861 = vmatprep.mubr.msk.f32.mxu0 %vm1430_vm2, %v23193_v56  ;;  %v18957_v31 = vpop.permute.xlu1 %1890  ;;  %v18968_v0 = vpop.permute.xlu0 %1810  ;;  %v23194_v12 = vcombine.high %v18784_v22, %v18781_v13  ;;  %v4904_v20 = vcombine.low %v18950_v41, %v18929_v30  ;;  %v18982_v46 = vcombine.low %v18866_v57, %v5336_v61  ;;  %v23200_v56 = vld [vmem:[#allocation17_spill] sm:$0xff] }
 0x4d4   : > { %15852 = vmatprep.subr.msk.mxu1 %vm1430_vm2, %v4954_v42  ;;  %15859 = vmatprep.subr.msk.mxu0 %vm1430_vm2, %v4955_v18  ;;  %v18985_v40 = vcombine.high %v18866_v57, %v5336_v61  ;;  %v5359_v50 = vrot.slane %v5345_v27, %v16779_v52  ;;  %v5092_v22 = vcombine.low %v5048_v4, %v5080_v7 }
 0x4d5   : > { %v18975_v21 = vrot.slane %v23194_v12, %v16779_v52  ;;  %4244 = vrot.lane.b32.xlu1 %v23195_v6, %s16390_s26  ;;  %4220 = vrot.lane.b32.xlu0 %v23195_v6, %s16391_s24  ;;  %v5093_v13 = vcombine.high %v5048_v4, %v5080_v7  ;;  %v18992_v26 = vcombine.low %v18884_v44, %v5343_v35  ;;  %v23203_v4 = vld [vmem:[#allocation101_spill] sm:$0xff] }
 0x4d6   : > { %15853 = vmatpush3.xpose.msk.msra.mxu1 %vm1430_vm2, %v4954_v42  ;;  %v5073_v1 = vcombine.high %v18872_v28, %v18869_v32  ;;  %v19000_v57 = vcombine.high %v18884_v44, %v5343_v35  ;;  %v19002_v27 = vcombine.low %v5320_v23, %v5352_v45  ;;  %v19004_v61 = vcombine.high %v5320_v23, %v5352_v45  ;;  %v23196_v44 = vld [vmem:[#allocation34_spill] sm:$0xff]  ;;  %v23199_v42 = vld [vmem:[#allocation44_spill] sm:$0xff]  ;;  %v23201_v23 = vld [vmem:[#allocation33_spill] sm:$0xff] }
 0x4d7   : > { %15860 = vmatpush3.xpose.msk.msra.mxu0 %vm1430_vm2, %v4955_v18  ;;  %v18997_v47 = vpop.permute.xlu1 %1938  ;;  %v4905_v3 = vcombine.high %v18950_v41, %v18929_v30  ;;  %v5416_v17 = vcombine.low %v18591_v25, %v18637_v59  ;;  %15864 = vmatprep.subr.msk.mxu1 %vm1430_vm2, %v5092_v22  ;;  %v19012_v32 = vpop.permute.xlu0 %1866  ;;  %v4944_v28 = vrot.slane %v4936_v11, %v16779_v52  ;;  %v23202_v11 = vld [vmem:[#allocation97_spill] sm:$0xff] }
 0x4d8   : > { %15871 = vmatprep.subr.msk.mxu0 %vm1430_vm2, %v5093_v13  ;;  %v5384_v35 = vcombine.low %v23197_v36, %v23196_v44  ;;  %v5041_v9 = vcombine.high %v18891_v29, %v18903_v5  ;;  %v4912_v30 = vrot.slane %v4904_v20, %v16779_v52  ;;  %v19023_v43 = vcombine.low %v18975_v21, %v5359_v50 }
 0x4d9   : > { %4292 = vrot.lane.b32.xlu1 %v23195_v6, %s22946_s25  ;;  %v5368_v18 = vcombine.low %v23199_v42, %v23198_v37  ;;  %v5369_v7 = vcombine.high %v23199_v42, %v23198_v37  ;;  %v4937_v41 = vcombine.high %v18932_v16, %v18917_v14  ;;  %v5400_v29 = vcombine.low %v23201_v23, %v23200_v56 }
 0x4da   : > { %4268 = vrot.lane.b32.xlu0 %v23195_v6, %s22945_s15  ;;  %v5385_v5 = vcombine.high %v23197_v36, %v23196_v44  ;;  %v5417_v45 = vcombine.high %v18591_v25, %v18637_v59  ;;  %v23204_v12 = vcombine.low %v23202_v11, %v23203_v4  ;;  %v23205_v14 = vcombine.high %v23202_v11, %v23203_v4  ;;  %v23206_v44 = vld [vmem:[#allocation74_spill] sm:$0xff]  ;;  %v23207_v25 = vld [vmem:[#allocation96_spill] sm:$0xff] }
 0x4db   : > { %v19047_v16 = vpop.permute.xlu1 %1986  ;;  %v5087_v20 = vrot.slane %v5073_v1, %v16779_v52  ;;  %v5424_v37 = vrot.slane %v5416_v17, %v16771_v8  ;;  %v23208_v59 = vcombine.low %v23206_v44, %v23207_v25  ;;  %v4956_v36 = vcombine.low %v4912_v30, %v4944_v28 }
 0x4dc   : > { %15855 = vmatmul.mubr.msk.f32.vlgmr.msra.gmra.mxu1 %vm1430_vm2, %v23204_v12  ;;  %15862 = vmatmul.mubr.msk.f32.vlgmr.msra.gmra.mxu0 %vm1430_vm2, %v23205_v14  ;;  %v4957_v42 = vcombine.high %v4912_v30, %v4944_v28  ;;  %v19056_v12 = vpop.permute.xlu0 %1914  ;;  %v5401_v11 = vcombine.high %v23201_v23, %v23200_v56  ;;  %v5392_v4 = vrot.slane %v5384_v35, %v16771_v8 }
 0x4dd   : > { %15865 = vmatpush3.xpose.msk.msra.mxu1 %vm1430_vm2, %v5092_v22  ;;  %15868 = vmatprep.mubr.msk.f32.mxu1 %vm1430_vm2, %v23208_v59  ;;  %v23209_v1 = vcombine.high %v23206_v44, %v23207_v25  ;;  %v5055_v22 = vrot.slane %v5041_v9, %v16779_v52  ;;  %v5376_v17 = vrot.slane %v5368_v18, %v16771_v8 }
 0x4de   : > { %15872 = vmatpush3.xpose.msk.msra.mxu0 %vm1430_vm2, %v5093_v13  ;;  %v5408_v28 = vrot.slane %v5400_v29, %v16771_v8  ;;  %15866 = vmatprep.subr.msk.mxu1 %vm1430_vm2, %v4956_v36  ;;  %v4951_v30 = vrot.slane %v4937_v41, %v16779_v52  ;;  %v5399_v35 = vrot.slane %v5385_v5, %v16771_v8 }
 0x4df   : > { %15875 = vmatprep.mubr.msk.f32.mxu0 %vm1430_vm2, %v23209_v1  ;;  %15873 = vmatprep.subr.msk.mxu0 %vm1430_vm2, %v4957_v42  ;;  %v5431_v13 = vrot.slane %v5417_v45, %v16771_v8  ;;  %v5094_v9 = vcombine.low %v5055_v22, %v5087_v20  ;;  %v19078_v18 = vpop.permute.xlu1 %1788  ;;  %v5095_v23 = vcombine.high %v5055_v22, %v5087_v20  ;;  %v23213_v22 = vld [vmem:[#allocation102_spill] sm:$0xff] }
 0x4e0   : > { %4340 = vrot.lane.b32.xlu1 %v23195_v6, %s22947_s29  ;;  %4316 = vrot.lane.b32.xlu0 %v23195_v6, %s22949_s30  ;;  %v5464_v56 = vcombine.low %v5408_v28, %v5424_v37  ;;  %v19081_v29 = vpop.permute.xlu0 %1962  ;;  %v4919_v41 = vrot.slane %v4905_v3, %v16779_v52  ;;  %v19085_v5 = vcombine.high %v18975_v21, %v5359_v50  ;;  %v23210_v21 = vld [vmem:[#allocation20_spill] sm:$0xff] }
 0x4e1   : > { %15867 = vmatpush3.xpose.msk.msra.mxu1 %vm1430_vm2, %v4956_v36  ;;  %v5383_v45 = vrot.slane %v5369_v7, %v16771_v8  ;;  %v5415_v14 = vrot.slane %v5401_v11, %v16771_v8  ;;  %v5432_v44 = vcombine.low %v5376_v17, %v5392_v4  ;;  %v5433_v25 = vcombine.high %v5376_v17, %v5392_v4  ;;  %v23211_v7 = vld [vmem:[#allocation92_spill] sm:$0xff] }
 0x4e2   : > { %15874 = vmatpush3.xpose.msk.msra.mxu0 %vm1430_vm2, %v4957_v42  ;;  %15878 = vmatprep.subr.msk.mxu1 %vm1430_vm2, %v5094_v9  ;;  %v5465_v59 = vcombine.high %v5408_v28, %v5424_v37  ;;  %v4958_v20 = vcombine.low %v4919_v41, %v4951_v30  ;;  %v4959_v36 = vcombine.high %v4919_v41, %v4951_v30  ;;  %v23212_v37 = vld [vmem:[#allocation98_spill] sm:$0xff] }
 0x4e3   : > { %15885 = vmatprep.subr.msk.mxu0 %vm1430_vm2, %v5095_v23  ;;  %v5448_v1 = vcombine.low %v5383_v45, %v5399_v35  ;;  %v5480_v3 = vcombine.low %v5415_v14, %v5431_v13  ;;  %v3144_v50 = vcombine.low %v23210_v21, %v18792_v60  ;;  %v19098_v42 = vpop.permute.xlu1 %1836  ;;  %v5449_v11 = vcombine.high %v5383_v45, %v5399_v35  ;;  %v23218_v45 = vld [vmem:[#allocation99_spill] sm:$0xff] }
 0x4e4   : > { %4396 = vrot.lane.b32.xlu1 %v23211_v7, %s16391_s24  ;;  %4364 = vrot.lane.b32.xlu0 %v23195_v6, %s22950_s13  ;;  %v5481_v4 = vcombine.high %v5415_v14, %v5431_v13  ;;  %v23214_v17 = vcombine.low %v23212_v37, %v23213_v22  ;;  %v23215_v28 = vcombine.high %v23212_v37, %v23213_v22  ;;  %v19108_v30 = vpop.permute.xlu0 %2010  ;;  %v23216_v6 = vld [vmem:[#allocation9_spill] sm:$0xff]  ;;  %v23217_v13 = vld [vmem:[#allocation75_spill] sm:$0xff] }
 0x4e5   : > { %v5472_v41 = vrot.slane %v5464_v56, %v16779_v52  ;;  %v3160_v10 = vcombine.low %v23216_v6, %v18688_v62  ;;  %v3145_v35 = vcombine.high %v23210_v21, %v18792_v60  ;;  %v23219_v14 = vcombine.low %v23217_v13, %v23218_v45 }
 0x4e6   : > { %15869 = vmatmul.mubr.msk.f32.vlgmr.msra.gmra.mxu1 %vm1430_vm2, %v23214_v17  ;;  %15876 = vmatmul.mubr.msk.f32.vlgmr.msra.gmra.mxu0 %vm1430_vm2, %v23215_v28  ;;  %v5440_v37 = vrot.slane %v5432_v44, %v16779_v52  ;;  %v3161_v22 = vcombine.high %v23216_v6, %v18688_v62  ;;  %v23220_v56 = vcombine.high %v23217_v13, %v23218_v45  ;;  %v23221_v45 = vld [vmem:[#allocation52_spill] sm:$0xff] }
 0x4e7   : > { %15879 = vmatpush3.xpose.msk.msra.mxu1 %vm1430_vm2, %v5094_v9  ;;  %15882 = vmatprep.mubr.msk.f32.mxu1 %vm1430_vm2, %v23219_v14  ;;  %v5447_v60 = vrot.slane %v5433_v25, %v16779_v52  ;;  %v5479_v9 = vrot.slane %v5465_v59, %v16779_v52  ;;  %v3152_v21 = vrot.slane %v3144_v50, %v16771_v8  ;;  %v19133_v44 = vpop.permute.xlu1 %1892 }
 0x4e8   : > { %15886 = vmatpush3.xpose.msk.msra.mxu0 %vm1430_vm2, %v5095_v23  ;;  %15889 = vmatprep.mubr.msk.f32.mxu0 %vm1430_vm2, %v23220_v56  ;;  %v5456_v62 = vrot.slane %v5448_v1, %v16779_v52  ;;  %v5488_v6 = vrot.slane %v5480_v3, %v16779_v52  ;;  %v19141_v23 = vpop.permute.xlu0 %1812  ;;  %v19143_v25 = vcombine.low %v5440_v37, %v5472_v41 }
 0x4e9   : > { %15880 = vmatprep.subr.msk.mxu1 %vm1430_vm2, %v4958_v20  ;;  %15887 = vmatprep.subr.msk.mxu0 %vm1430_vm2, %v4959_v36  ;;  %v5463_v59 = vrot.slane %v5449_v11, %v16779_v52  ;;  %v5495_v50 = vrot.slane %v5481_v4, %v16779_v52  ;;  %v3168_v17 = vrot.slane %v3160_v10, %v16771_v8 }
 0x4ea   : > { %4444 = vrot.lane.b32.xlu1 %v23211_v7, %s22945_s15  ;;  %4420 = vrot.lane.b32.xlu0 %v23211_v7, %s16390_s26  ;;  %v3159_v1 = vrot.slane %v3145_v35, %v16771_v8  ;;  %v3264_v3 = vcombine.low %v18831_v55, %v18856_v49  ;;  %v19152_v28 = vcombine.high %v5440_v37, %v5472_v41 }
 0x4eb   : > { %15881 = vmatpush3.xpose.msk.msra.mxu1 %vm1430_vm2, %v4958_v20  ;;  %v3175_v13 = vrot.slane %v3161_v22, %v16771_v8  ;;  %v3248_v14 = vcombine.low %v23221_v45, %v18778_v33  ;;  %v19160_v10 = vcombine.low %v5447_v60, %v5479_v9  ;;  %v3208_v11 = vcombine.low %v3152_v21, %v3168_v17  ;;  %v19164_v20 = vpop.permute.xlu1 %1940 }
 0x4ec   : > { %15888 = vmatpush3.xpose.msk.msra.mxu0 %vm1430_vm2, %v4959_v36  ;;  %15892 = vmatprep.subr.msk.mxu1 %vm1430_vm2, %v18982_v46  ;;  %v3209_v4 = vcombine.high %v3152_v21, %v3168_v17  ;;  %23222 = vst [vmem:[#allocation10_spill] sm:$0xff] %v19164_v20  ;;  %v19166_v41 = vcombine.high %v5447_v60, %v5479_v9  ;;  %v19180_v56 = vpop.permute.xlu0 %1868  ;;  %v23224_v17 = vld [vmem:[#allocation100_spill] sm:$0xff] }
 0x4ed   : > { %15899 = vmatprep.subr.msk.mxu0 %vm1430_vm2, %v18985_v40  ;;  %v19168_v35 = vcombine.low %v5456_v62, %v5488_v6  ;;  %v3249_v37 = vcombine.high %v23221_v45, %v18778_v33  ;;  %v3280_v36 = vcombine.low %v18818_v58, %v18849_v48  ;;  %v3265_v22 = vcombine.high %v18831_v55, %v18856_v49  ;;  %v23225_v33 = vld [vmem:[#allocation103_spill] sm:$0xff] }
 0x4ee   : > { %4492 = vrot.lane.b32.xlu1 %v23211_v7, %s22949_s30  ;;  %4468 = vrot.lane.b32.xlu0 %v23211_v7, %s22946_s25  ;;  %v3224_v60 = vcombine.low %v3159_v1, %v3175_v13  ;;  %v3225_v9 = vcombine.high %v3159_v1, %v3175_v13  ;;  %v3272_v21 = vrot.slane %v3264_v3, %v16771_v8 }
 0x4ef   : > { %23223 = vst [vmem:[#allocation31_spill] sm:$0xff] %v19168_v35  ;;  %v23226_v45 = vcombine.low %v23224_v17, %v23225_v33  ;;  %v19187_v20 = vcombine.high %v5456_v62, %v5488_v6  ;;  %v3256_v55 = vrot.slane %v3248_v14, %v16771_v8  ;;  %v3296_v49 = vcombine.low %v18895_v2, %v18925_v34  ;;  %v23228_v62 = vld [vmem:[#allocation59_spill] sm:$0xff]  ;;  %v23229_v6 = vld [vmem:[#allocation57_spill] sm:$0xff] }
 0x4f0   : > { %v23227_v35 = vcombine.high %v23224_v17, %v23225_v33  ;;  %v19196_v1 = vcombine.low %v5463_v59, %v5495_v50  ;;  %v19198_v3 = vcombine.high %v5463_v59, %v5495_v50  ;;  %v3281_v13 = vcombine.high %v18818_v58, %v18849_v48  ;;  %v19227_v50 = vpop.permute.xlu0 %1916 }
 0x4f1   : > { %15883 = vmatmul.mubr.msk.f32.vlgmr.msra.gmra.mxu1 %vm1430_vm2, %v23226_v45  ;;  %v23230_v14 = vcombine.low %v23228_v62, %v23229_v6  ;;  %v19208_v45 = vpop.permute.xlu1 %4390  ;;  %v19211_v17 = vrot.slane %v3208_v11, %v16779_v52  ;;  %v3263_v59 = vrot.slane %v3249_v37, %v16771_v8  ;;  %v19218_v58 = vrot.slane %v3280_v36, %v16771_v8 }
 0x4f2   : > { %15890 = vmatmul.mubr.msk.f32.vlgmr.msra.gmra.mxu0 %vm1430_vm2, %v23227_v35  ;;  %15893 = vmatpush3.xpose.msk.msra.mxu1 %vm1430_vm2, %v18982_v46  ;;  %v19214_v35 = vrot.slane %v3209_v4, %v16779_v52  ;;  %v3279_v48 = vrot.slane %v3265_v22, %v16771_v8  ;;  %v23233_v46 = vcombine.high %v23228_v62, %v23229_v6 }
 0x4f3   : > { %15896 = vmatprep.mubr.msk.f32.mxu1 %vm1430_vm2, %v23230_v14  ;;  %23231 = vst [vmem:[#allocation93_spill] sm:$0xff] %v19211_v17  ;;  %15900 = vmatpush3.xpose.msk.msra.mxu0 %vm1430_vm2, %v18985_v40  ;;  %v3312_v11 = vcombine.low %v3256_v55, %v3272_v21  ;;  %v19234_v4 = vrot.slane %v3224_v60, %v16779_v52 }
 0x4f4   : > { %23232 = vst [vmem:[#allocation15_spill] sm:$0xff] %v19214_v35  ;;  %15903 = vmatprep.mubr.msk.f32.mxu0 %vm1430_vm2, %v23233_v46  ;;  %15894 = vmatprep.subr.msk.mxu1 %vm1430_vm2, %v18733_v51  ;;  %v19237_v37 = vrot.slane %v3225_v9, %v16779_v52  ;;  %v3313_v40 = vcombine.high %v3256_v55, %v3272_v21  ;;  %v23242_v46 = vld [vmem:[#allocation54_spill] sm:$0xff]  ;;  %v23243_v21 = vld [vmem:[#allocation47_spill] sm:$0xff]  ;;  %v23264_v9 = vld [vmem:[#allocation25_spill] sm:$0xff] }
 0x4f5   : > { %15901 = vmatprep.subr.msk.mxu0 %vm1430_vm2, %v18745_v54  ;;  %23234 = vst [vmem:[#allocation8_spill] sm:$0xff] %v19234_v4  ;;  %v3297_v36 = vcombine.high %v18895_v2, %v18925_v34  ;;  %v3304_v22 = vrot.slane %v3296_v49, %v16771_v8  ;;  %4540 = vrot.lane.b32.xlu1 %v23211_v7, %s22950_s13  ;;  %v19251_v60 = vpop.permute.xlu1 %4438  ;;  %v23241_v2 = vld [vmem:[#allocation56_spill] sm:$0xff] }
 0x4f6   : > { %23235 = vst [vmem:[#allocation28_spill] sm:$0xff] %v19237_v37  ;;  %4516 = vrot.lane.b32.xlu0 %v23211_v7, %s22947_s29  ;;  %v19247_v33 = vrot.slane %v3281_v13, %v16771_v8  ;;  %15895 = vmatpush3.xpose.msk.msra.mxu1 %vm1430_vm2, %v18733_v51  ;;  %v3328_v49 = vcombine.low %v3263_v59, %v3279_v48  ;;  %v19263_v51 = vpop.permute.xlu0 %4414  ;;  %v23244_v7 = vld [vmem:[#allocation55_spill] sm:$0xff]  ;;  %v23248_v34 = vld [vmem:[#allocation60_spill] sm:$0xff]  ;;  %v23259_v37 = vld [vmem:[#allocation45_spill] sm:$0xff] }
 0x4f7   : > { %v3329_v62 = vcombine.high %v3263_v59, %v3279_v48  ;;  %15902 = vmatpush3.xpose.msk.msra.mxu0 %vm1430_vm2, %v18745_v54  ;;  %15906 = vmatprep.subr.msk.mxu1 %vm1430_vm2, %v18992_v26  ;;  %v19268_v6 = vrot.slane %v3312_v11, %v16779_v52  ;;  %v19279_v55 = vrot.slane %v3313_v40, %v16779_v52  ;;  %v23260_v48 = vld [vmem:[#allocation50_spill] sm:$0xff] }
 0x4f8   : > { %15913 = vmatprep.subr.msk.mxu0 %vm1430_vm2, %v19000_v57  ;;  %v3311_v13 = vrot.slane %v3297_v36, %v16771_v8  ;;  %v3344_v11 = vcombine.low %v19218_v58, %v3304_v22  ;;  %v3432_v59 = vcombine.low %v18881_v24, %v18913_v15  ;;  %v3433_v54 = vcombine.high %v18881_v24, %v18913_v15  ;;  %v23247_v15 = vld [vmem:[#allocation24_spill] sm:$0xff] }
 0x4f9   : > { %23238 = vst [vmem:[#allocation29_spill] sm:$0xff] %v19268_v6  ;;  %1870 = vrot.lane.b32.xlu1 %v23241_v2, %s16391_s24  ;;  %v3520_v40 = vcombine.low %v23242_v46, %v18957_v31  ;;  %v23245_v36 = vcombine.low %v23243_v21, %v23244_v7  ;;  %v23246_v4 = vcombine.high %v23243_v21, %v23244_v7 }
 0x4fa   : > { %1838 = vrot.lane.b32.xlu0 %v23167_v39, %s22950_s13  ;;  %v19301_v39 = vpop.permute.xlu1 %4486  ;;  %v19304_v14 = vrot.slane %v3328_v49, %v16779_v52  ;;  %v3345_v24 = vcombine.high %v19218_v58, %v3304_v22  ;;  %v3416_v35 = vcombine.low %v23247_v15, %v18968_v0  ;;  %v19315_v7 = vpop.permute.xlu0 %4462  ;;  %v3521_v21 = vcombine.high %v23242_v46, %v18957_v31 }
 0x4fb   : > { %15897 = vmatmul.mubr.msk.f32.vlgmr.msra.gmra.mxu1 %vm1430_vm2, %v23245_v36  ;;  %15904 = vmatmul.mubr.msk.f32.vlgmr.msra.gmra.mxu0 %vm1430_vm2, %v23246_v4  ;;  %v23249_v36 = vld [vmem:[#allocation36_spill] sm:$0xff]  ;;  %v19318_v4 = vrot.slane %v3329_v62, %v16779_v52  ;;  %v3360_v22 = vcombine.low %v19247_v33, %v3311_v13  ;;  %v3361_v49 = vcombine.high %v19247_v33, %v3311_v13  ;;  %v23254_v62 = vld [vmem:[#allocation18_spill] sm:$0xff] }
 0x4fc   : > { %15907 = vmatpush3.xpose.msk.msra.mxu1 %vm1430_vm2, %v18992_v26  ;;  %v23250_v17 = vcombine.low %v23248_v34, %v23249_v36  ;;  %15914 = vmatpush3.xpose.msk.msra.mxu0 %vm1430_vm2, %v19000_v57  ;;  %v23252_v58 = vcombine.high %v23248_v34, %v23249_v36  ;;  %v19340_v31 = vrot.slane %v3432_v59, %v16771_v8 }
 0x4fd   : > { %23251 = vst [vmem:[#allocation49_spill] sm:$0xff] %v19318_v4  ;;  %15908 = vmatprep.subr.msk.mxu1 %vm1430_vm2, %v18766_v53  ;;  %15915 = vmatprep.subr.msk.mxu0 %vm1430_vm2, %v18794_v63  ;;  %v19343_v57 = vrot.slane %v3433_v54, %v16771_v8  ;;  %v19346_v34 = vrot.slane %v3520_v40, %v16771_v8 }
 0x4fe   : > { %15910 = vmatprep.mubr.msk.f32.mxu1 %vm1430_vm2, %v23250_v17  ;;  %15917 = vmatprep.mubr.msk.f32.mxu0 %vm1430_vm2, %v23252_v58  ;;  %v19331_v17 = vrot.slane %v3344_v11, %v16779_v52  ;;  %v19352_v33 = vpop.permute.xlu1 %4534  ;;  %v19355_v13 = vrot.slane %v3345_v24, %v16779_v52  ;;  %v3417_v59 = vcombine.high %v23247_v15, %v18968_v0  ;;  %v19366_v11 = vpop.permute.xlu0 %4510  ;;  %v23255_v24 = vld [vmem:[#allocation11_spill] sm:$0xff] }
 0x4ff   : > { %4246 = vrot.lane.b32.xlu1 %v23254_v62, %s16390_s26  ;;  %4222 = vrot.lane.b32.xlu0 %v23254_v62, %s16391_s24  ;;  %v19360_v54 = vrot.slane %v3416_v35, %v16771_v8  ;;  %v5552_v46 = vcombine.low %v19301_v39, %v19352_v33  ;;  %v5520_v40 = vcombine.low %v19208_v45, %v19251_v60 }
 0x500   : > { %23253 = vst [vmem:[#allocation42_spill] sm:$0xff] %v19331_v17  ;;  %15909 = vmatpush3.xpose.msk.msra.mxu1 %vm1430_vm2, %v18766_v53  ;;  %15916 = vmatpush3.xpose.msk.msra.mxu0 %vm1430_vm2, %v18794_v63  ;;  %v5504_v0 = vcombine.low %v23255_v24, %v19263_v51  ;;  %v5536_v53 = vcombine.low %v19315_v7, %v19366_v11 }
 0x501   : > { %15920 = vmatprep.subr.msk.mxu1 %vm1430_vm2, %v19002_v27  ;;  %v19379_v35 = vrot.slane %v3360_v22, %v16779_v52  ;;  %v19382_v15 = vrot.slane %v3361_v49, %v16779_v52  ;;  %v19387_v63 = vrot.slane %v3521_v21, %v16771_v8  ;;  %15927 = vmatprep.subr.msk.mxu0 %vm1430_vm2, %v19004_v61 }
 0x502   : > { %v19398_v22 = vrot.slane %v5552_v46, %v16771_v8  ;;  %v19401_v49 = vrot.slane %v5536_v53, %v16771_v8  ;;  %v19403_v21 = vpop.permute.xlu1 %1988  ;;  %v3431_v36 = vrot.slane %v3417_v59, %v16771_v8  ;;  %v3536_v58 = vcombine.low %v19012_v32, %v19056_v12  ;;  %v19418_v53 = vpop.permute.xlu0 %1964 }
 0x503   : > { %23256 = vst [vmem:[#allocation22_spill] sm:$0xff] %v19379_v35  ;;  %23257 = vst [vmem:[#allocation12_spill] sm:$0xff] %v19382_v15  ;;  %4294 = vrot.lane.b32.xlu1 %v23254_v62, %s22946_s25  ;;  %4270 = vrot.lane.b32.xlu0 %v23254_v62, %s22945_s15  ;;  %v23261_v17 = vcombine.low %v23259_v37, %v23260_v48  ;;  %v23262_v46 = vcombine.high %v23259_v37, %v23260_v48  ;;  %v23281_v35 = vld [vmem:[#allocation51_spill] sm:$0xff] }
 0x504   : > { %23258 = vst [vmem:[#allocation37_spill] sm:$0xff] %v19403_v21  ;;  %v3480_v26 = vcombine.low %v19360_v54, %v19340_v31  ;;  %v19423_v59 = vrot.slane %v5520_v40, %v16771_v8  ;;  %v19426_v6 = vrot.slane %v5504_v0, %v16771_v8  ;;  %v3481_v48 = vcombine.high %v19360_v54, %v19340_v31  ;;  %v23272_v54 = vld [vmem:[#allocation26_spill] sm:$0xff] }
 0x505   : > { %15911 = vmatmul.mubr.msk.f32.vlgmr.msra.gmra.mxu1 %vm1430_vm2, %v23261_v17  ;;  %15918 = vmatmul.mubr.msk.f32.vlgmr.msra.gmra.mxu0 %vm1430_vm2, %v23262_v46  ;;  %v23263_v17 = vld [vmem:[#allocation62_spill] sm:$0xff]  ;;  %v3537_v40 = vcombine.high %v19012_v32, %v19056_v12  ;;  %v3552_v0 = vcombine.low %v18997_v47, %v19047_v16  ;;  %v3496_v32 = vcombine.low %v3431_v36, %v19343_v57 }
 0x506   : > { %15921 = vmatpush3.xpose.msk.msra.mxu1 %vm1430_vm2, %v19002_v27  ;;  %v23265_v21 = vcombine.low %v23263_v17, %v23264_v9  ;;  %15928 = vmatpush3.xpose.msk.msra.mxu0 %vm1430_vm2, %v19004_v61  ;;  %v23266_v27 = vcombine.high %v23263_v17, %v23264_v9  ;;  %v5600_v61 = vcombine.low %v19401_v49, %v19398_v22 }
 0x507   : > { %15922 = vmatprep.subr.msk.mxu1 %vm1430_vm2, %v18802_v19  ;;  %15929 = vmatprep.subr.msk.mxu0 %vm1430_vm2, %v18804_v38  ;;  %v3497_v12 = vcombine.high %v3431_v36, %v19343_v57  ;;  %v3544_v9 = vrot.slane %v3536_v58, %v16771_v8  ;;  %v5568_v57 = vcombine.low %v19426_v6, %v19423_v59 }
 0x508   : > { %15924 = vmatprep.mubr.msk.f32.mxu1 %vm1430_vm2, %v23265_v21  ;;  %15931 = vmatprep.mubr.msk.f32.mxu0 %vm1430_vm2, %v23266_v27  ;;  %v3553_v21 = vcombine.high %v18997_v47, %v19047_v16  ;;  %v19463_v47 = vpop.permute.xlu1 %4240  ;;  %v19465_v16 = vpop.permute.xlu0 %4216  ;;  %v19476_v36 = vrot.slane %v3480_v26, %v16779_v52  ;;  %v3551_v17 = vrot.slane %v3537_v40, %v16771_v8 }
 0x509   : > { %4342 = vrot.lane.b32.xlu1 %v23254_v62, %s22947_s29  ;;  %4318 = vrot.lane.b32.xlu0 %v23254_v62, %s22949_s30  ;;  %v19488_v27 = vrot.slane %v3552_v0, %v16771_v8  ;;  %v5608_v26 = vrot.slane %v5600_v61, %v16779_v52  ;;  %v19497_v46 = vrot.slane %v3481_v48, %v16779_v52  ;;  %v23271_v48 = vld [vmem:[#allocation105_spill] sm:$0xff] }
 0x50a   : > { %15923 = vmatpush3.xpose.msk.msra.mxu1 %vm1430_vm2, %v18802_v19  ;;  %15930 = vmatpush3.xpose.msk.msra.mxu0 %vm1430_vm2, %v18804_v38  ;;  %v19491_v19 = vrot.slane %v3553_v21, %v16771_v8  ;;  %v3584_v40 = vcombine.low %v19346_v34, %v3544_v9  ;;  %v23268_v38 = vld [vmem:[#allocation7_spill] sm:$0xff]  ;;  %v19507_v21 = vrot.slane %v3496_v32, %v16779_v52  ;;  %v23275_v32 = vld [vmem:[#allocation80_spill] sm:$0xff] }
 0x50b   : > { %15934 = vmatprep.subr.msk.mxu1 %vm1430_vm2, %v19023_v43  ;;  %15941 = vmatprep.subr.msk.mxu0 %vm1430_vm2, %v19085_v5  ;;  %23267 = vst [vmem:[#allocation39_spill] sm:$0xff] %v19497_v46  ;;  %v19510_v58 = vrot.slane %v3497_v12, %v16779_v52  ;;  %v3585_v61 = vcombine.high %v19346_v34, %v3544_v9  ;;  %v23328_v46 = vld [vmem:[#allocation79_spill] sm:$0xff] }
 0x50c   : > { %v19504_v0 = vpop.permute.xlu1 %4288  ;;  %23269 = vst [vmem:[#allocation43_spill] sm:$0xff] %v19507_v21  ;;  %v23273_v31 = vcombine.low %v23271_v48, %v23272_v54  ;;  %v23274_v37 = vcombine.high %v23271_v48, %v23272_v54  ;;  %v19522_v15 = vpop.permute.xlu0 %4264  ;;  %v3600_v4 = vcombine.low %v19387_v63, %v3551_v17  ;;  %v3601_v34 = vcombine.high %v19387_v63, %v3551_v17  ;;  %v23277_v54 = vld [vmem:[#allocation104_spill] sm:$0xff] }
 0x50d   : > { %4398 = vrot.lane.b32.xlu1 %v23268_v38, %s16391_s24  ;;  %4366 = vrot.lane.b32.xlu0 %v23254_v62, %s22950_s13  ;;  %23270 = vst [vmem:[#allocation38_spill] sm:$0xff] %v19510_v58  ;;  %v5576_v62 = vrot.slane %v5568_v57, %v16779_v52  ;;  %v3568_v9 = vcombine.low %v19081_v29, %v19108_v30 }
 0x50e   : > { %15925 = vmatmul.mubr.msk.f32.vlgmr.msra.gmra.mxu1 %vm1430_vm2, %v23273_v31  ;;  %15932 = vmatmul.mubr.msk.f32.vlgmr.msra.gmra.mxu0 %vm1430_vm2, %v23274_v37  ;;  %v23276_v31 = vld [vmem:[#allocation63_spill] sm:$0xff]  ;;  %v3704_v12 = vcombine.low %v19078_v18, %v19098_v42  ;;  %v3705_v17 = vcombine.high %v19078_v18, %v19098_v42 }
 0x50f   : > { %15935 = vmatpush3.xpose.msk.msra.mxu1 %vm1430_vm2, %v19023_v43  ;;  %v23278_v37 = vcombine.low %v23276_v31, %v23277_v54  ;;  %15942 = vmatpush3.xpose.msk.msra.mxu0 %vm1430_vm2, %v19085_v5  ;;  %v23279_v57 = vcombine.high %v23276_v31, %v23277_v54  ;;  %v5632_v63 = vcombine.low %v5576_v62, %v5608_v26  ;;  %v23282_v5 = vld [vmem:[#allocation40_spill] sm:$0xff] }
 0x510   : > { %15936 = vmatprep.subr.msk.mxu1 %vm1430_vm2, %v23281_v35  ;;  %15943 = vmatprep.subr.msk.mxu0 %vm1430_vm2, %v23282_v5  ;;  %v5633_v31 = vcombine.high %v5576_v62, %v5608_v26  ;;  %v19555_v54 = vrot.slane %v3584_v40, %v16779_v52  ;;  %v19569_v43 = vrot.slane %v3600_v4, %v16779_v52 }
 0x511   : > { %15938 = vmatprep.mubr.msk.f32.mxu1 %vm1430_vm2, %v23278_v37  ;;  %15945 = vmatprep.mubr.msk.f32.mxu0 %vm1430_vm2, %v23279_v57  ;;  %v3569_v37 = vcombine.high %v19081_v29, %v19108_v30  ;;  %v19558_v57 = vrot.slane %v3585_v61, %v16779_v52  ;;  %v19564_v29 = vpop.permute.xlu1 %4336  ;;  %v19572_v62 = vrot.slane %v3601_v34, %v16779_v52  ;;  %v19579_v61 = vpop.permute.xlu0 %4312  ;;  %v23293_v30 = vld [vmem:[#allocation58_spill] sm:$0xff] }
 0x512   : > { %4446 = vrot.lane.b32.xlu1 %v23268_v38, %s22945_s15  ;;  %4422 = vrot.lane.b32.xlu0 %v23268_v38, %s16390_s26  ;;  %23284 = vst [vmem:[#allocation46_spill] sm:$0xff] %v19569_v43  ;;  %v3576_v26 = vrot.slane %v3568_v9, %v16771_v8  ;;  %v5601_v40 = vcombine.high %v19401_v49, %v19398_v22 }
 0x513   : > { %23283 = vst [vmem:[#allocation73_spill] sm:$0xff] %v19558_v57  ;;  %23285 = vst [vmem:[#allocation34_spill] sm:$0xff] %v19572_v62  ;;  %15937 = vmatpush3.xpose.msk.msra.mxu1 %vm1430_vm2, %v23281_v35  ;;  %v5553_v4 = vcombine.high %v19301_v39, %v19352_v33  ;;  %v5537_v34 = vcombine.high %v19315_v7, %v19366_v11  ;;  %15944 = vmatpush3.xpose.msk.msra.mxu0 %vm1430_vm2, %v23282_v5 }
 0x514   : > { %15948 = vmatprep.subr.msk.mxu1 %vm1430_vm2, %v5632_v63  ;;  %v19591_v22 = vrot.slane %v3704_v12, %v16771_v8  ;;  %v3583_v35 = vrot.slane %v3569_v37, %v16771_v8  ;;  %v5569_v49 = vcombine.high %v19426_v6, %v19423_v59  ;;  %15955 = vmatprep.subr.msk.mxu0 %vm1430_vm2, %v5633_v31  ;;  %v23287_v59 = vld [vmem:[#allocation53_spill] sm:$0xff] }
 0x515   : > { %v5521_v39 = vcombine.high %v19208_v45, %v19251_v60  ;;  %v5505_v7 = vcombine.high %v23255_v24, %v19263_v51  ;;  %v19607_v33 = vpop.permute.xlu1 %4392  ;;  %v3616_v11 = vcombine.low %v19488_v27, %v3576_v26  ;;  %v3792_v12 = vcombine.low %v23287_v59, %v19133_v44  ;;  %v23288_v45 = vld [vmem:[#allocation106_spill] sm:$0xff]  ;;  %v23289_v60 = vld [vmem:[#allocation27_spill] sm:$0xff]  ;;  %v19623_v37 = vpop.permute.xlu0 %4360 }
 0x516   : > { %4494 = vrot.lane.b32.xlu1 %v23268_v38, %s22949_s30  ;;  %4470 = vrot.lane.b32.xlu0 %v23268_v38, %s22946_s25  ;;  %v23290_v9 = vcombine.low %v23288_v45, %v23289_v60  ;;  %v23291_v51 = vcombine.high %v23288_v45, %v23289_v60  ;;  %v5615_v24 = vrot.slane %v5601_v40, %v16779_v52 }
 0x517   : > { %v3617_v5 = vcombine.high %v19488_v27, %v3576_v26  ;;  %v19627_v6 = vrot.slane %v5553_v4, %v16771_v8  ;;  %v19630_v42 = vrot.slane %v5537_v34, %v16771_v8  ;;  %v3632_v45 = vcombine.low %v19491_v19, %v3583_v35 }
 0x518   : > { %15939 = vmatmul.mubr.msk.f32.vlgmr.msra.gmra.mxu1 %vm1430_vm2, %v23290_v9  ;;  %15946 = vmatmul.mubr.msk.f32.vlgmr.msra.gmra.mxu0 %vm1430_vm2, %v23291_v51  ;;  %v23292_v9 = vld [vmem:[#allocation76_spill] sm:$0xff]  ;;  %v3793_v40 = vcombine.high %v23287_v59, %v19133_v44  ;;  %v5583_v26 = vrot.slane %v5569_v49, %v16779_v52  ;;  %v19648_v4 = vrot.slane %v5521_v39, %v16771_v8 }
 0x519   : > { %15949 = vmatpush3.xpose.msk.msra.mxu1 %vm1430_vm2, %v5632_v63  ;;  %v23294_v21 = vcombine.low %v23292_v9, %v23293_v30  ;;  %15956 = vmatpush3.xpose.msk.msra.mxu0 %vm1430_vm2, %v5633_v31  ;;  %v23295_v27 = vcombine.high %v23292_v9, %v23293_v30  ;;  %v3633_v63 = vcombine.high %v19491_v19, %v3583_v35  ;;  %v19657_v44 = vpop.permute.xlu1 %4440  ;;  %v23297_v30 = vld [vmem:[#allocation23_spill] sm:$0xff]  ;;  %v19668_v35 = vpop.permute.xlu0 %4416 }
 0x51a   : > { %15950 = vmatprep.subr.msk.mxu1 %vm1430_vm2, %v19143_v25  ;;  %15957 = vmatprep.subr.msk.mxu0 %vm1430_vm2, %v19152_v28  ;;  %v19660_v31 = vrot.slane %v3616_v11, %v16779_v52  ;;  %v3688_v19 = vcombine.low %v23297_v30, %v19141_v23  ;;  %v5634_v34 = vcombine.low %v5583_v26, %v5615_v24 }
 0x51b   : > { %15952 = vmatprep.mubr.msk.f32.mxu1 %vm1430_vm2, %v23294_v21  ;;  %15959 = vmatprep.mubr.msk.f32.mxu0 %vm1430_vm2, %v23295_v27  ;;  %v19651_v21 = vrot.slane %v5505_v7, %v16771_v8  ;;  %v19671_v49 = vrot.slane %v3705_v17, %v16771_v8  ;;  %v19674_v39 = vrot.slane %v3617_v5, %v16779_v52 }
 0x51c   : > { %23296 = vst [vmem:[#allocation16_spill] sm:$0xff] %v19660_v31  ;;  %4542 = vrot.lane.b32.xlu1 %v23268_v38, %s22950_s13  ;;  %4518 = vrot.lane.b32.xlu0 %v23268_v38, %s22947_s29  ;;  %v5616_v7 = vcombine.low %v19630_v42, %v19627_v6  ;;  %v5635_v11 = vcombine.high %v5583_v26, %v5615_v24  ;;  %v23306_v38 = vld [vmem:[#allocation77_spill] sm:$0xff] }
 0x51d   : > { %23298 = vst [vmem:[#allocation32_spill] sm:$0xff] %v19674_v39  ;;  %15951 = vmatpush3.xpose.msk.msra.mxu1 %vm1430_vm2, %v19143_v25  ;;  %v19681_v59 = vrot.slane %v3632_v45, %v16779_v52  ;;  %v19684_v60 = vrot.slane %v3792_v12, %v16771_v8  ;;  %15958 = vmatpush3.xpose.msk.msra.mxu0 %vm1430_vm2, %v19152_v28  ;;  %v19702_v28 = vpop.permute.xlu1 %4488 }
 0x51e   : > { %15962 = vmatprep.subr.msk.mxu1 %vm1430_vm2, %v5634_v34  ;;  %v19692_v5 = vrot.slane %v3633_v63, %v16779_v52  ;;  %v19695_v25 = vrot.slane %v3793_v40, %v16771_v8  ;;  %v3689_v24 = vcombine.high %v23297_v30, %v19141_v23  ;;  %v5584_v12 = vcombine.low %v19651_v21, %v19648_v4  ;;  %v19713_v23 = vpop.permute.xlu0 %4464  ;;  %v23302_v63 = vld [vmem:[#allocation35_spill] sm:$0xff]  ;;  %v23303_v30 = vld [vmem:[#allocation14_spill] sm:$0xff] }
 0x51f   : > { %23299 = vst [vmem:[#allocation44_spill] sm:$0xff] %v19681_v59  ;;  %15969 = vmatprep.subr.msk.mxu0 %vm1430_vm2, %v5635_v11  ;;  %v19707_v45 = vrot.slane %v3688_v19, %v16771_v8  ;;  %v23304_v19 = vcombine.low %v23302_v63, %v23303_v30  ;;  %v23305_v51 = vcombine.high %v23302_v63, %v23303_v30  ;;  %v23316_v40 = vld [vmem:[#allocation78_spill] sm:$0xff] }
 0x520   : > { %23301 = vst [vmem:[#allocation17_spill] sm:$0xff] %v19692_v5  ;;  %1918 = vrot.lane.b32.xlu1 %v23241_v2, %s22945_s15  ;;  %1894 = vrot.lane.b32.xlu0 %v23241_v2, %s16390_s26  ;;  %v5624_v9 = vrot.slane %v5616_v7, %v16779_v52  ;;  %v3808_v7 = vcombine.low %v19180_v56, %v19227_v50 }
 0x521   : > { %15953 = vmatmul.mubr.msk.f32.vlgmr.msra.gmra.mxu1 %vm1430_vm2, %v23304_v19  ;;  %15960 = vmatmul.mubr.msk.f32.vlgmr.msra.gmra.mxu0 %vm1430_vm2, %v23305_v51  ;;  %v23307_v19 = vld [vmem:[#allocation82_spill] sm:$0xff]  ;;  %v19751_v30 = vpop.permute.xlu1 %4536  ;;  %v19754_v26 = vrot.slane %v3689_v24, %v16771_v8  ;;  %v5617_v24 = vcombine.high %v19630_v42, %v19627_v6  ;;  %v3753_v17 = vcombine.high %v19707_v45, %v19591_v22 }
 0x522   : > { %15963 = vmatpush3.xpose.msk.msra.mxu1 %vm1430_vm2, %v5634_v34  ;;  %v23308_v58 = vcombine.low %v23306_v38, %v23307_v19  ;;  %15970 = vmatpush3.xpose.msk.msra.mxu0 %vm1430_vm2, %v5635_v11  ;;  %v23309_v63 = vcombine.high %v23306_v38, %v23307_v19  ;;  %v5592_v34 = vrot.slane %v5584_v12, %v16779_v52  ;;  %v19764_v11 = vpop.permute.xlu0 %4512 }
 0x523   : > { %15964 = vmatprep.subr.msk.mxu1 %vm1430_vm2, %v19160_v10  ;;  %15971 = vmatprep.subr.msk.mxu0 %vm1430_vm2, %v19166_v41  ;;  %v5824_v38 = vcombine.low %v19702_v28, %v19751_v30  ;;  %v3752_v12 = vcombine.low %v19707_v45, %v19591_v22  ;;  %v5792_v19 = vcombine.low %v19607_v33, %v19657_v44 }
 0x524   : > { %15966 = vmatprep.mubr.msk.f32.mxu1 %vm1430_vm2, %v23308_v58  ;;  %15973 = vmatprep.mubr.msk.f32.mxu0 %vm1430_vm2, %v23309_v63  ;;  %v3809_v58 = vcombine.high %v19180_v56, %v19227_v50  ;;  %v5636_v56 = vcombine.low %v5592_v34, %v5624_v9  ;;  %v5808_v50 = vcombine.low %v19713_v23, %v19764_v11  ;;  %v23310_v63 = vld [vmem:[#allocation87_spill] sm:$0xff] }
 0x525   : > { %1966 = vrot.lane.b32.xlu1 %v23241_v2, %s22949_s30  ;;  %1942 = vrot.lane.b32.xlu0 %v23241_v2, %s22946_s25  ;;  %v5776_v51 = vcombine.low %v23310_v63, %v19668_v35  ;;  %v5637_v27 = vcombine.high %v5592_v34, %v5624_v9  ;;  %v3816_v59 = vrot.slane %v3808_v7, %v16771_v8  ;;  %v19790_v42 = vpop.permute.xlu1 %1766 }
 0x526   : > { %15965 = vmatpush3.xpose.msk.msra.mxu1 %vm1430_vm2, %v19160_v10  ;;  %15972 = vmatpush3.xpose.msk.msra.mxu0 %vm1430_vm2, %v19166_v41  ;;  %v3823_v10 = vrot.slane %v3809_v58, %v16771_v8  ;;  %v5585_v6 = vcombine.high %v19651_v21, %v19648_v4  ;;  %v19797_v9 = vrot.slane %v5824_v38, %v16771_v8  ;;  %v19802_v45 = vpop.permute.xlu0 %2012  ;;  %v23312_v58 = vld [vmem:[#allocation48_spill] sm:$0xff] }
 0x527   : > { %15976 = vmatprep.subr.msk.mxu1 %vm1430_vm2, %v5636_v56  ;;  %15983 = vmatprep.subr.msk.mxu0 %vm1430_vm2, %v5637_v27  ;;  %v19800_v22 = vrot.slane %v5808_v50, %v16771_v8  ;;  %v3768_v41 = vcombine.low %v19754_v26, %v19671_v49  ;;  %v3769_v7 = vcombine.high %v19754_v26, %v19671_v49  ;;  %v23313_v38 = vld [vmem:[#allocation88_spill] sm:$0xff] }
 0x528   : > { %v19813_v4 = vrot.slane %v3752_v12, %v16779_v52  ;;  %v19816_v21 = vrot.slane %v5792_v19, %v16771_v8  ;;  %v19819_v34 = vrot.slane %v5776_v51, %v16771_v8  ;;  %v23314_v50 = vcombine.low %v23312_v58, %v23313_v38 }
 0x529   : > { %2014 = vrot.lane.b32.xlu1 %v23241_v2, %s22950_s13  ;;  %1990 = vrot.lane.b32.xlu0 %v23241_v2, %s22947_s29  ;;  %v23315_v49 = vcombine.high %v23312_v58, %v23313_v38  ;;  %v5631_v26 = vrot.slane %v5617_v24, %v16779_v52  ;;  %v3856_v12 = vcombine.low %v19684_v60, %v3816_v59  ;;  %v23317_v2 = vld [vmem:[#allocation68_spill] sm:$0xff] }
 0x52a   : > { %23311 = vst [vmem:[#allocation33_spill] sm:$0xff] %v19813_v4  ;;  %15967 = vmatmul.mubr.msk.f32.vlgmr.msra.gmra.mxu1 %vm1430_vm2, %v23314_v50  ;;  %v3857_v19 = vcombine.high %v19684_v60, %v3816_v59  ;;  %v5688_v51 = vcombine.low %v19579_v61, %v19623_v37  ;;  %v23318_v5 = vcombine.low %v23316_v40, %v23317_v2  ;;  %v19839_v50 = vpop.permute.xlu1 %4242  ;;  %v23329_v4 = vld [vmem:[#allocation61_spill] sm:$0xff] }
 0x52b   : > { %15974 = vmatmul.mubr.msk.f32.vlgmr.msra.gmra.mxu0 %vm1430_vm2, %v23315_v49  ;;  %15977 = vmatpush3.xpose.msk.msra.mxu1 %vm1430_vm2, %v5636_v56  ;;  %v3872_v58 = vcombine.low %v19695_v25, %v3823_v10  ;;  %v23319_v24 = vcombine.high %v23316_v40, %v23317_v2  ;;  %v5872_v59 = vcombine.low %v19800_v22, %v19797_v9  ;;  %v19850_v56 = vpop.permute.xlu0 %4218  ;;  %v23320_v49 = vld [vmem:[#allocation31_spill] sm:$0xff] }
 0x52c   : > { %15980 = vmatprep.mubr.msk.f32.mxu1 %vm1430_vm2, %v23318_v5  ;;  %15984 = vmatpush3.xpose.msk.msra.mxu0 %vm1430_vm2, %v5637_v27  ;;  %v5599_v60 = vrot.slane %v5585_v6, %v16779_v52  ;;  %v3873_v5 = vcombine.high %v19695_v25, %v3823_v10  ;;  %v5656_v38 = vcombine.low %v19465_v16, %v19522_v15  ;;  %v23321_v10 = vld [vmem:[#allocation13_spill] sm:$0xff] }
 0x52d   : > { %15987 = vmatprep.mubr.msk.f32.mxu0 %vm1430_vm2, %v23319_v24  ;;  %v5672_v27 = vcombine.low %v19504_v0, %v19564_v29  ;;  %15978 = vmatprep.subr.msk.mxu1 %vm1430_vm2, %v23320_v49  ;;  %v5840_v2 = vcombine.low %v19819_v34, %v19816_v21  ;;  %v19864_v6 = vrot.slane %v3753_v17, %v16779_v52 }
 0x52e   : > { %15985 = vmatprep.subr.msk.mxu0 %vm1430_vm2, %v19187_v20  ;;  %v5638_v40 = vcombine.low %v5599_v60, %v5631_v26  ;;  %v19867_v25 = vrot.slane %v3768_v41, %v16779_v52  ;;  %v5640_v24 = vcombine.low %v23321_v10, %v19463_v47  ;;  %v19872_v62 = vrot.slane %v5688_v51, %v16771_v8  ;;  %v19876_v18 = vpop.permute.xlu1 %4290 }
 0x52f   : > { %15979 = vmatpush3.xpose.msk.msra.mxu1 %vm1430_vm2, %v23320_v49  ;;  %v5639_v43 = vcombine.high %v5599_v60, %v5631_v26  ;;  %v19879_v39 = vrot.slane %v3769_v7, %v16779_v52  ;;  %v19882_v17 = vrot.slane %v3856_v12, %v16779_v52  ;;  %v19885_v41 = vrot.slane %v3857_v19, %v16779_v52  ;;  %v19891_v49 = vpop.permute.xlu0 %4266  ;;  %v23323_v60 = vld [vmem:[#allocation94_spill] sm:$0xff] }
 0x530   : > { %15986 = vmatpush3.xpose.msk.msra.mxu0 %vm1430_vm2, %v19187_v20  ;;  %15990 = vmatprep.subr.msk.mxu1 %vm1430_vm2, %v5638_v40  ;;  %v5880_v51 = vrot.slane %v5872_v59, %v16779_v52  ;;  %v19894_v26 = vrot.slane %v3872_v58, %v16779_v52  ;;  %v19897_v7 = vrot.slane %v3873_v5, %v16779_v52  ;;  %v23322_v20 = vld [vmem:[#allocation71_spill] sm:$0xff]  ;;  %v23365_v5 = vld [vmem:[#allocation28_spill] sm:$0xff] }
 0x531   : > { %v19900_v12 = vrot.slane %v5656_v38, %v16771_v8  ;;  %v19903_v19 = vrot.slane %v5672_v27, %v16771_v8  ;;  %15997 = vmatprep.subr.msk.mxu0 %vm1430_vm2, %v5639_v43  ;;  %v23324_v57 = vcombine.low %v23322_v20, %v23323_v60  ;;  %v5848_v59 = vrot.slane %v5840_v2, %v16779_v52  ;;  %v23326_v38 = vld [vmem:[#allocation69_spill] sm:$0xff] }
 0x532   : > { %v19918_v27 = vrot.slane %v5640_v24, %v16771_v8  ;;  %v19927_v2 = vpop.permute.xlu1 %4338  ;;  %v5641_v48 = vcombine.high %v23321_v10, %v19463_v47  ;;  %v5657_v24 = vcombine.high %v19465_v16, %v19522_v15  ;;  %v23330_v58 = vcombine.low %v23328_v46, %v23329_v4 }
 0x533   : > { %15981 = vmatmul.mubr.msk.f32.vlgmr.msra.gmra.mxu1 %vm1430_vm2, %v23324_v57  ;;  %v5736_v31 = vcombine.low %v19903_v19, %v19872_v62  ;;  %v23327_v57 = vcombine.high %v23322_v20, %v23323_v60  ;;  %v5904_v20 = vcombine.low %v5848_v59, %v5880_v51  ;;  %v23331_v47 = vcombine.high %v23328_v46, %v23329_v4  ;;  %v23332_v46 = vld [vmem:[#allocation37_spill] sm:$0xff] }
 0x534   : > { %15991 = vmatpush3.xpose.msk.msra.mxu1 %vm1430_vm2, %v5638_v40  ;;  %15994 = vmatprep.mubr.msk.f32.mxu1 %vm1430_vm2, %v23330_v58  ;;  %v19940_v40 = vpop.permute.xlu0 %4314  ;;  %v5704_v60 = vcombine.low %v19918_v27, %v19900_v12  ;;  %v5905_v15 = vcombine.high %v5848_v59, %v5880_v51  ;;  %v5689_v16 = vcombine.high %v19579_v61, %v19623_v37 }
 0x535   : > { %15988 = vmatmul.mubr.msk.f32.vlgmr.msra.gmra.mxu0 %vm1430_vm2, %v23327_v57  ;;  %v5673_v57 = vcombine.high %v19504_v0, %v19564_v29  ;;  %15992 = vmatprep.subr.msk.mxu1 %vm1430_vm2, %v19196_v1  ;;  %v5809_v10 = vcombine.high %v19713_v23, %v19764_v11  ;;  %v5873_v0 = vcombine.high %v19800_v22, %v19797_v9  ;;  %v23333_v29 = vld [vmem:[#allocation10_spill] sm:$0xff] }
 0x536   : > { %15998 = vmatpush3.xpose.msk.msra.mxu0 %vm1430_vm2, %v5639_v43  ;;  %16001 = vmatprep.mubr.msk.f32.mxu0 %vm1430_vm2, %v23331_v47  ;;  %v5825_v43 = vcombine.high %v19702_v28, %v19751_v30  ;;  %v3824_v4 = vcombine.low %v23333_v29, %v23332_v46  ;;  %v5793_v51 = vcombine.high %v19607_v33, %v19657_v44  ;;  %v19969_v37 = vpop.permute.xlu1 %4394  ;;  %v23334_v28 = vld [vmem:[#allocation70_spill] sm:$0xff] }
 0x537   : > { %15999 = vmatprep.subr.msk.mxu0 %vm1430_vm2, %v19198_v3  ;;  %v5744_v61 = vrot.slane %v5736_v31, %v16779_v52  ;;  %v3825_v30 = vcombine.high %v23333_v29, %v23332_v46  ;;  %v5777_v11 = vcombine.high %v23310_v63, %v19668_v35  ;;  %v5841_v9 = vcombine.high %v19819_v34, %v19816_v21  ;;  %v23335_v21 = vld [vmem:[#allocation95_spill] sm:$0xff]  ;;  %v23336_v34 = vld [vmem:[#allocation41_spill] sm:$0xff] }
 0x538   : > { %15993 = vmatpush3.xpose.msk.msra.mxu1 %vm1430_vm2, %v19196_v1  ;;  %v19982_v1 = vpop.permute.xlu0 %4362  ;;  %v5655_v33 = vrot.slane %v5641_v48, %v16771_v8  ;;  %v5671_v44 = vrot.slane %v5657_v24, %v16771_v8  ;;  %v5687_v31 = vrot.slane %v5673_v57, %v16771_v8  ;;  %v5712_v35 = vrot.slane %v5704_v60, %v16779_v52 }
 0x539   : > { %16004 = vmatprep.subr.msk.mxu1 %vm1430_vm2, %v5904_v20  ;;  %v5703_v63 = vrot.slane %v5689_v16, %v16771_v8  ;;  %v19991_v22 = vrot.slane %v5825_v43, %v16771_v8  ;;  %v23337_v59 = vcombine.low %v23335_v21, %v23336_v34  ;;  %v5887_v48 = vrot.slane %v5873_v0, %v16779_v52  ;;  %v23339_v43 = vld [vmem:[#allocation64_spill] sm:$0xff] }
 0x53a   : > { %16000 = vmatpush3.xpose.msk.msra.mxu0 %vm1430_vm2, %v19198_v3  ;;  %v19994_v3 = vrot.slane %v5809_v10, %v16771_v8  ;;  %v5737_v58 = vcombine.high %v19903_v19, %v19872_v62  ;;  %v20004_v24 = vrot.slane %v5793_v51, %v16771_v8  ;;  %v23338_v60 = vcombine.high %v23335_v21, %v23336_v34  ;;  %v20011_v47 = vpop.permute.xlu1 %4442  ;;  %v23340_v10 = vld [vmem:[#allocation93_spill] sm:$0xff] }
 0x53b   : > { %16011 = vmatprep.subr.msk.mxu0 %vm1430_vm2, %v5905_v15  ;;  %15995 = vmatmul.mubr.msk.f32.vlgmr.msra.gmra.mxu1 %vm1430_vm2, %v23337_v59  ;;  %v5768_v57 = vcombine.low %v5712_v35, %v5744_v61  ;;  %v20014_v16 = vrot.slane %v5777_v11, %v16771_v8  ;;  %v23341_v0 = vcombine.low %v23339_v43, %v23340_v10  ;;  %v23343_v59 = vld [vmem:[#allocation72_spill] sm:$0xff] }
 0x53c   : > { %16005 = vmatpush3.xpose.msk.msra.mxu1 %vm1430_vm2, %v5904_v20  ;;  %v5769_v62 = vcombine.high %v5712_v35, %v5744_v61  ;;  %v5855_v19 = vrot.slane %v5841_v9, %v16779_v52  ;;  %v20022_v46 = vpop.permute.xlu0 %4418  ;;  %v5705_v20 = vcombine.high %v19918_v27, %v19900_v12  ;;  %v5720_v29 = vcombine.low %v5655_v33, %v5671_v44 }
 0x53d   : > { %16002 = vmatmul.mubr.msk.f32.vlgmr.msra.gmra.mxu0 %vm1430_vm2, %v23338_v60  ;;  %16008 = vmatprep.mubr.msk.f32.mxu1 %vm1430_vm2, %v23341_v0  ;;  %v23342_v51 = vcombine.high %v23339_v43, %v23340_v10  ;;  %v5752_v61 = vcombine.low %v5687_v31, %v5703_v63  ;;  %v5888_v9 = vcombine.low %v19994_v3, %v19991_v22  ;;  %v23345_v10 = vld [vmem:[#allocation42_spill] sm:$0xff] }
 0x53e   : > { %16012 = vmatpush3.xpose.msk.msra.mxu0 %vm1430_vm2, %v5905_v15  ;;  %16006 = vmatprep.subr.msk.mxu1 %vm1430_vm2, %v5768_v57  ;;  %v5721_v15 = vcombine.high %v5655_v33, %v5671_v44  ;;  %v5906_v35 = vcombine.low %v5855_v19, %v5887_v48  ;;  %v5753_v12 = vcombine.high %v5687_v31, %v5703_v63  ;;  %v20038_v34 = vpop.permute.xlu1 %4490 }
 0x53f   : > { %16015 = vmatprep.mubr.msk.f32.mxu0 %vm1430_vm2, %v23342_v51  ;;  %16013 = vmatprep.subr.msk.mxu0 %vm1430_vm2, %v5769_v62  ;;  %v5907_v27 = vcombine.high %v5855_v19, %v5887_v48  ;;  %v5751_v21 = vrot.slane %v5737_v58, %v16779_v52  ;;  %v20043_v33 = vrot.slane %v3824_v4, %v16771_v8 }
 0x540   : > { %16007 = vmatpush3.xpose.msk.msra.mxu1 %vm1430_vm2, %v5768_v57  ;;  %v20046_v44 = vrot.slane %v3825_v30, %v16771_v8  ;;  %v5856_v43 = vcombine.low %v20014_v16, %v20004_v24  ;;  %v20052_v31 = vpop.permute.xlu0 %4466  ;;  %v3840_v63 = vcombine.low %v19418_v53, %v19802_v45  ;;  %v5719_v4 = vrot.slane %v5705_v20, %v16779_v52  ;;  %v23344_v57 = vld [vmem:[#allocation29_spill] sm:$0xff]  ;;  %v23349_v30 = vld [vmem:[#allocation15_spill] sm:$0xff] }
 0x541   : > { %16018 = vmatprep.subr.msk.mxu1 %vm1430_vm2, %v5906_v35  ;;  %v5728_v48 = vrot.slane %v5720_v29, %v16779_v52  ;;  %v3841_v58 = vcombine.high %v19418_v53, %v19802_v45  ;;  %v23346_v0 = vcombine.low %v23344_v57, %v23345_v10  ;;  %v5760_v19 = vrot.slane %v5752_v61, %v16779_v52 }
 0x542   : > { %16014 = vmatpush3.xpose.msk.msra.mxu0 %vm1430_vm2, %v5769_v62  ;;  %v5896_v62 = vrot.slane %v5888_v9, %v16779_v52  ;;  %v5735_v51 = vrot.slane %v5721_v15, %v16779_v52  ;;  %v5857_v20 = vcombine.high %v20014_v16, %v20004_v24  ;;  %v23347_v29 = vcombine.high %v23344_v57, %v23345_v10  ;;  %v20077_v45 = vpop.permute.xlu1 %4538  ;;  %v23348_v9 = vld [vmem:[#allocation65_spill] sm:$0xff] }
 0x543   : > { %16025 = vmatprep.subr.msk.mxu0 %vm1430_vm2, %v5907_v27  ;;  %16009 = vmatmul.mubr.msk.f32.vlgmr.msra.gmra.mxu1 %vm1430_vm2, %v23346_v0  ;;  %v5770_v53 = vcombine.low %v5719_v4, %v5751_v21  ;;  %v5767_v0 = vrot.slane %v5753_v12, %v16779_v52  ;;  %v23350_v61 = vcombine.low %v23348_v9, %v23349_v30 }
 0x544   : > { %16019 = vmatpush3.xpose.msk.msra.mxu1 %vm1430_vm2, %v5906_v35  ;;  %v5771_v24 = vcombine.high %v5719_v4, %v5751_v21  ;;  %v5864_v16 = vrot.slane %v5856_v43, %v16779_v52  ;;  %v6096_v15 = vcombine.low %v20038_v34, %v20077_v45  ;;  %v20088_v57 = vpop.permute.xlu0 %4514  ;;  %v5889_v35 = vcombine.high %v19994_v3, %v19991_v22  ;;  %v23352_v22 = vld [vmem:[#allocation90_spill] sm:$0xff] }
 0x545   : > { %16016 = vmatmul.mubr.msk.f32.vlgmr.msra.gmra.mxu0 %vm1430_vm2, %v23347_v29  ;;  %16022 = vmatprep.mubr.msk.f32.mxu1 %vm1430_vm2, %v23350_v61  ;;  %v3848_v12 = vrot.slane %v3840_v63, %v16771_v8  ;;  %v23351_v10 = vcombine.high %v23348_v9, %v23349_v30  ;;  %v3855_v21 = vrot.slane %v3841_v58, %v16771_v8  ;;  %v23353_v61 = vld [vmem:[#allocation89_spill] sm:$0xff] }
 0x546   : > { %16026 = vmatpush3.xpose.msk.msra.mxu0 %vm1430_vm2, %v5907_v27  ;;  %16020 = vmatprep.subr.msk.mxu1 %vm1430_vm2, %v5770_v53  ;;  %v6080_v27 = vcombine.low %v20052_v31, %v20088_v57  ;;  %v6064_v43 = vcombine.low %v19969_v37, %v20011_v47  ;;  %v6048_v3 = vcombine.low %v23352_v22, %v20022_v46  ;;  %v20118_v11 = vpop.permute.xlu1 %1814 }
 0x547   : > { %16029 = vmatprep.mubr.msk.f32.mxu0 %vm1430_vm2, %v23351_v10  ;;  %16027 = vmatprep.subr.msk.mxu0 %vm1430_vm2, %v5771_v24  ;;  %v5908_v63 = vcombine.low %v5864_v16, %v5896_v62  ;;  %v5909_v4 = vcombine.high %v5864_v16, %v5896_v62  ;;  %v5772_v30 = vcombine.low %v5728_v48, %v5760_v19 }
 0x548   : > { %16021 = vmatpush3.xpose.msk.msra.mxu1 %vm1430_vm2, %v5770_v53  ;;  %v5773_v29 = vcombine.high %v5728_v48, %v5760_v19  ;;  %v5871_v9 = vrot.slane %v5857_v20, %v16779_v52  ;;  %v5912_v10 = vcombine.low %v23353_v61, %v19839_v50  ;;  %v20113_v58 = vrot.slane %v6096_v15, %v16771_v8  ;;  %v20120_v62 = vpop.permute.xlu0 %1790 }
 0x549   : > { %16032 = vmatprep.subr.msk.mxu1 %vm1430_vm2, %v5908_v63  ;;  %v20116_v60 = vrot.slane %v6080_v27, %v16771_v8  ;;  %v3888_v48 = vcombine.low %v20043_v33, %v3848_v12  ;;  %v3889_v19 = vcombine.high %v20043_v33, %v3848_v12  ;;  %v5913_v20 = vcombine.high %v23353_v61, %v19839_v50 }
 0x54a   : > { %16028 = vmatpush3.xpose.msk.msra.mxu0 %vm1430_vm2, %v5771_v24  ;;  %v20127_v53 = vcombine.low %v5735_v51, %v5767_v0  ;;  %v3904_v24 = vcombine.low %v20046_v44, %v3855_v21  ;;  %v20131_v16 = vrot.slane %v6064_v43, %v16771_v8  ;;  %v20134_v15 = vrot.slane %v6048_v3, %v16771_v8 }
 0x54b   : > { %16039 = vmatprep.subr.msk.mxu0 %vm1430_vm2, %v5909_v4  ;;  %v23354_v27 = vcombine.low %v19279_v55, %v19355_v13  ;;  %v5903_v33 = vrot.slane %v5889_v35, %v16779_v52  ;;  %v3905_v50 = vcombine.high %v20046_v44, %v3855_v21  ;;  %v5960_v12 = vcombine.low %v19940_v40, %v19982_v1  ;;  %v23357_v44 = vld [vmem:[#allocation8_spill] sm:$0xff] }
 0x54c   : > { %v23355_v61 = vcombine.high %v19279_v55, %v19355_v13  ;;  %v20149_v43 = vcombine.high %v5735_v51, %v5767_v0  ;;  %v20152_v3 = vrot.slane %v5912_v10, %v16771_v8  ;;  %v5928_v35 = vcombine.low %v19850_v56, %v19891_v49 }
 0x54d   : > { %16023 = vmatmul.mubr.msk.f32.vlgmr.msra.gmra.mxu1 %vm1430_vm2, %v23354_v27  ;;  %v23356_v27 = vld [vmem:[#allocation66_spill] sm:$0xff]  ;;  %v6144_v55 = vcombine.low %v20116_v60, %v20113_v58  ;;  %v20164_v13 = vrot.slane %v3888_v48, %v16779_v52  ;;  %v20167_v51 = vrot.slane %v3889_v19, %v16779_v52  ;;  %v5944_v0 = vcombine.low %v19876_v18, %v19927_v2 }
 0x54e   : > { %16030 = vmatmul.mubr.msk.f32.vlgmr.msra.gmra.mxu0 %vm1430_vm2, %v23355_v61  ;;  %16033 = vmatpush3.xpose.msk.msra.mxu1 %vm1430_vm2, %v5908_v63  ;;  %v23358_v21 = vcombine.low %v23356_v27, %v23357_v44  ;;  %v23359_v63 = vcombine.high %v23356_v27, %v23357_v44  ;;  %v20179_v10 = vrot.slane %v3904_v24, %v16779_v52 }
 0x54f   : > { %16040 = vmatpush3.xpose.msk.msra.mxu0 %vm1430_vm2, %v5909_v4  ;;  %16034 = vmatprep.subr.msk.mxu1 %vm1430_vm2, %v5772_v30  ;;  %v20176_v4 = vpop.permute.xlu1 %4244  ;;  %v20182_v48 = vrot.slane %v5913_v20, %v16771_v8  ;;  %v6112_v19 = vcombine.low %v20134_v15, %v20131_v16  ;;  %v5910_v61 = vcombine.low %v5871_v9, %v5903_v33 }
 0x550   : > { %16036 = vmatprep.mubr.msk.f32.mxu1 %vm1430_vm2, %v23358_v21  ;;  %16043 = vmatprep.mubr.msk.f32.mxu0 %vm1430_vm2, %v23359_v63  ;;  %v20187_v21 = vpop.permute.xlu0 %4220  ;;  %v20190_v27 = vrot.slane %v3905_v50, %v16779_v52  ;;  %v5929_v44 = vcombine.high %v19850_v56, %v19891_v49  ;;  %v20195_v24 = vrot.slane %v5960_v12, %v16771_v8  ;;  %v23361_v12 = vld [vmem:[#allocation22_spill] sm:$0xff] }
 0x551   : > { %16041 = vmatprep.subr.msk.mxu0 %vm1430_vm2, %v5773_v29  ;;  %v5911_v20 = vcombine.high %v5871_v9, %v5903_v33  ;;  %v20199_v63 = vrot.slane %v5928_v35, %v16771_v8  ;;  %v5961_v23 = vcombine.high %v19940_v40, %v19982_v1  ;;  %v6152_v50 = vrot.slane %v6144_v55, %v16779_v52 }
 0x552   : > { %23360 = vst [vmem:[#allocation97_spill] sm:$0xff] %v20190_v27  ;;  %16035 = vmatpush3.xpose.msk.msra.mxu1 %vm1430_vm2, %v5772_v30  ;;  %v5952_v9 = vrot.slane %v5944_v0, %v16771_v8  ;;  %v5945_v33 = vcombine.high %v19876_v18, %v19927_v2  ;;  %v23362_v35 = vcombine.low %v19304_v14, %v23361_v12 }
 0x553   : > { %16042 = vmatpush3.xpose.msk.msra.mxu0 %vm1430_vm2, %v5773_v29  ;;  %16046 = vmatprep.subr.msk.mxu1 %vm1430_vm2, %v5910_v61  ;;  %v20214_v40 = vpop.permute.xlu1 %4292  ;;  %v6120_v55 = vrot.slane %v6112_v19, %v16779_v52  ;;  %v20232_v1 = vrot.slane %v5929_v44, %v16771_v8  ;;  %v23363_v18 = vcombine.high %v19304_v14, %v23361_v12 }
 0x554   : > { %16053 = vmatprep.subr.msk.mxu0 %vm1430_vm2, %v5911_v20  ;;  %v20227_v0 = vpop.permute.xlu0 %4268  ;;  %v6008_v29 = vcombine.low %v5952_v9, %v20195_v24  ;;  %v5976_v2 = vcombine.low %v20152_v3, %v20199_v63  ;;  %v5975_v19 = vrot.slane %v5961_v23, %v16771_v8  ;;  %v6065_v14 = vcombine.high %v19969_v37, %v20011_v47 }
 0x555   : > { %16037 = vmatmul.mubr.msk.f32.vlgmr.msra.gmra.mxu1 %vm1430_vm2, %v23362_v35  ;;  %v23364_v35 = vld [vmem:[#allocation67_spill] sm:$0xff]  ;;  %v6176_v44 = vcombine.low %v6120_v55, %v6152_v50  ;;  %v6049_v12 = vcombine.high %v23352_v22, %v20022_v46  ;;  %v6177_v23 = vcombine.high %v6120_v55, %v6152_v50  ;;  %v6081_v37 = vcombine.high %v20052_v31, %v20088_v57 }
 0x556   : > { %16044 = vmatmul.mubr.msk.f32.vlgmr.msra.gmra.mxu0 %vm1430_vm2, %v23363_v18  ;;  %16047 = vmatpush3.xpose.msk.msra.mxu1 %vm1430_vm2, %v5910_v61  ;;  %v23366_v30 = vcombine.low %v23364_v35, %v23365_v5  ;;  %v23367_v61 = vcombine.high %v23364_v35, %v23365_v5  ;;  %v6145_v47 = vcombine.high %v20116_v60, %v20113_v58  ;;  %v23391_v5 = vld [vmem:[#allocation46_spill] sm:$0xff] }
 0x557   : > { %16054 = vmatpush3.xpose.msk.msra.mxu0 %vm1430_vm2, %v5911_v20  ;;  %16048 = vmatprep.subr.msk.mxu1 %vm1430_vm2, %v20127_v53  ;;  %v6097_v20 = vcombine.high %v20038_v34, %v20077_v45  ;;  %v5977_v46 = vcombine.high %v20152_v3, %v20199_v63  ;;  %v6009_v22 = vcombine.high %v5952_v9, %v20195_v24  ;;  %v20275_v31 = vpop.permute.xlu1 %4340 }
 0x558   : > { %16050 = vmatprep.mubr.msk.f32.mxu1 %vm1430_vm2, %v23366_v30  ;;  %16057 = vmatprep.mubr.msk.f32.mxu0 %vm1430_vm2, %v23367_v61  ;;  %v5959_v30 = vrot.slane %v5945_v33, %v16771_v8  ;;  %v6016_v34 = vrot.slane %v6008_v29, %v16779_v52  ;;  %v20277_v45 = vpop.permute.xlu0 %4316  ;;  %v5992_v60 = vcombine.low %v20182_v48, %v20232_v1 }
 0x559   : > { %16055 = vmatprep.subr.msk.mxu0 %vm1430_vm2, %v20149_v43  ;;  %v6113_v58 = vcombine.high %v20134_v15, %v20131_v16  ;;  %v6063_v24 = vrot.slane %v6049_v12, %v16771_v8  ;;  %v5984_v63 = vrot.slane %v5976_v2, %v16779_v52  ;;  %v5993_v50 = vcombine.high %v20182_v48, %v20232_v1  ;;  %v23368_v15 = vld [vmem:[#allocation49_spill] sm:$0xff] }
 0x55a   : > { %16049 = vmatpush3.xpose.msk.msra.mxu1 %vm1430_vm2, %v20127_v53  ;;  %v6024_v57 = vcombine.low %v5959_v30, %v5975_v19  ;;  %v6025_v3 = vcombine.high %v5959_v30, %v5975_v19  ;;  %v6079_v53 = vrot.slane %v6065_v14, %v16771_v8  ;;  %v20293_v9 = vrot.slane %v6097_v20, %v16771_v8 }
 0x55b   : > { %16056 = vmatpush3.xpose.msk.msra.mxu0 %vm1430_vm2, %v20149_v43  ;;  %16060 = vmatprep.subr.msk.mxu1 %vm1430_vm2, %v6176_v44  ;;  %v20296_v16 = vrot.slane %v6081_v37, %v16771_v8  ;;  %v23369_v43 = vld [vmem:[#allocation12_spill] sm:$0xff]  ;;  %v6159_v33 = vrot.slane %v6145_v47, %v16779_v52  ;;  %v6040_v48 = vcombine.low %v5984_v63, %v6016_v34  ;;  %v20308_v1 = vpop.permute.xlu1 %4396 }
 0x55c   : > { %16067 = vmatprep.subr.msk.mxu0 %vm1430_vm2, %v6177_v23  ;;  %v23370_v29 = vcombine.low %v23368_v15, %v23369_v43  ;;  %v23371_v55 = vcombine.high %v23368_v15, %v23369_v43  ;;  %v20310_v18 = vpop.permute.xlu0 %4364  ;;  %v5991_v2 = vrot.slane %v5977_v46, %v16779_v52  ;;  %v6023_v19 = vrot.slane %v6009_v22, %v16779_v52 }
 0x55d   : > { %v23372_v35 = vcombine.low %v23275_v32, %v19476_v36  ;;  %v6041_v14 = vcombine.high %v5984_v63, %v6016_v34  ;;  %v6127_v12 = vrot.slane %v6113_v58, %v16779_v52  ;;  %v6128_v61 = vcombine.low %v6063_v24, %v6079_v53 }
 0x55e   : > { %16051 = vmatmul.mubr.msk.f32.vlgmr.msra.gmra.mxu1 %vm1430_vm2, %v23370_v29  ;;  %16058 = vmatmul.mubr.msk.f32.vlgmr.msra.gmra.mxu0 %vm1430_vm2, %v23371_v55  ;;  %v6129_v30 = vcombine.high %v6063_v24, %v6079_v53  ;;  %v23373_v20 = vcombine.high %v23275_v32, %v19476_v36  ;;  %v6039_v37 = vrot.slane %v6025_v3, %v16779_v52  ;;  %v23374_v55 = vld [vmem:[#allocation16_spill] sm:$0xff] }
 0x55f   : > { %16061 = vmatpush3.xpose.msk.msra.mxu1 %vm1430_vm2, %v6176_v44  ;;  %16064 = vmatprep.mubr.msk.f32.mxu1 %vm1430_vm2, %v23372_v35  ;;  %v6032_v44 = vrot.slane %v6024_v57, %v16779_v52  ;;  %v6178_v46 = vcombine.low %v6127_v12, %v6159_v33  ;;  %v6000_v22 = vrot.slane %v5992_v60, %v16779_v52  ;;  %v20339_v3 = vpop.permute.xlu1 %4444 }
 0x560   : > { %16068 = vmatpush3.xpose.msk.msra.mxu0 %vm1430_vm2, %v6177_v23  ;;  %16071 = vmatprep.mubr.msk.f32.mxu0 %vm1430_vm2, %v23373_v20  ;;  %v6160_v23 = vcombine.low %v20296_v16, %v20293_v9  ;;  %v6179_v36 = vcombine.high %v6127_v12, %v6159_v33  ;;  %v6042_v32 = vcombine.low %v5991_v2, %v6023_v19  ;;  %v20341_v53 = vpop.permute.xlu0 %4420 }
 0x561   : > { %16062 = vmatprep.subr.msk.mxu1 %vm1430_vm2, %v6040_v48  ;;  %16069 = vmatprep.subr.msk.mxu0 %vm1430_vm2, %v6041_v14  ;;  %v6043_v34 = vcombine.high %v5991_v2, %v6023_v19  ;;  %v6007_v57 = vrot.slane %v5993_v50, %v16779_v52  ;;  %v6200_v58 = vcombine.low %v20187_v21, %v20227_v0 }
 0x562   : > { %v20343_v24 = vcombine.low %v6000_v22, %v6032_v44  ;;  %v20345_v60 = vcombine.high %v6000_v22, %v6032_v44  ;;  %v6232_v63 = vcombine.low %v20277_v45, %v20310_v18  ;;  %v6136_v50 = vrot.slane %v6128_v61, %v16779_v52 }
 0x563   : > { %16063 = vmatpush3.xpose.msk.msra.mxu1 %vm1430_vm2, %v6040_v48  ;;  %v20352_v15 = vrot.slane %v6129_v30, %v16779_v52  ;;  %v20354_v43 = vcombine.low %v6007_v57, %v6039_v37  ;;  %v3960_v29 = vcombine.low %v19790_v42, %v20118_v11  ;;  %v3961_v33 = vcombine.high %v19790_v42, %v20118_v11  ;;  %v23379_v30 = vld [vmem:[#allocation39_spill] sm:$0xff] }
 0x564   : > { %16070 = vmatpush3.xpose.msk.msra.mxu0 %vm1430_vm2, %v6041_v14  ;;  %16074 = vmatprep.subr.msk.mxu1 %vm1430_vm2, %v6178_v46  ;;  %v23375_v48 = vcombine.low %v19555_v54, %v23374_v55  ;;  %v6168_v2 = vrot.slane %v6160_v23, %v16779_v52  ;;  %v20365_v19 = vcombine.high %v6007_v57, %v6039_v37  ;;  %v23376_v14 = vld [vmem:[#allocation91_spill] sm:$0xff]  ;;  %v20392_v37 = vpop.permute.xlu0 %4468  ;;  %v23382_v57 = vld [vmem:[#allocation92_spill] sm:$0xff] }
 0x565   : > { %16081 = vmatprep.subr.msk.mxu0 %vm1430_vm2, %v6179_v36  ;;  %v6161_v35 = vcombine.high %v20296_v16, %v20293_v9  ;;  %v6184_v12 = vcombine.low %v23376_v14, %v20176_v4  ;;  %v6216_v44 = vcombine.low %v20214_v40, %v20275_v31  ;;  %v23377_v42 = vcombine.high %v19555_v54, %v23374_v55  ;;  %v23378_v16 = vld [vmem:[#allocation81_spill] sm:$0xff]  ;;  %v20390_v54 = vpop.permute.xlu1 %4492 }
 0x566   : > { %16065 = vmatmul.mubr.msk.f32.vlgmr.msra.gmra.mxu1 %vm1430_vm2, %v23375_v48  ;;  %v6185_v11 = vcombine.high %v23376_v14, %v20176_v4  ;;  %v6201_v61 = vcombine.high %v20187_v21, %v20227_v0  ;;  %v20383_v9 = vrot.slane %v6200_v58, %v16771_v8  ;;  %v23380_v20 = vcombine.low %v23378_v16, %v23379_v30 }
 0x567   : > { %16072 = vmatmul.mubr.msk.f32.vlgmr.msra.gmra.mxu0 %vm1430_vm2, %v23377_v42  ;;  %16075 = vmatpush3.xpose.msk.msra.mxu1 %vm1430_vm2, %v6178_v46  ;;  %v6217_v4 = vcombine.high %v20214_v40, %v20275_v31  ;;  %v23381_v21 = vcombine.high %v23378_v16, %v23379_v30  ;;  %v6233_v0 = vcombine.high %v20277_v45, %v20310_v18  ;;  %v20404_v46 = vpop.f32.mrf.mxu0 }
 0x568   : > { %16078 = vmatprep.mubr.msk.f32.mxu1 %vm1430_vm2, %v23380_v20  ;;  %16082 = vmatpush3.xpose.msk.msra.mxu0 %vm1430_vm2, %v6179_v36  ;;  %v6240_v23 = vrot.slane %v6232_v63, %v16771_v8  ;;  %v20407_v22 = vrot.slane %v3960_v29, %v16771_v8  ;;  %v20410_v36 = vrot.slane %v3961_v33, %v16771_v8  ;;  %v20420_v29 = vpop.f32.mrf.mxu1  ;;  %v20450_v20 = vpop.permute.xlu0 %4516 }
 0x569   : > { %16085 = vmatprep.mubr.msk.f32.mxu0 %vm1430_vm2, %v23381_v21  ;;  %16076 = vmatprep.subr.msk.mxu1 %vm1430_vm2, %v6042_v32  ;;  %v6336_v40 = vcombine.low %v20308_v1, %v20339_v3  ;;  %v6180_v31 = vcombine.low %v6136_v50, %v6168_v2  ;;  %v6192_v45 = vrot.slane %v6184_v12, %v16771_v8  ;;  %v20448_v30 = vpop.permute.xlu1 %4540 }
 0x56a   : > { %16083 = vmatprep.subr.msk.mxu0 %vm1430_vm2, %v6043_v34  ;;  %v6224_v18 = vrot.slane %v6216_v44, %v16771_v8  ;;  %v6320_v58 = vcombine.low %v23382_v57, %v20341_v53  ;;  %v6181_v63 = vcombine.high %v6136_v50, %v6168_v2  ;;  %v6199_v33 = vrot.slane %v6185_v11, %v16771_v8  ;;  %v20435_v2 = vpop.f32.mrf.mxu0  ;;  %v23383_v11 = vld [vmem:[#allocation73_spill] sm:$0xff] }
 0x56b   : > { %16077 = vmatpush3.xpose.msk.msra.mxu1 %vm1430_vm2, %v6042_v32  ;;  %v6215_v55 = vrot.slane %v6201_v61, %v16771_v8  ;;  %v6175_v48 = vrot.slane %v6161_v35, %v16779_v52  ;;  %v6248_v14 = vcombine.low %v6192_v45, %v20383_v9  ;;  %v20429_v32 = vrot.slane %v6217_v4, %v16771_v8  ;;  %v23384_v61 = vld [vmem:[#allocation32_spill] sm:$0xff] }
 0x56c   : > { %16084 = vmatpush3.xpose.msk.msra.mxu0 %vm1430_vm2, %v6043_v34  ;;  %16088 = vmatprep.subr.msk.mxu1 %vm1430_vm2, %v6180_v31  ;;  %v20432_v12 = vrot.slane %v6233_v0, %v16771_v8  ;;  %v6280_v50 = vcombine.low %v6224_v18, %v6240_v23  ;;  %v6281_v44 = vcombine.high %v6224_v18, %v6240_v23  ;;  %v23387_v18 = vld [vmem:[#allocation30_spill] sm:$0xff] }
 0x56d   : > { %16095 = vmatprep.subr.msk.mxu0 %vm1430_vm2, %v6181_v63  ;;  %v6337_v34 = vcombine.high %v20308_v1, %v20339_v3  ;;  %v20440_v42 = vrot.slane %v6336_v40, %v16771_v8  ;;  %v6321_v35 = vcombine.high %v23382_v57, %v20341_v53  ;;  %v23385_v16 = vcombine.low %v23383_v11, %v23384_v61  ;;  %v20460_v3 = vpop.f32.mrf.mxu1  ;;  %v23388_v57 = vld [vmem:[#allocation43_spill] sm:$0xff] }
 0x56e   : > { %v20453_v4 = vrot.slane %v6320_v58, %v16771_v8  ;;  %v23386_v1 = vcombine.high %v23383_v11, %v23384_v61  ;;  %v6368_v53 = vcombine.low %v20390_v54, %v20448_v30  ;;  %v6352_v21 = vcombine.low %v20392_v37, %v20450_v20 }
 0x56f   : > { %16079 = vmatmul.mubr.msk.f32.vlgmr.msra.gmra.mxu1 %vm1430_vm2, %v23385_v16  ;;  %v6249_v0 = vcombine.high %v6192_v45, %v20383_v9  ;;  %v6264_v23 = vcombine.low %v6199_v33, %v6215_v55  ;;  %v6265_v40 = vcombine.high %v6199_v33, %v6215_v55  ;;  %v23389_v58 = vcombine.low %v23387_v18, %v23388_v57  ;;  %v20494_v16 = vpop.permute.xlu1 %1870 }
 0x570   : > { %16086 = vmatmul.mubr.msk.f32.vlgmr.msra.gmra.mxu0 %vm1430_vm2, %v23386_v1  ;;  %16089 = vmatpush3.xpose.msk.msra.mxu1 %vm1430_vm2, %v6180_v31  ;;  %v20472_v31 = vpop.f32.mrf.mxu0  ;;  %v6296_v11 = vcombine.low %v20429_v32, %v20432_v12  ;;  %v23390_v61 = vcombine.high %v23387_v18, %v23388_v57  ;;  %v20483_v9 = vrot.slane %v6368_v53, %v16771_v8  ;;  %v20496_v1 = vpop.permute.xlu0 %1838 }
 0x571   : > { %16092 = vmatprep.mubr.msk.f32.mxu1 %vm1430_vm2, %v23389_v58  ;;  %16096 = vmatpush3.xpose.msk.msra.mxu0 %vm1430_vm2, %v6181_v63  ;;  %v20486_v45 = vrot.slane %v6352_v21, %v16771_v8  ;;  %v20488_v63 = vpop.f32.mrf.mxu1  ;;  %v6182_v33 = vcombine.low %v20352_v15, %v6175_v48  ;;  %v6183_v55 = vcombine.high %v20352_v15, %v6175_v48 }
 0x572   : > { %16099 = vmatprep.mubr.msk.f32.mxu0 %vm1430_vm2, %v23390_v61  ;;  %16090 = vmatprep.subr.msk.mxu1 %vm1430_vm2, %v20343_v24  ;;  %v6288_v18 = vrot.slane %v6280_v50, %v16779_v52  ;;  %v6295_v53 = vrot.slane %v6281_v44, %v16779_v52  ;;  %v20501_v21 = vrot.slane %v6337_v34, %v16771_v8  ;;  %v20515_v48 = vpop.f32.mrf.mxu0 }
 0x573   : > { %16097 = vmatprep.subr.msk.mxu0 %vm1430_vm2, %v20345_v60  ;;  %v20504_v57 = vrot.slane %v6321_v35, %v16771_v8  ;;  %v6384_v58 = vcombine.low %v20453_v4, %v20440_v42  ;;  %v6416_v15 = vcombine.low %v20486_v45, %v20483_v9  ;;  %v6256_v50 = vrot.slane %v6248_v14, %v16779_v52  ;;  %v23392_v14 = vld [vmem:[#allocation44_spill] sm:$0xff] }
 0x574   : > { %16091 = vmatpush3.xpose.msk.msra.mxu1 %vm1430_vm2, %v20343_v24  ;;  %v6263_v44 = vrot.slane %v6249_v0, %v16779_v52  ;;  %v6272_v34 = vrot.slane %v6264_v23, %v16779_v52  ;;  %v6297_v35 = vcombine.high %v20429_v32, %v20432_v12  ;;  %v6304_v61 = vrot.slane %v6296_v11, %v16779_v52  ;;  %v7328_v0 = vpop.f32.mrf.mxu1  ;;  %v20532_v23 = vpop.f32.mrf.mxu0 }
 0x575   : > { %16098 = vmatpush3.xpose.msk.msra.mxu0 %vm1430_vm2, %v20345_v60  ;;  %16102 = vmatprep.subr.msk.mxu1 %vm1430_vm2, %v6182_v33  ;;  %v6424_v24 = vrot.slane %v6416_v15, %v16779_v52  ;;  %v6279_v60 = vrot.slane %v6265_v40, %v16779_v52  ;;  %v6385_v47 = vcombine.high %v20453_v4, %v20440_v42  ;;  %v20551_v11 = vpop.permute.xlu0 %4222 }
 0x576   : > { %16109 = vmatprep.subr.msk.mxu0 %vm1430_vm2, %v6183_v55  ;;  %v23393_v49 = vcombine.low %v23391_v5, %v23392_v14  ;;  %v20534_v32 = vcombine.low %v6256_v50, %v6288_v18  ;;  %v20536_v12 = vcombine.high %v6256_v50, %v6288_v18  ;;  %v20538_v15 = vcombine.low %v6263_v44, %v6295_v53 }
 0x577   : > { %v6400_v40 = vcombine.low %v20504_v57, %v20501_v21  ;;  %v6401_v42 = vcombine.high %v20504_v57, %v20501_v21  ;;  %v23394_v4 = vcombine.high %v23391_v5, %v23392_v14  ;;  %v6392_v18 = vrot.slane %v6384_v58, %v16779_v52  ;;  %v23395_v21 = vld [vmem:[#allocation21_spill] sm:$0xff]  ;;  %v23396_v57 = vld [vmem:[#allocation38_spill] sm:$0xff] }
 0x578   : > { %16093 = vmatmul.mubr.msk.f32.vlgmr.msra.gmra.mxu1 %vm1430_vm2, %v23393_v49  ;;  %v20549_v49 = vpop.permute.xlu1 %4246  ;;  %v6369_v50 = vcombine.high %v20390_v54, %v20448_v30  ;;  %v6353_v56 = vcombine.high %v20392_v37, %v20450_v20  ;;  %v23397_v27 = vcombine.low %v23395_v21, %v23396_v57  ;;  %v20563_v5 = vcombine.high %v6263_v44, %v6295_v53 }
 0x579   : > { %16100 = vmatmul.mubr.msk.f32.vlgmr.msra.gmra.mxu0 %vm1430_vm2, %v23394_v4  ;;  %16103 = vmatpush3.xpose.msk.msra.mxu1 %vm1430_vm2, %v6182_v33  ;;  %v13416_v33 = vcombine.low %v20420_v29, %v20488_v63  ;;  %v23398_v58 = vcombine.high %v23395_v21, %v23396_v57  ;;  %v6448_v54 = vcombine.low %v6392_v18, %v6424_v24  ;;  %v23400_v21 = vld [vmem:[#allocation17_spill] sm:$0xff] }
 0x57a   : > { %16106 = vmatprep.mubr.msk.f32.mxu1 %vm1430_vm2, %v23397_v27  ;;  %16110 = vmatpush3.xpose.msk.msra.mxu0 %vm1430_vm2, %v6183_v55  ;;  %v6449_v37 = vcombine.high %v6392_v18, %v6424_v24  ;;  %v6417_v27 = vcombine.high %v20486_v45, %v20483_v9  ;;  %v13417_v30 = vcombine.high %v20420_v29, %v20488_v63  ;;  %v20580_v55 = vpop.f32.mrf.mxu0  ;;  %v20589_v9 = vpop.permute.xlu0 %4270 }
 0x57b   : > { %16113 = vmatprep.mubr.msk.f32.mxu0 %vm1430_vm2, %v23398_v58  ;;  %16104 = vmatprep.subr.msk.mxu1 %vm1430_vm2, %v20354_v43  ;;  %v12328_v20 = vcombine.low %v20460_v3, %v7328_v0  ;;  %v20582_v53 = vcombine.low %v6272_v34, %v6304_v61  ;;  %v12329_v44 = vcombine.high %v20460_v3, %v7328_v0 }
 0x57c   : > { %16111 = vmatprep.subr.msk.mxu0 %vm1430_vm2, %v20365_v19  ;;  %v20587_v24 = vpop.permute.xlu1 %4294  ;;  %v6399_v29 = vrot.slane %v6385_v47, %v16779_v52  ;;  %v20593_v45 = vrot.slane %v6400_v40, %v16779_v52  ;;  %v6311_v63 = vrot.slane %v6297_v35, %v16779_v52  ;;  %v20597_v14 = vrot.slane %v6369_v50, %v16771_v8  ;;  %v15807_v35 = vpop.f32.mrf.mxu0  ;;  %v23399_v50 = vld [vmem:[#allocation34_spill] sm:$0xff] }
 0x57d   : > { %16105 = vmatpush3.xpose.msk.msra.mxu1 %vm1430_vm2, %v20354_v43  ;;  %v20600_v4 = vrot.slane %v6353_v56, %v16771_v8  ;;  %v3976_v43 = vcombine.low %v20120_v62, %v20496_v1  ;;  %v20608_v47 = vrot.slane %v13416_v33, %v16771_v8  ;;  %v3977_v3 = vcombine.high %v20120_v62, %v20496_v1 }
 0x57e   : > { %16112 = vmatpush3.xpose.msk.msra.mxu0 %vm1430_vm2, %v20365_v19  ;;  %16116 = vmatprep.subr.msk.mxu1 %vm1430_vm2, %v6448_v54  ;;  %v20613_v0 = vcombine.high %v6272_v34, %v6304_v61  ;;  %v20616_v56 = vrot.slane %v6401_v42, %v16779_v52  ;;  %v20619_v40 = vrot.slane %v13417_v30, %v16771_v8  ;;  %v23403_v30 = vld [vmem:[#allocation19_spill] sm:$0xff] }
 0x57f   : > { %16123 = vmatprep.subr.msk.mxu0 %vm1430_vm2, %v6449_v37  ;;  %v20622_v19 = vrot.slane %v12328_v20, %v16771_v8  ;;  %v13384_v18 = vcombine.low %v20404_v46, %v20532_v23  ;;  %v23401_v62 = vcombine.low %v23399_v50, %v23400_v21  ;;  %v6431_v1 = vrot.slane %v6417_v27, %v16779_v52  ;;  %v23404_v20 = vld [vmem:[#allocation33_spill] sm:$0xff] }
 0x580   : > { %v20632_v34 = vrot.slane %v12329_v44, %v16771_v8  ;;  %v23402_v61 = vcombine.high %v23399_v50, %v23400_v21  ;;  %v20639_v42 = vcombine.low %v6279_v60, %v6311_v63  ;;  %v20641_v57 = vcombine.high %v6279_v60, %v6311_v63  ;;  %v20657_v60 = vpop.permute.xlu0 %4318  ;;  %v20671_v21 = vpop.f32.mrf.mxu0 }
 0x581   : > { %16107 = vmatmul.mubr.msk.f32.vlgmr.msra.gmra.mxu1 %vm1430_vm2, %v23401_v62  ;;  %v6432_v33 = vcombine.low %v20600_v4, %v20597_v14  ;;  %v20648_v27 = vrot.slane %v3976_v43, %v16771_v8  ;;  %v23405_v44 = vcombine.low %v23403_v30, %v23404_v20  ;;  %v20660_v63 = vrot.slane %v3977_v3, %v16771_v8 }
 0x582   : > { %16114 = vmatmul.mubr.msk.f32.vlgmr.msra.gmra.mxu0 %vm1430_vm2, %v23402_v61  ;;  %16117 = vmatpush3.xpose.msk.msra.mxu1 %vm1430_vm2, %v6448_v54  ;;  %v20655_v54 = vpop.permute.xlu1 %4342  ;;  %v13385_v50 = vcombine.high %v20404_v46, %v20532_v23  ;;  %v23406_v43 = vcombine.high %v23403_v30, %v23404_v20  ;;  %v20674_v62 = vrot.slane %v13384_v18, %v16771_v8  ;;  %v23407_v61 = vld [vmem:[#allocation18_spill] sm:$0xff] }
 0x583   : > { %16120 = vmatprep.mubr.msk.f32.mxu1 %vm1430_vm2, %v23405_v44  ;;  %16124 = vmatpush3.xpose.msk.msra.mxu0 %vm1430_vm2, %v6449_v37  ;;  %v13400_v37 = vcombine.low %v20472_v31, %v15807_v35  ;;  %v6472_v3 = vcombine.low %v20551_v11, %v20589_v9  ;;  %v6450_v46 = vcombine.low %v6399_v29, %v6431_v1 }
 0x584   : > { %16127 = vmatprep.mubr.msk.f32.mxu0 %vm1430_vm2, %v23406_v43  ;;  %16118 = vmatprep.subr.msk.mxu1 %vm1430_vm2, %v20534_v32  ;;  %v13401_v23 = vcombine.high %v20472_v31, %v15807_v35  ;;  %v6456_v30 = vcombine.low %v23407_v61, %v20549_v49  ;;  %v6457_v20 = vcombine.high %v23407_v61, %v20549_v49  ;;  %v20689_v43 = vpop.f32.mrf.mxu0 }
 0x585   : > { %16125 = vmatprep.subr.msk.mxu0 %vm1430_vm2, %v20536_v12  ;;  %v6473_v44 = vcombine.high %v20551_v11, %v20589_v9  ;;  %v6451_v18 = vcombine.high %v6399_v29, %v6431_v1  ;;  %v12296_v31 = vcombine.low %v20435_v2, %v20580_v55  ;;  %v12297_v35 = vcombine.high %v20435_v2, %v20580_v55 }
 0x586   : > { %16119 = vmatpush3.xpose.msk.msra.mxu1 %vm1430_vm2, %v20534_v32  ;;  %v20700_v49 = vpop.permute.xlu1 %4398  ;;  %v20702_v32 = vpop.permute.xlu0 %4366  ;;  %v13408_v29 = vrot.slane %v13400_v37, %v16771_v8  ;;  %v6440_v2 = vrot.slane %v6432_v33, %v16779_v52  ;;  %v20714_v55 = vrot.slane %v13385_v50, %v16771_v8  ;;  %v20717_v1 = vrot.slane %v6472_v3, %v16771_v8 }
 0x587   : > { %16126 = vmatpush3.xpose.msk.msra.mxu0 %vm1430_vm2, %v20536_v12  ;;  %16130 = vmatprep.subr.msk.mxu1 %vm1430_vm2, %v6450_v46  ;;  %v20720_v61 = vrot.slane %v13401_v23, %v16771_v8  ;;  %v23408_v9 = vcombine.low %v19882_v17, %v20164_v13  ;;  %v20727_v37 = vrot.slane %v6456_v30, %v16771_v8 }
 0x588   : > { %16137 = vmatprep.subr.msk.mxu0 %vm1430_vm2, %v6451_v18  ;;  %v20730_v33 = vrot.slane %v6457_v20, %v16771_v8  ;;  %v20733_v50 = vrot.slane %v6473_v44, %v16771_v8  ;;  %v23409_v3 = vcombine.high %v19882_v17, %v20164_v13  ;;  %v20741_v23 = vrot.slane %v12296_v31, %v16771_v8  ;;  %v20753_v13 = vpop.f32.mrf.mxu0 }
 0x589   : > { %16121 = vmatmul.mubr.msk.f32.vlgmr.msra.gmra.mxu1 %vm1430_vm2, %v23408_v9  ;;  %v20744_v9 = vrot.slane %v12297_v35, %v16771_v8  ;;  %v23411_v30 = vcombine.low %v23326_v38, %v19864_v6  ;;  %v12312_v17 = vcombine.low %v20515_v48, %v20671_v21  ;;  %v13449_v20 = vcombine.high %v20674_v62, %v13408_v29 }
 0x58a   : > { %16128 = vmatmul.mubr.msk.f32.vlgmr.msra.gmra.mxu0 %vm1430_vm2, %v23409_v3  ;;  %16131 = vmatpush3.xpose.msk.msra.mxu1 %vm1430_vm2, %v6450_v46  ;;  %v13448_v46 = vcombine.low %v20674_v62, %v13408_v29  ;;  %v23412_v44 = vcombine.high %v23326_v38, %v19864_v6  ;;  %v12313_v31 = vcombine.high %v20515_v48, %v20671_v21  ;;  %v20763_v35 = vpop.permute.xlu1 %4446  ;;  %v20777_v38 = vpop.f32.mrf.mxu0 }
 0x58b   : > { %23410 = vst [vmem:[#allocation101_spill] sm:$0xff] %v20744_v9  ;;  %16134 = vmatprep.mubr.msk.f32.mxu1 %vm1430_vm2, %v23411_v30  ;;  %16138 = vmatpush3.xpose.msk.msra.mxu0 %vm1430_vm2, %v6451_v18  ;;  %v20765_v18 = vpop.permute.xlu0 %4422  ;;  %v6452_v3 = vcombine.low %v20593_v45, %v6440_v2  ;;  %v13464_v62 = vcombine.low %v20714_v55, %v20720_v61 }
 0x58c   : > { %16141 = vmatprep.mubr.msk.f32.mxu0 %vm1430_vm2, %v23412_v44  ;;  %16132 = vmatprep.subr.msk.mxu1 %vm1430_vm2, %v20538_v15  ;;  %v6453_v6 = vcombine.high %v20593_v45, %v6440_v2  ;;  %v6488_v29 = vcombine.low %v20587_v24, %v20655_v54  ;;  %v6489_v44 = vcombine.high %v20587_v24, %v20655_v54  ;;  %v23413_v2 = vld [vmem:[#allocation7_spill] sm:$0xff] }
 0x58d   : > { %16139 = vmatprep.subr.msk.mxu0 %vm1430_vm2, %v20563_v5  ;;  %v6608_v45 = vcombine.low %v20700_v49, %v20763_v35  ;;  %v6592_v12 = vcombine.low %v23413_v2, %v20765_v18  ;;  %v13432_v21 = vcombine.low %v20689_v43, %v20777_v38  ;;  %v20801_v54 = vrot.slane %v13448_v46, %v16779_v52 }
 0x58e   : > { %16133 = vmatpush3.xpose.msk.msra.mxu1 %vm1430_vm2, %v20538_v15  ;;  %v20804_v15 = vrot.slane %v13449_v20, %v16779_v52  ;;  %v12320_v48 = vrot.slane %v12312_v17, %v16771_v8  ;;  %v13465_v30 = vcombine.high %v20714_v55, %v20720_v61  ;;  %v20815_v58 = vrot.slane %v13464_v62, %v16779_v52 }
 0x58f   : > { %16140 = vmatpush3.xpose.msk.msra.mxu0 %vm1430_vm2, %v20563_v5  ;;  %16144 = vmatprep.subr.msk.mxu1 %vm1430_vm2, %v6452_v3  ;;  %v20808_v5 = vpop.permute.xlu1 %4494  ;;  %v20810_v11 = vpop.permute.xlu0 %4470  ;;  %v6504_v46 = vcombine.low %v20657_v60, %v20702_v32  ;;  %v23414_v20 = vcombine.low %v19885_v41, %v20167_v51  ;;  %v23415_v17 = vcombine.high %v20600_v4, %v20597_v14 }
 0x590   : > { %16151 = vmatprep.subr.msk.mxu0 %vm1430_vm2, %v6453_v6  ;;  %v20828_v9 = vrot.slane %v6488_v29, %v16771_v8  ;;  %v20831_v55 = vrot.slane %v6489_v44, %v16771_v8  ;;  %v6505_v61 = vcombine.high %v20657_v60, %v20702_v32  ;;  %v23416_v62 = vcombine.high %v19885_v41, %v20167_v51 }
 0x591   : > { %16135 = vmatmul.mubr.msk.f32.vlgmr.msra.gmra.mxu1 %vm1430_vm2, %v23414_v20  ;;  %v6447_v24 = vrot.slane %v23415_v17, %v16779_v52  ;;  %v20841_v20 = vrot.slane %v6608_v45, %v16771_v8  ;;  %v20844_v14 = vrot.slane %v6592_v12, %v16771_v8  ;;  %v23417_v4 = vcombine.low %v23334_v28, %v19867_v25 }
 0x592   : > { %16142 = vmatmul.mubr.msk.f32.vlgmr.msra.gmra.mxu0 %vm1430_vm2, %v23416_v62  ;;  %16145 = vmatpush3.xpose.msk.msra.mxu1 %vm1430_vm2, %v6452_v3  ;;  %v20852_v60 = vrot.slane %v13432_v21, %v16771_v8  ;;  %v20855_v41 = vrot.slane %v12313_v31, %v16771_v8  ;;  %v12360_v51 = vcombine.low %v20741_v23, %v12320_v48 }
 0x593   : > { %16148 = vmatprep.mubr.msk.f32.mxu1 %vm1430_vm2, %v23417_v4  ;;  %16152 = vmatpush3.xpose.msk.msra.mxu0 %vm1430_vm2, %v6453_v6  ;;  %v23418_v32 = vcombine.high %v23334_v28, %v19867_v25  ;;  %v23419_v12 = vcombine.low %v20407_v22, %v20648_v27  ;;  %v20871_v6 = vrot.slane %v6504_v46, %v16771_v8  ;;  %v20876_v25 = vpop.permute.xlu1 %4542  ;;  %v20878_v28 = vpop.permute.xlu0 %4518 }
 0x594   : > { %16146 = vmatprep.subr.msk.mxu1 %vm1430_vm2, %v20582_v53  ;;  %v12361_v31 = vcombine.high %v20741_v23, %v12320_v48  ;;  %16153 = vmatprep.subr.msk.mxu0 %vm1430_vm2, %v20613_v0  ;;  %v6454_v21 = vcombine.low %v20616_v56, %v6447_v24  ;;  %v6455_v29 = vcombine.high %v20616_v56, %v6447_v24 }
 0x595   : > { %16155 = vmatprep.mubr.msk.f32.mxu0 %vm1430_vm2, %v23418_v32  ;;  %v20868_v3 = vrot.slane %v23419_v12, %v16779_v52  ;;  %v20883_v44 = vrot.slane %v6505_v61, %v16771_v8  ;;  %v6609_v45 = vcombine.high %v20700_v49, %v20763_v35  ;;  %v6640_v23 = vcombine.low %v20808_v5, %v20876_v25 }
 0x596   : > { %16147 = vmatpush3.xpose.msk.msra.mxu1 %vm1430_vm2, %v20582_v53  ;;  %v6624_v48 = vcombine.low %v20810_v11, %v20878_v28  ;;  %v6593_v46 = vcombine.high %v23413_v2, %v20765_v18  ;;  %v6656_v56 = vcombine.low %v20844_v14, %v20841_v20  ;;  %v13480_v49 = vcombine.low %v20608_v47, %v20852_v60 }
 0x597   : > { %16154 = vmatpush3.xpose.msk.msra.mxu0 %vm1430_vm2, %v20613_v0  ;;  %16158 = vmatprep.subr.msk.mxu1 %vm1430_vm2, %v6454_v21  ;;  %v20903_v35 = vrot.slane %v13465_v30, %v16779_v52  ;;  %v20906_v53 = vrot.slane %v12360_v51, %v16779_v52  ;;  %v6648_v24 = vrot.slane %v6640_v23, %v16771_v8  ;;  %v20924_v62 = vpop.permute.xlu1 %1918  ;;  %v20926_v4 = vpop.permute.xlu0 %1894 }
 0x598   : > { %v6632_v18 = vrot.slane %v6624_v48, %v16771_v8  ;;  %16165 = vmatprep.subr.msk.mxu0 %vm1430_vm2, %v6455_v29  ;;  %v6552_v0 = vcombine.low %v20828_v9, %v20871_v6  ;;  %v20916_v17 = vrot.slane %v12361_v31, %v16779_v52  ;;  %v13433_v30 = vcombine.high %v20689_v43, %v20777_v38  ;;  %v20937_v43 = vpop.f32.mrf.mxu0  ;;  %v23422_v38 = vld [vmem:[#allocation83_spill] sm:$0xff] }
 0x599   : > { %v23420_v61 = vcombine.low %v19894_v26, %v20179_v10  ;;  %v20931_v32 = vrot.slane %v6609_v45, %v16771_v8  ;;  %v23421_v31 = vcombine.high %v19894_v26, %v20179_v10  ;;  %v4056_v23 = vcombine.low %v23422_v38, %v20868_v3 }
 0x59a   : > { %v6688_v12 = vcombine.low %v6632_v18, %v6648_v24  ;;  %v20942_v48 = vrot.slane %v6593_v46, %v16771_v8  ;;  %v23423_v45 = vcombine.low %v23343_v59, %v19879_v39  ;;  %v6664_v26 = vrot.slane %v6656_v56, %v16779_v52 }
 0x59b   : > { %16149 = vmatmul.mubr.msk.f32.vlgmr.msra.gmra.mxu1 %vm1430_vm2, %v23420_v61  ;;  %16156 = vmatmul.mubr.msk.f32.vlgmr.msra.gmra.mxu0 %vm1430_vm2, %v23421_v31  ;;  %v20945_v61 = vrot.slane %v13480_v49, %v16779_v52  ;;  %v4080_v10 = vcombine.low %v20494_v16, %v20924_v62  ;;  %v23424_v46 = vcombine.high %v23343_v59, %v19879_v39  ;;  %v23425_v49 = vld [vmem:[#allocation56_spill] sm:$0xff] }
 0x59c   : > { %16159 = vmatpush3.xpose.msk.msra.mxu1 %vm1430_vm2, %v6454_v21  ;;  %16162 = vmatprep.mubr.msk.f32.mxu1 %vm1430_vm2, %v23423_v45  ;;  %v4064_v21 = vcombine.low %v23425_v49, %v20926_v4  ;;  %v6696_v31 = vrot.slane %v6688_v12, %v16779_v52  ;;  %v20964_v51 = vrot.slane %v13433_v30, %v16771_v8  ;;  %v20978_v30 = vpop.permute.xlu0 %1942 }
 0x59d   : > { %16166 = vmatpush3.xpose.msk.msra.mxu0 %vm1430_vm2, %v6455_v29  ;;  %16169 = vmatprep.mubr.msk.f32.mxu0 %vm1430_vm2, %v23424_v46  ;;  %v13481_v56 = vcombine.high %v20608_v47, %v20852_v60  ;;  %v12344_v45 = vcombine.low %v20753_v13, %v20937_v43  ;;  %v6657_v39 = vcombine.high %v20844_v14, %v20841_v20  ;;  %v20976_v29 = vpop.permute.xlu1 %1966 }
 0x59e   : > { %16160 = vmatprep.subr.msk.mxu1 %vm1430_vm2, %v20639_v42  ;;  %16167 = vmatprep.subr.msk.mxu0 %vm1430_vm2, %v20641_v57  ;;  %v6689_v59 = vcombine.high %v6632_v18, %v6648_v24  ;;  %v6720_v12 = vcombine.low %v6664_v26, %v6696_v31  ;;  %v6721_v46 = vcombine.high %v6664_v26, %v6696_v31  ;;  %v23427_v26 = vld [vmem:[#allocation97_spill] sm:$0xff] }
 0x59f   : > { %v12345_v47 = vcombine.high %v20753_v13, %v20937_v43  ;;  %v4057_v60 = vcombine.high %v23422_v38, %v20868_v3  ;;  %v6560_v2 = vrot.slane %v6552_v0, %v16779_v52  ;;  %v13513_v20 = vcombine.high %v20801_v54, %v20945_v61 }
 0x5a0   : > { %16161 = vmatpush3.xpose.msk.msra.mxu1 %vm1430_vm2, %v20639_v42  ;;  %v6672_v14 = vcombine.low %v20942_v48, %v20931_v32  ;;  %v20992_v24 = vrot.slane %v4080_v10, %v16771_v8  ;;  %v20995_v18 = vrot.slane %v4064_v21, %v16771_v8  ;;  %v21001_v42 = vrot.slane %v13481_v56, %v16779_v52  ;;  %v1991_v31 = vpop.permute.xlu0 %1990 }
 0x5a1   : > { %16168 = vmatpush3.xpose.msk.msra.mxu0 %vm1430_vm2, %v20641_v57  ;;  %16172 = vmatprep.subr.msk.mxu1 %vm1430_vm2, %v6720_v12  ;;  %v13496_v13 = vcombine.low %v20619_v40, %v20964_v51  ;;  %v13497_v3 = vcombine.high %v20619_v40, %v20964_v51  ;;  %v23426_v0 = vcombine.low %v20727_v37, %v20717_v1  ;;  %v2015_v21 = vpop.permute.xlu1 %2014 }
 0x5a2   : > { %16179 = vmatprep.subr.msk.mxu0 %vm1430_vm2, %v6721_v46  ;;  %v6641_v57 = vcombine.high %v20808_v5, %v20876_v25  ;;  %v6625_v38 = vcombine.high %v20810_v11, %v20878_v28  ;;  %v23428_v10 = vcombine.low %v19897_v7, %v23427_v26  ;;  %14704 = vrot.lane.b32.xlu0 %v13513_v20, %s22950_s13 }
 0x5a3   : > { %v6528_v43 = vrot.slane %v23426_v0, %v16779_v52  ;;  %v6703_v56 = vrot.slane %v6689_v59, %v16779_v52  ;;  %v23429_v0 = vcombine.high %v19897_v7, %v23427_v26  ;;  %v4112_v5 = vcombine.low %v20976_v29, %v2015_v21 }
 0x5a4   : > { %16163 = vmatmul.mubr.msk.f32.vlgmr.msra.gmra.mxu1 %vm1430_vm2, %v23428_v10  ;;  %v4096_v11 = vcombine.low %v20978_v30, %v1991_v31  ;;  %v4128_v28 = vcombine.low %v20995_v18, %v20992_v24  ;;  %v6671_v20 = vrot.slane %v6657_v39, %v16779_v52  ;;  %v21035_v7 = vrot.slane %v12344_v45, %v16771_v8 }
 0x5a5   : > { %16170 = vmatmul.mubr.msk.f32.vlgmr.msra.gmra.mxu0 %vm1430_vm2, %v23429_v0  ;;  %16173 = vmatpush3.xpose.msk.msra.mxu1 %vm1430_vm2, %v6720_v12  ;;  %v6584_v25 = vcombine.low %v6528_v43, %v6560_v2  ;;  %v6585_v59 = vcombine.high %v6528_v43, %v6560_v2  ;;  %v4120_v26 = vrot.slane %v4112_v5, %v16771_v8  ;;  %v21062_v0 = vpop.f32.mrf.mxu1 }
 0x5a6   : > { %16176 = vmatprep.mubr.msk.f32.mxu1 %vm1430_vm2, %v4056_v23  ;;  %16180 = vmatpush3.xpose.msk.msra.mxu0 %vm1430_vm2, %v6721_v46  ;;  %v4104_v12 = vrot.slane %v4096_v11, %v16771_v8  ;;  %v21042_v10 = vrot.slane %v6641_v57, %v16771_v8  ;;  %v21045_v23 = vrot.slane %v6625_v38, %v16771_v8 }
 0x5a7   : > { %16183 = vmatprep.mubr.msk.f32.mxu0 %vm1430_vm2, %v4057_v60  ;;  %16174 = vmatprep.subr.msk.mxu1 %vm1430_vm2, %v6584_v25  ;;  %v21048_v2 = vrot.slane %v13496_v13, %v16779_v52  ;;  %v6722_v45 = vcombine.low %v6671_v20, %v6703_v56  ;;  %v4081_v39 = vcombine.high %v20494_v16, %v20924_v62 }
 0x5a8   : > { %16181 = vmatprep.subr.msk.mxu0 %vm1430_vm2, %v6585_v59  ;;  %v4160_v46 = vcombine.low %v4104_v12, %v4120_v26  ;;  %v6723_v60 = vcombine.high %v6671_v20, %v6703_v56  ;;  %v13514_v43 = vcombine.low %v20804_v15, %v21001_v42  ;;  %v4065_v57 = vcombine.high %v23425_v49, %v20926_v4  ;;  %v21068_v56 = vpop.f32.mrf.mxu0  ;;  %v21100_v20 = vpop.f32.mrf.mxu1 }
 0x5a9   : > { %16175 = vmatpush3.xpose.msk.msra.mxu1 %vm1430_vm2, %v6584_v25  ;;  %v4136_v38 = vrot.slane %v4128_v28, %v16779_v52  ;;  %v4113_v13 = vcombine.high %v20976_v29, %v2015_v21  ;;  %v4097_v16 = vcombine.high %v20978_v30, %v1991_v31  ;;  %v23430_v4 = vcombine.high %v20828_v9, %v20871_v6 }
 0x5aa   : > { %16182 = vmatpush3.xpose.msk.msra.mxu0 %vm1430_vm2, %v6585_v59  ;;  %16186 = vmatprep.subr.msk.mxu1 %vm1430_vm2, %v6722_v45  ;;  %v4168_v62 = vrot.slane %v4160_v46, %v16779_v52  ;;  %v6704_v29 = vcombine.low %v21045_v23, %v21042_v10  ;;  %v21077_v21 = vrot.slane %v12345_v47, %v16771_v8 }
 0x5ab   : > { %16193 = vmatprep.subr.msk.mxu0 %vm1430_vm2, %v6723_v60  ;;  %14736 = vrot.lane.b32.xlu0 %v13514_v43, %s22947_s29  ;;  %v6567_v49 = vrot.slane %v23430_v4, %v16779_v52  ;;  %v4161_v30 = vcombine.high %v4104_v12, %v4120_v26  ;;  %v23431_v31 = vcombine.high %v20407_v22, %v20648_v27 }
 0x5ac   : > { %v4192_v11 = vcombine.low %v4136_v38, %v4168_v62  ;;  %v4193_v25 = vcombine.high %v4136_v38, %v4168_v62  ;;  %v13515_v28 = vcombine.high %v20804_v15, %v21001_v42  ;;  %v23432_v9 = vcombine.high %v20727_v37, %v20717_v1  ;;  %v21105_v42 = vpop.f32.mrf.mxu0 }
 0x5ad   : > { %v4039_v5 = vrot.slane %v23431_v31, %v16779_v52  ;;  %v21090_v59 = vrot.slane %v4081_v39, %v16771_v8  ;;  %v21093_v47 = vrot.slane %v4065_v57, %v16771_v8  ;;  %v4129_v22 = vcombine.high %v20995_v18, %v20992_v24  ;;  %v23433_v18 = vld [vmem:[#allocation84_spill] sm:$0xff]  ;;  %v21115_v39 = vpop.f32.mrf.mxu1 }
 0x5ae   : > { %v6535_v6 = vrot.slane %v23432_v9, %v16779_v52  ;;  %v21098_v27 = vrot.slane %v4113_v13, %v16771_v8  ;;  %v21103_v15 = vrot.slane %v4097_v16, %v16771_v8  ;;  %16177 = vmatmul.mubr.msk.f32.vlgmr.msra.gmra.mxu1 %vm1430_vm2, %v4192_v11  ;;  %v13516_v37 = vcombine.low %v20815_v58, %v21048_v2  ;;  %v21120_v43 = vpop.f32.mrf.mxu0 }
 0x5af   : > { %14768 = vrot.lane.b32.xlu0 %v13515_v28, %s22949_s30  ;;  %v4175_v24 = vrot.slane %v4161_v30, %v16779_v52  ;;  %16184 = vmatmul.mubr.msk.f32.vlgmr.msra.gmra.mxu0 %vm1430_vm2, %v4193_v25  ;;  %v4058_v26 = vcombine.low %v23433_v18, %v4039_v5  ;;  %v4059_v46 = vcombine.high %v23433_v18, %v4039_v5 }
 0x5b0   : > { %v6586_v1 = vcombine.low %v6535_v6, %v6567_v49  ;;  %16187 = vmatpush3.xpose.msk.msra.mxu1 %vm1430_vm2, %v6722_v45  ;;  %v6587_v12 = vcombine.high %v6535_v6, %v6567_v49  ;;  %16194 = vmatpush3.xpose.msk.msra.mxu0 %vm1430_vm2, %v6723_v60  ;;  %v6680_v57 = vrot.slane %v6672_v14, %v16779_v52 }
 0x5b1   : > { %v6712_v45 = vrot.slane %v6704_v29, %v16779_v52  ;;  %v6569_v38 = vcombine.high %v20831_v55, %v20883_v44  ;;  %v6673_v13 = vcombine.high %v20942_v48, %v20931_v32  ;;  %v12392_v60 = vcombine.low %v20622_v19, %v21035_v7  ;;  %16190 = vmatprep.mubr.msk.f32.mxu1 %vm1430_vm2, %v4058_v26  ;;  %v21151_v29 = vpop.f32.mrf.mxu1 }
 0x5b2   : > { %16188 = vmatprep.subr.msk.mxu1 %vm1430_vm2, %v6586_v1  ;;  %16195 = vmatprep.subr.msk.mxu0 %vm1430_vm2, %v6587_v12  ;;  %v4143_v16 = vrot.slane %v4129_v22, %v16779_v52  ;;  %v4176_v14 = vcombine.low %v21103_v15, %v21098_v27  ;;  %v21144_v32 = vrot.slane %v13497_v3, %v16779_v52 }
 0x5b3   : > { %16197 = vmatprep.mubr.msk.f32.mxu0 %vm1430_vm2, %v4059_v46  ;;  %14800 = vrot.lane.b32.xlu0 %v13516_v37, %s22946_s25  ;;  %v6724_v62 = vcombine.low %v6680_v57, %v6712_v45  ;;  %v12393_v48 = vcombine.high %v20622_v19, %v21035_v7  ;;  %v12408_v4 = vcombine.low %v20632_v34, %v21077_v21  ;;  %v21159_v19 = vpop.f32.mrf.mxu0  ;;  %v21169_v11 = vpop.f32.mrf.mxu1 }
 0x5b4   : > { %16189 = vmatpush3.xpose.msk.msra.mxu1 %vm1430_vm2, %v6586_v1  ;;  %v6725_v49 = vcombine.high %v6680_v57, %v6712_v45  ;;  %v4144_v30 = vcombine.low %v21093_v47, %v21090_v59  ;;  %v4145_v31 = vcombine.high %v21093_v47, %v21090_v59  ;;  %v4194_v40 = vcombine.low %v4143_v16, %v4175_v24 }
 0x5b5   : > { %16196 = vmatpush3.xpose.msk.msra.mxu0 %vm1430_vm2, %v6587_v12  ;;  %16200 = vmatprep.subr.msk.mxu1 %vm1430_vm2, %v6724_v62  ;;  %v21162_v51 = vrot.slane %v12392_v60, %v16779_v52  ;;  %v4195_v3 = vcombine.high %v4143_v16, %v4175_v24  ;;  %v13520_v7 = vcombine.low %v21062_v0, %v21115_v39  ;;  %v21181_v47 = vpop.f32.mrf.mxu0  ;;  %v21212_v57 = vpop.f32.mrf.mxu1 }
 0x5b6   : > { %v13536_v5 = vcombine.low %v21068_v56, %v21120_v43  ;;  %16207 = vmatprep.subr.msk.mxu0 %vm1430_vm2, %v6725_v49  ;;  %v4177_v25 = vcombine.high %v21103_v15, %v21098_v27  ;;  %v4184_v28 = vrot.slane %v4176_v14, %v16779_v52  ;;  %v13517_v9 = vcombine.high %v20815_v58, %v21048_v2 }
 0x5b7   : > { %16191 = vmatmul.mubr.msk.f32.vlgmr.msra.gmra.mxu1 %vm1430_vm2, %v4194_v40  ;;  %v23434_v6 = vcombine.low %v20410_v36, %v20660_v63  ;;  %v6705_v22 = vcombine.high %v21045_v23, %v21042_v10  ;;  %v23435_v58 = vcombine.low %v20730_v33, %v20733_v50  ;;  %v23436_v27 = vcombine.low %v20831_v55, %v20883_v44  ;;  %v23437_v23 = vld [vmem:[#allocation85_spill] sm:$0xff]  ;;  %v15884_v40 = vpop.f32.mrf.mxu1 }
 0x5b8   : > { %16198 = vmatmul.mubr.msk.f32.vlgmr.msra.gmra.mxu0 %vm1430_vm2, %v4195_v3  ;;  %16201 = vmatpush3.xpose.msk.msra.mxu1 %vm1430_vm2, %v6724_v62  ;;  %v4152_v1 = vrot.slane %v4144_v30, %v16779_v52  ;;  %v21197_v37 = vrot.slane %v4145_v31, %v16779_v52  ;;  %v21200_v10 = vrot.slane %v12393_v48, %v16779_v52  ;;  %v21220_v62 = vpop.f32.mrf.mxu0 }
 0x5b9   : > { %v4048_v59 = vrot.slane %v23434_v6, %v16779_v52  ;;  %v6544_v2 = vrot.slane %v23435_v58, %v16779_v52  ;;  %v6576_v15 = vrot.slane %v23436_v27, %v16779_v52  ;;  %14832 = vrot.lane.b32.xlu0 %v13517_v9, %s22945_s15  ;;  %v21205_v18 = vrot.slane %v13520_v7, %v16771_v8  ;;  %v23439_v6 = vld [vmem:[#allocation86_spill] sm:$0xff] }
 0x5ba   : > { %v21208_v26 = vrot.slane %v13536_v5, %v16771_v8  ;;  %16208 = vmatpush3.xpose.msk.msra.mxu0 %vm1430_vm2, %v6725_v49  ;;  %v21215_v45 = vrot.slane %v4177_v25, %v16779_v52  ;;  %v4196_v60 = vcombine.low %v4152_v1, %v4184_v28  ;;  %v13518_v14 = vcombine.low %v20903_v35, %v21144_v32 }
 0x5bb   : > { %v4060_v24 = vcombine.low %v23437_v23, %v4048_v59  ;;  %v4061_v12 = vcombine.high %v23437_v23, %v4048_v59  ;;  %v6588_v46 = vcombine.low %v6544_v2, %v6576_v15  ;;  %v6589_v16 = vcombine.high %v6544_v2, %v6576_v15 }
 0x5bc   : > { %v6687_v48 = vrot.slane %v6673_v13, %v16779_v52  ;;  %v6719_v49 = vrot.slane %v6705_v22, %v16779_v52  ;;  %v23438_v30 = vcombine.high %v20410_v36, %v20660_v63  ;;  %v4197_v3 = vcombine.high %v4152_v1, %v4184_v28  ;;  %v15891_v13 = vpop.f32.mrf.mxu0 }
 0x5bd   : > { %16204 = vmatprep.mubr.msk.f32.mxu1 %vm1430_vm2, %v4060_v24  ;;  %16211 = vmatprep.mubr.msk.f32.mxu0 %vm1430_vm2, %v4061_v12  ;;  %v13521_v7 = vcombine.high %v21062_v0, %v21115_v39  ;;  %v12432_v5 = vcombine.low %v21100_v20, %v21151_v29  ;;  %v13584_v25 = vcombine.low %v21205_v18, %v21208_v26 }
 0x5be   : > { %16202 = vmatprep.subr.msk.mxu1 %vm1430_vm2, %v6588_v46  ;;  %v4055_v31 = vrot.slane %v23438_v30, %v16779_v52  ;;  %16209 = vmatprep.subr.msk.mxu0 %vm1430_vm2, %v6589_v16  ;;  %v6726_v36 = vcombine.low %v6687_v48, %v6719_v49  ;;  %v6727_v63 = vcombine.high %v6687_v48, %v6719_v49  ;;  %v21259_v2 = vpop.f32.mrf.mxu0 }
 0x5bf   : > { %14864 = vrot.lane.b32.xlu0 %v13518_v14, %s16390_s26  ;;  %16203 = vmatpush3.xpose.msk.msra.mxu1 %vm1430_vm2, %v6588_v46  ;;  %v12448_v0 = vcombine.low %v21105_v42, %v21159_v19  ;;  %v13519_v39 = vcombine.high %v20903_v35, %v21144_v32  ;;  %v6583_v28 = vrot.slane %v6569_v38, %v16779_v52  ;;  %v21257_v32 = vpop.f32.mrf.mxu1 }
 0x5c0   : > { %16210 = vmatpush3.xpose.msk.msra.mxu0 %vm1430_vm2, %v6589_v16  ;;  %v13552_v9 = vcombine.low %v21169_v11, %v15884_v40  ;;  %16214 = vmatprep.subr.msk.mxu1 %vm1430_vm2, %v6726_v36  ;;  %v4062_v59 = vcombine.low %v23439_v6, %v4055_v31  ;;  %v23440_v22 = vcombine.high %v20730_v33, %v20733_v50 }
 0x5c1   : > { %16221 = vmatprep.subr.msk.mxu0 %vm1430_vm2, %v6727_v63  ;;  %v13568_v35 = vcombine.low %v21181_v47, %v15891_v13  ;;  %v4063_v55 = vcombine.high %v23439_v6, %v4055_v31  ;;  %v12425_v44 = vcombine.high %v20906_v53, %v21162_v51  ;;  %v13553_v50 = vcombine.high %v21169_v11, %v15884_v40 }
 0x5c2   : > { %v6551_v58 = vrot.slane %v23440_v22, %v16779_v52  ;;  %16205 = vmatmul.mubr.msk.f32.vlgmr.msra.gmra.mxu1 %vm1430_vm2, %v4196_v60  ;;  %v13560_v38 = vrot.slane %v13552_v9, %v16771_v8  ;;  %v12464_v1 = vcombine.low %v21212_v57, %v21257_v32  ;;  %v12480_v23 = vcombine.low %v21220_v62, %v21259_v2 }
 0x5c3   : > { %14896 = vrot.lane.b32.xlu0 %v13519_v39, %s16391_s24  ;;  %16212 = vmatmul.mubr.msk.f32.vlgmr.msra.gmra.mxu0 %vm1430_vm2, %v4197_v3  ;;  %v13576_v27 = vrot.slane %v13568_v35, %v16771_v8  ;;  %v13569_v24 = vcombine.high %v21181_v47, %v15891_v13  ;;  %v13537_v46 = vcombine.high %v21068_v56, %v21120_v43 }
 0x5c4   : > { %16215 = vmatpush3.xpose.msk.msra.mxu1 %vm1430_vm2, %v6726_v36  ;;  %v6590_v33 = vcombine.low %v6551_v58, %v6583_v28  ;;  %16218 = vmatprep.mubr.msk.f32.mxu1 %vm1430_vm2, %v4062_v59  ;;  %v6591_v15 = vcombine.high %v6551_v58, %v6583_v28  ;;  %v13585_v60 = vcombine.high %v21205_v18, %v21208_v26 }
 0x5c5   : > { %16222 = vmatpush3.xpose.msk.msra.mxu0 %vm1430_vm2, %v6727_v63  ;;  %16225 = vmatprep.mubr.msk.f32.mxu0 %vm1430_vm2, %v4063_v55  ;;  %v13616_v11 = vcombine.low %v13560_v38, %v13576_v27  ;;  %v13617_v12 = vcombine.high %v13560_v38, %v13576_v27  ;;  %v21287_v16 = vrot.slane %v12464_v1, %v16771_v8 }
 0x5c6   : > { %16216 = vmatprep.subr.msk.mxu1 %vm1430_vm2, %v6590_v33  ;;  %16223 = vmatprep.subr.msk.mxu0 %vm1430_vm2, %v6591_v15  ;;  %v21290_v14 = vrot.slane %v13584_v25, %v16779_v52  ;;  %v21293_v47 = vrot.slane %v12432_v5, %v16771_v8  ;;  %v21296_v48 = vrot.slane %v12448_v0, %v16771_v8  ;;  %v23441_v5 = vld [vmem:[#allocation101_spill] sm:$0xff] }
 0x5c7   : > { %14480 = vrot.lane.b32.xlu0 %v12425_v44, %s22950_s13  ;;  %v21299_v56 = vrot.slane %v13616_v11, %v16779_v52  ;;  %v4198_v43 = vcombine.low %v21197_v37, %v21215_v45  ;;  %v4199_v18 = vcombine.high %v21197_v37, %v21215_v45  ;;  %v21308_v26 = vrot.slane %v12480_v23, %v16771_v8 }
 0x5c8   : > { %16217 = vmatpush3.xpose.msk.msra.mxu1 %vm1430_vm2, %v6590_v33  ;;  %v12426_v49 = vcombine.low %v20916_v17, %v21200_v10  ;;  %v13567_v30 = vrot.slane %v13553_v50, %v16771_v8  ;;  %v13583_v31 = vrot.slane %v13569_v24, %v16771_v8  ;;  %v13631_v40 = vrot.slane %v13617_v12, %v16779_v52 }
 0x5c9   : > { %16224 = vmatpush3.xpose.msk.msra.mxu0 %vm1430_vm2, %v6591_v15  ;;  %v13649_v3 = vcombine.high %v21290_v14, %v21299_v56  ;;  %v12376_v37 = vcombine.low %v23441_v5, %v20855_v41  ;;  %v13535_v45 = vrot.slane %v13521_v7, %v16771_v8  ;;  %v12528_v13 = vcombine.low %v21287_v16, %v21308_v26 }
 0x5ca   : > { %v13551_v25 = vrot.slane %v13537_v46, %v16771_v8  ;;  %v13599_v36 = vrot.slane %v13585_v60, %v16779_v52  ;;  %v12496_v63 = vcombine.low %v21293_v47, %v21296_v48  ;;  %v12416_v7 = vrot.slane %v12408_v4, %v16779_v52  ;;  %v21347_v4 = vpop.f32.mrf.mxu1 }
 0x5cb   : > { %14512 = vrot.lane.b32.xlu0 %v12426_v49, %s22947_s29  ;;  %16219 = vmatmul.mubr.msk.f32.vlgmr.msra.gmra.mxu1 %vm1430_vm2, %v4198_v43  ;;  %v12427_v0 = vcombine.high %v20916_v17, %v21200_v10  ;;  %v13632_v39 = vcombine.low %v13567_v30, %v13583_v31  ;;  %v12384_v9 = vrot.slane %v12376_v37, %v16779_v52  ;;  %v21349_v17 = vpop.f32.mrf.mxu0 }
 0x5cc   : > { %16226 = vmatmul.mubr.msk.f32.vlgmr.msra.gmra.mxu0 %vm1430_vm2, %v4199_v18  ;;  %14706 = vrot.lane.b32.xlu1 %v13649_v3, %s22950_s13  ;;  %v13650_v28 = vcombine.low %v13599_v36, %v13631_v40  ;;  %v21338_v6 = vrot.slane %v12528_v13, %v16779_v52  ;;  %v12409_v59 = vcombine.high %v20632_v34, %v21077_v21  ;;  %v21366_v15 = vpop.f32.mrf.mxu1 }
 0x5cd   : > { %v13600_v22 = vcombine.low %v13535_v45, %v13551_v25  ;;  %v21344_v58 = vrot.slane %v12496_v63, %v16779_v52  ;;  %v12428_v10 = vcombine.low %v12384_v9, %v12416_v7  ;;  %v13512_v35 = vcombine.low %v20801_v54, %v20945_v61  ;;  %v21368_v1 = vpop.f32.mrf.mxu0 }
 0x5ce   : > { %v13640_v21 = vrot.slane %v13632_v39, %v16779_v52  ;;  %v13651_v44 = vcombine.high %v13599_v36, %v13631_v40  ;;  %v12377_v38 = vcombine.high %v23441_v5, %v20855_v41  ;;  %v12423_v27 = vrot.slane %v12409_v59, %v16779_v52  ;;  %v21372_v12 = vpop.f32.mrf.mxu1 }
 0x5cf   : > { %14544 = vrot.lane.b32.xlu0 %v12427_v0, %s22949_s30  ;;  %v13608_v50 = vrot.slane %v13600_v22, %v16779_v52  ;;  %v12429_v23 = vcombine.high %v12384_v9, %v12416_v7  ;;  %v13633_v24 = vcombine.high %v13567_v30, %v13583_v31  ;;  %v21374_v46 = vpop.f32.mrf.mxu0  ;;  %v13601_v60 = vcombine.high %v13535_v45, %v13551_v25 }
 0x5d0   : > { %14738 = vrot.lane.b32.xlu1 %v13650_v28, %s22947_s29  ;;  %v12391_v41 = vrot.slane %v12377_v38, %v16779_v52  ;;  %v21378_v40 = vpop.f32.mrf.mxu1  ;;  %v13656_v31 = vcombine.low %v21347_v4, %v21372_v12  ;;  %v13672_v5 = vcombine.low %v21349_v17, %v21374_v46  ;;  %v12465_v36 = vcombine.high %v21212_v57, %v21257_v32 }
 0x5d1   : > { %v13652_v11 = vcombine.low %v13608_v50, %v13640_v21  ;;  %v13647_v18 = vrot.slane %v13633_v24, %v16779_v52  ;;  %v13653_v49 = vcombine.high %v13608_v50, %v13640_v21  ;;  %v21380_v3 = vpop.f32.mrf.mxu0  ;;  %v13615_v30 = vrot.slane %v13601_v60, %v16779_v52 }
 0x5d2   : > { %v12430_v43 = vcombine.low %v12391_v41, %v12423_v27  ;;  %v12431_v37 = vcombine.high %v12391_v41, %v12423_v27  ;;  %v15926_v45 = vpop.f32.mrf.mxu1  ;;  %v12481_v63 = vcombine.high %v21220_v62, %v21259_v2  ;;  %v12529_v7 = vcombine.high %v21287_v16, %v21308_v26 }
 0x5d3   : > { %14576 = vrot.lane.b32.xlu0 %v12428_v10, %s22946_s25  ;;  %v15933_v13 = vpop.f32.mrf.mxu0  ;;  %v13654_v25 = vcombine.low %v13615_v30, %v13647_v18  ;;  %v12433_v0 = vcombine.high %v21100_v20, %v21151_v29  ;;  %v12449_v39 = vcombine.high %v21105_v42, %v21159_v19  ;;  %v12497_v28 = vcombine.high %v21293_v47, %v21296_v48 }
 0x5d4   : > { %14770 = vrot.lane.b32.xlu1 %v13651_v44, %s22949_s30  ;;  %v13664_v57 = vrot.slane %v13656_v31, %v16771_v8  ;;  %v13680_v62 = vrot.slane %v13672_v5, %v16771_v8  ;;  %v21405_v32 = vpop.f32.mrf.mxu1  ;;  %v12568_v16 = vcombine.low %v21366_v15, %v21378_v40  ;;  %v12584_v20 = vcombine.low %v21368_v1, %v21380_v3 }
 0x5d5   : > { %v21407_v2 = vpop.f32.mrf.mxu0  ;;  %v13655_v29 = vcombine.high %v13615_v30, %v13647_v18  ;;  %v21414_v42 = vrot.slane %v12465_v36, %v16771_v8  ;;  %v21417_v19 = vrot.slane %v12481_v63, %v16771_v8  ;;  %v12543_v47 = vrot.slane %v12529_v7, %v16779_v52 }
 0x5d6   : > { %v21421_v9 = vrot.slane %v12433_v0, %v16771_v8  ;;  %v21425_v10 = vrot.slane %v12449_v39, %v16771_v8  ;;  %v12511_v21 = vrot.slane %v12497_v28, %v16779_v52  ;;  %v13720_v44 = vcombine.low %v13664_v57, %v13680_v62 }
 0x5d7   : > { %14608 = vrot.lane.b32.xlu0 %v12429_v23, %s22945_s15  ;;  %v12561_v27 = vcombine.high %v21344_v58, %v21338_v6  ;;  %v21435_v23 = vrot.slane %v12568_v16, %v16771_v8  ;;  %v21438_v24 = vrot.slane %v12584_v20, %v16771_v8  ;;  %v12544_v60 = vcombine.low %v21414_v42, %v21417_v19 }
 0x5d8   : > { %14802 = vrot.lane.b32.xlu1 %v13652_v11, %s22946_s25  ;;  %v15940_v48 = vpop.f32.mrf.mxu1  ;;  %v15947_v26 = vpop.f32.mrf.mxu0  ;;  %v13673_v36 = vcombine.high %v21349_v17, %v21374_v46  ;;  %v13721_v0 = vcombine.high %v13664_v57, %v13680_v62 }
 0x5d9   : > { %v13688_v59 = vcombine.low %v15926_v45, %v15940_v48  ;;  %v13704_v22 = vcombine.low %v15933_v13, %v15947_v26  ;;  %v13689_v30 = vcombine.high %v15926_v45, %v15940_v48  ;;  %v13705_v31 = vcombine.high %v15933_v13, %v15947_v26 }
 0x5da   : > { %v21428_v38 = vpop.f32.mrf.mxu1  ;;  %v21430_v50 = vpop.f32.mrf.mxu0  ;;  %v21460_v45 = vrot.slane %v13720_v44, %v16779_v52  ;;  %v12632_v13 = vcombine.low %v21435_v23, %v21438_v24  ;;  %v12552_v62 = vrot.slane %v12544_v60, %v16779_v52  ;;  %v13687_v48 = vrot.slane %v13673_v36, %v16771_v8 }
 0x5db   : > { %14640 = vrot.lane.b32.xlu0 %v12430_v43, %s16390_s26  ;;  %v13696_v11 = vrot.slane %v13688_v59, %v16771_v8  ;;  %v13712_v41 = vrot.slane %v13704_v22, %v16771_v8  ;;  %v12600_v43 = vcombine.low %v21405_v32, %v21428_v38  ;;  %v12616_v18 = vcombine.low %v21407_v2, %v21430_v50 }
 0x5dc   : > { %14834 = vrot.lane.b32.xlu1 %v13653_v49, %s22945_s15  ;;  %v12562_v49 = vcombine.low %v12511_v21, %v12543_v47  ;;  %v13719_v46 = vrot.slane %v13705_v31, %v16771_v8  ;;  %v13735_v26 = vrot.slane %v13721_v0, %v16779_v52  ;;  %v21485_v59 = vrot.slane %v12632_v13, %v16779_v52 }
 0x5dd   : > { %v13752_v5 = vcombine.low %v13696_v11, %v13712_v41  ;;  %v21454_v63 = vrot.slane %v12600_v43, %v16771_v8  ;;  %v21457_v7 = vrot.slane %v12616_v18, %v16771_v8  ;;  %v12513_v18 = vcombine.high %v21421_v9, %v21425_v10 }
 0x5df   : > { %14672 = vrot.lane.b32.xlu0 %v12431_v37, %s16391_s24  ;;  %v13753_v37 = vcombine.high %v13696_v11, %v13712_v41  ;;  %v21465_v39 = vrot.slane %v13752_v5, %v16779_v52  ;;  %v12664_v17 = vcombine.low %v21454_v63, %v21457_v7 }
 0x5e0   : > { %14866 = vrot.lane.b32.xlu1 %v13654_v25, %s16390_s26  ;;  %v13657_v25 = vcombine.high %v21347_v4, %v21372_v12  ;;  %v12512_v4 = vcombine.low %v21421_v9, %v21425_v10  ;;  %v13703_v12 = vrot.slane %v13689_v30, %v16771_v8 }
 0x5e1   : > { %v13767_v28 = vrot.slane %v13753_v37, %v16779_v52  ;;  %v13785_v57 = vcombine.high %v21460_v45, %v21465_v39  ;;  %v21480_v20 = vrot.slane %v12664_v17, %v16779_v52  ;;  %v21497_v43 = vpop.f32.mrf.mxu1  ;;  %v21502_v30 = vpop.f32.mrf.mxu0 }
 0x5e2   : > { %v13671_v16 = vrot.slane %v13657_v25, %v16771_v8  ;;  %v12520_v44 = vrot.slane %v12512_v4, %v16779_v52  ;;  %v12527_v25 = vrot.slane %v12513_v18, %v16779_v52  ;;  %v13769_v36 = vcombine.high %v13703_v12, %v13719_v46 }
 0x5e3   : > { %14708 = vrot.lane.b32.xlu0 %v13785_v57, %s22950_s13  ;;  %v13786_v11 = vcombine.low %v13735_v26, %v13767_v28  ;;  %v13787_v31 = vcombine.high %v13735_v26, %v13767_v28  ;;  %v21508_v37 = vpop.f32.mrf.mxu1  ;;  %v21511_v9 = vpop.f32.mrf.mxu0 }
 0x5e4   : > { %14898 = vrot.lane.b32.xlu1 %v13655_v29, %s16391_s24  ;;  %v12563_v29 = vcombine.high %v12511_v21, %v12543_v47  ;;  %v12545_v21 = vcombine.high %v21414_v42, %v21417_v19  ;;  %v13736_v41 = vcombine.low %v13671_v16, %v13687_v48  ;;  %v12564_v60 = vcombine.low %v12520_v44, %v12552_v62 }
 0x5e5   : > { %v12565_v19 = vcombine.high %v12520_v44, %v12552_v62  ;;  %v13737_v13 = vcombine.high %v13671_v16, %v13687_v48  ;;  %v13783_v28 = vrot.slane %v13769_v36, %v16779_v52 }
 0x5e6   : > { %v12559_v5 = vrot.slane %v12545_v21, %v16779_v52  ;;  %v13744_v42 = vrot.slane %v13736_v41, %v16779_v52  ;;  %v12617_v21 = vcombine.high %v21407_v2, %v21430_v50  ;;  %v12569_v41 = vcombine.high %v21366_v15, %v21378_v40 }
 0x5e7   : > { %14740 = vrot.lane.b32.xlu0 %v13786_v11, %s22947_s29  ;;  %v12601_v11 = vcombine.high %v21405_v32, %v21428_v38  ;;  %v12585_v2 = vcombine.high %v21368_v1, %v21380_v3  ;;  %v12633_v50 = vcombine.high %v21435_v23, %v21438_v24 }
 0x5e8   : > { %14482 = vrot.lane.b32.xlu1 %v12561_v27, %s22950_s13  ;;  %v13768_v27 = vcombine.low %v13703_v12, %v13719_v46  ;;  %v12566_v17 = vcombine.low %v12527_v25, %v12559_v5  ;;  %v13751_v12 = vrot.slane %v13737_v13, %v16779_v52  ;;  %v21563_v1 = vrot.slane %v12569_v41, %v16771_v8 }
 0x5ea   : > { %v21514_v0 = vpop.f32.mrf.mxu1  ;;  %v13791_v32 = vcombine.high %v13751_v12, %v13783_v28 }
 0x5eb   : > { %14772 = vrot.lane.b32.xlu0 %v13787_v31, %s22949_s30  ;;  %v21516_v4 = vpop.f32.mrf.mxu0  ;;  %v13792_v48 = vcombine.low %v21497_v43, %v21514_v0 }
 0x5ec   : > { %14514 = vrot.lane.b32.xlu1 %v12562_v49, %s22947_s29  ;;  %v13776_v49 = vrot.slane %v13768_v27, %v16779_v52  ;;  %v21521_v62 = vpop.f32.mrf.mxu1  ;;  %v13808_v26 = vcombine.low %v21502_v30, %v21516_v4  ;;  %v13790_v27 = vcombine.low %v13751_v12, %v13783_v28 }
 0x5ed   : > { %v21524_v46 = vpop.f32.mrf.mxu0  ;;  %v12704_v38 = vcombine.low %v21508_v37, %v21521_v62 }
 0x5ee   : > { %v13788_v10 = vcombine.low %v13744_v42, %v13776_v49  ;;  %v13789_v57 = vcombine.high %v13744_v42, %v13776_v49  ;;  %v13800_v49 = vrot.slane %v13792_v48, %v16771_v8  ;;  %v13816_v31 = vrot.slane %v13808_v26, %v16771_v8 }
 0x5ef   : > { %v12720_v15 = vcombine.low %v21511_v9, %v21524_v46  ;;  %v21576_v28 = vrot.slane %v12704_v38, %v16771_v8  ;;  %v12599_v48 = vrot.slane %v12585_v2, %v16771_v8  ;;  %v12647_v26 = vrot.slane %v12633_v50, %v16779_v52 }
 0x5f0   : > { %14546 = vrot.lane.b32.xlu1 %v12563_v29, %s22949_s30  ;;  %14804 = vrot.lane.b32.xlu0 %v13788_v10, %s22946_s25  ;;  %v12567_v29 = vcombine.high %v12527_v25, %v12559_v5  ;;  %v13856_v10 = vcombine.low %v13800_v49, %v13816_v31  ;;  %v13793_v38 = vcombine.high %v21497_v43, %v21514_v0 }
 0x5f1   : > { %v13809_v2 = vcombine.high %v21502_v30, %v21516_v4 }
 0x5f3   : > { %v15982_v16 = vpop.f32.mrf.mxu1 }
 0x5f4   : > { %14578 = vrot.lane.b32.xlu1 %v12564_v60, %s22946_s25  ;;  %14836 = vrot.lane.b32.xlu0 %v13789_v57, %s22945_s15  ;;  %v12665_v60 = vcombine.high %v21454_v63, %v21457_v7  ;;  %v21556_v63 = vrot.slane %v12601_v11, %v16771_v8  ;;  %v21559_v7 = vrot.slane %v12617_v21, %v16771_v8 }
 0x5f5   : > { %v15989_v44 = vpop.f32.mrf.mxu0  ;;  %v21541_v18 = vpop.f32.mrf.mxu1  ;;  %v21579_v57 = vrot.slane %v12720_v15, %v16771_v8 }
 0x5f6   : > { %v12679_v3 = vrot.slane %v12665_v60, %v16779_v52 }
 0x5f7   : > { %v21545_v5 = vpop.f32.mrf.mxu0  ;;  %v12769_v47 = vcombine.high %v21576_v28, %v21579_v57 }
 0x5f8   : > { %14610 = vrot.lane.b32.xlu1 %v12565_v19, %s22945_s15  ;;  %14868 = vrot.lane.b32.xlu0 %v13790_v27, %s16390_s26  ;;  %v12680_v27 = vcombine.low %v21556_v63, %v21559_v7  ;;  %v12698_v50 = vcombine.low %v12647_v26, %v12679_v3 }
 0x5fb   : > { %v15996_v40 = vpop.f32.mrf.mxu1 }
 0x5fc   : > { %14642 = vrot.lane.b32.xlu1 %v12566_v17, %s16390_s26  ;;  %v13824_v42 = vcombine.low %v15982_v16, %v15996_v40  ;;  %14900 = vrot.lane.b32.xlu0 %v13791_v32, %s16391_s24  ;;  %v12697_v17 = vcombine.high %v21485_v59, %v21480_v20  ;;  %v13825_v21 = vcombine.high %v15982_v16, %v15996_v40 }
 0x5fd   : > { %v16003_v19 = vpop.f32.mrf.mxu0  ;;  %v21566_v36 = vpop.f32.mrf.mxu1  ;;  %v12768_v16 = vcombine.low %v21576_v28, %v21579_v57  ;;  %v12648_v40 = vcombine.low %v21563_v1, %v12599_v48 }
 0x5fe   : > { %v13840_v25 = vcombine.low %v15989_v44, %v16003_v19  ;;  %v13832_v23 = vrot.slane %v13824_v42, %v16771_v8  ;;  %v12736_v24 = vcombine.low %v21541_v18, %v21566_v36  ;;  %v13841_v41 = vcombine.high %v15989_v44, %v16003_v19 }
 0x5ff   : > { %v21571_v13 = vpop.f32.mrf.mxu0  ;;  %v13857_v42 = vcombine.high %v13800_v49, %v13816_v31  ;;  %v13839_v30 = vrot.slane %v13825_v21, %v16771_v8  ;;  %v12688_v31 = vrot.slane %v12680_v27, %v16779_v52  ;;  %v13807_v19 = vrot.slane %v13793_v38, %v16771_v8 }
 0x600   : > { %14674 = vrot.lane.b32.xlu1 %v12567_v29, %s16391_s24  ;;  %v13848_v12 = vrot.slane %v13840_v25, %v16771_v8  ;;  %v12752_v29 = vcombine.low %v21545_v5, %v21571_v13  ;;  %v21589_v11 = vrot.slane %v12736_v24, %v16771_v8  ;;  %14484 = vrot.lane.b32.xlu0 %v12697_v17, %s22950_s13 }
 0x601   : > { %v21600_v25 = vrot.slane %v13856_v10, %v16779_v52  ;;  %v13855_v0 = vrot.slane %v13841_v41, %v16771_v8  ;;  %v13823_v24 = vrot.slane %v13809_v2, %v16771_v8  ;;  %v13871_v17 = vrot.slane %v13857_v42, %v16779_v52 }
 0x602   : > { %v13888_v60 = vcombine.low %v13832_v23, %v13848_v12  ;;  %v13889_v32 = vcombine.high %v13832_v23, %v13848_v12  ;;  %v21597_v15 = vrot.slane %v12752_v29, %v16771_v8  ;;  %v12699_v23 = vcombine.high %v12647_v26, %v12679_v3 }
 0x603   : > { %v21624_v12 = vrot.slane %v12768_v16, %v16779_v52  ;;  %v12656_v27 = vrot.slane %v12648_v40, %v16779_v52  ;;  %v13904_v21 = vcombine.low %v13839_v30, %v13855_v0  ;;  %v21631_v41 = vpop.f32.mrf.mxu1  ;;  %v13872_v2 = vcombine.low %v13807_v19, %v13823_v24 }
 0x604   : > { %v21605_v44 = vrot.slane %v13888_v60, %v16779_v52  ;;  %v12800_v43 = vcombine.low %v21589_v11, %v21597_v15  ;;  %14516 = vrot.lane.b32.xlu0 %v12698_v50, %s22947_s29  ;;  %v13903_v4 = vrot.slane %v13889_v32, %v16779_v52  ;;  %v12681_v60 = vcombine.high %v21556_v63, %v21559_v7 }
 0x605   : > { %23443 = vst [vmem:[#allocation96_spill] sm:$0xff] %v21624_v12  ;;  %v21637_v32 = vpop.f32.mrf.mxu0  ;;  %v12700_v38 = vcombine.low %v12656_v27, %v12688_v31  ;;  %v12649_v50 = vcombine.high %v21563_v1, %v12599_v48  ;;  %v13912_v42 = vrot.slane %v13904_v21, %v16779_v52  ;;  %v21643_v16 = vpop.f32.mrf.mxu1  ;;  %v12701_v63 = vcombine.high %v12656_v27, %v12688_v31 }
 0x606   : > { %v13921_v49 = vcombine.high %v21600_v25, %v21605_v44  ;;  %v21619_v10 = vrot.slane %v12800_v43, %v16779_v52  ;;  %v13922_v3 = vcombine.low %v13871_v17, %v13903_v4  ;;  %v13923_v40 = vcombine.high %v13871_v17, %v13903_v4 }
 0x607   : > { %v12695_v43 = vrot.slane %v12681_v60, %v16779_v52  ;;  %v13880_v7 = vrot.slane %v13872_v2, %v16779_v52  ;;  %v12663_v1 = vrot.slane %v12649_v50, %v16779_v52  ;;  %v13905_v4 = vcombine.high %v13839_v30, %v13855_v0 }
 0x608   : > { %23442 = vst [vmem:[#allocation74_spill] sm:$0xff] %v21619_v10  ;;  %14710 = vrot.lane.b32.xlu1 %v13921_v49, %s22950_s13  ;;  %14548 = vrot.lane.b32.xlu0 %v12699_v23, %s22949_s30  ;;  %v21646_v49 = vpop.f32.mrf.mxu0  ;;  %v13873_v60 = vcombine.high %v13807_v19, %v13823_v24 }
 0x609   : > { %v13924_v17 = vcombine.low %v13880_v7, %v13912_v42  ;;  %v12702_v21 = vcombine.low %v12663_v1, %v12695_v43  ;;  %v13919_v27 = vrot.slane %v13905_v4, %v16779_v52  ;;  %v12703_v30 = vcombine.high %v12663_v1, %v12695_v43 }
 0x60a   : > { %v13887_v0 = vrot.slane %v13873_v60, %v16779_v52  ;;  %v12705_v43 = vcombine.high %v21508_v37, %v21521_v62  ;;  %v12737_v1 = vcombine.high %v21541_v18, %v21566_v36  ;;  %v12721_v18 = vcombine.high %v21511_v9, %v21524_v46 }
 0x60b   : > { %v12801_v36 = vcombine.high %v21589_v11, %v21597_v15 }
 0x60c   : > { %14742 = vrot.lane.b32.xlu1 %v13922_v3, %s22947_s29  ;;  %14580 = vrot.lane.b32.xlu0 %v12700_v38, %s22946_s25  ;;  %v21716_v11 = vrot.slane %v12737_v1, %v16771_v8 }
 0x60d   : > { %v21649_v23 = vpop.f32.mrf.mxu1  ;;  %v12815_v1 = vrot.slane %v12801_v36, %v16779_v52 }
 0x60e   : > { %v21655_v48 = vpop.f32.mrf.mxu0  ;;  %v13928_v19 = vcombine.low %v21631_v41, %v21649_v23 }
 0x60f   : > { %v21658_v38 = vpop.f32.mrf.mxu1  ;;  %v13944_v24 = vcombine.low %v21637_v32, %v21655_v48 }
 0x610   : > { %14774 = vrot.lane.b32.xlu1 %v13923_v40, %s22949_s30  ;;  %14612 = vrot.lane.b32.xlu0 %v12701_v63, %s22945_s15  ;;  %v21661_v31 = vpop.f32.mrf.mxu0  ;;  %v13925_v40 = vcombine.high %v13880_v7, %v13912_v42  ;;  %v13926_v42 = vcombine.low %v13887_v0, %v13919_v27  ;;  %v12840_v26 = vcombine.low %v21643_v16, %v21658_v38 }
 0x611   : > { %v13952_v60 = vrot.slane %v13944_v24, %v16771_v8  ;;  %v12856_v37 = vcombine.low %v21646_v49, %v21661_v31 }
 0x612   : > { %v21726_v57 = vrot.slane %v12840_v26, %v16771_v8 }
 0x614   : > { %v21652_v3 = vpop.permute.xlu0 %14704  ;;  %14806 = vrot.lane.b32.xlu1 %v13924_v17, %s22946_s25  ;;  %14644 = vrot.lane.b32.xlu0 %v12702_v21, %s16390_s26  ;;  %v13936_v21 = vrot.slane %v13928_v19, %v16771_v8 }
 0x615   : > { %v21665_v2 = vpop.f32.mrf.mxu1 }
 0x616   : > { %v21669_v63 = vpop.f32.mrf.mxu0  ;;  %v13992_v15 = vcombine.low %v13936_v21, %v13952_v60  ;;  %v13993_v55 = vcombine.high %v13936_v21, %v13952_v60 }
 0x617   : > { %v21678_v4 = vpop.f32.mrf.mxu1 }
 0x618   : > { %14838 = vrot.lane.b32.xlu1 %v13925_v40, %s22945_s15  ;;  %14676 = vrot.lane.b32.xlu0 %v12703_v30, %s16391_s24  ;;  %v21684_v7 = vpop.f32.mrf.mxu0  ;;  %v12753_v30 = vcombine.high %v21545_v5, %v21571_v13  ;;  %v13927_v5 = vcombine.high %v13887_v0, %v13919_v27  ;;  %v21706_v13 = vrot.slane %v12705_v43, %v16771_v8 }
 0x619   : > { %v21729_v0 = vrot.slane %v12856_v37, %v16771_v8  ;;  %v21747_v36 = vrot.slane %v13992_v15, %v16779_v52 }
 0x61a   : > { %v21723_v28 = vrot.slane %v12753_v30, %v16771_v8  ;;  %v21738_v30 = vrot.slane %v12721_v18, %v16771_v8 }
 0x61b   : > { %23444 = vst [vmem:[#allocation20_spill] sm:$0xff] %v21747_v36 }
 0x61c   : > { %14870 = vrot.lane.b32.xlu1 %v13926_v42, %s16390_s26  ;;  %v12816_v21 = vcombine.low %v21716_v11, %v21723_v28  ;;  %v12784_v15 = vcombine.low %v21706_v13, %v21738_v30 }
 0x61d   : > { %v21667_v50 = vpop.permute.xlu0 %14736 }
 0x61e   : > { %v16052_v40 = vpop.f32.mrf.mxu1  ;;  %v16059_v29 = vpop.f32.mrf.mxu0 }
 0x61f   : > { %v13960_v62 = vcombine.low %v21665_v2, %v16052_v40  ;;  %v13976_v19 = vcombine.low %v21669_v63, %v16059_v29  ;;  %v13961_v26 = vcombine.high %v21665_v2, %v16052_v40  ;;  %v13977_v34 = vcombine.high %v21669_v63, %v16059_v29 }
 0x620   : > { %v21703_v42 = vpop.f32.mrf.mxu1  ;;  %v21713_v46 = vpop.f32.mrf.mxu0  ;;  %14902 = vrot.lane.b32.xlu1 %v13927_v5, %s16391_s24  ;;  %v12833_v5 = vcombine.high %v21624_v12, %v21619_v10  ;;  %v13929_v2 = vcombine.high %v21631_v41, %v21649_v23  ;;  %v13945_v29 = vcombine.high %v21637_v32, %v21655_v48  ;;  %v12904_v63 = vcombine.low %v21726_v57, %v21729_v0 }
 0x621   : > { %v21680_v17 = vpop.permute.xlu0 %14768  ;;  %v13968_v22 = vrot.slane %v13960_v62, %v16771_v8  ;;  %v12872_v9 = vcombine.low %v21678_v4, %v21703_v42  ;;  %v13984_v33 = vrot.slane %v13976_v19, %v16771_v8  ;;  %v12888_v27 = vcombine.low %v21684_v7, %v21713_v46 }
 0x622   : > { %v14976_v32 = vsel %vm1430_vm2, %v13512_v35, %v21652_v3  ;;  %v13975_v23 = vrot.slane %v13961_v26, %v16771_v8  ;;  %v13991_v48 = vrot.slane %v13977_v34, %v16771_v8  ;;  %v13943_v54 = vrot.slane %v13929_v2, %v16771_v8 }
 0x623   : > { %v21732_v43 = vrot.slane %v12872_v9, %v16771_v8  ;;  %v14024_v62 = vcombine.low %v13968_v22, %v13984_v33  ;;  %v14025_v19 = vcombine.high %v13968_v22, %v13984_v33  ;;  %v21743_v37 = vrot.slane %v12888_v27, %v16771_v8 }
 0x624   : > { %v12783_v9 = vrot.slane %v12769_v47, %v16779_v52  ;;  %14486 = vrot.lane.b32.xlu1 %v12833_v5, %s22950_s13  ;;  %v14007_v27 = vrot.slane %v13993_v55, %v16779_v52  ;;  %v13959_v61 = vrot.slane %v13945_v29, %v16771_v8  ;;  %v21789_v35 = vrot.slane %v12904_v63, %v16779_v52 }
 0x625   : > { %v14801_v24 = vpop.permute.xlu0 %14800  ;;  %v21750_v33 = vrot.slane %v14024_v62, %v16779_v52  ;;  %v12936_v47 = vcombine.low %v21732_v43, %v21743_v37  ;;  %v14039_v60 = vrot.slane %v14025_v19, %v16779_v52  ;;  %v14984_v62 = vsel %vm1432_vm3, %v14976_v32, %v21667_v50 }
 0x626   : > { %v12834_v40 = vcombine.low %v12783_v9, %v12815_v1  ;;  %23447 = vst [vmem:[#allocation9_spill] sm:$0xff] %v21789_v35  ;;  %v14992_v55 = vsel %vm1434_vm4, %v14984_v62, %v21680_v17  ;;  %v12824_v34 = vrot.slane %v12816_v21, %v16779_v52  ;;  %v21795_v50 = vpop.f32.mrf.mxu1  ;;  %v12835_v5 = vcombine.high %v12783_v9, %v12815_v1 }
 0x627   : > { %23445 = vst [vmem:[#allocation98_spill] sm:$0xff] %v21750_v33  ;;  %v14057_v41 = vcombine.high %v21747_v36, %v21750_v33  ;;  %v21775_v18 = vrot.slane %v12936_v47, %v16779_v52  ;;  %v15000_v3 = vsel %vm457_vm0, %v14992_v55, %v14801_v24  ;;  %v14058_v26 = vcombine.low %v14007_v27, %v14039_v60  ;;  %v21798_v2 = vpop.f32.mrf.mxu0 }
 0x628   : > { %14518 = vrot.lane.b32.xlu1 %v12834_v40, %s22947_s29  ;;  %v14040_v47 = vcombine.low %v13975_v23, %v13991_v48  ;;  %v12792_v17 = vrot.slane %v12784_v15, %v16779_v52  ;;  %v14008_v1 = vcombine.low %v13943_v54, %v13959_v61  ;;  %v12785_v55 = vcombine.high %v21706_v13, %v21738_v30 }
 0x629   : > { %23446 = vst [vmem:[#allocation102_spill] sm:$0xff] %v21775_v18  ;;  %14712 = vrot.lane.b32.xlu0 %v14057_v41, %s22950_s13  ;;  %v21811_v41 = vpop.f32.mrf.mxu1  ;;  %v21817_v62 = vpop.f32.mrf.mxu0  ;;  %v12969_v36 = vcombine.high %v21789_v35, %v21775_v18 }
 0x62a   : > { %v12836_v32 = vcombine.low %v12792_v17, %v12824_v34  ;;  %v14048_v15 = vrot.slane %v14040_v47, %v16779_v52  ;;  %v12837_v47 = vcombine.high %v12792_v17, %v12824_v34 }
 0x62b   : > { %v14833_v22 = vpop.permute.xlu0 %14832 }
 0x62c   : > { %v15008_v40 = vsel %vm1437_vm5, %v15000_v3, %v14833_v22  ;;  %14550 = vrot.lane.b32.xlu1 %v12835_v5, %s22949_s30  ;;  %v12817_v22 = vcombine.high %v21716_v11, %v21723_v28  ;;  %v14016_v11 = vrot.slane %v14008_v1, %v16779_v52 }
 0x62d   : > { %14744 = vrot.lane.b32.xlu0 %v14058_v26, %s22947_s29 }
 0x62e   : > { %v12831_v26 = vrot.slane %v12817_v22, %v16779_v52  ;;  %v14061_v17 = vcombine.high %v14016_v11, %v14048_v15  ;;  %v12841_v22 = vcombine.high %v21643_v16, %v21658_v38  ;;  %v12905_v16 = vcombine.high %v21726_v57, %v21729_v0 }
 0x62f   : > { %v21821_v3 = vpop.f32.mrf.mxu1  ;;  %v12873_v38 = vcombine.high %v21678_v4, %v21703_v42 }
 0x630   : > { %14582 = vrot.lane.b32.xlu1 %v12836_v32, %s22946_s25  ;;  %v21827_v28 = vpop.f32.mrf.mxu0 }
 0x631   : > { %v14865_v19 = vpop.permute.xlu0 %14864  ;;  %v21832_v13 = vpop.f32.mrf.mxu1 }
 0x632   : > { %v15016_v21 = vsel %vm1439_vm6, %v15008_v40, %v14865_v19  ;;  %v14059_v19 = vcombine.high %v14007_v27, %v14039_v60  ;;  %v14041_v40 = vcombine.high %v13975_v23, %v13991_v48  ;;  %v14060_v60 = vcombine.low %v14016_v11, %v14048_v15 }
 0x633   : > { %v12799_v27 = vrot.slane %v12785_v55, %v16779_v52  ;;  %v12857_v55 = vcombine.high %v21646_v49, %v21661_v31  ;;  %v12889_v11 = vcombine.high %v21684_v7, %v21713_v46  ;;  %v12976_v46 = vcombine.low %v21811_v41, %v21832_v13 }
 0x634   : > { %14776 = vrot.lane.b32.xlu0 %v14059_v19, %s22949_s30  ;;  %14614 = vrot.lane.b32.xlu1 %v12837_v47, %s22945_s15  ;;  %v14055_v23 = vrot.slane %v14041_v40, %v16779_v52 }
 0x635   : > { %v14897_v24 = vpop.permute.xlu0 %14896  ;;  %v12838_v34 = vcombine.low %v12799_v27, %v12831_v26  ;;  %v12839_v40 = vcombine.high %v12799_v27, %v12831_v26  ;;  %v21879_v42 = vrot.slane %v12857_v55, %v16771_v8  ;;  %v21920_v10 = vrot.slane %v12976_v46, %v16771_v8 }
 0x636   : > { %v15024_v9 = vsel %vm1441_vm7, %v15016_v21, %v14897_v24  ;;  %v14009_v21 = vcombine.high %v13943_v54, %v13959_v61  ;;  %v21837_v24 = vpop.f32.mrf.mxu0  ;;  %v14064_v54 = vcombine.low %v21795_v50, %v21821_v3  ;;  %v14080_v61 = vcombine.low %v21798_v2, %v21827_v28 }
 0x637   : > { %15033 = vst [vmem:[%s21813_s19 + $0x8] sm:$0xff] %v15024_v9 }
 0x638   : > { %14808 = vrot.lane.b32.xlu0 %v14060_v60, %s22946_s25  ;;  %v21842_v9 = vpop.f32.mrf.mxu1  ;;  %14646 = vrot.lane.b32.xlu1 %v12838_v34, %s16390_s26  ;;  %v14023_v19 = vrot.slane %v14009_v21, %v16779_v52  ;;  %v12937_v60 = vcombine.high %v21732_v43, %v21743_v37  ;;  %v21873_v21 = vrot.slane %v12841_v22, %v16771_v8 }
 0x639   : > { %v21823_v5 = vpop.permute.xlu0 %14480  ;;  %v21845_v48 = vpop.f32.mrf.mxu0  ;;  %v14072_v57 = vrot.slane %v14064_v54, %v16771_v8  ;;  %v14088_v0 = vrot.slane %v14080_v61, %v16771_v8  ;;  %v12992_v43 = vcombine.low %v21817_v62, %v21837_v24  ;;  %v21890_v34 = vrot.slane %v12905_v16, %v16779_v52 }
 0x63a   : > { %v21866_v47 = vpop.f32.mrf.mxu1  ;;  %v14062_v31 = vcombine.low %v14023_v19, %v14055_v23  ;;  %v21896_v22 = vrot.slane %v12889_v11, %v16771_v8  ;;  %v21902_v55 = vrot.slane %v12937_v60, %v16779_v52  ;;  %v14063_v63 = vcombine.high %v14023_v19, %v14055_v23 }
 0x63b   : > { %v21870_v49 = vpop.f32.mrf.mxu0  ;;  %v23448_v60 = vcombine.low %v20906_v53, %v21162_v51  ;;  %v21923_v23 = vrot.slane %v12992_v43, %v16771_v8  ;;  %v14065_v51 = vcombine.high %v21795_v50, %v21821_v3 }
 0x63c   : > { %14840 = vrot.lane.b32.xlu0 %v14061_v17, %s22945_s15  ;;  %14678 = vrot.lane.b32.xlu1 %v12839_v40, %s16391_s24  ;;  %v21893_v17 = vrot.slane %v12873_v38, %v16771_v8  ;;  %v14128_v38 = vcombine.low %v14072_v57, %v14088_v0 }
 0x63d   : > { %v21834_v30 = vpop.permute.xlu0 %14512 }
 0x63e   : > { %v21840_v1 = vpop.permute.xlu1 %14706  ;;  %v12952_v50 = vcombine.low %v21893_v17, %v21896_v22 }
 0x640   : > { %14872 = vrot.lane.b32.xlu0 %v14062_v31, %s16390_s26 }
 0x641   : > { %v14545_v32 = vpop.permute.xlu0 %14544  ;;  %v16108_v7 = vpop.f32.mrf.mxu1 }
 0x642   : > { %v21858_v15 = vpop.permute.xlu1 %14738  ;;  %v14096_v37 = vcombine.low %v21842_v9, %v16108_v7  ;;  %v16115_v26 = vpop.f32.mrf.mxu0  ;;  %v14097_v18 = vcombine.high %v21842_v9, %v16108_v7 }
 0x643   : > { %v14112_v54 = vcombine.low %v21845_v48, %v16115_v26  ;;  %v21899_v61 = vpop.f32.mrf.mxu1  ;;  %v14113_v35 = vcombine.high %v21845_v48, %v16115_v26  ;;  %v23450_v26 = vcombine.low %v21290_v14, %v21299_v56  ;;  %v12960_v56 = vrot.slane %v12952_v50, %v16779_v52 }
 0x644   : > { %v14104_v40 = vrot.slane %v14096_v37, %v16771_v8  ;;  %v13008_v31 = vcombine.low %v21866_v47, %v21899_v61  ;;  %v21907_v16 = vpop.f32.mrf.mxu0  ;;  %v14920_v37 = vsel %vm1430_vm2, %v23448_v60, %v21823_v5  ;;  %14904 = vrot.lane.b32.xlu0 %v14063_v63, %s16391_s24  ;;  %v14081_v5 = vcombine.high %v21798_v2, %v21827_v28 }
 0x645   : > { %v14577_v4 = vpop.permute.xlu0 %14576  ;;  %v14120_v29 = vrot.slane %v14112_v54, %v16771_v8  ;;  %v13024_v33 = vcombine.low %v21870_v49, %v21907_v16  ;;  %v14928_v46 = vsel %vm1432_vm3, %v14920_v37, %v21834_v30  ;;  %v14129_v63 = vcombine.high %v14072_v57, %v14088_v0 }
 0x646   : > { %v21887_v27 = vpop.permute.xlu1 %14770  ;;  %v21926_v19 = vrot.slane %v13008_v31, %v16771_v8  ;;  %v21941_v31 = vrot.slane %v14128_v38, %v16779_v52  ;;  %v14936_v9 = vsel %vm1434_vm4, %v14928_v46, %v14545_v32  ;;  %v13040_v2 = vcombine.low %v21920_v10, %v21923_v23 }
 0x647   : > { %v14160_v12 = vcombine.low %v14104_v40, %v14120_v29  ;;  %v14161_v53 = vcombine.high %v14104_v40, %v14120_v29  ;;  %v21938_v43 = vrot.slane %v13024_v33, %v16771_v8  ;;  %v14944_v3 = vsel %vm457_vm0, %v14936_v9, %v14577_v4 }
 0x648   : > { %14488 = vrot.lane.b32.xlu0 %v12969_v36, %s22950_s13  ;;  %v21956_v30 = vrot.slane %v14097_v18, %v16771_v8  ;;  %v21965_v0 = vrot.slane %v14065_v51, %v16771_v8  ;;  %v12970_v36 = vcombine.low %v21890_v34, %v21902_v55  ;;  %v14095_v18 = vrot.slane %v14081_v5, %v16771_v8 }
 0x649   : > { %v14609_v11 = vpop.permute.xlu0 %14608  ;;  %v21945_v29 = vrot.slane %v14160_v12, %v16779_v52  ;;  %v13072_v33 = vcombine.low %v21926_v19, %v21938_v43  ;;  %v21959_v12 = vrot.slane %v14113_v35, %v16771_v8  ;;  %v14175_v32 = vrot.slane %v14161_v53, %v16779_v52 }
 0x64a   : > { %v14803_v54 = vpop.permute.xlu1 %14802  ;;  %v14952_v4 = vsel %vm1437_vm5, %v14944_v3, %v14609_v11  ;;  %v14143_v35 = vrot.slane %v14129_v63, %v16779_v52  ;;  %v14977_v40 = vsel %vm1430_vm2, %v23450_v26, %v21840_v1  ;;  %v12920_v60 = vcombine.low %v21873_v21, %v21879_v42  ;;  %v21997_v63 = vpop.f32.mrf.mxu1 }
 0x64b   : > { %v14193_v57 = vcombine.high %v21941_v31, %v21945_v29  ;;  %v21969_v7 = vrot.slane %v13072_v33, %v16779_v52  ;;  %v21985_v37 = vrot.slane %v13040_v2, %v16779_v52  ;;  %v14985_v53 = vsel %vm1432_vm3, %v14977_v40, %v21858_v15  ;;  %v22007_v3 = vpop.f32.mrf.mxu0 }
 0x64c   : > { %14520 = vrot.lane.b32.xlu0 %v12970_v36, %s22947_s29  ;;  %v14176_v1 = vcombine.low %v21956_v30, %v21959_v12  ;;  %v14993_v5 = vsel %vm1434_vm4, %v14985_v53, %v21887_v27  ;;  %v14194_v46 = vcombine.low %v14143_v35, %v14175_v32  ;;  %v12971_v15 = vcombine.high %v21890_v34, %v21902_v55  ;;  %v22018_v26 = vpop.f32.mrf.mxu1 }
 0x64d   : > { %v14641_v48 = vpop.permute.xlu0 %14640  ;;  %23449 = vst [vmem:[#allocation75_spill] sm:$0xff] %v21969_v7  ;;  %14714 = vrot.lane.b32.xlu1 %v14193_v57, %s22950_s13  ;;  %v15001_v9 = vsel %vm457_vm0, %v14993_v5, %v14803_v54  ;;  %v14144_v2 = vcombine.low %v21965_v0, %v14095_v18  ;;  %v12928_v54 = vrot.slane %v12920_v60, %v16779_v52 }
 0x64e   : > { %v14835_v28 = vpop.permute.xlu1 %14834  ;;  %v14960_v38 = vsel %vm1439_vm6, %v14952_v4, %v14641_v48  ;;  %v14184_v33 = vrot.slane %v14176_v1, %v16779_v52  ;;  %v14195_v57 = vcombine.high %v14143_v35, %v14175_v32  ;;  %v12953_v36 = vcombine.high %v21893_v17, %v21896_v22 }
 0x64f   : > { %v15009_v27 = vsel %vm1437_vm5, %v15001_v9, %v14835_v28  ;;  %v12972_v28 = vcombine.low %v12928_v54, %v12960_v56  ;;  %v14152_v40 = vrot.slane %v14144_v2, %v16779_v52  ;;  %v14177_v17 = vcombine.high %v21956_v30, %v21959_v12 }
 0x650   : > { %14552 = vrot.lane.b32.xlu0 %v12971_v15, %s22949_s30  ;;  %v12967_v53 = vrot.slane %v12953_v36, %v16779_v52  ;;  %v13025_v15 = vcombine.high %v21870_v49, %v21907_v16  ;;  %v12993_v49 = vcombine.high %v21817_v62, %v21837_v24 }
 0x651   : > { %v14673_v11 = vpop.permute.xlu0 %14672  ;;  %14746 = vrot.lane.b32.xlu1 %v14194_v46, %s22947_s29  ;;  %v22027_v60 = vpop.f32.mrf.mxu1  ;;  %v14196_v35 = vcombine.low %v14152_v40, %v14184_v33  ;;  %v14191_v30 = vrot.slane %v14177_v17, %v16779_v52  ;;  %v14197_v5 = vcombine.high %v14152_v40, %v14184_v33 }
 0x652   : > { %v14968_v51 = vsel %vm1441_vm7, %v14960_v38, %v14673_v11  ;;  %v14867_v14 = vpop.permute.xlu1 %14866  ;;  %v22022_v38 = vpop.f32.mrf.mxu0  ;;  %v12921_v11 = vcombine.high %v21873_v21, %v21879_v42  ;;  %v22079_v36 = vrot.slane %v13025_v15, %v16771_v8 }
 0x653   : > { %15032 = vst [vmem:[%s21813_s19] sm:$0xff] %v14968_v51  ;;  %v15017_v34 = vsel %vm1439_vm6, %v15009_v27, %v14867_v14  ;;  %v12973_v51 = vcombine.high %v12928_v54, %v12960_v56  ;;  %v14145_v14 = vcombine.high %v21965_v0, %v14095_v18  ;;  %v22040_v42 = vpop.f32.mrf.mxu1  ;;  %v13009_v18 = vcombine.high %v21866_v47, %v21899_v61 }
 0x654   : > { %14584 = vrot.lane.b32.xlu0 %v12972_v28, %s22946_s25  ;;  %v22034_v22 = vpop.f32.mrf.mxu0  ;;  %v12935_v21 = vrot.slane %v12921_v11, %v16779_v52  ;;  %v14200_v27 = vcombine.low %v21997_v63, %v22027_v60  ;;  %v12977_v47 = vcombine.high %v21811_v41, %v21832_v13  ;;  %v13041_v61 = vcombine.high %v21920_v10, %v21923_v23 }
 0x655   : > { %14778 = vrot.lane.b32.xlu1 %v14195_v57, %s22949_s30  ;;  %v22050_v9 = vpop.permute.xlu0 %14708  ;;  %v14159_v0 = vrot.slane %v14145_v14, %v16779_v52  ;;  %v14216_v54 = vcombine.low %v22007_v3, %v22034_v22  ;;  %v13073_v41 = vcombine.high %v21926_v19, %v21938_v43  ;;  %v13112_v28 = vcombine.low %v22018_v26, %v22040_v42 }
 0x656   : > { %v14899_v55 = vpop.permute.xlu1 %14898  ;;  %v22046_v12 = vpop.f32.mrf.mxu0  ;;  %v12974_v56 = vcombine.low %v12935_v21, %v12967_v53  ;;  %v12975_v33 = vcombine.high %v12935_v21, %v12967_v53  ;;  %v22087_v10 = vrot.slane %v14200_v27, %v16771_v8  ;;  %v22097_v17 = vrot.slane %v12977_v47, %v16771_v8 }
 0x657   : > { %v15025_v4 = vsel %vm1441_vm7, %v15017_v34, %v14899_v55  ;;  %v14198_v55 = vcombine.low %v14159_v0, %v14191_v30  ;;  %v14224_v62 = vrot.slane %v14216_v54, %v16771_v8  ;;  %v13128_v40 = vcombine.low %v22022_v38, %v22046_v12 }
 0x658   : > { %15035 = vst [vmem:[%s21813_s19 + $0x18] sm:$0xff] %v15025_v4  ;;  %14616 = vrot.lane.b32.xlu0 %v12973_v51, %s22945_s15  ;;  %v22076_v4 = vrot.slane %v13009_v18, %v16771_v8  ;;  %v14199_v11 = vcombine.high %v14159_v0, %v14191_v30  ;;  %v22103_v53 = vrot.slane %v13041_v61, %v16779_v52 }
 0x659   : > { %14810 = vrot.lane.b32.xlu1 %v14196_v35, %s22946_s25  ;;  %v22073_v57 = vpop.permute.xlu0 %14740  ;;  %v22100_v35 = vrot.slane %v12993_v49, %v16771_v8  ;;  %v14264_v15 = vcombine.low %v22087_v10, %v14224_v62  ;;  %v22124_v49 = vrot.slane %v13112_v28, %v16771_v8  ;;  %v22127_v61 = vrot.slane %v13128_v40, %v16771_v8 }
 0x65a   : > { %v22030_v32 = vpop.permute.xlu1 %14482  ;;  %v14201_v40 = vcombine.high %v21997_v63, %v22027_v60 }
 0x65b   : > { %v22048_v46 = vpop.f32.mrf.mxu1  ;;  %v22057_v2 = vpop.f32.mrf.mxu0 }
 0x65c   : > { %14648 = vrot.lane.b32.xlu0 %v12974_v56, %s16390_s26  ;;  %v13088_v56 = vcombine.low %v22076_v4, %v22079_v36 }
 0x65d   : > { %14842 = vrot.lane.b32.xlu1 %v14197_v5, %s22945_s15  ;;  %v22071_v16 = vpop.f32.mrf.mxu1  ;;  %v22083_v13 = vpop.f32.mrf.mxu0  ;;  %v13087_v5 = vrot.slane %v13073_v41, %v16779_v52 }
 0x65e   : > { %v22043_v1 = vpop.permute.xlu1 %14514  ;;  %v14773_v21 = vpop.permute.xlu0 %14772 }
 0x660   : > { %14680 = vrot.lane.b32.xlu0 %v12975_v33, %s16391_s24  ;;  %v23451_v33 = vcombine.low %v21344_v58, %v21338_v6 }
 0x661   : > { %14874 = vrot.lane.b32.xlu1 %v14198_v55, %s16390_s26  ;;  %v13105_v55 = vcombine.high %v21985_v37, %v21969_v7  ;;  %v14217_v7 = vcombine.high %v22007_v3, %v22034_v22  ;;  %v13176_v3 = vcombine.low %v22124_v49, %v22127_v61 }
 0x662   : > { %v14547_v34 = vpop.permute.xlu1 %14546  ;;  %v14921_v41 = vsel %vm1430_vm2, %v23451_v33, %v22030_v32  ;;  %v14805_v28 = vpop.permute.xlu0 %14804  ;;  %v14265_v32 = vcombine.high %v22087_v10, %v14224_v62 }
 0x663   : > { %v14929_v6 = vsel %vm1432_vm3, %v14921_v41, %v22043_v1 }
 0x664   : > { %v16164_v24 = vpop.f32.mrf.mxu1  ;;  %v14937_v63 = vsel %vm1434_vm4, %v14929_v6, %v14547_v34 }
 0x665   : > { %v14232_v19 = vcombine.low %v22048_v46, %v16164_v24  ;;  %v16171_v43 = vpop.f32.mrf.mxu0  ;;  %14906 = vrot.lane.b32.xlu1 %v14199_v11, %s16391_s24  ;;  %v14233_v11 = vcombine.high %v22048_v46, %v16164_v24  ;;  %v22151_v46 = vrot.slane %v14264_v15, %v16779_v52  ;;  %v13106_v24 = vcombine.low %v22103_v53, %v13087_v5 }
 0x666   : > { %v14579_v23 = vpop.permute.xlu1 %14578  ;;  %v14248_v51 = vcombine.low %v22057_v2, %v16171_v43  ;;  %v22106_v14 = vpop.f32.mrf.mxu1 }
 0x667   : > { %v14240_v30 = vrot.slane %v14232_v19, %v16771_v8  ;;  %v13144_v0 = vcombine.low %v22071_v16, %v22106_v14  ;;  %v22114_v18 = vpop.f32.mrf.mxu0  ;;  %v14945_v1 = vsel %vm457_vm0, %v14937_v63, %v14579_v23  ;;  %v22164_v10 = vrot.slane %v14233_v11, %v16771_v8 }
 0x668   : > { %v14256_v27 = vrot.slane %v14248_v51, %v16771_v8  ;;  %v13160_v54 = vcombine.low %v22083_v13, %v22114_v18  ;;  %v14249_v51 = vcombine.high %v22057_v2, %v16171_v43  ;;  %v14837_v43 = vpop.permute.xlu0 %14836  ;;  %v13107_v11 = vcombine.high %v22103_v53, %v13087_v5 }
 0x669   : > { %v22135_v19 = vrot.slane %v13144_v0, %v16771_v8  ;;  %14490 = vrot.lane.b32.xlu1 %v13105_v55, %s22950_s13  ;;  %v13096_v0 = vrot.slane %v13088_v56, %v16779_v52  ;;  %v22186_v56 = vrot.slane %v13176_v3, %v16779_v52 }
 0x66a   : > { %v14611_v47 = vpop.permute.xlu1 %14610  ;;  %v14296_v50 = vcombine.low %v14240_v30, %v14256_v27  ;;  %v14297_v48 = vcombine.high %v14240_v30, %v14256_v27  ;;  %v22146_v58 = vrot.slane %v13160_v54, %v16771_v8  ;;  %v22167_v62 = vrot.slane %v14249_v51, %v16771_v8 }
 0x66b   : > { %v13056_v30 = vcombine.low %v22097_v17, %v22100_v35  ;;  %v14953_v15 = vsel %vm1437_vm5, %v14945_v1, %v14611_v47  ;;  %v14215_v27 = vrot.slane %v14201_v40, %v16771_v8  ;;  %v14279_v54 = vrot.slane %v14265_v32, %v16779_v52 }
 0x66c   : > { %v22154_v2 = vrot.slane %v14296_v50, %v16779_v52  ;;  %v13208_v22 = vcombine.low %v22135_v19, %v22146_v58  ;;  %v14311_v50 = vrot.slane %v14297_v48, %v16779_v52  ;;  %v14231_v48 = vrot.slane %v14217_v7, %v16771_v8  ;;  %v14869_v32 = vpop.permute.xlu0 %14868 }
 0x66d   : > { %14522 = vrot.lane.b32.xlu1 %v13106_v24, %s22947_s29  ;;  %v23452_v47 = vcombine.low %v21460_v45, %v21465_v39  ;;  %v14312_v51 = vcombine.low %v22164_v10, %v22167_v62  ;;  %v13064_v63 = vrot.slane %v13056_v30, %v16779_v52 }
 0x66e   : > { %v14643_v60 = vpop.permute.xlu1 %14642  ;;  %v14329_v34 = vcombine.high %v22151_v46, %v22154_v2  ;;  %v22176_v23 = vrot.slane %v13208_v22, %v16779_v52  ;;  %v14330_v6 = vcombine.low %v14279_v54, %v14311_v50  ;;  %v14331_v1 = vcombine.high %v14279_v54, %v14311_v50  ;;  %v22216_v30 = vpop.f32.mrf.mxu1 }
 0x66f   : > { %v14961_v55 = vsel %vm1439_vm6, %v14953_v15, %v14643_v60  ;;  %v14978_v41 = vsel %vm1430_vm2, %v23452_v47, %v22050_v9  ;;  %v14280_v9 = vcombine.low %v14215_v27, %v14231_v48  ;;  %v14320_v3 = vrot.slane %v14312_v51, %v16779_v52 }
 0x670   : > { %14716 = vrot.lane.b32.xlu0 %v14329_v34, %s22950_s13  ;;  %v14986_v40 = vsel %vm1432_vm3, %v14978_v41, %v22073_v57  ;;  %v13089_v57 = vcombine.high %v22076_v4, %v22079_v36  ;;  %v14901_v24 = vpop.permute.xlu0 %14900  ;;  %v13057_v34 = vcombine.high %v22097_v17, %v22100_v35  ;;  %v22221_v36 = vpop.f32.mrf.mxu0  ;;  %v13109_v50 = vcombine.high %v13064_v63, %v13096_v0 }
 0x671   : > { %v14994_v60 = vsel %vm1434_vm4, %v14986_v40, %v14773_v21  ;;  %14554 = vrot.lane.b32.xlu1 %v13107_v11, %s22949_s30  ;;  %v13108_v21 = vcombine.low %v13064_v63, %v13096_v0  ;;  %v14288_v4 = vrot.slane %v14280_v9, %v16779_v52  ;;  %v14313_v15 = vcombine.high %v22164_v10, %v22167_v62 }
 0x672   : > { %v14675_v33 = vpop.permute.xlu1 %14674  ;;  %v15002_v53 = vsel %vm457_vm0, %v14994_v60, %v14805_v28  ;;  %v13071_v54 = vrot.slane %v13057_v34, %v16779_v52  ;;  %v13145_v47 = vcombine.high %v22071_v16, %v22106_v14  ;;  %v13161_v41 = vcombine.high %v22083_v13, %v22114_v18  ;;  %v22238_v0 = vpop.f32.mrf.mxu0 }
 0x673   : > { %v14969_v7 = vsel %vm1441_vm7, %v14961_v55, %v14675_v33  ;;  %v15010_v5 = vsel %vm1437_vm5, %v15002_v53, %v14837_v43  ;;  %v13103_v43 = vrot.slane %v13089_v57, %v16779_v52  ;;  %v14332_v17 = vcombine.low %v14288_v4, %v14320_v3  ;;  %v22231_v55 = vpop.f32.mrf.mxu1 }
 0x674   : > { %15034 = vst [vmem:[%s21813_s19 + $0x10] sm:$0xff] %v14969_v7  ;;  %14748 = vrot.lane.b32.xlu0 %v14330_v6, %s22947_s29  ;;  %v15018_v22 = vsel %vm1439_vm6, %v15010_v5, %v14869_v32  ;;  %v22228_v35 = vpop.permute.xlu0 %14484  ;;  %v14281_v33 = vcombine.high %v14215_v27, %v14231_v48  ;;  %v13113_v11 = vcombine.high %v22018_v26, %v22040_v42 }
 0x675   : > { %14586 = vrot.lane.b32.xlu1 %v13108_v21, %s22946_s25  ;;  %v15026_v28 = vsel %vm1441_vm7, %v15018_v22, %v14901_v24  ;;  %v13110_v62 = vcombine.low %v13071_v54, %v13103_v43  ;;  %v13129_v7 = vcombine.high %v22022_v38, %v22046_v12  ;;  %v22248_v27 = vrot.slane %v14313_v15, %v16779_v52 }
 0x676   : > { %15037 = vst [vmem:[%s21813_s19 + $0x28] sm:$0xff] %v15026_v28  ;;  %v14333_v14 = vcombine.high %v14288_v4, %v14320_v3  ;;  %v22254_v18 = vrot.slane %v14281_v33, %v16779_v52  ;;  %v22257_v48 = vrot.slane %v13145_v47, %v16771_v8  ;;  %v22260_v26 = vrot.slane %v13161_v41, %v16771_v8 }
 0x677   : > { %v22241_v10 = vpop.f32.mrf.mxu1  ;;  %v13111_v12 = vcombine.high %v13071_v54, %v13103_v43  ;;  %v22268_v51 = vrot.slane %v13113_v11, %v16771_v8  ;;  %v22271_v40 = vrot.slane %v13129_v7, %v16771_v8  ;;  %v13209_v6 = vcombine.high %v22135_v19, %v22146_v58 }
 0x678   : > { %14780 = vrot.lane.b32.xlu0 %v14331_v1, %s22949_s30  ;;  %v22250_v16 = vpop.f32.mrf.mxu0  ;;  %v14517_v13 = vpop.permute.xlu0 %14516  ;;  %v14334_v63 = vcombine.low %v22254_v18, %v22248_v27  ;;  %v13177_v53 = vcombine.high %v22124_v49, %v22127_v61  ;;  %v13224_v57 = vcombine.low %v22257_v48, %v22260_v26  ;;  %v14336_v19 = vcombine.low %v22216_v30, %v22241_v10 }
 0x679   : > { %14618 = vrot.lane.b32.xlu1 %v13109_v50, %s22945_s15  ;;  %v22263_v38 = vpop.f32.mrf.mxu1  ;;  %v14352_v58 = vcombine.low %v22221_v36, %v22250_v16  ;;  %v13192_v3 = vcombine.low %v22268_v51, %v22271_v40  ;;  %v13223_v49 = vrot.slane %v13209_v6, %v16779_v52  ;;  %v13241_v61 = vcombine.high %v22186_v56, %v22176_v23 }
 0x67a   : > { %v22265_v42 = vpop.permute.xlu1 %14710  ;;  %v22275_v32 = vpop.f32.mrf.mxu0  ;;  %v13191_v24 = vrot.slane %v13177_v53, %v16779_v52  ;;  %v22304_v34 = vrot.slane %v13224_v57, %v16779_v52  ;;  %v13248_v28 = vcombine.low %v22231_v55, %v22263_v38  ;;  %v14344_v43 = vrot.slane %v14336_v19, %v16771_v8 }
 0x67b   : > { %v14360_v50 = vrot.slane %v14352_v58, %v16771_v8  ;;  %v22316_v54 = vrot.slane %v13192_v3, %v16779_v52  ;;  %v13264_v33 = vcombine.low %v22238_v0, %v22275_v32  ;;  %v13225_v7 = vcombine.high %v22257_v48, %v22260_v26 }
 0x67c   : > { %14812 = vrot.lane.b32.xlu0 %v14332_v17, %s22946_s25  ;;  %v14549_v60 = vpop.permute.xlu0 %14548  ;;  %v13243_v6 = vcombine.high %v13191_v24, %v13223_v49  ;;  %v23453_v58 = vcombine.low %v21485_v59, %v21480_v20 }
 0x67d   : > { %14650 = vrot.lane.b32.xlu1 %v13110_v62, %s16390_s26  ;;  %v13242_v62 = vcombine.low %v13191_v24, %v13223_v49  ;;  %v13244_v48 = vcombine.low %v22316_v54, %v22304_v34  ;;  %v14400_v26 = vcombine.low %v14344_v43, %v14360_v50 }
 0x67e   : > { %v22293_v21 = vpop.permute.xlu1 %14742  ;;  %v14922_v3 = vsel %vm1430_vm2, %v23453_v58, %v22228_v35  ;;  %v14337_v58 = vcombine.high %v22216_v30, %v22241_v10 }
 0x680   : > { %14844 = vrot.lane.b32.xlu0 %v14333_v14, %s22945_s15  ;;  %v14581_v22 = vpop.permute.xlu0 %14580 }
 0x681   : > { %14682 = vrot.lane.b32.xlu1 %v13111_v12, %s16391_s24 }
 0x682   : > { %v22279_v9 = vpop.f32.mrf.mxu1  ;;  %v22313_v17 = vpop.permute.xlu1 %14774 }
 0x683   : > { %v22286_v5 = vpop.f32.mrf.mxu0 }
 0x684   : > { %14876 = vrot.lane.b32.xlu0 %v14334_v63, %s16390_s26  ;;  %v22300_v1 = vpop.f32.mrf.mxu1  ;;  %v14613_v11 = vpop.permute.xlu0 %14612  ;;  %v22327_v63 = vrot.slane %v13248_v28, %v16771_v8  ;;  %v22346_v28 = vrot.slane %v13264_v33, %v16771_v8  ;;  %v14353_v33 = vcombine.high %v22221_v36, %v22250_v16 }
 0x685   : > { %v22308_v4 = vpop.f32.mrf.mxu0 }
 0x686   : > { %v14807_v24 = vpop.permute.xlu1 %14806  ;;  %v13312_v36 = vcombine.low %v22327_v63, %v22346_v28 }
 0x688   : > { %14492 = vrot.lane.b32.xlu0 %v13241_v61, %s22950_s13  ;;  %v14645_v39 = vpop.permute.xlu0 %14644 }
 0x68a   : > { %v14839_v10 = vpop.permute.xlu1 %14838 }
 0x68b   : > { %v16220_v15 = vpop.f32.mrf.mxu1 }
 0x68c   : > { %v14368_v47 = vcombine.low %v22279_v9, %v16220_v15  ;;  %v16227_v41 = vpop.f32.mrf.mxu0  ;;  %14524 = vrot.lane.b32.xlu0 %v13242_v62, %s22947_s29  ;;  %v14369_v62 = vcombine.high %v22279_v9, %v16220_v15  ;;  %v14401_v15 = vcombine.high %v14344_v43, %v14360_v50  ;;  %v14677_v50 = vpop.permute.xlu0 %14676 }
 0x68d   : > { %v14384_v14 = vcombine.low %v22286_v5, %v16227_v41  ;;  %v22324_v12 = vpop.f32.mrf.mxu1  ;;  %v14385_v59 = vcombine.high %v22286_v5, %v16227_v41 }
 0x68e   : > { %v14376_v53 = vrot.slane %v14368_v47, %v16771_v8  ;;  %v13280_v57 = vcombine.low %v22300_v1, %v22324_v12  ;;  %v22332_v19 = vpop.f32.mrf.mxu0  ;;  %v14930_v47 = vsel %vm1432_vm3, %v14922_v3, %v14517_v13  ;;  %v14383_v16 = vrot.slane %v14369_v62, %v16771_v8 }
 0x68f   : > { %v14392_v49 = vrot.slane %v14384_v14, %v16771_v8  ;;  %v13296_v61 = vcombine.low %v22308_v4, %v22332_v19  ;;  %v14938_v20 = vsel %vm1434_vm4, %v14930_v47, %v14549_v60  ;;  %v22365_v60 = vrot.slane %v14400_v26, %v16779_v52 }
 0x690   : > { %v22351_v45 = vrot.slane %v13280_v57, %v16771_v8  ;;  %v14946_v9 = vsel %vm457_vm0, %v14938_v20, %v14581_v22  ;;  %14556 = vrot.lane.b32.xlu0 %v13243_v6, %s22949_s30  ;;  %v14399_v41 = vrot.slane %v14385_v59, %v16771_v8  ;;  %v13193_v57 = vcombine.high %v22268_v51, %v22271_v40 }
 0x691   : > { %v14432_v35 = vcombine.low %v14376_v53, %v14392_v49  ;;  %v14433_v14 = vcombine.high %v14376_v53, %v14392_v49  ;;  %v22360_v13 = vrot.slane %v13296_v61, %v16771_v8  ;;  %v14954_v30 = vsel %vm1437_vm5, %v14946_v9, %v14613_v11 }
 0x692   : > { %v14962_v43 = vsel %vm1439_vm6, %v14954_v30, %v14645_v39  ;;  %v23454_v26 = vcombine.low %v21600_v25, %v21605_v44  ;;  %v14351_v49 = vrot.slane %v14337_v58, %v16771_v8  ;;  %v14367_v61 = vrot.slane %v14353_v33, %v16771_v8  ;;  %v14871_v25 = vpop.permute.xlu1 %14870 }
 0x693   : > { %v22368_v5 = vrot.slane %v14432_v35, %v16779_v52  ;;  %v13344_v22 = vcombine.low %v22351_v45, %v22360_v13  ;;  %v14447_v6 = vrot.slane %v14433_v14, %v16779_v52  ;;  %v14970_v11 = vsel %vm1441_vm7, %v14962_v43, %v14677_v50 }
 0x694   : > { %v14979_v3 = vsel %vm1430_vm2, %v23454_v26, %v22265_v42  ;;  %14588 = vrot.lane.b32.xlu0 %v13244_v48, %s22946_s25  ;;  %15036 = vst [vmem:[%s21813_s19 + $0x20] sm:$0xff] %v14970_v11  ;;  %v14415_v47 = vrot.slane %v14401_v15, %v16779_v52  ;;  %v13239_v44 = vrot.slane %v13225_v7, %v16779_v52 }
 0x695   : > { %v14465_v53 = vcombine.high %v22365_v60, %v22368_v5  ;;  %v22390_v39 = vrot.slane %v13344_v22, %v16779_v52  ;;  %v14987_v51 = vsel %vm1432_vm3, %v14979_v3, %v22293_v21  ;;  %v22402_v42 = vrot.slane %v13312_v36, %v16779_v52 }
 0x696   : > { %v14995_v40 = vsel %vm1434_vm4, %v14987_v51, %v22313_v17  ;;  %v13245_v48 = vcombine.high %v22316_v54, %v22304_v34  ;;  %v14448_v62 = vcombine.low %v14383_v16, %v14399_v41  ;;  %v14466_v59 = vcombine.low %v14415_v47, %v14447_v6  ;;  %v14903_v54 = vpop.permute.xlu1 %14902 }
 0x697   : > { %14718 = vrot.lane.b32.xlu1 %v14465_v53, %s22950_s13  ;;  %v15003_v20 = vsel %vm457_vm0, %v14995_v40, %v14807_v24  ;;  %v13207_v21 = vrot.slane %v13193_v57, %v16779_v52  ;;  %v14464_v7 = vcombine.low %v22365_v60, %v22368_v5  ;;  %v13376_v17 = vcombine.low %v22402_v42, %v22390_v39  ;;  %v23456_v40 = vld [vmem:[#allocation74_spill] sm:$0xff] }
 0x698   : > { %v15011_v35 = vsel %vm1437_vm5, %v15003_v20, %v14839_v10  ;;  %14620 = vrot.lane.b32.xlu0 %v13245_v48, %s22945_s15  ;;  %v14416_v14 = vcombine.low %v14351_v49, %v14367_v61  ;;  %v14456_v33 = vrot.slane %v14448_v62, %v16779_v52  ;;  %v14467_v9 = vcombine.high %v14415_v47, %v14447_v6 }
 0x699   : > { %v15019_v34 = vsel %vm1439_vm6, %v15011_v35, %v14871_v25  ;;  %v13246_v58 = vcombine.low %v13207_v21, %v13239_v44  ;;  %v13247_v10 = vcombine.high %v13207_v21, %v13239_v44  ;;  %v14449_v36 = vcombine.high %v14383_v16, %v14399_v41  ;;  %v23455_v44 = vld [vmem:[#allocation96_spill] sm:$0xff] }
 0x69a   : > { %v15027_v24 = vsel %vm1441_vm7, %v15019_v34, %v14903_v54  ;;  %v14424_v15 = vrot.slane %v14416_v14, %v16779_v52  ;;  %v14487_v30 = vpop.permute.xlu1 %14486  ;;  %v14417_v43 = vcombine.high %v14351_v49, %v14367_v61  ;;  %v14335_v6 = vcombine.high %v22254_v18, %v22248_v27 }
 0x69b   : > { %14750 = vrot.lane.b32.xlu1 %v14466_v59, %s22947_s29  ;;  %15039 = vst [vmem:[%s21813_s19 + $0x38] sm:$0xff] %v15027_v24  ;;  %v14713_v53 = vpop.permute.xlu0 %14712  ;;  %v22429_v11 = vrot.slane %v14449_v36, %v16779_v52  ;;  %v13281_v3 = vcombine.high %v22300_v1, %v22324_v12  ;;  %v13297_v49 = vcombine.high %v22308_v4, %v22332_v19 }
 0x69c   : > { %14652 = vrot.lane.b32.xlu0 %v13246_v58, %s16390_s26  ;;  %v14468_v22 = vcombine.low %v14424_v15, %v14456_v33  ;;  %v14469_v57 = vcombine.high %v14424_v15, %v14456_v33  ;;  %v22433_v26 = vrot.slane %v14417_v43, %v16779_v52  ;;  %v13345_v27 = vcombine.high %v22351_v45, %v22360_v13  ;;  %v23458_v33 = vld [vmem:[#allocation20_spill] sm:$0xff] }
 0x69d   : > { %v13249_v61 = vcombine.high %v22231_v55, %v22263_v38  ;;  %v13265_v47 = vcombine.high %v22238_v0, %v22275_v32  ;;  %v13313_v51 = vcombine.high %v22327_v63, %v22346_v28  ;;  %v13295_v4 = vrot.slane %v13281_v3, %v16771_v8 }
 0x69e   : > { %v14519_v50 = vpop.permute.xlu1 %14518  ;;  %v14470_v18 = vcombine.low %v22433_v26, %v22429_v11  ;;  %v13311_v45 = vrot.slane %v13297_v49, %v16771_v8  ;;  %v13359_v19 = vrot.slane %v13345_v27, %v16779_v52  ;;  %v13377_v13 = vcombine.high %v22402_v42, %v22390_v39 }
 0x69f   : > { %14782 = vrot.lane.b32.xlu1 %v14467_v9, %s22949_s30  ;;  %v14745_v41 = vpop.permute.xlu0 %14744  ;;  %v13263_v55 = vrot.slane %v13249_v61, %v16771_v8  ;;  %v13279_v0 = vrot.slane %v13265_v47, %v16771_v8  ;;  %v13327_v38 = vrot.slane %v13313_v51, %v16779_v52  ;;  %v23457_v48 = vcombine.low %v23455_v44, %v23456_v40  ;;  %v23459_v9 = vld [vmem:[#allocation98_spill] sm:$0xff] }
 0x6a0   : > { %14684 = vrot.lane.b32.xlu0 %v13247_v10, %s16391_s24  ;;  %v13360_v28 = vcombine.low %v13295_v4, %v13311_v45  ;;  %v23460_v15 = vcombine.low %v23458_v33, %v23459_v9 }
 0x6a1   : > { %v13378_v25 = vcombine.low %v13327_v38, %v13359_v19  ;;  %v14923_v62 = vsel %vm1430_vm2, %v23457_v48, %v14487_v30  ;;  %v13328_v20 = vcombine.low %v13263_v55, %v13279_v0  ;;  %v13379_v54 = vcombine.high %v13327_v38, %v13359_v19 }
 0x6a2   : > { %v14551_v16 = vpop.permute.xlu1 %14550  ;;  %v14931_v59 = vsel %vm1432_vm3, %v14923_v62, %v14519_v50  ;;  %v13368_v14 = vrot.slane %v13360_v28, %v16779_v52  ;;  %v14980_v30 = vsel %vm1430_vm2, %v23460_v15, %v14713_v53  ;;  %v13329_v49 = vcombine.high %v13263_v55, %v13279_v0  ;;  %v23461_v28 = vld [vmem:[#allocation9_spill] sm:$0xff] }
 0x6a3   : > { %14814 = vrot.lane.b32.xlu1 %v14468_v22, %s22946_s25  ;;  %v14939_v8 = vsel %vm1434_vm4, %v14931_v59, %v14551_v16  ;;  %v13336_v58 = vrot.slane %v13328_v20, %v16779_v52  ;;  %v14988_v22 = vsel %vm1432_vm3, %v14980_v30, %v14745_v41  ;;  %v14471_v0 = vcombine.high %v22433_v26, %v22429_v11 }
 0x6a4   : > { %14908 = vrot.lane.b32.xlu0 %v14335_v6, %s16391_s24  ;;  %v13361_v6 = vcombine.high %v13295_v4, %v13311_v45  ;;  %v13343_v51 = vrot.slane %v13329_v49, %v16779_v52  ;;  %v23464_v11 = vcombine.low %v21941_v31, %v21945_v29 }
 0x6a5   : > { %v13380_v16 = vcombine.low %v13336_v58, %v13368_v14  ;;  %v13381_v47 = vcombine.high %v13336_v58, %v13368_v14 }
 0x6a6   : > { %v14583_v1 = vpop.permute.xlu1 %14582  ;;  %v14777_v12 = vpop.permute.xlu0 %14776  ;;  %v13375_v41 = vrot.slane %v13361_v6, %v16779_v52 }
 0x6a7   : > { %14846 = vrot.lane.b32.xlu1 %v14469_v57, %s22945_s15  ;;  %v14947_v34 = vsel %vm457_vm0, %v14939_v8, %v14583_v1  ;;  %v14996_v57 = vsel %vm1434_vm4, %v14988_v22, %v14777_v12 }
 0x6a8   : > { %v13382_v12 = vcombine.low %v13343_v51, %v13375_v41  ;;  %v13383_v19 = vcombine.high %v13343_v51, %v13375_v41 }
 0x6aa   : > { %v14615_v32 = vpop.permute.xlu1 %14614  ;;  %v14809_v63 = vpop.permute.xlu0 %14808 }
 0x6ab   : > { %14878 = vrot.lane.b32.xlu1 %v14470_v18, %s16390_s26  ;;  %v14955_v24 = vsel %vm1437_vm5, %v14947_v34, %v14615_v32  ;;  %v15004_v3 = vsel %vm457_vm0, %v14996_v57, %v14809_v63 }
 0x6ae   : > { %v14647_v21 = vpop.permute.xlu1 %14646  ;;  %v14841_v35 = vpop.permute.xlu0 %14840 }
 0x6af   : > { %14494 = vrot.lane.b32.xlu1 %v13377_v13, %s22950_s13  ;;  %v14963_v10 = vsel %vm1439_vm6, %v14955_v24, %v14647_v21  ;;  %v15012_v53 = vsel %vm1437_vm5, %v15004_v3, %v14841_v35  ;;  %v23465_v3 = vld [vmem:[#allocation75_spill] sm:$0xff] }
 0x6b0   : > { %v23466_v49 = vcombine.low %v21985_v37, %v23465_v3 }
 0x6b2   : > { %v14679_v36 = vpop.permute.xlu1 %14678  ;;  %v14873_v50 = vpop.permute.xlu0 %14872 }
 0x6b3   : > { %14526 = vrot.lane.b32.xlu1 %v13378_v25, %s22947_s29  ;;  %v14971_v43 = vsel %vm1441_vm7, %v14963_v10, %v14679_v36  ;;  %v15020_v27 = vsel %vm1439_vm6, %v15012_v53, %v14873_v50  ;;  %v23462_v25 = vld [vmem:[#allocation102_spill] sm:$0xff] }
 0x6b4   : > { %15038 = vst [vmem:[%s21813_s19 + $0x30] sm:$0xff] %v14971_v43  ;;  %v23463_v44 = vcombine.low %v23461_v28, %v23462_v25 }
 0x6b6   : > { %v14905_v18 = vpop.permute.xlu0 %14904 }
 0x6b7   : > { %14558 = vrot.lane.b32.xlu1 %v13379_v54, %s22949_s30  ;;  %v15028_v61 = vsel %vm1441_vm7, %v15020_v27, %v14905_v18 }
 0x6b8   : > { %15041 = vst [vmem:[%s21813_s19 + $0x48] sm:$0xff] %v15028_v61 }
 0x6ba   : > { %v14489_v1 = vpop.permute.xlu0 %14488 }
 0x6bb   : > { %14590 = vrot.lane.b32.xlu1 %v13380_v16, %s22946_s25  ;;  %v14924_v40 = vsel %vm1430_vm2, %v23463_v44, %v14489_v1 }
 0x6be   : > { %v14521_v45 = vpop.permute.xlu0 %14520 }
 0x6bf   : > { %14622 = vrot.lane.b32.xlu1 %v13381_v47, %s22945_s15  ;;  %v14715_v4 = vpop.permute.xlu1 %14714  ;;  %v14932_v62 = vsel %vm1432_vm3, %v14924_v40, %v14521_v45 }
 0x6c0   : > { %v14981_v26 = vsel %vm1430_vm2, %v23464_v11, %v14715_v4 }
 0x6c2   : > { %v14553_v55 = vpop.permute.xlu0 %14552 }
 0x6c3   : > { %14654 = vrot.lane.b32.xlu1 %v13382_v12, %s16390_s26  ;;  %v14747_v13 = vpop.permute.xlu1 %14746  ;;  %v14940_v59 = vsel %vm1434_vm4, %v14932_v62, %v14553_v55  ;;  %v23468_v62 = vcombine.low %v22151_v46, %v22154_v2  ;;  %s15411_s26 = sshll.u32 %s16475_s21, 11  ;;  %s22583_s21 = scalar_lea.sflag [#allocation3], %s377_s14 }
 0x6c4   : > { %v14989_v8 = vsel %vm1432_vm3, %v14981_v26, %v14747_v13  ;;  %s22574_s29 = scalar_lea.hbm %s22635_s11, %s15411_s26 }
 0x6c6   : > { %v14585_v52 = vpop.permute.xlu0 %14584 }
 0x6c7   : > { %14686 = vrot.lane.b32.xlu1 %v13383_v19, %s16391_s24  ;;  %v14779_v38 = vpop.permute.xlu1 %14778  ;;  %v14948_v21 = vsel %vm457_vm0, %v14940_v59, %v14585_v52 }
 0x6c8   : > { %v14997_v34 = vsel %vm1434_vm4, %v14989_v8, %v14779_v38 }
 0x6ca   : > { %v14617_v63 = vpop.permute.xlu0 %14616 }
 0x6cb   : > { %14910 = vrot.lane.b32.xlu1 %v14471_v0, %s16391_s24  ;;  %v14811_v32 = vpop.permute.xlu1 %14810  ;;  %v14956_v35 = vsel %vm1437_vm5, %v14948_v21, %v14617_v63  ;;  %s15062_s24 = sshll.u32 %s21813_s19, 4  ;;  %s22577_s24 = int_to_ptr.vmem [resolvable:$true] %s15062_s24 }
 0x6cc   : > { %v15005_v58 = vsel %vm457_vm0, %v14997_v34, %v14811_v32  ;;  %v23467_v32 = vcombine.low %v22186_v56, %v22176_v23  ;;  %s16317_s30 = scalar_lea.vmem %s22577_s24, 2048  ;;  %p16324_p0 = scmp.lt.s32.totalorder %s22577_s24, %s16322_s16 }
 0x6cd   : > { %p16318_p11 = scmp.ne.s32.totalorder %s22577_s24, %s16317_s30  ;;  %p16325_p1 = scmp.lt.s32.totalorder %s16323_s22, %s16317_s30 }
 0x6ce   : > { %v14649_v20 = vpop.permute.xlu0 %14648 }
 0x6cf   : > { %v14843_v48 = vpop.permute.xlu1 %14842  ;;  %v14964_v54 = vsel %vm1439_vm6, %v14956_v35, %v14649_v20  ;;  %p16319_p12 = pnand %p16318_p11, %p16492_p5  ;;  %p16326_p2 = por %p16325_p1, %p16324_p0 }
 0x6d0   : > { %v15013_v31 = vsel %vm1437_vm5, %v15005_v58, %v14843_v48 }
 0x6d1   : > { %p16320_p13 = pneg %p16319_p12 }
 0x6d2   : > { %v14681_v24 = vpop.permute.xlu0 %14680 }
 0x6d3   : > { %v14875_v14 = vpop.permute.xlu1 %14874  ;;  %v14972_v33 = vsel %vm1441_vm7, %v14964_v54, %v14681_v24  ;;  %p16327_p3 = pnand %p16326_p2, %p16320_p13 }
 0x6d4   : > { %15040 = vst [vmem:[%s21813_s19 + $0x40] sm:$0xff] %v14972_v33  ;;  %v15021_v29 = vsel %vm1439_vm6, %v15013_v31, %v14875_v14 }
 0x6d7   : > { %v14907_v9 = vpop.permute.xlu1 %14906 }
 0x6d8   : > { %v15029_v15 = vsel %vm1441_vm7, %v15021_v29, %v14907_v9 }
 0x6d9   : > { %15043 = vst [vmem:[%s21813_s19 + $0x58] sm:$0xff] %v15029_v15 }
 0x6db   : > { %v14491_v30 = vpop.permute.xlu1 %14490 }
 0x6dc   : > { %v14925_v53 = vsel %vm1430_vm2, %v23466_v49, %v14491_v30 }
 0x6df   : > { %v14523_v10 = vpop.permute.xlu1 %14522 }
 0x6e0   : > { %v14933_v27 = vsel %vm1432_vm3, %v14925_v53, %v14523_v10 }
 0x6e2   : > { %v14717_v36 = vpop.permute.xlu0 %14716 }
 0x6e3   : > { %v14555_v22 = vpop.permute.xlu1 %14554  ;;  %v14982_v20 = vsel %vm1430_vm2, %v23468_v62, %v14717_v36 }
 0x6e4   : > { %v14941_v41 = vsel %vm1434_vm4, %v14933_v27, %v14555_v22 }
 0x6e6   : > { %v14749_v43 = vpop.permute.xlu0 %14748 }
 0x6e7   : > { %v14587_v50 = vpop.permute.xlu1 %14586  ;;  %v14990_v23 = vsel %vm1432_vm3, %v14982_v20, %v14749_v43 }
 0x6e8   : > { %v14949_v47 = vsel %vm457_vm0, %v14941_v41, %v14587_v50 }
 0x6ea   : > { %v14781_v6 = vpop.permute.xlu0 %14780 }
 0x6eb   : > { %v14619_v57 = vpop.permute.xlu1 %14618  ;;  %v14998_v26 = vsel %vm1434_vm4, %v14990_v23, %v14781_v6 }
 0x6ec   : > { %v14957_v51 = vsel %vm1437_vm5, %v14949_v47, %v14619_v57 }
 0x6ee   : > { %v14813_v16 = vpop.permute.xlu0 %14812 }
 0x6ef   : > { %v14651_v18 = vpop.permute.xlu1 %14650  ;;  %v15006_v35 = vsel %vm457_vm0, %v14998_v26, %v14813_v16 }
 0x6f0   : > { %v14965_v1 = vsel %vm1439_vm6, %v14957_v51, %v14651_v18 }
 0x6f2   : > { %v14845_v61 = vpop.permute.xlu0 %14844 }
 0x6f3   : > { %v14683_v12 = vpop.permute.xlu1 %14682  ;;  %v15014_v46 = vsel %vm1437_vm5, %v15006_v35, %v14845_v61 }
 0x6f4   : > { %v14973_v4 = vsel %vm1441_vm7, %v14965_v1, %v14683_v12 }
 0x6f5   : > { %15042 = vst [vmem:[%s21813_s19 + $0x50] sm:$0xff] %v14973_v4 }
 0x6f6   : > { %v14877_v45 = vpop.permute.xlu0 %14876 }
 0x6f7   : > { %v15022_v2 = vsel %vm1439_vm6, %v15014_v46, %v14877_v45 }
 0x6fa   : > { %v14493_v37 = vpop.permute.xlu0 %14492 }
 0x6fb   : > { %v14926_v63 = vsel %vm1430_vm2, %v23467_v32, %v14493_v37 }
 0x6fe   : > { %v14525_v19 = vpop.permute.xlu0 %14524 }
 0x6ff   : > { %v14934_v28 = vsel %vm1432_vm3, %v14926_v63, %v14525_v19 }
 0x702   : > { %v14557_v13 = vpop.permute.xlu0 %14556 }
 0x703   : > { %v14942_v44 = vsel %vm1434_vm4, %v14934_v28, %v14557_v13 }
 0x706   : > { %v14589_v55 = vpop.permute.xlu0 %14588 }
 0x707   : > { %v14950_v48 = vsel %vm457_vm0, %v14942_v44, %v14589_v55 }
 0x709   : > { %v14719_v0 = vpop.permute.xlu1 %14718 }
 0x70a   : > { %v14621_v38 = vpop.permute.xlu0 %14620  ;;  %v14983_v43 = vsel %vm1430_vm2, %v14464_v7, %v14719_v0 }
 0x70b   : > { %v14958_v59 = vsel %vm1437_vm5, %v14950_v48, %v14621_v38 }
 0x70d   : > { %v14751_v52 = vpop.permute.xlu1 %14750 }
 0x70e   : > { %v14653_v25 = vpop.permute.xlu0 %14652  ;;  %v14991_v39 = vsel %vm1432_vm3, %v14983_v43, %v14751_v52 }
 0x70f   : > { %v14966_v56 = vsel %vm1439_vm6, %v14958_v59, %v14653_v25 }
 0x711   : > { %v14783_v40 = vpop.permute.xlu1 %14782 }
 0x712   : > { %v14685_v11 = vpop.permute.xlu0 %14684  ;;  %v14999_v6 = vsel %vm1434_vm4, %v14991_v39, %v14783_v40 }
 0x713   : > { %v14974_v8 = vsel %vm1441_vm7, %v14966_v56, %v14685_v11 }
 0x714   : > { %15044 = vst [vmem:[%s21813_s19 + $0x60] sm:$0xff] %v14974_v8 }
 0x715   : > { %v14815_v21 = vpop.permute.xlu1 %14814 }
 0x716   : > { %v14909_v14 = vpop.permute.xlu0 %14908  ;;  %v15007_v60 = vsel %vm457_vm0, %v14999_v6, %v14815_v21 }
 0x717   : > { %v15030_v54 = vsel %vm1441_vm7, %v15022_v2, %v14909_v14 }
 0x718   : > { %15045 = vst [vmem:[%s21813_s19 + $0x68] sm:$0xff] %v15030_v54 }
 0x719   : > { %v14847_v34 = vpop.permute.xlu1 %14846 }
 0x71a   : > { %v15015_v5 = vsel %vm1437_vm5, %v15007_v60, %v14847_v34 }
 0x71d   : > { %v14879_v24 = vpop.permute.xlu1 %14878 }
 0x71e   : > { %v15023_v7 = vsel %vm1439_vm6, %v15015_v5, %v14879_v24 }
 0x721   : > { %v14495_v58 = vpop.permute.xlu1 %14494 }
 0x722   : > { %v14927_v15 = vsel %vm1430_vm2, %v13376_v17, %v14495_v58 }
 0x725   : > { %v14527_v33 = vpop.permute.xlu1 %14526 }
 0x726   : > { %v14935_v30 = vsel %vm1432_vm3, %v14927_v15, %v14527_v33 }
 0x729   : > { %v14559_v31 = vpop.permute.xlu1 %14558 }
 0x72a   : > { %v14943_v36 = vsel %vm1434_vm4, %v14935_v30, %v14559_v31 }
 0x72d   : > { %v14591_v29 = vpop.permute.xlu1 %14590 }
 0x72e   : > { %v14951_v22 = vsel %vm457_vm0, %v14943_v36, %v14591_v29 }
 0x731   : > { %v14623_v9 = vpop.permute.xlu1 %14622 }
 0x732   : > { %v14959_v50 = vsel %vm1437_vm5, %v14951_v22, %v14623_v9 }
 0x735   : > { %v14655_v10 = vpop.permute.xlu1 %14654 }
 0x736   : > { %v14967_v42 = vsel %vm1439_vm6, %v14959_v50, %v14655_v10 }
 0x739   : > { %v14687_v17 = vpop.permute.xlu1 %14686 }
 0x73a   : > { %v14975_v57 = vsel %vm1441_vm7, %v14967_v42, %v14687_v17 }
 0x73b   : > { %15046 = vst [vmem:[%s21813_s19 + $0x70] sm:$0xff] %v14975_v57 }
 0x73d   : > { %v14911_v16 = vpop.permute.xlu1 %14910 }
 0x73e   : > { %v15031_v3 = vsel %vm1441_vm7, %v15023_v7, %v14911_v16 }
 0x73f   : > { %15047 = vst [vmem:[%s21813_s19 + $0x78] sm:$0xff] %v15031_v3 }
 0x740   : > { %16330 = shalt.err (!%p16327_p3)
}
 0x741   : > { %s16331_s14 = scalar_lea.hbm %s22574_s29, 2048  ;;  %s16335_s15 = scalar_lea.hbm %s22635_s11, 4096 }
 0x742   : > { %p16332_p4 = scmp.ne.s32.totalorder %s22574_s29, %s16331_s14  ;;  %p16336_p9 = scmp.lt.s32.totalorder %s22574_s29, %s22635_s11 }
 0x743   : > { %p16337_p10 = scmp.lt.s32.totalorder %s16335_s15, %s16331_s14 }
 0x744   : > { %p16333_p7 = pnand %p16332_p4, %p16492_p5 }
 0x745   : > { %p16338_p11 = por %p16337_p10, %p16336_p9 }
 0x746   : > { %p16334_p8 = pneg %p16333_p7 }
 0x748   : > { %p16339_p12 = pnand %p16338_p11, %p16334_p8 }
 0x74a   : > { %16342 = shalt.err (!%p16339_p12)
}
 0x74b   : > { %s16393_s30 = smov 256  }
 0x74c   : > { %16230 = dma.vmem_to_hbm [thread:$0]  (%p16492_p5), %s22577_s24, 2048, %s22574_s29, %s22583_s21, %s16393_s30, %s16393_s30, %s22950_s13  }
 0x74d PF: > { %p16236_p13 = scmp.ge.s32.totalorder %s16377_s20, 2  ;;  %s15077_s16 = sand.u32 1, %s16365_s17  }
 0x74e   : > { %s15078_s22 = scalar_lea.sflag [#allocation3], %s15077_s16 }
 0x74f   : > { %p16233_p0 = pnand %p16236_p13, %p16496_p6 }
 0x751   : > { %p16234_p1 = pneg %p16233_p0 }
 0x753   : > { %16360 = dma.done.wait (%p16234_p1), %s15078_s22, 2048  }
 0x754   : > { %16362 = vsyncadd (%p16234_p1), %s15078_s22, 4294965248  ;;  %s23469_s27 = sld [smem:[#allocation5_spill]]  ;;  %p21_p2 = scmp.ge.s32.totalorder %s16479_s23, 4  }
 0x755   : > { %s23470_s19 = sld [smem:[#allocation6_spill]]  ;;  %s23471_s17 = smov %s16369_s18 }
 0x756   : > { %s23473_s20 = smov %s16479_s23  ;;  %23 = sbr.rel (!%p21_p2) target bundleno = 3 (0x3), region = 99 }
 0x75a   : > { %s23472_s18 = smov %s23469_s27 }
 0x75b   :  { %15083 = vsyncpa [#allocation3], 1 }
 0x75c   :  { %15085 = vsyncpa [#allocation3 + $0x1], 1 }

</bundles_post_ra>
